<compile_context>
chip_gen: v7x
topology: tpu7x:2x2x1
jax: 0.10.0
libtpu: 0.0.40
codegen_flags: <defaults>
</compile_context>

<pallas_src>
from functools import partial

import numpy as np
import jax
import jax.numpy as jnp
from jax.experimental import pallas as pl
from jax.experimental.pallas import tpu as pltpu

EPS = 1e-5


# ----------------------------------------------------------------------------
# Static (numpy) construction of the 1-D upsample(+pad) operators.
# ----------------------------------------------------------------------------
def _lin_interp_matrix(n_in, scale=2):
    """[scale*n_in, n_in] 1-D linear interpolation matrix, align_corners=True."""
    n_out = n_in * scale
    M = np.zeros((n_out, n_in), dtype=np.float32)
    for i in range(n_out):
        if n_out == 1 or n_in == 1:
            src = 0.0
        else:
            src = i * (n_in - 1) / (n_out - 1)
        lo = int(np.floor(src))
        hi = min(lo + 1, n_in - 1)
        frac = src - lo
        M[i, lo] += 1.0 - frac
        M[i, hi] += frac
    return M


def _upsample_pad_matrix(n_in, n_target):
    """Fold 2x align_corners bilinear upsample + F.pad (pos=pad, neg=crop)."""
    up = _lin_interp_matrix(n_in, 2)             # [2*n_in, n_in]
    n_up = up.shape[0]
    d = n_target - n_up
    lo = d // 2                                  # matches (d//2, d - d//2)
    out = np.zeros((n_target, n_in), dtype=np.float32)
    for g in range(n_target):                    # handles negative pad (crop) too
        k = g - lo
        if 0 <= k < n_up:
            out[g, :] = up[k, :]
    return out


def _round_up(x, m):
    return ((x + m - 1) // m) * m


# ----------------------------------------------------------------------------
# Pallas kernel
# ----------------------------------------------------------------------------
def _upscaling_kernel(x1_ref, x2_ref, uwT_ref, uh_ref,
                      w1_ref, g1_ref, be1_ref,
                      w2_ref, g2_ref, be2_ref,
                      out_ref,
                      padC, padM,
                      *, N, H1, W1, C1p, C2p, H2, W2, Cm, Co):
    f32 = jnp.float32
    sdt = padC.dtype                       # scratch / matmul-operand dtype
    Cin = C2p + C1p
    NHW = N * H2 * W2

    # --- zero only the 1-pixel conv halo of the padded scratch buffers -------
    # (top/bottom rows cover the corners, so column strips only span 1:H2+1)
    def zero_halo(buf, C):
        zrow = jnp.zeros((N, 1, W2 + 2, C), sdt)
        buf[:, 0:1, :, :] = zrow
        buf[:, H2 + 1:H2 + 2, :, :] = zrow
        zcol = jnp.zeros((N, H2, 1, C), sdt)
        buf[:, 1:H2 + 1, 0:1, :] = zcol
        buf[:, 1:H2 + 1, W2 + 1:W2 + 2, :] = zcol

    zero_halo(padC, Cin)
    zero_halo(padM, Cm)

    # --- separable bilinear upsample (+ F.pad) of x1 --------------------------
    # W pass on the MXU: contract W1 against the fused (W1, W2) upsample+pad
    # matrix, batched over N*H1*C1p rows.
    x1 = x1_ref[...]                                        # (N, H1, C1p, W1) f32
    xw = jnp.dot(x1.reshape(N * H1 * C1p, W1), uwT_ref[...],
                 preferred_element_type=f32)                # (N*H1*C1p, W2)
    xw = jnp.swapaxes(xw.reshape(N, H1, C1p, W2), 2, 3)     # (N, H1, W2, C1p)

    # H pass on the MXU: one (H2,H1) x (H1, W2*C1p) matmul per batch sample,
    # written straight into the x1 channel range of the conv-1 padded scratch
    # (F.pad zero rows are baked into Uh).
    for n in range(N):
        r = jnp.dot(uh_ref[...], xw[n].reshape(H1, W2 * C1p),
                    preferred_element_type=f32)             # (H2, W2*C1p)
        padC[n:n + 1, 1:H2 + 1, 1:W2 + 1, C2p:] = (
            r.reshape(1, H2, W2, C1p).astype(sdt))

    # x2 goes straight into its channel range -> no in-kernel concat.
    padC[:, 1:H2 + 1, 1:W2 + 1, :C2p] = x2_ref[...].astype(sdt)

    # --- helpers --------------------------------------------------------------
    def conv3x3(buf, C, w_ref, Cout_p):
        # 9 per-tap matmuls accumulated in f32; no (NHW, 9*C) operand is built.
        acc = jnp.zeros((NHW, Cout_p), f32)
        t = 0
        for di in range(3):
            for dj in range(3):
                lhs = buf[:, di:di + H2, dj:dj + W2, :].reshape(NHW, C)
                acc = acc + jnp.dot(lhs, w_ref[t],
                                    preferred_element_type=f32)
                t += 1
        return acc

    def bn_relu(acc, g_ref, be_ref):
        # training-mode BatchNorm: biased batch statistics over N*H*W (f32).
        mean = jnp.mean(acc, axis=0, keepdims=True)
        centered = acc - mean
        var = jnp.mean(centered * centered, axis=0, keepdims=True)
        scale = jax.lax.rsqrt(var + EPS) * g_ref[...]       # gamma folded in
        return jnp.maximum(centered * scale + be_ref[...], 0.0)

    # --- Conv1 (3x3, pad=1) + BN + ReLU ---------------------------------------
    # (conv bias omitted on purpose: it cancels exactly under training-mode BN)
    acc1 = conv3x3(padC, Cin, w1_ref, Cm)                   # (NHW, Cm) f32
    y = bn_relu(acc1, g1_ref, be1_ref)
    padM[:, 1:H2 + 1, 1:W2 + 1, :] = y.reshape(N, H2, W2, Cm).astype(sdt)

    # --- Conv2 (3x3, pad=1) + BN + ReLU ---------------------------------------
    acc2 = conv3x3(padM, Cm, w2_ref, Co)                    # (NHW, Co) f32
    z = bn_relu(acc2, g2_ref, be2_ref)

    out_ref[...] = z.reshape(N, H2, W2, Co).astype(out_ref.dtype)


# ----------------------------------------------------------------------------
# Wrapper (NCHW in / NCHW out, like the PyTorch module)
# ----------------------------------------------------------------------------
def upscaling_forward(x1_nchw, x2_nchw, params, compute_dtype=jnp.float32):
    N, C1, H1, W1 = x1_nchw.shape
    _, C2, H2, W2 = x2_nchw.shape
    w1, b1, g1, be1, w2, b2, g2, be2 = params
    del b1, b2     # conv biases cancel exactly under training-mode BatchNorm
    Cmid = w1.shape[-1]
    Cout = w2.shape[-1]

    LANE, SUB = 128, 8
    C1p = _round_up(C1, SUB)          # sublane-friendly input-channel padding
    C2p = _round_up(C2, SUB)
    Cin_k = C2p + C1p
    # Lane-dense (128) padding only when the real channel count is large enough
    # to pay; otherwise sublane padding keeps conv2's K and the HBM writeback
    # from blowing up 16-32x at small channel counts.
    Cm = _round_up(Cmid, LANE) if Cmid >= 64 else _round_up(Cmid, SUB)
    Co = _round_up(Cout, LANE) if Cout >= 64 else _round_up(Cout, SUB)

    # ---- input layout plumbing (done here, in XLA, not in the kernel) -------
    x2k = jnp.transpose(x2_nchw, (0, 2, 3, 1)).astype(compute_dtype)   # NHWC
    x2k = jnp.pad(x2k, ((0, 0), (0, 0), (0, 0), (0, C2p - C2)))
    x1k = jnp.transpose(x1_nchw, (0, 2, 1, 3)).astype(jnp.float32)     # N,H,C,W
    x1k = jnp.pad(x1k, ((0, 0), (0, 0), (0, C1p - C1), (0, 0)))

    # ---- separable upsample(+pad) operators (static numpy) ------------------
    Uh = _upsample_pad_matrix(H1, H2)                 # (H2, H1)
    Uw = _upsample_pad_matrix(W1, W2)                 # (W2, W1)
    uhk = jnp.asarray(Uh, jnp.float32)
    uwT = jnp.asarray(Uw.T, jnp.float32)              # (W1, W2)

    # ---- padded, tap-major parameters ----------------------------------------
    # conv1 weight rows per tap: [x2 (C2), 0.., x1 (C1), 0..] (torch.cat order).
    # Padded rows/cols and padded gamma/beta MUST stay zero (see invariant).
    w1f = jnp.zeros((9, Cin_k, Cm), compute_dtype)
    w1f = w1f.at[:, :C2, :Cmid].set(w1[:, :C2, :].astype(compute_dtype))
    w1f = w1f.at[:, C2p:C2p + C1, :Cmid].set(w1[:, C2:, :].astype(compute_dtype))

    w2f = jnp.zeros((9, Cm, Co), compute_dtype)
    w2f = w2f.at[:, :Cmid, :Cout].set(w2.astype(compute_dtype))

    def pad_vec(v, C, Cp):
        return jnp.zeros((1, Cp), jnp.float32).at[:, :C].set(
            v.reshape(1, C).astype(jnp.float32))

    g1p, be1p = pad_vec(g1, Cmid, Cm), pad_vec(be1, Cmid, Cm)
    g2p, be2p = pad_vec(g2, Cout, Co), pad_vec(be2, Cout, Co)

    kernel = partial(_upscaling_kernel, N=N, H1=H1, W1=W1, C1p=C1p, C2p=C2p,
                     H2=H2, W2=W2, Cm=Cm, Co=Co)

    vmem = pl.BlockSpec(memory_space=pltpu.MemorySpace.VMEM)

    # ---- explicit VMEM budget, capped below the physical per-core capacity ---
    sbytes = int(np.dtype(compute_dtype).itemsize)
    NHW = N * H2 * W2
    est = (N * (H2 + 2) * (W2 + 2) * (Cin_k + Cm) * sbytes      # padded scratch
           + NHW * (Cm + Co) * 4                                # f32 accumulators
           + NHW * max(Cin_k, Cm) * sbytes                      # live tap slice
           + 9 * (Cin_k * Cm + Cm * Co) * sbytes                # weights
           + (N * H1 * C1p * W1) * 4 + NHW * C2p * sbytes       # inputs
           + NHW * Co * 4)                                      # output
    try:
        phys = int(pltpu.get_tpu_info().vmem_capacity_bytes)
    except Exception:
        phys = 64 * 2**20                                       # v7x floor
    cap = max(32 * 2**20, phys - 16 * 2**20)    # ~48 MiB on v7x, ~112 MiB v5e/v6e
    vmem_limit = int(min(cap, max(32 * 2**20, 4 * est)))

    out = pl.pallas_call(
        kernel,
        out_shape=jax.ShapeDtypeStruct((N, H2, W2, Co), jnp.float32),
        in_specs=[vmem] * 10,
        out_specs=vmem,
        scratch_shapes=[
            pltpu.VMEM((N, H2 + 2, W2 + 2, Cin_k), compute_dtype),  # conv1 input
            pltpu.VMEM((N, H2 + 2, W2 + 2, Cm), compute_dtype),     # conv2 input
        ],
        compiler_params=pltpu.CompilerParams(vmem_limit_bytes=vmem_limit),
    )(x1k, x2k, uwT, uhk, w1f, g1p, be1p, w2f, g2p, be2p)

    return jnp.transpose(out[..., :Cout], (0, 3, 1, 2))     # back to NCHW


# ----------------------------------------------------------------------------
# Pure-JAX reference (independent path: kron operator + lax.conv + biases)
# ----------------------------------------------------------------------------
def reference_forward(x1_nchw, x2_nchw, params):
    x1 = jnp.transpose(x1_nchw, (0, 2, 3, 1)).astype(jnp.float32)
    x2 = jnp.transpose(x2_nchw, (0, 2, 3, 1)).astype(jnp.float32)
    N, H1, W1, C1 = x1.shape
    _, H2, W2, C2 = x2.shape
    w1, b1, g1, be1, w2, b2, g2, be2 = params

    U = jnp.asarray(np.kron(_upsample_pad_matrix(H1, H2),
                            _upsample_pad_matrix(W1, W2)))
    x1u = jnp.einsum('pk,nkc->npc', U,
                     x1.reshape(N, H1 * W1, C1)).reshape(N, H2, W2, C1)
    x = jnp.concatenate([x2, x1u], axis=-1)

    def conv_bn_relu(x, w_taps, b, g, be):
        Ci, Co = w_taps.shape[1], w_taps.shape[2]
        w = w_taps.reshape(3, 3, Ci, Co)
        y = jax.lax.conv_general_dilated(
            x, w, window_strides=(1, 1), padding=[(1, 1), (1, 1)],
            dimension_numbers=('NHWC', 'HWIO', 'NHWC'))
        # bias kept here -> independently validates the kernel's bias drop
        y = y + b.reshape(1, 1, 1, Co)
        mean = jnp.mean(y, axis=(0, 1, 2), keepdims=True)
        var = jnp.mean((y - mean) ** 2, axis=(0, 1, 2), keepdims=True)
        y = (y - mean) * jax.lax.rsqrt(var + EPS) * g.reshape(1, 1, 1, Co) \
            + be.reshape(1, 1, 1, Co)
        return jnp.maximum(y, 0.0)

    y = conv_bn_relu(x, w1, b1, g1, be1)
    y = conv_bn_relu(y, w2, b2, g2, be2)
    return jnp.transpose(y, (0, 3, 1, 2))


# ----------------------------------------------------------------------------
if __name__ == "__main__":
    key = jax.random.PRNGKey(0)
    ks = jax.random.split(key, 10)

    # Shapes implied by UpScaling(ndim=2, in_channels=8, out_channels=8):
    #   x1 (low-res feature): [2, 4, 7, 7] -> upsample to 14x14 -> pad to 16x16
    #   x2 (encoder skip):    [2, 4, 16, 16]
    #   cat channels = 8, middle = in_channels // 2 = 4
    N, C1, H1, W1 = 2, 4, 7, 7
    C2, H2, W2 = 4, 16, 16
    Cin = C1 + C2
    Cmid = Cin // 2
    Cout = 8

    x1 = jax.random.normal(ks[0], (N, C1, H1, W1), jnp.float32)
    x2 = jax.random.normal(ks[1], (N, C2, H2, W2), jnp.float32)

    # Synthetic parameters: tap-major conv weights [9, Cin, Cout], with input
    # channel order = [x2 channels, x1 channels] matching torch.cat([x2, x1]).
    w1 = jax.random.normal(ks[2], (9, Cin, Cmid), jnp.float32) * 0.1
    b1 = jax.random.normal(ks[3], (1, Cmid), jnp.float32) * 0.1
    g1 = 1.0 + jax.random.normal(ks[4], (1, Cmid), jnp.float32) * 0.1
    be1 = jax.random.normal(ks[5], (1, Cmid), jnp.float32) * 0.1
    w2 = jax.random.normal(ks[6], (9, Cmid, Cout), jnp.float32) * 0.1
    b2 = jax.random.normal(ks[7], (1, Cout), jnp.float32) * 0.1
    g2 = 1.0 + jax.random.normal(ks[8], (1, Cout), jnp.float32) * 0.1
    be2 = jax.random.normal(ks[9], (1, Cout), jnp.float32) * 0.1
    params = (w1, b1, g1, be1, w2, b2, g2, be2)

    # f32 operands keep the check tight; pass compute_dtype=jnp.bfloat16 for
    # production runs (bf16 scratch + bf16 MXU operands; BN stats stay f32).
    out = upscaling_forward(x1, x2, params, compute_dtype=jnp.float32)
    out = jax.block_until_ready(out)
    assert out.shape == (N, Cout, H2, W2)

    ref = reference_forward(x1, x2, params)
    np.testing.assert_allclose(np.asarray(out), np.asarray(ref),
                               rtol=1e-3, atol=1e-3)

    print("KERNEL_OK")
</pallas_src>

<mosaic_0001>
module attributes {stable_mosaic.version = 11 : i64} {
  func.func @_upscaling_kernel(%arg0: memref<2x7x8x7xf32, #tpu.memory_space<vmem>>, %arg1: memref<2x16x16x8xf32, #tpu.memory_space<vmem>>, %arg2: memref<7x16xf32, #tpu.memory_space<vmem>>, %arg3: memref<16x7xf32, #tpu.memory_space<vmem>>, %arg4: memref<9x16x8xf32, #tpu.memory_space<vmem>>, %arg5: memref<1x8xf32, #tpu.memory_space<vmem>>, %arg6: memref<1x8xf32, #tpu.memory_space<vmem>>, %arg7: memref<9x8x8xf32, #tpu.memory_space<vmem>>, %arg8: memref<1x8xf32, #tpu.memory_space<vmem>>, %arg9: memref<1x8xf32, #tpu.memory_space<vmem>>, %arg10: memref<2x16x16x8xf32, #tpu.memory_space<vmem>>, %arg11: memref<2x18x18x16xf32, #tpu.memory_space<vmem>>, %arg12: memref<2x18x18x8xf32, #tpu.memory_space<vmem>>) attributes {dimension_semantics = [], scalar_prefetch = 0 : i64, scratch_operands = 2 : i64, tpu.core_type = #tpu.core_type<tc>} {
    %cst = arith.constant 0.000000e+00 : f32
    %0 = vector.broadcast %cst : f32 to vector<2x1x18x16xf32>
    %c0 = arith.constant 0 : index
    %c0_0 = arith.constant 0 : index
    %c0_1 = arith.constant 0 : index
    %c0_2 = arith.constant 0 : index
    %1 = vector.load %arg11[%c0, %c0_0, %c0_1, %c0_2] : memref<2x18x18x16xf32, #tpu.memory_space<vmem>>, vector<2x1x18x16xf32>
    tpu.vector_store %arg11[%c0, %c0_0, %c0_1, %c0_2], %0 {strides = array<i32>} : memref<2x18x18x16xf32, #tpu.memory_space<vmem>>, vector<2x1x18x16xf32>,
    %c0_3 = arith.constant 0 : index
    %c17 = arith.constant 17 : index
    %c0_4 = arith.constant 0 : index
    %c0_5 = arith.constant 0 : index
    %2 = vector.load %arg11[%c0_3, %c17, %c0_4, %c0_5] : memref<2x18x18x16xf32, #tpu.memory_space<vmem>>, vector<2x1x18x16xf32>
    tpu.vector_store %arg11[%c0_3, %c17, %c0_4, %c0_5], %0 {strides = array<i32>} : memref<2x18x18x16xf32, #tpu.memory_space<vmem>>, vector<2x1x18x16xf32>,
    %cst_6 = arith.constant 0.000000e+00 : f32
    %3 = vector.broadcast %cst_6 : f32 to vector<2x16x1x16xf32>
    %c0_7 = arith.constant 0 : index
    %c1 = arith.constant 1 : index
    %c0_8 = arith.constant 0 : index
    %c0_9 = arith.constant 0 : index
    %4 = vector.load %arg11[%c0_7, %c1, %c0_8, %c0_9] : memref<2x18x18x16xf32, #tpu.memory_space<vmem>>, vector<2x16x1x16xf32>
    tpu.vector_store %arg11[%c0_7, %c1, %c0_8, %c0_9], %3 {strides = array<i32>} : memref<2x18x18x16xf32, #tpu.memory_space<vmem>>, vector<2x16x1x16xf32>,
    %c0_10 = arith.constant 0 : index
    %c1_11 = arith.constant 1 : index
    %c17_12 = arith.constant 17 : index
    %c0_13 = arith.constant 0 : index
    %5 = vector.load %arg11[%c0_10, %c1_11, %c17_12, %c0_13] : memref<2x18x18x16xf32, #tpu.memory_space<vmem>>, vector<2x16x1x16xf32>
    tpu.vector_store %arg11[%c0_10, %c1_11, %c17_12, %c0_13], %3 {strides = array<i32>} : memref<2x18x18x16xf32, #tpu.memory_space<vmem>>, vector<2x16x1x16xf32>,
    %cst_14 = arith.constant 0.000000e+00 : f32
    %6 = vector.broadcast %cst_14 : f32 to vector<2x1x18x8xf32>
    %c0_15 = arith.constant 0 : index
    %c0_16 = arith.constant 0 : index
    %c0_17 = arith.constant 0 : index
    %c0_18 = arith.constant 0 : index
    %7 = vector.load %arg12[%c0_15, %c0_16, %c0_17, %c0_18] : memref<2x18x18x8xf32, #tpu.memory_space<vmem>>, vector<2x1x18x8xf32>
    tpu.vector_store %arg12[%c0_15, %c0_16, %c0_17, %c0_18], %6 {strides = array<i32>} : memref<2x18x18x8xf32, #tpu.memory_space<vmem>>, vector<2x1x18x8xf32>,
    %c0_19 = arith.constant 0 : index
    %c17_20 = arith.constant 17 : index
    %c0_21 = arith.constant 0 : index
    %c0_22 = arith.constant 0 : index
    %8 = vector.load %arg12[%c0_19, %c17_20, %c0_21, %c0_22] : memref<2x18x18x8xf32, #tpu.memory_space<vmem>>, vector<2x1x18x8xf32>
    tpu.vector_store %arg12[%c0_19, %c17_20, %c0_21, %c0_22], %6 {strides = array<i32>} : memref<2x18x18x8xf32, #tpu.memory_space<vmem>>, vector<2x1x18x8xf32>,
    %cst_23 = arith.constant 0.000000e+00 : f32
    %9 = vector.broadcast %cst_23 : f32 to vector<2x16x1x8xf32>
    %c0_24 = arith.constant 0 : index
    %c1_25 = arith.constant 1 : index
    %c0_26 = arith.constant 0 : index
    %c0_27 = arith.constant 0 : index
    %10 = vector.load %arg12[%c0_24, %c1_25, %c0_26, %c0_27] : memref<2x18x18x8xf32, #tpu.memory_space<vmem>>, vector<2x16x1x8xf32>
    tpu.vector_store %arg12[%c0_24, %c1_25, %c0_26, %c0_27], %9 {strides = array<i32>} : memref<2x18x18x8xf32, #tpu.memory_space<vmem>>, vector<2x16x1x8xf32>,
    %c0_28 = arith.constant 0 : index
    %c1_29 = arith.constant 1 : index
    %c17_30 = arith.constant 17 : index
    %c0_31 = arith.constant 0 : index
    %11 = vector.load %arg12[%c0_28, %c1_29, %c17_30, %c0_31] : memref<2x18x18x8xf32, #tpu.memory_space<vmem>>, vector<2x16x1x8xf32>
    tpu.vector_store %arg12[%c0_28, %c1_29, %c17_30, %c0_31], %9 {strides = array<i32>} : memref<2x18x18x8xf32, #tpu.memory_space<vmem>>, vector<2x16x1x8xf32>,
    %c0_32 = arith.constant 0 : index
    %c0_33 = arith.constant 0 : index
    %c0_34 = arith.constant 0 : index
    %c0_35 = arith.constant 0 : index
    %12 = vector.load %arg0[%c0_32, %c0_33, %c0_34, %c0_35] : memref<2x7x8x7xf32, #tpu.memory_space<vmem>>, vector<2x7x8x7xf32>
    %13 = vector.shape_cast %12 : vector<2x7x8x7xf32> to vector<112x7xf32>
    %c0_36 = arith.constant 0 : index
    %c0_37 = arith.constant 0 : index
    %14 = vector.load %arg2[%c0_36, %c0_37] : memref<7x16xf32, #tpu.memory_space<vmem>>, vector<7x16xf32>
    %cst_38 = arith.constant dense<0.000000e+00> : vector<112x16xf32>
    %15 = tpu.matmul %13, %14, %cst_38 {dimension_numbers = #tpu.dot_dimension_numbers<[1], [0], [0], [1], [0, 0, 1, 1], [], []>} : vector<112x7xf32>, vector<7x16xf32>, vector<112x16xf32> -> vector<112x16xf32>
    %16 = vector.shape_cast %15 : vector<112x16xf32> to vector<2x7x8x16xf32>
    %17 = tpu.transpose %16, [0, 1, 3, 2] : vector<2x7x8x16xf32> -> vector<2x7x16x8xf32>
    %c0_39 = arith.constant 0 : index
    %c0_40 = arith.constant 0 : index
    %18 = vector.load %arg3[%c0_39, %c0_40] : memref<16x7xf32, #tpu.memory_space<vmem>>, vector<16x7xf32>
    %19 = vector.extract_strided_slice %17 {offsets = [0, 0, 0, 0], sizes = [1, 7, 16, 8], strides = [1, 1, 1, 1]} : vector<2x7x16x8xf32> to vector<1x7x16x8xf32>
    %20 = vector.shape_cast %19 : vector<1x7x16x8xf32> to vector<7x16x8xf32>
    %21 = vector.shape_cast %20 : vector<7x16x8xf32> to vector<7x128xf32>
    %cst_41 = arith.constant dense<0.000000e+00> : vector<16x128xf32>
    %22 = tpu.matmul %18, %21, %cst_41 {dimension_numbers = #tpu.dot_dimension_numbers<[1], [0], [0], [1], [0, 0, 1, 1], [], []>} : vector<16x7xf32>, vector<7x128xf32>, vector<16x128xf32> -> vector<16x128xf32>
    %23 = vector.shape_cast %22 : vector<16x128xf32> to vector<1x16x16x8xf32>
    %c0_42 = arith.constant 0 : index
    %c1_43 = arith.constant 1 : index
    %c1_44 = arith.constant 1 : index
    %c8 = arith.constant 8 : index
    %24 = vector.load %arg11[%c0_42, %c1_43, %c1_44, %c8] : memref<2x18x18x16xf32, #tpu.memory_space<vmem>>, vector<1x16x16x8xf32>
    tpu.vector_store %arg11[%c0_42, %c1_43, %c1_44, %c8], %23 {strides = array<i32>} : memref<2x18x18x16xf32, #tpu.memory_space<vmem>>, vector<1x16x16x8xf32>,
    %c0_45 = arith.constant 0 : index
    %c0_46 = arith.constant 0 : index
    %25 = vector.load %arg3[%c0_45, %c0_46] : memref<16x7xf32, #tpu.memory_space<vmem>>, vector<16x7xf32>
    %26 = vector.extract_strided_slice %17 {offsets = [1, 0, 0, 0], sizes = [1, 7, 16, 8], strides = [1, 1, 1, 1]} : vector<2x7x16x8xf32> to vector<1x7x16x8xf32>
    %27 = vector.shape_cast %26 : vector<1x7x16x8xf32> to vector<7x16x8xf32>
    %28 = vector.shape_cast %27 : vector<7x16x8xf32> to vector<7x128xf32>
    %cst_47 = arith.constant dense<0.000000e+00> : vector<16x128xf32>
    %29 = tpu.matmul %25, %28, %cst_47 {dimension_numbers = #tpu.dot_dimension_numbers<[1], [0], [0], [1], [0, 0, 1, 1], [], []>} : vector<16x7xf32>, vector<7x128xf32>, vector<16x128xf32> -> vector<16x128xf32>
    %30 = vector.shape_cast %29 : vector<16x128xf32> to vector<1x16x16x8xf32>
    %c1_48 = arith.constant 1 : index
    %c1_49 = arith.constant 1 : index
    %c1_50 = arith.constant 1 : index
    %c8_51 = arith.constant 8 : index
    %31 = vector.load %arg11[%c1_48, %c1_49, %c1_50, %c8_51] : memref<2x18x18x16xf32, #tpu.memory_space<vmem>>, vector<1x16x16x8xf32>
    tpu.vector_store %arg11[%c1_48, %c1_49, %c1_50, %c8_51], %30 {strides = array<i32>} : memref<2x18x18x16xf32, #tpu.memory_space<vmem>>, vector<1x16x16x8xf32>,
    %c0_52 = arith.constant 0 : index
    %c0_53 = arith.constant 0 : index
    %c0_54 = arith.constant 0 : index
    %c0_55 = arith.constant 0 : index
    %32 = vector.load %arg1[%c0_52, %c0_53, %c0_54, %c0_55] : memref<2x16x16x8xf32, #tpu.memory_space<vmem>>, vector<2x16x16x8xf32>
    %c0_56 = arith.constant 0 : index
    %c1_57 = arith.constant 1 : index
    %c1_58 = arith.constant 1 : index
    %c0_59 = arith.constant 0 : index
    %33 = vector.load %arg11[%c0_56, %c1_57, %c1_58, %c0_59] : memref<2x18x18x16xf32, #tpu.memory_space<vmem>>, vector<2x16x16x8xf32>
    tpu.vector_store %arg11[%c0_56, %c1_57, %c1_58, %c0_59], %32 {strides = array<i32>} : memref<2x18x18x16xf32, #tpu.memory_space<vmem>>, vector<2x16x16x8xf32>,
    %cst_60 = arith.constant 0.000000e+00 : f32
    %34 = vector.broadcast %cst_60 : f32 to vector<512x8xf32>
    %c0_61 = arith.constant 0 : index
    %c0_62 = arith.constant 0 : index
    %c0_63 = arith.constant 0 : index
    %c0_64 = arith.constant 0 : index
    %35 = vector.load %arg11[%c0_61, %c0_62, %c0_63, %c0_64] : memref<2x18x18x16xf32, #tpu.memory_space<vmem>>, vector<2x16x16x16xf32>
    %36 = vector.shape_cast %35 : vector<2x16x16x16xf32> to vector<512x16xf32>
    %c0_65 = arith.constant 0 : index
    %c0_66 = arith.constant 0 : index
    %c0_67 = arith.constant 0 : index
    %37 = vector.load %arg4[%c0_65, %c0_66, %c0_67] : memref<9x16x8xf32, #tpu.memory_space<vmem>>, vector<1x16x8xf32>
    %38 = vector.shape_cast %37 : vector<1x16x8xf32> to vector<16x8xf32>
    %cst_68 = arith.constant dense<0.000000e+00> : vector<512x8xf32>
    %39 = tpu.matmul %36, %38, %cst_68 {dimension_numbers = #tpu.dot_dimension_numbers<[1], [0], [0], [1], [0, 0, 1, 1], [], []>} : vector<512x16xf32>, vector<16x8xf32>, vector<512x8xf32> -> vector<512x8xf32>
    %40 = arith.addf %34, %39 : vector<512x8xf32>
    %c0_69 = arith.constant 0 : index
    %c0_70 = arith.constant 0 : index
    %c1_71 = arith.constant 1 : index
    %c0_72 = arith.constant 0 : index
    %41 = vector.load %arg11[%c0_69, %c0_70, %c1_71, %c0_72] : memref<2x18x18x16xf32, #tpu.memory_space<vmem>>, vector<2x16x16x16xf32>
    %42 = vector.shape_cast %41 : vector<2x16x16x16xf32> to vector<512x16xf32>
    %c1_73 = arith.constant 1 : index
    %c0_74 = arith.constant 0 : index
    %c0_75 = arith.constant 0 : index
    %43 = vector.load %arg4[%c1_73, %c0_74, %c0_75] : memref<9x16x8xf32, #tpu.memory_space<vmem>>, vector<1x16x8xf32>
    %44 = vector.shape_cast %43 : vector<1x16x8xf32> to vector<16x8xf32>
    %cst_76 = arith.constant dense<0.000000e+00> : vector<512x8xf32>
    %45 = tpu.matmul %42, %44, %cst_76 {dimension_numbers = #tpu.dot_dimension_numbers<[1], [0], [0], [1], [0, 0, 1, 1], [], []>} : vector<512x16xf32>, vector<16x8xf32>, vector<512x8xf32> -> vector<512x8xf32>
    %46 = arith.addf %40, %45 : vector<512x8xf32>
    %c0_77 = arith.constant 0 : index
    %c0_78 = arith.constant 0 : index
    %c2 = arith.constant 2 : index
    %c0_79 = arith.constant 0 : index
    %47 = vector.load %arg11[%c0_77, %c0_78, %c2, %c0_79] : memref<2x18x18x16xf32, #tpu.memory_space<vmem>>, vector<2x16x16x16xf32>
    %48 = vector.shape_cast %47 : vector<2x16x16x16xf32> to vector<512x16xf32>
    %c2_80 = arith.constant 2 : index
    %c0_81 = arith.constant 0 : index
    %c0_82 = arith.constant 0 : index
    %49 = vector.load %arg4[%c2_80, %c0_81, %c0_82] : memref<9x16x8xf32, #tpu.memory_space<vmem>>, vector<1x16x8xf32>
    %50 = vector.shape_cast %49 : vector<1x16x8xf32> to vector<16x8xf32>
    %cst_83 = arith.constant dense<0.000000e+00> : vector<512x8xf32>
    %51 = tpu.matmul %48, %50, %cst_83 {dimension_numbers = #tpu.dot_dimension_numbers<[1], [0], [0], [1], [0, 0, 1, 1], [], []>} : vector<512x16xf32>, vector<16x8xf32>, vector<512x8xf32> -> vector<512x8xf32>
    %52 = arith.addf %46, %51 : vector<512x8xf32>
    %c0_84 = arith.constant 0 : index
    %c1_85 = arith.constant 1 : index
    %c0_86 = arith.constant 0 : index
    %c0_87 = arith.constant 0 : index
    %53 = vector.load %arg11[%c0_84, %c1_85, %c0_86, %c0_87] : memref<2x18x18x16xf32, #tpu.memory_space<vmem>>, vector<2x16x16x16xf32>
    %54 = vector.shape_cast %53 : vector<2x16x16x16xf32> to vector<512x16xf32>
    %c3 = arith.constant 3 : index
    %c0_88 = arith.constant 0 : index
    %c0_89 = arith.constant 0 : index
    %55 = vector.load %arg4[%c3, %c0_88, %c0_89] : memref<9x16x8xf32, #tpu.memory_space<vmem>>, vector<1x16x8xf32>
    %56 = vector.shape_cast %55 : vector<1x16x8xf32> to vector<16x8xf32>
    %cst_90 = arith.constant dense<0.000000e+00> : vector<512x8xf32>
    %57 = tpu.matmul %54, %56, %cst_90 {dimension_numbers = #tpu.dot_dimension_numbers<[1], [0], [0], [1], [0, 0, 1, 1], [], []>} : vector<512x16xf32>, vector<16x8xf32>, vector<512x8xf32> -> vector<512x8xf32>
    %58 = arith.addf %52, %57 : vector<512x8xf32>
    %c0_91 = arith.constant 0 : index
    %c1_92 = arith.constant 1 : index
    %c1_93 = arith.constant 1 : index
    %c0_94 = arith.constant 0 : index
    %59 = vector.load %arg11[%c0_91, %c1_92, %c1_93, %c0_94] : memref<2x18x18x16xf32, #tpu.memory_space<vmem>>, vector<2x16x16x16xf32>
    %60 = vector.shape_cast %59 : vector<2x16x16x16xf32> to vector<512x16xf32>
    %c4 = arith.constant 4 : index
    %c0_95 = arith.constant 0 : index
    %c0_96 = arith.constant 0 : index
    %61 = vector.load %arg4[%c4, %c0_95, %c0_96] : memref<9x16x8xf32, #tpu.memory_space<vmem>>, vector<1x16x8xf32>
    %62 = vector.shape_cast %61 : vector<1x16x8xf32> to vector<16x8xf32>
    %cst_97 = arith.constant dense<0.000000e+00> : vector<512x8xf32>
    %63 = tpu.matmul %60, %62, %cst_97 {dimension_numbers = #tpu.dot_dimension_numbers<[1], [0], [0], [1], [0, 0, 1, 1], [], []>} : vector<512x16xf32>, vector<16x8xf32>, vector<512x8xf32> -> vector<512x8xf32>
    %64 = arith.addf %58, %63 : vector<512x8xf32>
    %c0_98 = arith.constant 0 : index
    %c1_99 = arith.constant 1 : index
    %c2_100 = arith.constant 2 : index
    %c0_101 = arith.constant 0 : index
    %65 = vector.load %arg11[%c0_98, %c1_99, %c2_100, %c0_101] : memref<2x18x18x16xf32, #tpu.memory_space<vmem>>, vector<2x16x16x16xf32>
    %66 = vector.shape_cast %65 : vector<2x16x16x16xf32> to vector<512x16xf32>
    %c5 = arith.constant 5 : index
    %c0_102 = arith.constant 0 : index
    %c0_103 = arith.constant 0 : index
    %67 = vector.load %arg4[%c5, %c0_102, %c0_103] : memref<9x16x8xf32, #tpu.memory_space<vmem>>, vector<1x16x8xf32>
    %68 = vector.shape_cast %67 : vector<1x16x8xf32> to vector<16x8xf32>
    %cst_104 = arith.constant dense<0.000000e+00> : vector<512x8xf32>
    %69 = tpu.matmul %66, %68, %cst_104 {dimension_numbers = #tpu.dot_dimension_numbers<[1], [0], [0], [1], [0, 0, 1, 1], [], []>} : vector<512x16xf32>, vector<16x8xf32>, vector<512x8xf32> -> vector<512x8xf32>
    %70 = arith.addf %64, %69 : vector<512x8xf32>
    %c0_105 = arith.constant 0 : index
    %c2_106 = arith.constant 2 : index
    %c0_107 = arith.constant 0 : index
    %c0_108 = arith.constant 0 : index
    %71 = vector.load %arg11[%c0_105, %c2_106, %c0_107, %c0_108] : memref<2x18x18x16xf32, #tpu.memory_space<vmem>>, vector<2x16x16x16xf32>
    %72 = vector.shape_cast %71 : vector<2x16x16x16xf32> to vector<512x16xf32>
    %c6 = arith.constant 6 : index
    %c0_109 = arith.constant 0 : index
    %c0_110 = arith.constant 0 : index
    %73 = vector.load %arg4[%c6, %c0_109, %c0_110] : memref<9x16x8xf32, #tpu.memory_space<vmem>>, vector<1x16x8xf32>
    %74 = vector.shape_cast %73 : vector<1x16x8xf32> to vector<16x8xf32>
    %cst_111 = arith.constant dense<0.000000e+00> : vector<512x8xf32>
    %75 = tpu.matmul %72, %74, %cst_111 {dimension_numbers = #tpu.dot_dimension_numbers<[1], [0], [0], [1], [0, 0, 1, 1], [], []>} : vector<512x16xf32>, vector<16x8xf32>, vector<512x8xf32> -> vector<512x8xf32>
    %76 = arith.addf %70, %75 : vector<512x8xf32>
    %c0_112 = arith.constant 0 : index
    %c2_113 = arith.constant 2 : index
    %c1_114 = arith.constant 1 : index
    %c0_115 = arith.constant 0 : index
    %77 = vector.load %arg11[%c0_112, %c2_113, %c1_114, %c0_115] : memref<2x18x18x16xf32, #tpu.memory_space<vmem>>, vector<2x16x16x16xf32>
    %78 = vector.shape_cast %77 : vector<2x16x16x16xf32> to vector<512x16xf32>
    %c7 = arith.constant 7 : index
    %c0_116 = arith.constant 0 : index
    %c0_117 = arith.constant 0 : index
    %79 = vector.load %arg4[%c7, %c0_116, %c0_117] : memref<9x16x8xf32, #tpu.memory_space<vmem>>, vector<1x16x8xf32>
    %80 = vector.shape_cast %79 : vector<1x16x8xf32> to vector<16x8xf32>
    %cst_118 = arith.constant dense<0.000000e+00> : vector<512x8xf32>
    %81 = tpu.matmul %78, %80, %cst_118 {dimension_numbers = #tpu.dot_dimension_numbers<[1], [0], [0], [1], [0, 0, 1, 1], [], []>} : vector<512x16xf32>, vector<16x8xf32>, vector<512x8xf32> -> vector<512x8xf32>
    %82 = arith.addf %76, %81 : vector<512x8xf32>
    %c0_119 = arith.constant 0 : index
    %c2_120 = arith.constant 2 : index
    %c2_121 = arith.constant 2 : index
    %c0_122 = arith.constant 0 : index
    %83 = vector.load %arg11[%c0_119, %c2_120, %c2_121, %c0_122] : memref<2x18x18x16xf32, #tpu.memory_space<vmem>>, vector<2x16x16x16xf32>
    %84 = vector.shape_cast %83 : vector<2x16x16x16xf32> to vector<512x16xf32>
    %c8_123 = arith.constant 8 : index
    %c0_124 = arith.constant 0 : index
    %c0_125 = arith.constant 0 : index
    %85 = vector.load %arg4[%c8_123, %c0_124, %c0_125] : memref<9x16x8xf32, #tpu.memory_space<vmem>>, vector<1x16x8xf32>
    %86 = vector.shape_cast %85 : vector<1x16x8xf32> to vector<16x8xf32>
    %cst_126 = arith.constant dense<0.000000e+00> : vector<512x8xf32>
    %87 = tpu.matmul %84, %86, %cst_126 {dimension_numbers = #tpu.dot_dimension_numbers<[1], [0], [0], [1], [0, 0, 1, 1], [], []>} : vector<512x16xf32>, vector<16x8xf32>, vector<512x8xf32> -> vector<512x8xf32>
    %88 = arith.addf %82, %87 : vector<512x8xf32>
    %cst_127 = arith.constant dense<0.000000e+00> : vector<8xf32>
    %89 = vector.multi_reduction <add>, %88, %cst_127 [0] : vector<512x8xf32> to vector<8xf32>
    %90 = vector.shape_cast %89 : vector<8xf32> to vector<1x8xf32>
    %cst_128 = arith.constant 5.120000e+02 : f32
    %91 = vector.broadcast %cst_128 : f32 to vector<1x8xf32>
    %92 = arith.divf %90, %91 : vector<1x8xf32>
    %93 = vector.broadcast %92 : vector<1x8xf32> to vector<512x8xf32>
    %94 = arith.subf %88, %93 : vector<512x8xf32>
    %95 = arith.mulf %94, %94 : vector<512x8xf32>
    %cst_129 = arith.constant dense<0.000000e+00> : vector<8xf32>
    %96 = vector.multi_reduction <add>, %95, %cst_129 [0] : vector<512x8xf32> to vector<8xf32>
    %97 = vector.shape_cast %96 : vector<8xf32> to vector<1x8xf32>
    %cst_130 = arith.constant 5.120000e+02 : f32
    %98 = vector.broadcast %cst_130 : f32 to vector<1x8xf32>
    %99 = arith.divf %97, %98 : vector<1x8xf32>
    %cst_131 = arith.constant 9.99999974E-6 : f32
    %100 = vector.broadcast %cst_131 : f32 to vector<1x8xf32>
    %101 = arith.addf %99, %100 : vector<1x8xf32>
    %102 = math.rsqrt %101 : vector<1x8xf32>
    %c0_132 = arith.constant 0 : index
    %c0_133 = arith.constant 0 : index
    %103 = vector.load %arg5[%c0_132, %c0_133] : memref<1x8xf32, #tpu.memory_space<vmem>>, vector<1x8xf32>
    %104 = arith.mulf %102, %103 : vector<1x8xf32>
    %105 = vector.broadcast %104 : vector<1x8xf32> to vector<512x8xf32>
    %106 = arith.mulf %94, %105 : vector<512x8xf32>
    %c0_134 = arith.constant 0 : index
    %c0_135 = arith.constant 0 : index
    %107 = vector.load %arg6[%c0_134, %c0_135] : memref<1x8xf32, #tpu.memory_space<vmem>>, vector<1x8xf32>
    %108 = vector.broadcast %107 : vector<1x8xf32> to vector<512x8xf32>
    %109 = arith.addf %106, %108 : vector<512x8xf32>
    %cst_136 = arith.constant 0.000000e+00 : f32
    %110 = vector.broadcast %cst_136 : f32 to vector<512x8xf32>
    %111 = arith.maximumf %109, %110 : vector<512x8xf32>
    %112 = vector.shape_cast %111 : vector<512x8xf32> to vector<2x16x16x8xf32>
    %c0_137 = arith.constant 0 : index
    %c1_138 = arith.constant 1 : index
    %c1_139 = arith.constant 1 : index
    %c0_140 = arith.constant 0 : index
    %113 = vector.load %arg12[%c0_137, %c1_138, %c1_139, %c0_140] : memref<2x18x18x8xf32, #tpu.memory_space<vmem>>, vector<2x16x16x8xf32>
    tpu.vector_store %arg12[%c0_137, %c1_138, %c1_139, %c0_140], %112 {strides = array<i32>} : memref<2x18x18x8xf32, #tpu.memory_space<vmem>>, vector<2x16x16x8xf32>,
    %cst_141 = arith.constant 0.000000e+00 : f32
    %114 = vector.broadcast %cst_141 : f32 to vector<512x8xf32>
    %c0_142 = arith.constant 0 : index
    %c0_143 = arith.constant 0 : index
    %c0_144 = arith.constant 0 : index
    %c0_145 = arith.constant 0 : index
    %115 = vector.load %arg12[%c0_142, %c0_143, %c0_144, %c0_145] : memref<2x18x18x8xf32, #tpu.memory_space<vmem>>, vector<2x16x16x8xf32>
    %116 = vector.shape_cast %115 : vector<2x16x16x8xf32> to vector<512x8xf32>
    %c0_146 = arith.constant 0 : index
    %c0_147 = arith.constant 0 : index
    %c0_148 = arith.constant 0 : index
    %117 = vector.load %arg7[%c0_146, %c0_147, %c0_148] : memref<9x8x8xf32, #tpu.memory_space<vmem>>, vector<1x8x8xf32>
    %118 = vector.shape_cast %117 : vector<1x8x8xf32> to vector<8x8xf32>
    %cst_149 = arith.constant dense<0.000000e+00> : vector<512x8xf32>
    %119 = tpu.matmul %116, %118, %cst_149 {dimension_numbers = #tpu.dot_dimension_numbers<[1], [0], [0], [1], [0, 0, 1, 1], [], []>} : vector<512x8xf32>, vector<8x8xf32>, vector<512x8xf32> -> vector<512x8xf32>
    %120 = arith.addf %114, %119 : vector<512x8xf32>
    %c0_150 = arith.constant 0 : index
    %c0_151 = arith.constant 0 : index
    %c1_152 = arith.constant 1 : index
    %c0_153 = arith.constant 0 : index
    %121 = vector.load %arg12[%c0_150, %c0_151, %c1_152, %c0_153] : memref<2x18x18x8xf32, #tpu.memory_space<vmem>>, vector<2x16x16x8xf32>
    %122 = vector.shape_cast %121 : vector<2x16x16x8xf32> to vector<512x8xf32>
    %c1_154 = arith.constant 1 : index
    %c0_155 = arith.constant 0 : index
    %c0_156 = arith.constant 0 : index
    %123 = vector.load %arg7[%c1_154, %c0_155, %c0_156] : memref<9x8x8xf32, #tpu.memory_space<vmem>>, vector<1x8x8xf32>
    %124 = vector.shape_cast %123 : vector<1x8x8xf32> to vector<8x8xf32>
    %cst_157 = arith.constant dense<0.000000e+00> : vector<512x8xf32>
    %125 = tpu.matmul %122, %124, %cst_157 {dimension_numbers = #tpu.dot_dimension_numbers<[1], [0], [0], [1], [0, 0, 1, 1], [], []>} : vector<512x8xf32>, vector<8x8xf32>, vector<512x8xf32> -> vector<512x8xf32>
    %126 = arith.addf %120, %125 : vector<512x8xf32>
    %c0_158 = arith.constant 0 : index
    %c0_159 = arith.constant 0 : index
    %c2_160 = arith.constant 2 : index
    %c0_161 = arith.constant 0 : index
    %127 = vector.load %arg12[%c0_158, %c0_159, %c2_160, %c0_161] : memref<2x18x18x8xf32, #tpu.memory_space<vmem>>, vector<2x16x16x8xf32>
    %128 = vector.shape_cast %127 : vector<2x16x16x8xf32> to vector<512x8xf32>
    %c2_162 = arith.constant 2 : index
    %c0_163 = arith.constant 0 : index
    %c0_164 = arith.constant 0 : index
    %129 = vector.load %arg7[%c2_162, %c0_163, %c0_164] : memref<9x8x8xf32, #tpu.memory_space<vmem>>, vector<1x8x8xf32>
    %130 = vector.shape_cast %129 : vector<1x8x8xf32> to vector<8x8xf32>
    %cst_165 = arith.constant dense<0.000000e+00> : vector<512x8xf32>
    %131 = tpu.matmul %128, %130, %cst_165 {dimension_numbers = #tpu.dot_dimension_numbers<[1], [0], [0], [1], [0, 0, 1, 1], [], []>} : vector<512x8xf32>, vector<8x8xf32>, vector<512x8xf32> -> vector<512x8xf32>
    %132 = arith.addf %126, %131 : vector<512x8xf32>
    %c0_166 = arith.constant 0 : index
    %c1_167 = arith.constant 1 : index
    %c0_168 = arith.constant 0 : index
    %c0_169 = arith.constant 0 : index
    %133 = vector.load %arg12[%c0_166, %c1_167, %c0_168, %c0_169] : memref<2x18x18x8xf32, #tpu.memory_space<vmem>>, vector<2x16x16x8xf32>
    %134 = vector.shape_cast %133 : vector<2x16x16x8xf32> to vector<512x8xf32>
    %c3_170 = arith.constant 3 : index
    %c0_171 = arith.constant 0 : index
    %c0_172 = arith.constant 0 : index
    %135 = vector.load %arg7[%c3_170, %c0_171, %c0_172] : memref<9x8x8xf32, #tpu.memory_space<vmem>>, vector<1x8x8xf32>
    %136 = vector.shape_cast %135 : vector<1x8x8xf32> to vector<8x8xf32>
    %cst_173 = arith.constant dense<0.000000e+00> : vector<512x8xf32>
    %137 = tpu.matmul %134, %136, %cst_173 {dimension_numbers = #tpu.dot_dimension_numbers<[1], [0], [0], [1], [0, 0, 1, 1], [], []>} : vector<512x8xf32>, vector<8x8xf32>, vector<512x8xf32> -> vector<512x8xf32>
    %138 = arith.addf %132, %137 : vector<512x8xf32>
    %c0_174 = arith.constant 0 : index
    %c1_175 = arith.constant 1 : index
    %c1_176 = arith.constant 1 : index
    %c0_177 = arith.constant 0 : index
    %139 = vector.load %arg12[%c0_174, %c1_175, %c1_176, %c0_177] : memref<2x18x18x8xf32, #tpu.memory_space<vmem>>, vector<2x16x16x8xf32>
    %140 = vector.shape_cast %139 : vector<2x16x16x8xf32> to vector<512x8xf32>
    %c4_178 = arith.constant 4 : index
    %c0_179 = arith.constant 0 : index
    %c0_180 = arith.constant 0 : index
    %141 = vector.load %arg7[%c4_178, %c0_179, %c0_180] : memref<9x8x8xf32, #tpu.memory_space<vmem>>, vector<1x8x8xf32>
    %142 = vector.shape_cast %141 : vector<1x8x8xf32> to vector<8x8xf32>
    %cst_181 = arith.constant dense<0.000000e+00> : vector<512x8xf32>
    %143 = tpu.matmul %140, %142, %cst_181 {dimension_numbers = #tpu.dot_dimension_numbers<[1], [0], [0], [1], [0, 0, 1, 1], [], []>} : vector<512x8xf32>, vector<8x8xf32>, vector<512x8xf32> -> vector<512x8xf32>
    %144 = arith.addf %138, %143 : vector<512x8xf32>
    %c0_182 = arith.constant 0 : index
    %c1_183 = arith.constant 1 : index
    %c2_184 = arith.constant 2 : index
    %c0_185 = arith.constant 0 : index
    %145 = vector.load %arg12[%c0_182, %c1_183, %c2_184, %c0_185] : memref<2x18x18x8xf32, #tpu.memory_space<vmem>>, vector<2x16x16x8xf32>
    %146 = vector.shape_cast %145 : vector<2x16x16x8xf32> to vector<512x8xf32>
    %c5_186 = arith.constant 5 : index
    %c0_187 = arith.constant 0 : index
    %c0_188 = arith.constant 0 : index
    %147 = vector.load %arg7[%c5_186, %c0_187, %c0_188] : memref<9x8x8xf32, #tpu.memory_space<vmem>>, vector<1x8x8xf32>
    %148 = vector.shape_cast %147 : vector<1x8x8xf32> to vector<8x8xf32>
    %cst_189 = arith.constant dense<0.000000e+00> : vector<512x8xf32>
    %149 = tpu.matmul %146, %148, %cst_189 {dimension_numbers = #tpu.dot_dimension_numbers<[1], [0], [0], [1], [0, 0, 1, 1], [], []>} : vector<512x8xf32>, vector<8x8xf32>, vector<512x8xf32> -> vector<512x8xf32>
    %150 = arith.addf %144, %149 : vector<512x8xf32>
    %c0_190 = arith.constant 0 : index
    %c2_191 = arith.constant 2 : index
    %c0_192 = arith.constant 0 : index
    %c0_193 = arith.constant 0 : index
    %151 = vector.load %arg12[%c0_190, %c2_191, %c0_192, %c0_193] : memref<2x18x18x8xf32, #tpu.memory_space<vmem>>, vector<2x16x16x8xf32>
    %152 = vector.shape_cast %151 : vector<2x16x16x8xf32> to vector<512x8xf32>
    %c6_194 = arith.constant 6 : index
    %c0_195 = arith.constant 0 : index
    %c0_196 = arith.constant 0 : index
    %153 = vector.load %arg7[%c6_194, %c0_195, %c0_196] : memref<9x8x8xf32, #tpu.memory_space<vmem>>, vector<1x8x8xf32>
    %154 = vector.shape_cast %153 : vector<1x8x8xf32> to vector<8x8xf32>
    %cst_197 = arith.constant dense<0.000000e+00> : vector<512x8xf32>
    %155 = tpu.matmul %152, %154, %cst_197 {dimension_numbers = #tpu.dot_dimension_numbers<[1], [0], [0], [1], [0, 0, 1, 1], [], []>} : vector<512x8xf32>, vector<8x8xf32>, vector<512x8xf32> -> vector<512x8xf32>
    %156 = arith.addf %150, %155 : vector<512x8xf32>
    %c0_198 = arith.constant 0 : index
    %c2_199 = arith.constant 2 : index
    %c1_200 = arith.constant 1 : index
    %c0_201 = arith.constant 0 : index
    %157 = vector.load %arg12[%c0_198, %c2_199, %c1_200, %c0_201] : memref<2x18x18x8xf32, #tpu.memory_space<vmem>>, vector<2x16x16x8xf32>
    %158 = vector.shape_cast %157 : vector<2x16x16x8xf32> to vector<512x8xf32>
    %c7_202 = arith.constant 7 : index
    %c0_203 = arith.constant 0 : index
    %c0_204 = arith.constant 0 : index
    %159 = vector.load %arg7[%c7_202, %c0_203, %c0_204] : memref<9x8x8xf32, #tpu.memory_space<vmem>>, vector<1x8x8xf32>
    %160 = vector.shape_cast %159 : vector<1x8x8xf32> to vector<8x8xf32>
    %cst_205 = arith.constant dense<0.000000e+00> : vector<512x8xf32>
    %161 = tpu.matmul %158, %160, %cst_205 {dimension_numbers = #tpu.dot_dimension_numbers<[1], [0], [0], [1], [0, 0, 1, 1], [], []>} : vector<512x8xf32>, vector<8x8xf32>, vector<512x8xf32> -> vector<512x8xf32>
    %162 = arith.addf %156, %161 : vector<512x8xf32>
    %c0_206 = arith.constant 0 : index
    %c2_207 = arith.constant 2 : index
    %c2_208 = arith.constant 2 : index
    %c0_209 = arith.constant 0 : index
    %163 = vector.load %arg12[%c0_206, %c2_207, %c2_208, %c0_209] : memref<2x18x18x8xf32, #tpu.memory_space<vmem>>, vector<2x16x16x8xf32>
    %164 = vector.shape_cast %163 : vector<2x16x16x8xf32> to vector<512x8xf32>
    %c8_210 = arith.constant 8 : index
    %c0_211 = arith.constant 0 : index
    %c0_212 = arith.constant 0 : index
    %165 = vector.load %arg7[%c8_210, %c0_211, %c0_212] : memref<9x8x8xf32, #tpu.memory_space<vmem>>, vector<1x8x8xf32>
    %166 = vector.shape_cast %165 : vector<1x8x8xf32> to vector<8x8xf32>
    %cst_213 = arith.constant dense<0.000000e+00> : vector<512x8xf32>
    %167 = tpu.matmul %164, %166, %cst_213 {dimension_numbers = #tpu.dot_dimension_numbers<[1], [0], [0], [1], [0, 0, 1, 1], [], []>} : vector<512x8xf32>, vector<8x8xf32>, vector<512x8xf32> -> vector<512x8xf32>
    %168 = arith.addf %162, %167 : vector<512x8xf32>
    %cst_214 = arith.constant dense<0.000000e+00> : vector<8xf32>
    %169 = vector.multi_reduction <add>, %168, %cst_214 [0] : vector<512x8xf32> to vector<8xf32>
    %170 = vector.shape_cast %169 : vector<8xf32> to vector<1x8xf32>
    %cst_215 = arith.constant 5.120000e+02 : f32
    %171 = vector.broadcast %cst_215 : f32 to vector<1x8xf32>
    %172 = arith.divf %170, %171 : vector<1x8xf32>
    %173 = vector.broadcast %172 : vector<1x8xf32> to vector<512x8xf32>
    %174 = arith.subf %168, %173 : vector<512x8xf32>
    %175 = arith.mulf %174, %174 : vector<512x8xf32>
    %cst_216 = arith.constant dense<0.000000e+00> : vector<8xf32>
    %176 = vector.multi_reduction <add>, %175, %cst_216 [0] : vector<512x8xf32> to vector<8xf32>
    %177 = vector.shape_cast %176 : vector<8xf32> to vector<1x8xf32>
    %cst_217 = arith.constant 5.120000e+02 : f32
    %178 = vector.broadcast %cst_217 : f32 to vector<1x8xf32>
    %179 = arith.divf %177, %178 : vector<1x8xf32>
    %cst_218 = arith.constant 9.99999974E-6 : f32
    %180 = vector.broadcast %cst_218 : f32 to vector<1x8xf32>
    %181 = arith.addf %179, %180 : vector<1x8xf32>
    %182 = math.rsqrt %181 : vector<1x8xf32>
    %c0_219 = arith.constant 0 : index
    %c0_220 = arith.constant 0 : index
    %183 = vector.load %arg8[%c0_219, %c0_220] : memref<1x8xf32, #tpu.memory_space<vmem>>, vector<1x8xf32>
    %184 = arith.mulf %182, %183 : vector<1x8xf32>
    %185 = vector.broadcast %184 : vector<1x8xf32> to vector<512x8xf32>
    %186 = arith.mulf %174, %185 : vector<512x8xf32>
    %c0_221 = arith.constant 0 : index
    %c0_222 = arith.constant 0 : index
    %187 = vector.load %arg9[%c0_221, %c0_222] : memref<1x8xf32, #tpu.memory_space<vmem>>, vector<1x8xf32>
    %188 = vector.broadcast %187 : vector<1x8xf32> to vector<512x8xf32>
    %189 = arith.addf %186, %188 : vector<512x8xf32>
    %cst_223 = arith.constant 0.000000e+00 : f32
    %190 = vector.broadcast %cst_223 : f32 to vector<512x8xf32>
    %191 = arith.maximumf %189, %190 : vector<512x8xf32>
    %192 = vector.shape_cast %191 : vector<512x8xf32> to vector<2x16x16x8xf32>
    %c0_224 = arith.constant 0 : index
    %c0_225 = arith.constant 0 : index
    %c0_226 = arith.constant 0 : index
    %c0_227 = arith.constant 0 : index
    %193 = vector.load %arg10[%c0_224, %c0_225, %c0_226, %c0_227] : memref<2x16x16x8xf32, #tpu.memory_space<vmem>>, vector<2x16x16x8xf32>
    tpu.vector_store %arg10[%c0_224, %c0_225, %c0_226, %c0_227], %192 {strides = array<i32>} : memref<2x16x16x8xf32, #tpu.memory_space<vmem>>, vector<2x16x16x8xf32>,
    return
  }
}

</mosaic_0001>

<bundles_post_ra>
// kernel: tpu_custom_call.1
= control target key start
LH: loop header
LB: loop body
LE: loop exit
PB: predicated region body
PF: predicated region fallthrough
CT: control target
= control target key end

     0   :  { %vm255_vm0 = vcmask 1046528   ;;  %vm29954_vm1 = vcmask 56320   ;;  %vm116_vm2 = vcmask 64512   ;;  %v29955_v29 = vmov 0.0   ;;  %s22559_s22 = smov 16   ;;  %s22561_s23 = smov 56   ;;  %s29942_s2 = inlined_call_operand.vmem [shape: f32[7,16], index: 2, kind: input, shape index: {}]   ;;  %s29943_s0 = inlined_call_operand.vmem [shape: f32[2,7,8,7], index: 0, kind: input, shape index: {}]   ;;  %s29944_s3 = inlined_call_operand.vmem [shape: f32[16,7], index: 3, kind: input, shape index: {}]   ;;  %s29945_s4 = inlined_call_operand.vmem [shape: f32[9,16,8], index: 4, kind: input, shape index: {}]   ;;  %s29946_s1 = inlined_call_operand.vmem [shape: f32[2,16,16,8], index: 1, kind: input, shape index: {}]   ;;  %s29947_s7 = inlined_call_operand.vmem [shape: f32[9,8,8], index: 7, kind: input, shape index: {}]   ;;  %s29948_s5 = inlined_call_operand.vmem [shape: f32[1,8], index: 5, kind: input, shape index: {}]   ;;  %s29949_s6 = inlined_call_operand.vmem [shape: f32[1,8], index: 6, kind: input, shape index: {}]   ;;  %s29950_s8 = inlined_call_operand.vmem [shape: f32[1,8], index: 8, kind: input, shape index: {}]   ;;  %s29951_s9 = inlined_call_operand.vmem [shape: f32[1,8], index: 9, kind: input, shape index: {}]   ;;  %s29952_s10 = inlined_call_operand.vmem [shape: f32[2,16,16,8], index: 10, kind: output, shape index: {}]  }
   0x1   :  { %v211_v0 = vld [vmem:[%s29942_s2] sm:$0x7f]  ;;  %v207_v2 = vld [vmem:[%s29943_s0 + $0x50] sm:$0xff]  ;;  %v198_v3 = vld [vmem:[%s29943_s0 + $0x8] sm:$0xff]  ;;  %117 = vst.msk [vmem:[#allocation3] sm:$0xff] %vm116_vm2, %v29955_v29  ;;  %v849_v42 = vlaneseq  ;;  %vm35_vm3 = vcmask 130048  }
   0x2   :  { %v197_v1 = vld [vmem:[%s29943_s0] sm:$0xff]  ;;  %19656 = vmatprep.subr.msk.mxu0 %vm255_vm0, %v211_v0  ;;  %21507 = vmatprep.subr.msk.mxu1 %vm255_vm0, %v211_v0  ;;  %v208_v4 = vld [vmem:[%s29943_s0 + $0x58] sm:$0xff]  ;;  %v199_v5 = vld [vmem:[%s29943_s0 + $0x10] sm:$0xff]  ;;  %118 = vst.msk [vmem:[#allocation3 + $0x8] sm:$0xff] %vm116_vm2, %v29955_v29  ;;  %v22556_v40 = vmov 1983009808  }
   0x3   :  { %19657 = vmatpush3.msk.msra.mxu0 %vm255_vm0, %v211_v0  ;;  %21508 = vmatpush3.msk.msra.mxu1 %vm255_vm0, %v211_v0  ;;  %v200_v6 = vld [vmem:[%s29943_s0 + $0x18] sm:$0xff]  ;;  %v201_v7 = vld [vmem:[%s29943_s0 + $0x20] sm:$0xff]  ;;  %v202_v8 = vld [vmem:[%s29943_s0 + $0x28] sm:$0xff]  ;;  %121 = vst.msk [vmem:[#allocation3 + $0x1b0] sm:$0xff] %vm116_vm2, %v29955_v29  ;;  %v847_v41 = vunpack.c.l.s4 %v22556_v40  ;;  %v22727_v46 = vshrl.u32 %v849_v42, 7  ;;  %s22560_s2 = smov 24  }
   0x4   :  { %19658 = vmatprep.mubr.msk.f32.mxu0 %vm29954_vm1, %v197_v1  ;;  %19673 = vmatprep.mubr.msk.f32.mxu1 %vm29954_vm1, %v207_v2  ;;  %v203_v9 = vld [vmem:[%s29943_s0 + $0x30] sm:$0xff]  ;;  %v204_v10 = vld [vmem:[%s29943_s0 + $0x38] sm:$0xff]  ;;  %v205_v11 = vld [vmem:[%s29943_s0 + $0x40] sm:$0xff]  ;;  %122 = vst.msk [vmem:[#allocation3 + $0x1b8] sm:$0xff] %vm116_vm2, %v29955_v29  ;;  %v22557_v49 = vmov 1934713408  }
   0x5   :  { %19659 = vmatmul.mubr.msk.f32.vlgmr.msra.gmra.mrb[0].mxu0 %vm29954_vm1, %v198_v3  ;;  %19674 = vmatmul.mubr.msk.f32.vlgmr.msra.gmra.mrb[0].mxu1 %vm29954_vm1, %v208_v4  ;;  %v206_v12 = vld [vmem:[%s29943_s0 + $0x48] sm:$0xff]  ;;  %v209_v13 = vld [vmem:[%s29943_s0 + $0x60] sm:$0xff]  ;;  %125 = vst.msk [vmem:[#allocation3 + $0x198] sm:$0xff] %vm116_vm2, %v29955_v29  ;;  %126 = vst.msk [vmem:[#allocation3 + $0x1a0] sm:$0xff] %vm116_vm2, %v29955_v29  ;;  %v848_v45 = vunpack.c.0.s8 %v847_v41  ;;  %v910_v50 = vunpack.c.l.s4 %v22557_v49  ;;  %s22562_s24 = smov 32   ;;  %s22563_s25 = smov 72  }
   0x6   :  { %19661 = vmatprep.mubr.msk.f32.mxu0 %vm29954_vm1, %v199_v5  ;;  %v210_v14 = vld [vmem:[%s29943_s0 + $0x68] sm:$0xff]  ;;  %19676 = vmatprep.mubr.msk.f32.mxu1 %vm29954_vm1, %v209_v13  ;;  %128 = vst.msk [vmem:[#allocation3 + $0x348] sm:$0xff] %vm116_vm2, %v29955_v29  ;;  %129 = vst.msk [vmem:[#allocation3 + $0x350] sm:$0xff] %vm116_vm2, %v29955_v29  ;;  %s22558_s0 = smov 8   ;;  %s22564_s26 = smov 40   ;;  %vm1176_vm4 = vcmask 195584  }
   0x7   :  { %30187 = vst [vmem:[#allocation4_spill] sm:$0xff] %v22727_v46  ;;  %v22732_v52 = vsub.s32 %v848_v45, %v22727_v46  ;;  %v911_v56 = vunpack.c.0.s8 %v910_v50  ;;  %36 = vst.msk [vmem:[#allocation2] sm:$0xff] %vm35_vm3, %v29955_v29  ;;  %s22565_s27 = smov 88   ;;  %s22566_s28 = smov 48   ;;  %vm1178_vm5 = vcmask 261120   ;;  %vm1180_vm6 = vcmask 326656  }
   0x8   :  { %37 = vst.msk [vmem:[#allocation2 + $0x8] sm:$0xff] %vm35_vm3, %v29955_v29  ;;  %40 = vst.msk [vmem:[#allocation2 + $0x1b0] sm:$0xff] %vm35_vm3, %v29955_v29  ;;  %s22567_s29 = smov 104   ;;  %s22568_s30 = smov 64   ;;  %vm1182_vm7 = vcmask 392192   ;;  %vm29953_vm8 = vcmask 457728  }
   0x9   :  { %19662 = vmatmul.mubr.msk.f32.gmra.mrb[2].mxu0 %vm29954_vm1, %v200_v6  ;;  %19677 = vmatmul.mubr.msk.f32.gmra.mrb[2].mxu1 %vm29954_vm1, %v210_v14  ;;  %41 = vst.msk [vmem:[#allocation2 + $0x1b8] sm:$0xff] %vm35_vm3, %v29955_v29  ;;  %44 = vst.msk [vmem:[#allocation2 + $0x198] sm:$0xff] %vm35_vm3, %v29955_v29  ;;  %v22756_v2 = vsub.s32 %v911_v56, %v22727_v46  ;;  %s22569_s11 = smov 120   ;;  %s22570_s14 = smov 80   ;;  %vm1186_vm9 = vcmask 523264   ;;  %vm1188_vm10 = vcmask 588800  }
   0xa   :  { %19664 = vmatprep.mubr.msk.f32.mxu0 %vm29954_vm1, %v201_v7  ;;  %45 = vst.msk [vmem:[#allocation2 + $0x1a0] sm:$0xff] %vm35_vm3, %v29955_v29  ;;  %47 = vst.msk [vmem:[#allocation2 + $0x348] sm:$0xff] %vm35_vm3, %v29955_v29  ;;  %s22571_s15 = smov 96   ;;  %s22572_s16 = smov 112   ;;  %vm1190_vm11 = vcmask 654336   ;;  %vm1192_vm12 = vcmask 719872  }
   0xb   :  { %48 = vst.msk [vmem:[#allocation2 + $0x350] sm:$0xff] %vm35_vm3, %v29955_v29  ;;  %vm1194_vm13 = vcmask 785408   ;;  %vm1196_vm14 = vcmask 850944   ;;  %vm1198_vm15 = vcmask 916480  }
   0xd   :  { %19665 = vmatmul.mubr.msk.f32.gmra.mrb[4].mxu0 %vm29954_vm1, %v202_v8 }
   0xe   :  { %19667 = vmatprep.mubr.msk.f32.mxu0 %vm29954_vm1, %v203_v9 }
  0x11   :  { %19668 = vmatmul.mubr.msk.f32.gmra.mrb[6].mxu0 %vm29954_vm1, %v204_v10 }
  0x12   :  { %19670 = vmatprep.mubr.msk.f32.mxu0 %vm29954_vm1, %v205_v11 }
  0x15   :  { %19671 = vmatmul.mubr.msk.f32.gmra.mrb[8].mxu0 %vm29954_vm1, %v206_v12 }
  0xd8   :  { %v19660_v15 = vpop.f32.mrb[0].mxu0  ;;  %v19675_v16 = vpop.f32.mrb[0].mxu1 }
  0xd9   :  { %746 = vxpose.xlu1.b32.start.end [1/1] (short) (narrow) %v19675_v16, 16  ;;  %v375_v17 = vpop.f32.mrb[1].mxu1  ;;  %426 = vxpose.xlu0.b32.start.end [1/1] (short) (narrow) %v19660_v15, 16  ;;  %v325_v18 = vpop.f32.mrb[1].mxu0 }
  0xdc   :  { %v19663_v19 = vpop.f32.mrb[2].mxu0  ;;  %v22691_v27 = vpop.f32.mrb[2].mxu1 }
  0xdd   :  { %v335_v20 = vpop.f32.mrb[3].mxu0  ;;  %v22693_v28 = vpop.f32.mrb[3].mxu1 }
  0xde   :  { %394 = vxpose.xlu0.b32.start.end [1/1] (short) (narrow) %v325_v18, 16  ;;  %490 = vxpose.xlu1.b32.start.end [1/1] (short) (narrow) %v19663_v19, 16 }
  0xe0   :  { %v19666_v21 = vpop.f32.mrb[4].mxu0 }
  0xe1   :  { %v345_v22 = vpop.f32.mrb[5].mxu0 }
  0xe3   :  { %714 = vxpose.xlu0.b32.start.end [1/1] (short) (narrow) %v375_v17, 16  ;;  %458 = vxpose.xlu1.b32.start.end [1/1] (short) (narrow) %v335_v20, 16 }
  0xe4   :  { %v19669_v23 = vpop.f32.mrb[6].mxu0 }
  0xe5   :  { %v355_v24 = vpop.f32.mrb[7].mxu0 }
  0xe8   :  { %554 = vxpose.xlu0.b32.start.end [1/1] (short) (narrow) %v19666_v21, 16  ;;  %618 = vxpose.xlu1.b32.start.end [1/1] (short) (narrow) %v19669_v23, 16  ;;  %v19672_v25 = vpop.f32.mrb[8].mxu0 }
  0xe9   :  { %v365_v26 = vpop.f32.mrb[9].mxu0 }
  0xed   :  { %522 = vxpose.xlu0.b32.start.end [1/1] (short) (narrow) %v345_v22, 16  ;;  %586 = vxpose.xlu1.b32.start.end [1/1] (short) (narrow) %v355_v24, 16 }
  0xf2   :  { %682 = vxpose.xlu0.b32.start.end [1/1] (short) (narrow) %v19672_v25, 16 }
  0xf7   :  { %650 = vxpose.xlu0.b32.start.end [1/1] (short) (narrow) %v365_v26, 16 }
 0x159   :  { %v22711_v30 = vpop.trf.xlu1  ;;  %v442_v31 = vpop.trf.xlu0 }
 0x15d   :  { %v22713_v32 = vpop.trf.xlu1  ;;  %v22715_v33 = vpop.trf.xlu0 }
 0x161   :  { %v410_v34 = vpop.trf.xlu0  ;;  %v506_v35 = vpop.trf.xlu1 }
 0x162   :  { %v860_v53 = vcombine.low %v442_v31, %v506_v35  ;;  %v861_v60 = vcombine.high %v442_v31, %v506_v35 }
 0x164   :  { %v868_v61 = vrot.slane %v860_v53, %v22732_v52  ;;  %v875_v11 = vrot.slane %v861_v60, %v22732_v52 }
 0x165   :  { %v22717_v36 = vpop.trf.xlu0  ;;  %v22719_v37 = vpop.trf.xlu1 }
 0x166   :  { %v995_v14 = vcombine.low %v22715_v33, %v22719_v37  ;;  %v996_v53 = vcombine.high %v22715_v33, %v22719_v37 }
 0x168   :  { %v1003_v35 = vrot.slane %v995_v14, %v22732_v52  ;;  %v1010_v37 = vrot.slane %v996_v53, %v22732_v52 }
 0x169   :  { %v22721_v38 = vpop.trf.xlu0  ;;  %v474_v39 = vpop.trf.xlu1 }
 0x16a   :  { %v844_v51 = vcombine.low %v410_v34, %v474_v39  ;;  %v845_v57 = vcombine.high %v410_v34, %v474_v39 }
 0x16c   :  { %v852_v58 = vrot.slane %v844_v51, %v22732_v52  ;;  %v859_v3 = vrot.slane %v845_v57, %v22732_v52 }
 0x16d   :  { %v22723_v43 = vpop.trf.xlu0  ;;  %v22725_v44 = vpop.trf.xlu1 }
 0x16e   :  { %v907_v4 = vcombine.low %v852_v58, %v868_v61  ;;  %v908_v5 = vcombine.high %v852_v58, %v868_v61  ;;  %v979_v6 = vcombine.low %v22717_v36, %v22725_v44  ;;  %v924_v18 = vcombine.high %v859_v3, %v875_v11 }
 0x16f   :  { %v923_v42 = vcombine.low %v859_v3, %v875_v11  ;;  %v980_v49 = vcombine.high %v22717_v36, %v22725_v44 }
 0x170   :  { %v22769_v20 = vrot.slane %v907_v4, %v22756_v2  ;;  %v987_v21 = vrot.slane %v979_v6, %v22732_v52  ;;  %v922_v23 = vrot.slane %v908_v5, %v22756_v2  ;;  %v938_v51 = vrot.slane %v924_v18, %v22756_v2 }
 0x171   :  { %v570_v47 = vpop.trf.xlu0  ;;  %v22729_v48 = vpop.trf.xlu1  ;;  %v931_v60 = vrot.slane %v923_v42, %v22756_v2  ;;  %v994_v61 = vrot.slane %v980_v49, %v22732_v52 }
 0x172   :  { %v892_v59 = vcombine.high %v570_v47, %v29955_v29  ;;  %v899_v7 = vrot.slane %v570_v47, %v22732_v52  ;;  %v1042_v50 = vcombine.low %v987_v21, %v1003_v35 }
 0x173   :  { %v1058_v5 = vcombine.low %v994_v61, %v1010_v37  ;;  %v1059_v11 = vcombine.high %v994_v61, %v1010_v37 }
 0x174   :  { %v906_v8 = vrot.slane %v892_v59, %v22732_v52  ;;  %v1050_v33 = vrot.slane %v1042_v50, %v22756_v2 }
 0x175   :  { %v571_v54 = vpop.trf.xlu0  ;;  %v22734_v55 = vpop.trf.xlu1 }
 0x176   :  { %v1034_v25 = vrot.slane %v571_v54, %v22732_v52  ;;  %v1027_v45 = vcombine.high %v571_v54, %v29955_v29 }
 0x178   :  { %v1041_v44 = vrot.slane %v1027_v45, %v22732_v52 }
 0x179   :  { %v538_v62 = vpop.trf.xlu0  ;;  %v602_v63 = vpop.trf.xlu1 }
 0x17a   :  { %v876_v0 = vcombine.low %v538_v62, %v602_v63  ;;  %v877_v1 = vcombine.high %v538_v62, %v602_v63  ;;  %v1043_v62 = vcombine.high %v987_v21, %v1003_v35 }
 0x17c   :  { %v884_v9 = vrot.slane %v876_v0, %v22732_v52  ;;  %v891_v10 = vrot.slane %v877_v1, %v22732_v52  ;;  %v1057_v6 = vrot.slane %v1043_v62, %v22756_v2 }
 0x17d   :  { %v539_v12 = vpop.trf.xlu0  ;;  %v603_v13 = vpop.trf.xlu1 }
 0x17e   :  { %v939_v15 = vcombine.low %v884_v9, %v899_v7  ;;  %v940_v16 = vcombine.high %v884_v9, %v899_v7  ;;  %v956_v17 = vcombine.high %v891_v10, %v906_v8  ;;  %v1011_v19 = vcombine.low %v539_v12, %v603_v13 }
 0x17f   :  { %v955_v26 = vcombine.low %v891_v10, %v906_v8  ;;  %v1012_v31 = vcombine.high %v539_v12, %v603_v13  ;;  %v1066_v12 = vrot.slane %v1058_v5, %v22756_v2 }
 0x180   :  { %v22773_v22 = vrot.slane %v939_v15, %v22756_v2  ;;  %v954_v24 = vrot.slane %v940_v16, %v22756_v2  ;;  %v1019_v34 = vrot.slane %v1011_v19, %v22732_v52  ;;  %v970_v41 = vrot.slane %v956_v17, %v22756_v2 }
 0x181   :  { %v1026_v56 = vrot.slane %v1012_v31, %v22732_v52  ;;  %v963_v54 = vrot.slane %v955_v26, %v22756_v2  ;;  %v1073_v16 = vrot.slane %v1059_v11, %v22756_v2 }
 0x182   :  { %v972_v39 = vcombine.high %v22769_v20, %v22773_v22  ;;  %v973_v40 = vcombine.low %v922_v23, %v954_v24  ;;  %v1074_v47 = vcombine.low %v1019_v34, %v1034_v25  ;;  %v1075_v57 = vcombine.high %v1019_v34, %v1034_v25 }
 0x183   :  { %v974_v58 = vcombine.high %v922_v23, %v954_v24  ;;  %v978_v59 = vcombine.high %v938_v51, %v970_v41  ;;  %v1090_v63 = vcombine.low %v1026_v56, %v1041_v44  ;;  %v975_v0 = vcombine.low %v931_v60, %v963_v54  ;;  %v22829_v23 = vpop.trf.xlu0 }
 0x184   :  { %1115 = vrot.lane.b32.xlu1 %v972_v39, %s22558_s0  ;;  %1119 = vrot.lane.b32.xlu0 %v973_v40, %s22559_s22  ;;  %v1082_v36 = vrot.slane %v1074_v47, %v22756_v2  ;;  %v1089_v3 = vrot.slane %v1075_v57, %v22756_v2  ;;  %v971_v4 = vcombine.low %v22769_v20, %v22773_v22  ;;  %v22820_v20 = vld [vmem:[%s29944_s3] sm:$0xff] }
 0x185   :  { %v1091_v7 = vcombine.high %v1026_v56, %v1041_v44  ;;  %v976_v8 = vcombine.high %v931_v60, %v963_v54  ;;  %v1098_v10 = vrot.slane %v1090_v63, %v22756_v2  ;;  %v977_v13 = vcombine.low %v938_v51, %v970_v41  ;;  %19681 = vmatprep.mubr.msk.f32.mxu1 %vm29954_vm1, %v22820_v20 }
 0x186   :  { %v1107_v1 = vcombine.high %v1050_v33, %v1082_v36  ;;  %v1109_v9 = vcombine.high %v1057_v6, %v1089_v3  ;;  %v1106_v17 = vcombine.low %v1050_v33, %v1082_v36  ;;  %v1108_v19 = vcombine.low %v1057_v6, %v1089_v3  ;;  %v22853_v3 = vld [vmem:[%s29944_s3 + $0x8] sm:$0xff] }
 0x187   :  { %v1111_v14 = vcombine.high %v1066_v12, %v1098_v10  ;;  %v1105_v15 = vrot.slane %v1091_v7, %v22756_v2  ;;  %v1110_v21 = vcombine.low %v1066_v12, %v1098_v10  ;;  %v22831_v24 = vpop.trf.xlu0  ;;  %v2085_v6 = vcombine.low %v22729_v48, %v22829_v23 }
 0x188   :  { %1123 = vrot.lane.b32.xlu1 %v974_v58, %s22560_s2  ;;  %1139 = vrot.lane.b32.xlu0 %v978_v59, %s22561_s23  ;;  %v2086_v10 = vcombine.high %v22729_v48, %v22829_v23  ;;  %v2220_v48 = vcombine.low %v22734_v55, %v22831_v24 }
 0x189   :  { %v1113_v18 = vcombine.high %v1073_v16, %v1105_v15  ;;  %v1112_v22 = vcombine.low %v1073_v16, %v1105_v15  ;;  %v2093_v11 = vrot.slane %v2085_v6, %v22732_v52 }
 0x18b   :  { %v666_v25 = vpop.trf.xlu0 }
 0x18c   :  { %1127 = vrot.lane.b32.xlu1 %v975_v0, %s22562_s24  ;;  %1147 = vrot.lane.b32.xlu0 %v1107_v1, %s22563_s25  ;;  %v2102_v7 = vcombine.high %v666_v25, %v22721_v38 }
 0x18f   :  { %v22833_v26 = vpop.trf.xlu0 }
 0x190   :  { %1131 = vrot.lane.b32.xlu1 %v976_v8, %s22564_s26  ;;  %1155 = vrot.lane.b32.xlu0 %v1109_v9, %s22565_s27 }
 0x194   :  { %1135 = vrot.lane.b32.xlu1 %v977_v13, %s22566_s28  ;;  %1163 = vrot.lane.b32.xlu0 %v1111_v14, %s22567_s29  ;;  %v2116_v14 = vrot.slane %v2102_v7, %v22732_v52 }
 0x198   :  { %1143 = vrot.lane.b32.xlu1 %v1106_v17, %s22568_s30  ;;  %1171 = vrot.lane.b32.xlu0 %v1113_v18, %s22569_s11 }
 0x19c   :  { %1151 = vrot.lane.b32.xlu1 %v1108_v19, %s22570_s14 }
 0x1a0   :  { %1159 = vrot.lane.b32.xlu1 %v1110_v21, %s22571_s15 }
 0x1a4   :  { %1167 = vrot.lane.b32.xlu1 %v1112_v22, %s22572_s16 }
 0x1b6   :  { %810 = vxpose.xlu0.b32.start.end [1/1] (short) (narrow) %v22691_v27, 16 }
 0x1cd   :  { %778 = vxpose.xlu1.b32.start.end [1/1] (short) (narrow) %v22693_v28, 16 }
 0x1f6   :  { %v1116_v31 = vpop.permute.xlu1 %1115  ;;  %v1120_v34 = vpop.permute.xlu0 %1119 }
 0x1f7   :  { %v1174_v41 = vsel %vm116_vm2, %v971_v4, %v1116_v31  ;;  %v2101_v4 = vcombine.low %v666_v25, %v22721_v38 }
 0x1f8   :  { %v1175_v27 = vsel %vm35_vm3, %v1174_v41, %v1120_v34 }
 0x1f9   :  { %v2109_v8 = vrot.slane %v2101_v4, %v22732_v52 }
 0x1fa   :  { %v1124_v35 = vpop.permute.xlu1 %1123  ;;  %v1140_v40 = vpop.permute.xlu0 %1139 }
 0x1fb   :  { %v1177_v28 = vsel %vm1176_vm4, %v1175_v27, %v1124_v35  ;;  %v2148_v15 = vcombine.low %v2093_v11, %v2109_v8  ;;  %v2149_v17 = vcombine.high %v2093_v11, %v2109_v8 }
 0x1fd   :  { %v2163_v41 = vrot.slane %v2149_v17, %v22756_v2 }
 0x1fe   :  { %v1128_v39 = vpop.permute.xlu1 %1127  ;;  %v1148_v47 = vpop.permute.xlu0 %1147 }
 0x1ff   :  { %v1179_v45 = vsel %vm1178_vm5, %v1177_v28, %v1128_v39 }
 0x202   :  { %v1132_v42 = vpop.permute.xlu1 %1131  ;;  %v1156_v54 = vpop.permute.xlu0 %1155 }
 0x203   :  { %v1181_v49 = vsel %vm1180_vm6, %v1179_v45, %v1132_v42  ;;  %v22886_v42 = vrot.slane %v2148_v15, %v22756_v2 }
 0x206   :  { %v1136_v50 = vpop.permute.xlu1 %1135  ;;  %v1164_v44 = vpop.permute.xlu0 %1163 }
 0x207   :  { %v1183_v51 = vsel %vm1182_vm7, %v1181_v49, %v1136_v50  ;;  %v2228_v49 = vrot.slane %v2220_v48, %v22732_v52 }
 0x208   :  { %v1185_v56 = vsel %vm29953_vm8, %v1183_v51, %v1140_v40  ;;  %vm1200_vm8 = vcmask 982016  }
 0x20a   :  { %v1144_v53 = vpop.permute.xlu1 %1143  ;;  %v1172_v63 = vpop.permute.xlu0 %1171 }
 0x20b   :  { %v1187_v57 = vsel %vm1186_vm9, %v1185_v56, %v1144_v53 }
 0x20c   :  { %v1189_v59 = vsel %vm1188_vm10, %v1187_v57, %v1148_v47 }
 0x20e   :  { %v1152_v58 = vpop.permute.xlu1 %1151 }
 0x20f   :  { %v1191_v36 = vsel %vm1190_vm11, %v1189_v59, %v1152_v58  ;;  %v2237_v59 = vcombine.high %v22833_v26, %v22723_v43 }
 0x210   :  { %v1193_v61 = vsel %vm1192_vm12, %v1191_v36, %v1156_v54 }
 0x212   :  { %v1160_v60 = vpop.permute.xlu1 %1159 }
 0x213   :  { %v1195_v62 = vsel %vm1194_vm13, %v1193_v61, %v1160_v60  ;;  %v2221_v61 = vcombine.high %v22734_v55, %v22831_v24 }
 0x214   :  { %v1197_v37 = vsel %vm1196_vm14, %v1195_v62, %v1164_v44 }
 0x215   :  { %v2235_v24 = vrot.slane %v2221_v61, %v22732_v52 }
 0x216   :  { %v1168_v33 = vpop.permute.xlu1 %1167 }
 0x217   :  { %v1199_v0 = vsel %vm1198_vm15, %v1197_v37, %v1168_v33 }
 0x218   :  { %v1201_v1 = vsel %vm1200_vm8, %v1199_v0, %v1172_v63 }
 0x219   :  { %19679 = vmatprep.subr.msk.mxu1 %vm255_vm0, %v1201_v1 }
 0x21a   :  { %19680 = vmatpush3.msk.msra.mxu1 %vm255_vm0, %v1201_v1 }
 0x21b   :  { %19682 = vmatmul.mubr.msk.f32.vlgmr.msra.gmra.mrb[4].mxu1 %vm29954_vm1, %v22853_v3 }
 0x21c   :  { %19686 = vmatprep.mubr.msk.f32.mxu1 %vm29954_vm1, %v22820_v20  ;;  %v2100_v20 = vrot.slane %v2086_v10, %v22732_v52  ;;  %vm30188_vm1 = vcmask 457728  }
 0x21e   :  { %v2165_v34 = vcombine.high %v2100_v20, %v2116_v14  ;;  %v2164_v58 = vcombine.low %v2100_v20, %v2116_v14 }
 0x220   :  { %v2179_v60 = vrot.slane %v2165_v34, %v22756_v2  ;;  %v2172_v1 = vrot.slane %v2164_v58, %v22756_v2 }
 0x236   :  { %v826_v5 = vpop.trf.xlu0 }
 0x237   :  { %v2117_v9 = vcombine.low %v22711_v30, %v826_v5  ;;  %v2118_v12 = vcombine.high %v22711_v30, %v826_v5  ;;  %v2236_v30 = vcombine.low %v22833_v26, %v22723_v43  ;;  %v2251_v26 = vrot.slane %v2237_v59, %v22732_v52 }
 0x239   :  { %v2125_v18 = vrot.slane %v2117_v9, %v22732_v52  ;;  %v2132_v22 = vrot.slane %v2118_v12, %v22732_v52  ;;  %v2244_v27 = vrot.slane %v2236_v30, %v22732_v52  ;;  %v2299_v10 = vcombine.low %v2235_v24, %v2251_v26 }
 0x23a   :  { %v827_v13 = vpop.trf.xlu0 }
 0x23b   :  { %v2252_v21 = vcombine.low %v22713_v32, %v827_v13  ;;  %v2283_v36 = vcombine.low %v2228_v49, %v2244_v27  ;;  %v2253_v44 = vcombine.high %v22713_v32, %v827_v13  ;;  %v2284_v4 = vcombine.high %v2228_v49, %v2244_v27 }
 0x23c   :  { %v2307_v17 = vrot.slane %v2299_v10, %v22756_v2 }
 0x23d   :  { %v2260_v28 = vrot.slane %v2252_v21, %v22732_v52  ;;  %v2267_v5 = vrot.slane %v2253_v44, %v22732_v52  ;;  %v2291_v55 = vrot.slane %v2283_v36, %v22756_v2  ;;  %v2298_v11 = vrot.slane %v2284_v4, %v22756_v2 }
 0x24d   :  { %v794_v16 = vpop.trf.xlu1 }
 0x24e   :  { %v2133_v38 = vcombine.high %v794_v16, %v29955_v29  ;;  %v2140_v19 = vrot.slane %v794_v16, %v22732_v52  ;;  %v2300_v16 = vcombine.high %v2235_v24, %v2251_v26 }
 0x250   :  { %v2147_v23 = vrot.slane %v2133_v38, %v22732_v52  ;;  %v2180_v25 = vcombine.low %v2125_v18, %v2140_v19  ;;  %v2181_v31 = vcombine.high %v2125_v18, %v2140_v19  ;;  %v2314_v20 = vrot.slane %v2300_v16, %v22756_v2 }
 0x251   :  { %v795_v35 = vpop.trf.xlu1 }
 0x252   :  { %v2197_v39 = vcombine.high %v2132_v22, %v2147_v23  ;;  %v2275_v40 = vrot.slane %v795_v35, %v22732_v52  ;;  %v2195_v45 = vrot.slane %v2181_v31, %v22756_v2  ;;  %v22892_v47 = vrot.slane %v2180_v25, %v22756_v2 }
 0x253   :  { %v2196_v50 = vcombine.low %v2132_v22, %v2147_v23  ;;  %v2268_v51 = vcombine.high %v795_v35, %v29955_v29 }
 0x254   :  { %v2315_v53 = vcombine.low %v2260_v28, %v2275_v40  ;;  %v2214_v56 = vcombine.low %v2163_v41, %v2195_v45  ;;  %v2213_v54 = vcombine.high %v22886_v42, %v22892_v47  ;;  %v2211_v57 = vrot.slane %v2197_v39, %v22756_v2 }
 0x255   :  { %v2282_v62 = vrot.slane %v2268_v51, %v22732_v52  ;;  %v2316_v33 = vcombine.high %v2260_v28, %v2275_v40  ;;  %v2215_v37 = vcombine.high %v2163_v41, %v2195_v45  ;;  %v2204_v0 = vrot.slane %v2196_v50, %v22756_v2 }
 0x256   :  { %2360 = vrot.lane.b32.xlu1 %v2214_v56, %s22559_s22  ;;  %2356 = vrot.lane.b32.xlu0 %v2213_v54, %s22558_s0  ;;  %v2218_v63 = vcombine.low %v2179_v60, %v2211_v57  ;;  %v2323_v43 = vrot.slane %v2315_v53, %v22756_v2  ;;  %v2212_v32 = vcombine.low %v22886_v42, %v22892_v47 }
 0x257   :  { %v2331_v6 = vcombine.low %v2267_v5, %v2282_v62  ;;  %v2216_v7 = vcombine.low %v2172_v1, %v2204_v0  ;;  %v2330_v9 = vrot.slane %v2316_v33, %v22756_v2  ;;  %v2332_v12 = vcombine.high %v2267_v5, %v2282_v62 }
 0x258   :  { %v2347_v8 = vcombine.low %v2291_v55, %v2323_v43  ;;  %v2217_v13 = vcombine.high %v2172_v1, %v2204_v0  ;;  %v2219_v18 = vcombine.high %v2179_v60, %v2211_v57  ;;  %v2348_v48 = vcombine.high %v2291_v55, %v2323_v43 }
 0x259   :  { %v2349_v14 = vcombine.low %v2298_v11, %v2330_v9  ;;  %v2339_v15 = vrot.slane %v2331_v6, %v22756_v2  ;;  %v2346_v19 = vrot.slane %v2332_v12, %v22756_v2  ;;  %v2350_v21 = vcombine.high %v2298_v11, %v2330_v9 }
 0x25a   :  { %2364 = vrot.lane.b32.xlu1 %v2215_v37, %s22560_s2  ;;  %2376 = vrot.lane.b32.xlu0 %v2218_v63, %s22566_s28 }
 0x25b   :  { %v2351_v38 = vcombine.low %v2307_v17, %v2339_v15  ;;  %v2353_v30 = vcombine.low %v2314_v20, %v2346_v19  ;;  %v2352_v22 = vcombine.high %v2307_v17, %v2339_v15  ;;  %v2354_v23 = vcombine.high %v2314_v20, %v2346_v19 }
 0x25e   :  { %2368 = vrot.lane.b32.xlu1 %v2216_v7, %s22562_s24  ;;  %2384 = vrot.lane.b32.xlu0 %v2347_v8, %s22568_s30 }
 0x262   :  { %2372 = vrot.lane.b32.xlu1 %v2217_v13, %s22564_s26  ;;  %2392 = vrot.lane.b32.xlu0 %v2349_v14, %s22570_s14 }
 0x266   :  { %2380 = vrot.lane.b32.xlu1 %v2219_v18, %s22561_s23  ;;  %2400 = vrot.lane.b32.xlu0 %v2351_v38, %s22571_s15 }
 0x26a   :  { %2388 = vrot.lane.b32.xlu1 %v2348_v48, %s22563_s25  ;;  %2408 = vrot.lane.b32.xlu0 %v2353_v30, %s22572_s16 }
 0x26e   :  { %2396 = vrot.lane.b32.xlu1 %v2350_v21, %s22565_s27 }
 0x272   :  { %2404 = vrot.lane.b32.xlu1 %v2352_v22, %s22567_s29 }
 0x276   :  { %2412 = vrot.lane.b32.xlu1 %v2354_v23, %s22569_s11 }
 0x2c8   :  { %v2361_v25 = vpop.permute.xlu1 %2360  ;;  %v2357_v31 = vpop.permute.xlu0 %2356 }
 0x2c9   :  { %v2415_v35 = vsel %vm116_vm2, %v2212_v32, %v2357_v31 }
 0x2ca   :  { %v2416_v41 = vsel %vm35_vm3, %v2415_v35, %v2361_v25 }
 0x2cc   :  { %v2365_v34 = vpop.permute.xlu1 %2364  ;;  %v2377_v39 = vpop.permute.xlu0 %2376 }
 0x2cd   :  { %v2417_v42 = vsel %vm1176_vm4, %v2416_v41, %v2365_v34  ;;  %vm2050_vm4 = vcmask 130112  }
 0x2d0   :  { %v2369_v40 = vpop.permute.xlu1 %2368  ;;  %v2385_v45 = vpop.permute.xlu0 %2384 }
 0x2d1   :  { %v2418_v27 = vsel %vm1178_vm5, %v2417_v42, %v2369_v40  ;;  %vm51_vm5 = vcmask 122880  }
 0x2d4   :  { %v2373_v28 = vpop.permute.xlu1 %2372  ;;  %v2393_v53 = vpop.permute.xlu0 %2392 }
 0x2d5   :  { %v2419_v47 = vsel %vm1180_vm6, %v2418_v27, %v2373_v28  ;;  %vm132_vm6 = vcmask 57344  }
 0x2d6   :  { %v2420_v50 = vsel %vm1182_vm7, %v2419_v47, %v2377_v39 }
 0x2d8   :  { %v2381_v49 = vpop.permute.xlu1 %2380  ;;  %v2401_v36 = vpop.permute.xlu0 %2400 }
 0x2d9   :  { %v2421_v51 = vsel %vm30188_vm1, %v2420_v50, %v2381_v49  ;;  %vm30189_vm1 = vcmask 56320  }
 0x2da   :  { %v2422_v54 = vsel %vm1186_vm9, %v2421_v51, %v2385_v45 }
 0x2dc   :  { %v2389_v56 = vpop.permute.xlu1 %2388  ;;  %v2409_v33 = vpop.permute.xlu0 %2408 }
 0x2dd   :  { %v2423_v57 = vsel %vm1188_vm10, %v2422_v54, %v2389_v56 }
 0x2de   :  { %v2424_v59 = vsel %vm1190_vm11, %v2423_v57, %v2393_v53 }
 0x2e0   :  { %v2397_v58 = vpop.permute.xlu1 %2396 }
 0x2e1   :  { %v2425_v44 = vsel %vm1192_vm12, %v2424_v59, %v2397_v58 }
 0x2e2   :  { %v2426_v61 = vsel %vm1194_vm13, %v2425_v44, %v2401_v36 }
 0x2e4   :  { %v2405_v60 = vpop.permute.xlu1 %2404 }
 0x2e5   :  { %v2427_v62 = vsel %vm1196_vm14, %v2426_v61, %v2405_v60 }
 0x2e6   :  { %v2428_v63 = vsel %vm1198_vm15, %v2427_v62, %v2409_v33 }
 0x2e8   :  { %v2413_v37 = vpop.permute.xlu1 %2412 }
 0x2e9   :  { %v2429_v0 = vsel %vm1200_vm8, %v2428_v63, %v2413_v37 }
 0x2ea   :  { %19684 = vmatprep.subr.msk.mxu1 %vm255_vm0, %v2429_v0 }
 0x2eb   :  { %19685 = vmatpush3.msk.msra.mxu1 %vm255_vm0, %v2429_v0  ;;  %vm38_vm0 = vcmask 123904  }
 0x2ec   :  { %19687 = vmatmul.mubr.msk.f32.vlgmr.msra.gmra.mrb[6].mxu1 %vm30189_vm1, %v22853_v3 }
 0x2ee   :  { %v22955_v43 = vpop.f32.mrb[4].mxu1 }
 0x2ef   :  { %1290 = vrot.lane.b32.xlu1 %v22955_v43, %s22569_s11  ;;  %1296 = vrot.lane.b32.xlu0 %v22955_v43, %s22572_s16  ;;  %v22961_v32 = vpop.f32.mrb[5].mxu1 }
 0x2f3   :  { %1302 = vrot.lane.b32.xlu1 %v22955_v43, %s22567_s29  ;;  %1308 = vrot.lane.b32.xlu0 %v22955_v43, %s22571_s15 }
 0x2f7   :  { %1314 = vrot.lane.b32.xlu1 %v22955_v43, %s22565_s27  ;;  %1320 = vrot.lane.b32.xlu0 %v22955_v43, %s22570_s14 }
 0x2fb   :  { %1326 = vrot.lane.b32.xlu1 %v22955_v43, %s22563_s25  ;;  %1332 = vrot.lane.b32.xlu0 %v22955_v43, %s22568_s30 }
 0x2ff   :  { %1338 = vrot.lane.b32.xlu1 %v22955_v43, %s22561_s23  ;;  %1344 = vrot.lane.b32.xlu0 %v22955_v43, %s22566_s28 }
 0x303   :  { %1350 = vrot.lane.b32.xlu1 %v22955_v43, %s22564_s26  ;;  %1356 = vrot.lane.b32.xlu0 %v22955_v43, %s22562_s24 }
 0x307   :  { %1362 = vrot.lane.b32.xlu1 %v22955_v43, %s22560_s2  ;;  %1288 = vrot.lane.b32.xlu0 %v22961_v32, %s22569_s11 }
 0x30b   :  { %1294 = vrot.lane.b32.xlu1 %v22961_v32, %s22572_s16  ;;  %1300 = vrot.lane.b32.xlu0 %v22961_v32, %s22567_s29 }
 0x30f   :  { %1306 = vrot.lane.b32.xlu1 %v22961_v32, %s22571_s15  ;;  %1312 = vrot.lane.b32.xlu0 %v22961_v32, %s22565_s27 }
 0x313   :  { %1318 = vrot.lane.b32.xlu1 %v22961_v32, %s22570_s14  ;;  %1324 = vrot.lane.b32.xlu0 %v22961_v32, %s22563_s25 }
 0x317   :  { %1330 = vrot.lane.b32.xlu1 %v22961_v32, %s22568_s30  ;;  %1336 = vrot.lane.b32.xlu0 %v22961_v32, %s22561_s23 }
 0x31b   :  { %1342 = vrot.lane.b32.xlu1 %v22961_v32, %s22566_s28  ;;  %1348 = vrot.lane.b32.xlu0 %v22961_v32, %s22564_s26 }
 0x31f   :  { %1354 = vrot.lane.b32.xlu1 %v22961_v32, %s22562_s24  ;;  %1360 = vrot.lane.b32.xlu0 %v22961_v32, %s22560_s2 }
 0x323   :  { %1366 = vrot.lane.b32.xlu1 %v22961_v32, %s22559_s22  ;;  %1372 = vrot.lane.b32.xlu0 %v22961_v32, %s22558_s0 }
 0x327   :  { %1374 = vrot.lane.b32.xlu1 %v22955_v43, %s22558_s0  ;;  %1368 = vrot.lane.b32.xlu0 %v22955_v43, %s22559_s22 }
 0x361   :  { %v23019_v3 = vpop.permute.xlu1 %1290  ;;  %v23021_v26 = vpop.permute.xlu0 %1296 }
 0x362   :  { %v1651_v7 = vcombine.high %v22955_v43, %v23021_v26 }
 0x364   :  { %v23050_v13 = vrot.slane %v1651_v7, %v22732_v52 }
 0x365   :  { %v23023_v1 = vpop.permute.xlu1 %1302  ;;  %v23025_v4 = vpop.permute.xlu0 %1308 }
 0x366   :  { %v1667_v24 = vcombine.high %v23019_v3, %v23023_v1 }
 0x368   :  { %v23042_v10 = vrot.slane %v1667_v24, %v22732_v52 }
 0x369   :  { %v23027_v5 = vpop.permute.xlu1 %1314  ;;  %v23029_v55 = vpop.permute.xlu0 %1320 }
 0x36a   :  { %v1683_v6 = vcombine.high %v23025_v4, %v23029_v55  ;;  %v1731_v17 = vcombine.high %v23050_v13, %v23042_v10 }
 0x36c   :  { %v23045_v11 = vrot.slane %v1683_v6, %v22732_v52  ;;  %v23071_v48 = vrot.slane %v1731_v17, %v22756_v2 }
 0x36d   :  { %v23037_v8 = vpop.permute.xlu1 %1326  ;;  %v23039_v9 = vpop.permute.xlu0 %1332 }
 0x36e   :  { %v1699_v12 = vcombine.high %v23027_v5, %v23037_v8  ;;  %30190 = vst [vmem:[#allocation5_spill] sm:$0xff] %v23071_v48 }
 0x370   :  { %v23053_v14 = vrot.slane %v1699_v12, %v22732_v52 }
 0x371   :  { %v23055_v15 = vpop.permute.xlu1 %1338  ;;  %v23057_v16 = vpop.permute.xlu0 %1344 }
 0x372   :  { %v1763_v18 = vcombine.high %v23045_v11, %v23053_v14  ;;  %v1787_v47 = vcombine.high %v23039_v9, %v23057_v16 }
 0x374   :  { %v23064_v38 = vrot.slane %v1763_v18, %v22756_v2  ;;  %v23112_v53 = vrot.slane %v1787_v47, %v22732_v52 }
 0x375   :  { %v23066_v19 = vpop.permute.xlu1 %1350  ;;  %v23068_v20 = vpop.permute.xlu0 %1356 }
 0x376   :  { %v1803_v49 = vcombine.high %v23055_v15, %v23066_v19 }
 0x378   :  { %v23115_v56 = vrot.slane %v1803_v49, %v22732_v52 }
 0x379   :  { %v23075_v21 = vpop.permute.xlu1 %1362  ;;  %v23077_v22 = vpop.permute.xlu0 %1288 }
 0x37a   :  { %v1867_v36 = vcombine.high %v23112_v53, %v23115_v56 }
 0x37c   :  { %v23136_v62 = vrot.slane %v1867_v36, %v22756_v2 }
 0x37d   :  { %v23079_v23 = vpop.permute.xlu1 %1294  ;;  %v23081_v25 = vpop.permute.xlu0 %1300 }
 0x37e   :  { %30191 = vst [vmem:[#allocation6_spill] sm:$0xff] %v23136_v62  ;;  %v1378_v7 = vcombine.low %v22961_v32, %v23079_v23  ;;  %v1394_v12 = vcombine.low %v23077_v22, %v23081_v25 }
 0x380   :  { %v1386_v47 = vrot.slane %v1378_v7, %v22732_v52  ;;  %v1402_v49 = vrot.slane %v1394_v12, %v22732_v52 }
 0x381   :  { %v23083_v31 = vpop.permute.xlu1 %1306  ;;  %v23085_v34 = vpop.permute.xlu0 %1312 }
 0x382   :  { %v1443_v48 = vcombine.high %v1386_v47, %v1402_v49 }
 0x385   :  { %v23087_v35 = vpop.permute.xlu1 %1318  ;;  %v23089_v39 = vpop.permute.xlu0 %1324 }
 0x386   :  { %v1410_v24 = vcombine.low %v23083_v31, %v23087_v35  ;;  %v1426_v6 = vcombine.low %v23085_v34, %v23089_v39  ;;  %v1411_v46 = vcombine.high %v23083_v31, %v23087_v35  ;;  %v1427_v62 = vcombine.high %v23085_v34, %v23089_v39 }
 0x387   :  { %v1395_v31 = vcombine.high %v23077_v22, %v23081_v25 }
 0x388   :  { %v1418_v17 = vrot.slane %v1410_v24, %v22732_v52  ;;  %v1434_v18 = vrot.slane %v1426_v6, %v22732_v52  ;;  %v1442_v6 = vcombine.low %v1386_v47, %v1402_v49  ;;  %v1425_v34 = vrot.slane %v1411_v46, %v22732_v52 }
 0x389   :  { %v23091_v40 = vpop.permute.xlu1 %1330  ;;  %v23093_v41 = vpop.permute.xlu0 %1336  ;;  %v1441_v35 = vrot.slane %v1427_v62, %v22732_v52  ;;  %v1409_v46 = vrot.slane %v1395_v31, %v22732_v52 }
 0x38b   :  { %v1490_v25 = vcombine.low %v1425_v34, %v1441_v35 }
 0x38d   :  { %v23095_v42 = vpop.permute.xlu1 %1342  ;;  %v23097_v27 = vpop.permute.xlu0 %1348 }
 0x38e   :  { %v1530_v36 = vcombine.low %v23093_v41, %v23097_v27  ;;  %v1515_v62 = vcombine.high %v23091_v40, %v23095_v42 }
 0x390   :  { %v1538_v37 = vrot.slane %v1530_v36, %v22732_v52 }
 0x391   :  { %v23099_v28 = vpop.permute.xlu1 %1354  ;;  %v23101_v45 = vpop.permute.xlu0 %1360 }
 0x395   :  { %v23107_v50 = vpop.permute.xlu1 %1366  ;;  %v23109_v51 = vpop.permute.xlu0 %1372 }
 0x396   :  { %v1562_v24 = vcombine.low %v23101_v45, %v23109_v51 }
 0x398   :  { %v1570_v29 = vrot.slane %v1562_v24, %v22732_v52  ;;  %v1379_v24 = vcombine.high %v22961_v32, %v23079_v23  ;;  %v1457_v23 = vrot.slane %v1443_v48, %v22756_v2  ;;  %v1547_v48 = vcombine.high %v23099_v28, %v23107_v50 }
 0x399   :  { %v23117_v54 = vpop.permute.xlu1 %1374  ;;  %v23119_v57 = vpop.permute.xlu0 %1368 }
 0x39a   :  { %v1835_v58 = vcombine.high %v23075_v21, %v23117_v54  ;;  %v1819_v59 = vcombine.high %v23068_v20, %v23119_v57  ;;  %v1393_v22 = vrot.slane %v1379_v24, %v22732_v52 }
 0x39c   :  { %v23128_v44 = vrot.slane %v1835_v58, %v22732_v52  ;;  %v23131_v60 = vrot.slane %v1819_v59, %v22732_v52  ;;  %v1474_v58 = vcombine.low %v1418_v17, %v1434_v18  ;;  %v1514_v59 = vcombine.low %v23091_v40, %v23095_v42 }
 0x39d   :  { %v1498_v40 = vrot.slane %v1490_v25, %v22756_v2  ;;  %v1529_v42 = vrot.slane %v1515_v62, %v22732_v52  ;;  %v1459_v31 = vcombine.high %v1393_v22, %v1409_v46 }
 0x39e   :  { %v1899_v61 = vcombine.high %v23131_v60, %v23128_v44  ;;  %v1482_v7 = vrot.slane %v1474_v58, %v22756_v2  ;;  %v1522_v12 = vrot.slane %v1514_v59, %v22732_v52  ;;  %v1450_v58 = vrot.slane %v1442_v6, %v22756_v2 }
 0x39f   :  { %v1475_v59 = vcombine.high %v1418_v17, %v1434_v18  ;;  %v1563_v6 = vcombine.high %v23101_v45, %v23109_v51  ;;  %v1491_v51 = vcombine.high %v1425_v34, %v1441_v35  ;;  %v1473_v25 = vrot.slane %v1459_v31, %v22756_v2 }
 0x3a0   :  { %v23139_v33 = vrot.slane %v1899_v61, %v22756_v2  ;;  %v1546_v61 = vcombine.low %v23099_v28, %v23107_v50  ;;  %v1578_v36 = vcombine.low %v1522_v12, %v1538_v37  ;;  %v1507_v18 = vcombine.high %v1450_v58, %v1482_v7 }
 0x3a1   :  { %v1489_v39 = vrot.slane %v1475_v59, %v22756_v2  ;;  %v1579_v47 = vcombine.high %v1522_v12, %v1538_v37  ;;  %v1458_v59 = vcombine.low %v1393_v22, %v1409_v46  ;;  %v1561_v28 = vrot.slane %v1547_v48, %v22732_v52 }
 0x3a2   :  { %30192 = vst [vmem:[#allocation7_spill] sm:$0xff] %v23139_v33  ;;  %v1554_v30 = vrot.slane %v1546_v61, %v22732_v52  ;;  %v1506_v61 = vcombine.low %v1450_v58, %v1482_v7  ;;  %v1586_v32 = vrot.slane %v1578_v36, %v22756_v2  ;;  %v1577_v45 = vrot.slane %v1563_v6, %v22732_v52 }
 0x3a3   :  { %v1508_v49 = vcombine.low %v1457_v23, %v1489_v39  ;;  %v1593_v37 = vrot.slane %v1579_v47, %v22756_v2  ;;  %v1466_v50 = vrot.slane %v1458_v59, %v22756_v2  ;;  %v1682_v34 = vcombine.low %v23025_v4, %v23029_v55 }
 0x3a4   :  { %v1610_v33 = vcombine.low %v1554_v30, %v1570_v29  ;;  %v1611_v7 = vcombine.high %v1554_v30, %v1570_v29  ;;  %v1626_v36 = vcombine.low %v1561_v28, %v1577_v45  ;;  %v1698_v35 = vcombine.low %v23027_v5, %v23037_v8 }
 0x3a5   :  { %v1786_v22 = vcombine.low %v23039_v9, %v23057_v16  ;;  %v1802_v46 = vcombine.low %v23055_v15, %v23066_v19  ;;  %v1627_v47 = vcombine.high %v1561_v28, %v1577_v45  ;;  %v1818_v4 = vcombine.low %v23068_v20, %v23119_v57 }
 0x3a6   :  { %v1618_v17 = vrot.slane %v1610_v33, %v22756_v2  ;;  %v1531_v33 = vcombine.high %v23093_v41, %v23097_v27  ;;  %v1509_v27 = vcombine.high %v1457_v23, %v1489_v39  ;;  %v1625_v29 = vrot.slane %v1611_v7, %v22756_v2 }
 0x3a7   :  { %v1505_v39 = vrot.slane %v1491_v51, %v22756_v2  ;;  %v1650_v55 = vcombine.low %v22955_v43, %v23021_v26  ;;  %v1666_v8 = vcombine.low %v23019_v3, %v23023_v1  ;;  %v1690_v9 = vrot.slane %v1682_v34, %v22732_v52 }
 0x3a8   :  { %v1642_v58 = vcombine.low %v1586_v32, %v1618_v17  ;;  %v1545_v41 = vrot.slane %v1531_v33, %v22732_v52  ;;  %v1643_v30 = vcombine.high %v1586_v32, %v1618_v17  ;;  %v1644_v24 = vcombine.low %v1593_v37, %v1625_v29 }
 0x3a9   :  { %v1634_v17 = vrot.slane %v1626_v36, %v22756_v2  ;;  %v1645_v32 = vcombine.high %v1593_v37, %v1625_v29  ;;  %v1512_v33 = vcombine.low %v1473_v25, %v1505_v39  ;;  %v1706_v15 = vrot.slane %v1698_v35, %v22732_v52 }
 0x3aa   :  { %v1594_v12 = vcombine.low %v1529_v42, %v1545_v41  ;;  %v1595_v62 = vcombine.high %v1529_v42, %v1545_v41  ;;  %v1794_v16 = vrot.slane %v1786_v22, %v22732_v52  ;;  %v1810_v19 = vrot.slane %v1802_v46, %v22732_v52 }
 0x3ab   :  { %v1826_v3 = vrot.slane %v1818_v4, %v22732_v52  ;;  %v1674_v1 = vrot.slane %v1666_v8, %v22732_v52  ;;  %v1746_v57 = vcombine.low %v1690_v9, %v1706_v15  ;;  %v1513_v7 = vcombine.high %v1473_v25, %v1505_v39 }
 0x3ac   :  { %v1602_v23 = vrot.slane %v1594_v12, %v22756_v2  ;;  %v1609_v20 = vrot.slane %v1595_v62, %v22756_v2  ;;  %v1850_v48 = vcombine.low %v1794_v16, %v1810_v19  ;;  %v1747_v28 = vcombine.high %v1690_v9, %v1706_v15 }
 0x3ad   :  { %v1754_v41 = vrot.slane %v1746_v57, %v22756_v2  ;;  %v1851_v45 = vcombine.high %v1794_v16, %v1810_v19  ;;  %v1730_v34 = vcombine.low %v23050_v13, %v23042_v10  ;;  %v17278_v10 = vld [vmem:[%s29945_s4 + $0x10] sm:$0xff]  ;;  %v17279_v13 = vld [vmem:[%s29945_s4 + $0x18] sm:$0xff]  ;;  %v30194_v16 = vld [vmem:[#allocation5_spill] sm:$0xff] }
 0x3ae   :  { %v1646_v5 = vcombine.low %v1602_v23, %v1634_v17  ;;  %v1647_v26 = vcombine.high %v1602_v23, %v1634_v17  ;;  %v1761_v12 = vrot.slane %v1747_v28, %v22756_v2  ;;  %v1762_v17 = vcombine.low %v23045_v11, %v23053_v14 }
 0x3af   :  { %v1865_v31 = vrot.slane %v1851_v45, %v22756_v2  ;;  %v21471_v62 = vpack.c.bf16 %v17279_v13, %v17278_v10  ;;  %v1784_v19 = vcombine.low %v30194_v16, %v23064_v38 }
 0x3b0   :  { %v1770_v35 = vrot.slane %v1762_v17, %v22756_v2 }
 0x3b1   :  { %21472 = vmatprep.subr.bf16.mxu1 %v21471_v62 }
 0x3b2   :  { %21474 = vmatpush3.bf16.msra.mxu1 %v21471_v62 }
 0x3bf   :  { %v23143_v63 = vpop.f32.mrb[6].mxu1 }
 0x3c0   :  { %2524 = vrot.lane.b32.xlu1 %v23143_v63, %s22572_s16  ;;  %2518 = vrot.lane.b32.xlu0 %v23143_v63, %s22569_s11  ;;  %v23149_v0 = vpop.f32.mrb[7].mxu1 }
 0x3c4   :  { %2536 = vrot.lane.b32.xlu1 %v23143_v63, %s22571_s15  ;;  %2530 = vrot.lane.b32.xlu0 %v23143_v63, %s22567_s29 }
 0x3c8   :  { %2548 = vrot.lane.b32.xlu1 %v23143_v63, %s22570_s14  ;;  %2542 = vrot.lane.b32.xlu0 %v23143_v63, %s22565_s27 }
 0x3cc   :  { %2566 = vrot.lane.b32.xlu1 %v23143_v63, %s22561_s23  ;;  %2554 = vrot.lane.b32.xlu0 %v23143_v63, %s22563_s25 }
 0x3d0   :  { %2578 = vrot.lane.b32.xlu1 %v23143_v63, %s22564_s26  ;;  %2560 = vrot.lane.b32.xlu0 %v23143_v63, %s22568_s30 }
 0x3d4   :  { %2590 = vrot.lane.b32.xlu1 %v23143_v63, %s22560_s2  ;;  %2572 = vrot.lane.b32.xlu0 %v23143_v63, %s22566_s28 }
 0x3d8   :  { %2584 = vrot.lane.b32.xlu0 %v23143_v63, %s22562_s24  ;;  %2522 = vrot.lane.b32.xlu1 %v23149_v0, %s22572_s16 }
 0x3dc   :  { %2534 = vrot.lane.b32.xlu1 %v23149_v0, %s22571_s15  ;;  %2516 = vrot.lane.b32.xlu0 %v23149_v0, %s22569_s11 }
 0x3e0   :  { %2546 = vrot.lane.b32.xlu1 %v23149_v0, %s22570_s14  ;;  %2528 = vrot.lane.b32.xlu0 %v23149_v0, %s22567_s29 }
 0x3e4   :  { %2558 = vrot.lane.b32.xlu1 %v23149_v0, %s22568_s30  ;;  %2540 = vrot.lane.b32.xlu0 %v23149_v0, %s22565_s27 }
 0x3e8   :  { %2570 = vrot.lane.b32.xlu1 %v23149_v0, %s22566_s28  ;;  %2552 = vrot.lane.b32.xlu0 %v23149_v0, %s22563_s25 }
 0x3ec   :  { %2582 = vrot.lane.b32.xlu1 %v23149_v0, %s22562_s24  ;;  %2564 = vrot.lane.b32.xlu0 %v23149_v0, %s22561_s23 }
 0x3f0   :  { %2594 = vrot.lane.b32.xlu1 %v23149_v0, %s22559_s22  ;;  %2576 = vrot.lane.b32.xlu0 %v23149_v0, %s22564_s26 }
 0x3f4   :  { %2588 = vrot.lane.b32.xlu0 %v23149_v0, %s22560_s2  ;;  %1954 = vrot.lane.b32.xlu1 %v1506_v61, %s22558_s0  ;;  %v1510_v61 = vcombine.low %v1466_v50, %v1498_v40 }
 0x3f8   :  { %2600 = vrot.lane.b32.xlu0 %v23149_v0, %s22558_s0  ;;  %1958 = vrot.lane.b32.xlu1 %v1507_v18, %s22558_s0  ;;  %v1511_v18 = vcombine.high %v1466_v50, %v1498_v40 }
 0x3fc   :  { %1962 = vrot.lane.b32.xlu1 %v1508_v49, %s22558_s0  ;;  %1956 = vrot.lane.b32.xlu0 %v1642_v58, %s22558_s0  ;;  %v1834_v49 = vcombine.low %v23075_v21, %v23117_v54  ;;  %v1641_v21 = vrot.slane %v1627_v47, %v22756_v2  ;;  %v1658_v54 = vrot.slane %v1650_v55, %v22732_v52  ;;  %v3503_v47 = vld [vmem:[%s29945_s4] sm:$0xff] }
 0x3fe   :  { %v1842_v43 = vrot.slane %v1834_v49, %v22732_v52  ;;  %v1648_v58 = vcombine.low %v1609_v20, %v1641_v21  ;;  %v1714_v59 = vcombine.low %v1658_v54, %v1674_v1  ;;  %v1649_v42 = vcombine.high %v1609_v20, %v1641_v21  ;;  %v3504_v49 = vld [vmem:[%s29945_s4 + $0x8] sm:$0xff]  ;;  %v30195_v20 = vld [vmem:[#allocation7_spill] sm:$0xff]  ;;  %v30196_v21 = vld [vmem:[#allocation6_spill] sm:$0xff] }
 0x3ff   :  { %v1715_v51 = vcombine.high %v1658_v54, %v1674_v1  ;;  %v21475_v55 = vpack.c.bf16 %v3504_v49, %v3503_v47 }
 0x400   :  { %1966 = vrot.lane.b32.xlu1 %v1509_v27, %s22558_s0  ;;  %1960 = vrot.lane.b32.xlu0 %v1643_v30, %s22558_s0  ;;  %v1882_v6 = vcombine.low %v1826_v3, %v1842_v43  ;;  %v1858_v27 = vrot.slane %v1850_v48, %v22756_v2  ;;  %v1722_v37 = vrot.slane %v1714_v59, %v22756_v2 }
 0x401   :  { %v1883_v29 = vcombine.high %v1826_v3, %v1842_v43  ;;  %v1729_v39 = vrot.slane %v1715_v51, %v22756_v2  ;;  %21476 = vmatprep.subr.bf16.mxu1 %v21475_v55  ;;  %v1920_v43 = vcombine.low %v30196_v21, %v30195_v20 }
 0x402   :  { %v1890_v40 = vrot.slane %v1882_v6, %v22756_v2  ;;  %v1778_v30 = vcombine.low %v1722_v37, %v1754_v41 }
 0x403   :  { %v1897_v36 = vrot.slane %v1883_v29, %v22756_v2  ;;  %v1780_v23 = vcombine.low %v1729_v39, %v1761_v12  ;;  %v1781_v11 = vcombine.high %v1729_v39, %v1761_v12 }
 0x404   :  { %1970 = vrot.lane.b32.xlu1 %v1510_v61, %s22558_s0  ;;  %1964 = vrot.lane.b32.xlu0 %v1644_v24, %s22558_s0  ;;  %v1914_v50 = vcombine.low %v1858_v27, %v1890_v40  ;;  %v1779_v61 = vcombine.high %v1722_v37, %v1754_v41  ;;  %v1915_v24 = vcombine.high %v1858_v27, %v1890_v40 }
 0x405   :  { %v1916_v25 = vcombine.low %v1865_v31, %v1897_v36  ;;  %v1917_v14 = vcombine.high %v1865_v31, %v1897_v36 }
 0x408   :  { %1974 = vrot.lane.b32.xlu1 %v1511_v18, %s22558_s0  ;;  %1968 = vrot.lane.b32.xlu0 %v1645_v32, %s22558_s0  ;;  %v1866_v18 = vcombine.low %v23112_v53, %v23115_v56  ;;  %v1898_v32 = vcombine.low %v23131_v60, %v23128_v44  ;;  %v1738_v56 = vrot.slane %v1730_v34, %v22756_v2  ;;  %v3505_v44 = vld [vmem:[#allocation2 + $0x1] sm:$0xff] }
 0x409   :  { %19693 = vmatprep.mubr.msk.f32.mxu1 %vm35_vm3, %v3505_v44 }
 0x40a   :  { %v1906_v22 = vrot.slane %v1898_v32, %v22756_v2  ;;  %v1874_v53 = vrot.slane %v1866_v18, %v22756_v2  ;;  %v1782_v60 = vcombine.low %v1738_v56, %v1770_v35  ;;  %v1783_v4 = vcombine.high %v1738_v56, %v1770_v35 }
 0x40c   :  { %1978 = vrot.lane.b32.xlu1 %v1512_v33, %s22558_s0  ;;  %1972 = vrot.lane.b32.xlu0 %v1646_v5, %s22558_s0  ;;  %v1918_v46 = vcombine.low %v1874_v53, %v1906_v22  ;;  %v30193_v33 = vmov 0.0   ;;  %v1919_v5 = vcombine.high %v1874_v53, %v1906_v22 }
 0x40d   :  { %39 = vst.msk [vmem:[#allocation2 + $0x10] sm:$0x3] %vm38_vm0, %v30193_v33  ;;  %42 = vst.msk [vmem:[#allocation2 + $0x1c0] sm:$0x3] %vm38_vm0, %v30193_v33 }
 0x40e   :  { %46 = vst.msk [vmem:[#allocation2 + $0x1a8] sm:$0x3] %vm38_vm0, %v30193_v33  ;;  %49 = vst.msk [vmem:[#allocation2 + $0x358] sm:$0x3] %vm38_vm0, %v30193_v33 }
 0x40f   :  { %52 = vst.msk [vmem:[#allocation2 + $0x18] sm:$0x1] %vm51_vm5, %v30193_v33  ;;  %53 = vst.msk [vmem:[#allocation2 + $0x30] sm:$0x1] %vm51_vm5, %v30193_v33 }
 0x410   :  { %2602 = vrot.lane.b32.xlu1 %v23143_v63, %s22558_s0  ;;  %1976 = vrot.lane.b32.xlu0 %v1647_v26, %s22558_s0  ;;  %54 = vst.msk [vmem:[#allocation2 + $0x48] sm:$0x1] %vm51_vm5, %v30193_v33  ;;  %55 = vst.msk [vmem:[#allocation2 + $0x60] sm:$0x1] %vm51_vm5, %v30193_v33 }
 0x411   :  { %56 = vst.msk [vmem:[#allocation2 + $0x78] sm:$0x1] %vm51_vm5, %v30193_v33  ;;  %57 = vst.msk [vmem:[#allocation2 + $0x90] sm:$0x1] %vm51_vm5, %v30193_v33 }
 0x412   :  { %58 = vst.msk [vmem:[#allocation2 + $0xa8] sm:$0x1] %vm51_vm5, %v30193_v33  ;;  %59 = vst.msk [vmem:[#allocation2 + $0xc0] sm:$0x1] %vm51_vm5, %v30193_v33 }
 0x413   :  { %60 = vst.msk [vmem:[#allocation2 + $0xd8] sm:$0x1] %vm51_vm5, %v30193_v33  ;;  %61 = vst.msk [vmem:[#allocation2 + $0xf0] sm:$0x1] %vm51_vm5, %v30193_v33 }
 0x414   :  { %1982 = vrot.lane.b32.xlu1 %v1513_v7, %s22558_s0  ;;  %1980 = vrot.lane.b32.xlu0 %v1648_v58, %s22558_s0  ;;  %v3506_v8 = vld [vmem:[#allocation2 + $0x9] sm:$0xff]  ;;  %62 = vst.msk [vmem:[#allocation2 + $0x108] sm:$0x1] %vm51_vm5, %v30193_v33  ;;  %63 = vst.msk [vmem:[#allocation2 + $0x120] sm:$0x1] %vm51_vm5, %v30193_v33 }
 0x415   :  { %19694 = vmatmul.mubr.msk.f32.vlgmr.msra.gmra.mrb[8].mxu1 %vm35_vm3, %v3506_v8  ;;  %64 = vst.msk [vmem:[#allocation2 + $0x138] sm:$0x1] %vm51_vm5, %v30193_v33  ;;  %65 = vst.msk [vmem:[#allocation2 + $0x150] sm:$0x1] %vm51_vm5, %v30193_v33 }
 0x416   :  { %21478 = vmatpush3.bf16.msra.mxu1 %v21475_v55  ;;  %66 = vst.msk [vmem:[#allocation2 + $0x168] sm:$0x1] %vm51_vm5, %v30193_v33  ;;  %67 = vst.msk [vmem:[#allocation2 + $0x180] sm:$0x1] %vm51_vm5, %v30193_v33 }
 0x417   :  { %68 = vst.msk [vmem:[#allocation2 + $0x1c8] sm:$0x1] %vm51_vm5, %v30193_v33  ;;  %69 = vst.msk [vmem:[#allocation2 + $0x1e0] sm:$0x1] %vm51_vm5, %v30193_v33 }
 0x418   :  { %1984 = vrot.lane.b32.xlu1 %v1649_v42, %s22558_s0  ;;  %2596 = vrot.lane.b32.xlu0 %v23143_v63, %s22559_s22  ;;  %70 = vst.msk [vmem:[#allocation2 + $0x1f8] sm:$0x1] %vm51_vm5, %v30193_v33  ;;  %71 = vst.msk [vmem:[#allocation2 + $0x210] sm:$0x1] %vm51_vm5, %v30193_v33 }
 0x419   :  { %72 = vst.msk [vmem:[#allocation2 + $0x228] sm:$0x1] %vm51_vm5, %v30193_v33  ;;  %73 = vst.msk [vmem:[#allocation2 + $0x240] sm:$0x1] %vm51_vm5, %v30193_v33 }
 0x41a   :  { %74 = vst.msk [vmem:[#allocation2 + $0x258] sm:$0x1] %vm51_vm5, %v30193_v33  ;;  %75 = vst.msk [vmem:[#allocation2 + $0x270] sm:$0x1] %vm51_vm5, %v30193_v33 }
 0x41b   :  { %76 = vst.msk [vmem:[#allocation2 + $0x288] sm:$0x1] %vm51_vm5, %v30193_v33  ;;  %77 = vst.msk [vmem:[#allocation2 + $0x2a0] sm:$0x1] %vm51_vm5, %v30193_v33 }
 0x41c   :  { %1986 = vrot.lane.b32.xlu0 %v1778_v30, %s22558_s0  ;;  %1988 = vrot.lane.b32.xlu1 %v1914_v50, %s22558_s0  ;;  %78 = vst.msk [vmem:[#allocation2 + $0x2b8] sm:$0x1] %vm51_vm5, %v30193_v33  ;;  %79 = vst.msk [vmem:[#allocation2 + $0x2d0] sm:$0x1] %vm51_vm5, %v30193_v33 }
 0x41d   :  { %80 = vst.msk [vmem:[#allocation2 + $0x2e8] sm:$0x1] %vm51_vm5, %v30193_v33  ;;  %81 = vst.msk [vmem:[#allocation2 + $0x300] sm:$0x1] %vm51_vm5, %v30193_v33 }
 0x41e   :  { %82 = vst.msk [vmem:[#allocation2 + $0x318] sm:$0x1] %vm51_vm5, %v30193_v33  ;;  %83 = vst.msk [vmem:[#allocation2 + $0x330] sm:$0x1] %vm51_vm5, %v30193_v33 }
 0x41f   :  { %84 = vst.msk [vmem:[#allocation2 + $0x29] sm:$0x1] %vm51_vm5, %v30193_v33  ;;  %85 = vst.msk [vmem:[#allocation2 + $0x41] sm:$0x1] %vm51_vm5, %v30193_v33 }
 0x420   :  { %1990 = vrot.lane.b32.xlu0 %v1779_v61, %s22558_s0  ;;  %1992 = vrot.lane.b32.xlu1 %v1915_v24, %s22558_s0  ;;  %86 = vst.msk [vmem:[#allocation2 + $0x59] sm:$0x1] %vm51_vm5, %v30193_v33  ;;  %87 = vst.msk [vmem:[#allocation2 + $0x71] sm:$0x1] %vm51_vm5, %v30193_v33 }
 0x421   :  { %88 = vst.msk [vmem:[#allocation2 + $0x89] sm:$0x1] %vm51_vm5, %v30193_v33  ;;  %89 = vst.msk [vmem:[#allocation2 + $0xa1] sm:$0x1] %vm51_vm5, %v30193_v33 }
 0x422   :  { %90 = vst.msk [vmem:[#allocation2 + $0xb9] sm:$0x1] %vm51_vm5, %v30193_v33  ;;  %91 = vst.msk [vmem:[#allocation2 + $0xd1] sm:$0x1] %vm51_vm5, %v30193_v33 }
 0x423   :  { %92 = vst.msk [vmem:[#allocation2 + $0xe9] sm:$0x1] %vm51_vm5, %v30193_v33  ;;  %93 = vst.msk [vmem:[#allocation2 + $0x101] sm:$0x1] %vm51_vm5, %v30193_v33 }
 0x424   :  { %1994 = vrot.lane.b32.xlu0 %v1780_v23, %s22558_s0  ;;  %1996 = vrot.lane.b32.xlu1 %v1916_v25, %s22558_s0  ;;  %94 = vst.msk [vmem:[#allocation2 + $0x119] sm:$0x1] %vm51_vm5, %v30193_v33  ;;  %95 = vst.msk [vmem:[#allocation2 + $0x131] sm:$0x1] %vm51_vm5, %v30193_v33 }
 0x425   :  { %96 = vst.msk [vmem:[#allocation2 + $0x149] sm:$0x1] %vm51_vm5, %v30193_v33  ;;  %97 = vst.msk [vmem:[#allocation2 + $0x161] sm:$0x1] %vm51_vm5, %v30193_v33 }
 0x426   :  { %98 = vst.msk [vmem:[#allocation2 + $0x179] sm:$0x1] %vm51_vm5, %v30193_v33  ;;  %99 = vst.msk [vmem:[#allocation2 + $0x191] sm:$0x1] %vm51_vm5, %v30193_v33 }
 0x427   :  { %100 = vst.msk [vmem:[#allocation2 + $0x1d9] sm:$0x1] %vm51_vm5, %v30193_v33  ;;  %101 = vst.msk [vmem:[#allocation2 + $0x1f1] sm:$0x1] %vm51_vm5, %v30193_v33 }
 0x428   :  { %1998 = vrot.lane.b32.xlu0 %v1781_v11, %s22558_s0  ;;  %2000 = vrot.lane.b32.xlu1 %v1917_v14, %s22558_s0  ;;  %102 = vst.msk [vmem:[#allocation2 + $0x209] sm:$0x1] %vm51_vm5, %v30193_v33  ;;  %103 = vst.msk [vmem:[#allocation2 + $0x221] sm:$0x1] %vm51_vm5, %v30193_v33 }
 0x429   :  { %104 = vst.msk [vmem:[#allocation2 + $0x239] sm:$0x1] %vm51_vm5, %v30193_v33  ;;  %105 = vst.msk [vmem:[#allocation2 + $0x251] sm:$0x1] %vm51_vm5, %v30193_v33 }
 0x42a   :  { %106 = vst.msk [vmem:[#allocation2 + $0x269] sm:$0x1] %vm51_vm5, %v30193_v33  ;;  %107 = vst.msk [vmem:[#allocation2 + $0x281] sm:$0x1] %vm51_vm5, %v30193_v33 }
 0x42b   :  { %108 = vst.msk [vmem:[#allocation2 + $0x299] sm:$0x1] %vm51_vm5, %v30193_v33  ;;  %109 = vst.msk [vmem:[#allocation2 + $0x2b1] sm:$0x1] %vm51_vm5, %v30193_v33 }
 0x42c   :  { %2002 = vrot.lane.b32.xlu0 %v1782_v60, %s22558_s0  ;;  %2004 = vrot.lane.b32.xlu1 %v1918_v46, %s22558_s0  ;;  %110 = vst.msk [vmem:[#allocation2 + $0x2c9] sm:$0x1] %vm51_vm5, %v30193_v33  ;;  %111 = vst.msk [vmem:[#allocation2 + $0x2e1] sm:$0x1] %vm51_vm5, %v30193_v33 }
 0x42d   :  { %112 = vst.msk [vmem:[#allocation2 + $0x2f9] sm:$0x1] %vm51_vm5, %v30193_v33  ;;  %113 = vst.msk [vmem:[#allocation2 + $0x311] sm:$0x1] %vm51_vm5, %v30193_v33 }
 0x42e   :  { %114 = vst.msk [vmem:[#allocation2 + $0x329] sm:$0x1] %vm51_vm5, %v30193_v33  ;;  %115 = vst.msk [vmem:[#allocation2 + $0x341] sm:$0x1] %vm51_vm5, %v30193_v33 }
 0x430   :  { %2006 = vrot.lane.b32.xlu0 %v1783_v4, %s22558_s0  ;;  %2008 = vrot.lane.b32.xlu1 %v1919_v5, %s22558_s0 }
 0x432   :  { %v2525_v9 = vpop.permute.xlu1 %2524  ;;  %v2519_v15 = vpop.permute.xlu0 %2518 }
 0x433   :  { %v2878_v3 = vcombine.low %v23143_v63, %v2525_v9  ;;  %v2879_v26 = vcombine.high %v23143_v63, %v2525_v9 }
 0x434   :  { %2010 = vrot.lane.b32.xlu0 %v1784_v19, %s22558_s0  ;;  %2012 = vrot.lane.b32.xlu1 %v1920_v43, %s22558_s0 }
 0x435   :  { %v2886_v6 = vrot.slane %v2878_v3, %v22732_v52  ;;  %v2893_v7 = vrot.slane %v2879_v26, %v22732_v52 }
 0x436   :  { %v2537_v1 = vpop.permute.xlu1 %2536  ;;  %v2531_v54 = vpop.permute.xlu0 %2530 }
 0x437   :  { %v2894_v57 = vcombine.low %v2519_v15, %v2531_v54  ;;  %v2895_v48 = vcombine.high %v2519_v15, %v2531_v54 }
 0x439   :  { %v2902_v58 = vrot.slane %v2894_v57, %v22732_v52  ;;  %v2909_v59 = vrot.slane %v2895_v48, %v22732_v52 }
 0x43a   :  { %v2549_v40 = vpop.permute.xlu1 %2548  ;;  %v2543_v42 = vpop.permute.xlu0 %2542 }
 0x43b   :  { %v2942_v63 = vcombine.low %v2886_v6, %v2902_v58  ;;  %v2943_v41 = vcombine.high %v2886_v6, %v2902_v58  ;;  %v2958_v27 = vcombine.low %v2893_v7, %v2909_v59  ;;  %v2959_v37 = vcombine.high %v2893_v7, %v2909_v59 }
 0x43c   :  { %v2910_v28 = vcombine.low %v2537_v1, %v2549_v40  ;;  %v2911_v45 = vcombine.high %v2537_v1, %v2549_v40 }
 0x43d   :  { %v23378_v25 = vrot.slane %v2942_v63, %v22756_v2  ;;  %v23381_v34 = vrot.slane %v2943_v41, %v22756_v2  ;;  %v23396_v10 = vrot.slane %v2958_v27, %v22756_v2  ;;  %v23399_v13 = vrot.slane %v2959_v37, %v22756_v2 }
 0x43e   :  { %v2567_v29 = vpop.permute.xlu1 %2566  ;;  %v2555_v30 = vpop.permute.xlu0 %2554  ;;  %v2918_v12 = vrot.slane %v2910_v28, %v22732_v52  ;;  %v2925_v36 = vrot.slane %v2911_v45, %v22732_v52 }
 0x43f   :  { %v2926_v50 = vcombine.low %v2543_v42, %v2555_v30  ;;  %v2927_v51 = vcombine.high %v2543_v42, %v2555_v30 }
 0x441   :  { %v2934_v61 = vrot.slane %v2926_v50, %v22732_v52  ;;  %v2941_v24 = vrot.slane %v2927_v51, %v22732_v52 }
 0x442   :  { %v2579_v31 = vpop.permute.xlu1 %2578  ;;  %v2561_v39 = vpop.permute.xlu0 %2560 }
 0x443   :  { %v2974_v17 = vcombine.low %v2918_v12, %v2934_v61  ;;  %v2975_v18 = vcombine.high %v2918_v12, %v2934_v61  ;;  %v2990_v32 = vcombine.low %v2925_v36, %v2941_v24  ;;  %v2991_v23 = vcombine.high %v2925_v36, %v2941_v24 }
 0x444   :  { %v3030_v35 = vcombine.low %v2567_v29, %v2579_v31  ;;  %v3031_v22 = vcombine.high %v2567_v29, %v2579_v31 }
 0x445   :  { %v23384_v11 = vrot.slane %v2974_v17, %v22756_v2  ;;  %v23387_v14 = vrot.slane %v2975_v18, %v22756_v2  ;;  %v23390_v53 = vrot.slane %v2990_v32, %v22756_v2  ;;  %v23393_v56 = vrot.slane %v2991_v23, %v22756_v2 }
 0x446   :  { %v23402_v44 = vrot.slane %v3030_v35, %v22732_v52  ;;  %v23405_v60 = vrot.slane %v3031_v22, %v22732_v52  ;;  %v23407_v46 = vpop.permute.xlu1 %2590  ;;  %v2573_v62 = vpop.permute.xlu0 %2572 }
 0x447   :  { %v3014_v47 = vcombine.low %v2561_v39, %v2573_v62  ;;  %v3015_v49 = vcombine.high %v2561_v39, %v2573_v62  ;;  %v3006_v4 = vcombine.low %v23378_v25, %v23384_v11  ;;  %v3007_v5 = vcombine.high %v23378_v25, %v23384_v11 }
 0x448   :  { %v3008_v55 = vcombine.low %v23381_v34, %v23387_v14  ;;  %v3009_v8 = vcombine.high %v23381_v34, %v23387_v14  ;;  %v3010_v9 = vcombine.low %v23396_v10, %v23390_v53  ;;  %v3011_v15 = vcombine.high %v23396_v10, %v23390_v53  ;;  %v3336_v53 = vld [vmem:[%s29946_s1 + $0xc8] sm:$0xff]  ;;  %v3335_v10 = vld [vmem:[%s29946_s1 + $0xc0] sm:$0xff] }
 0x449   :  { %v23422_v19 = vrot.slane %v3014_v47, %v22732_v52  ;;  %v23425_v43 = vrot.slane %v3015_v49, %v22732_v52  ;;  %v3012_v3 = vcombine.low %v23399_v13, %v23393_v56  ;;  %v3013_v26 = vcombine.high %v23399_v13, %v23393_v56  ;;  %v3311_v49 = vld [vmem:[%s29946_s1] sm:$0xff] }
 0x44a   :  { %v23431_v1 = vpop.permute.xlu1 %2522  ;;  %v23433_v54 = vpop.permute.xlu0 %2584 }
 0x44b   :  { %v3078_v57 = vcombine.low %v23422_v19, %v23402_v44  ;;  %v3079_v48 = vcombine.high %v23422_v19, %v23402_v44  ;;  %v3094_v6 = vcombine.low %v23425_v43, %v23405_v60  ;;  %v3095_v7 = vcombine.high %v23425_v43, %v23405_v60  ;;  %v3330_v44 = vld [vmem:[%s29946_s1 + $0x98] sm:$0xff]  ;;  %v3329_v19 = vld [vmem:[%s29946_s1 + $0x90] sm:$0xff] }
 0x44c   :  { %v2606_v37 = vcombine.low %v23149_v0, %v23431_v1 }
 0x44e   :  { %v2535_v58 = vpop.permute.xlu1 %2534  ;;  %v2517_v59 = vpop.permute.xlu0 %2516  ;;  %v2614_v51 = vrot.slane %v2606_v37, %v22732_v52 }
 0x452   :  { %v2547_v40 = vpop.permute.xlu1 %2546  ;;  %v2529_v42 = vpop.permute.xlu0 %2528 }
 0x453   :  { %v2622_v63 = vcombine.low %v2517_v59, %v2529_v42  ;;  %v2638_v28 = vcombine.low %v2535_v58, %v2547_v40  ;;  %v2623_v37 = vcombine.high %v2517_v59, %v2529_v42 }
 0x455   :  { %v2630_v45 = vrot.slane %v2622_v63, %v22732_v52  ;;  %v2646_v12 = vrot.slane %v2638_v28, %v22732_v52  ;;  %v2639_v63 = vcombine.high %v2535_v58, %v2547_v40 }
 0x456   :  { %v23443_v41 = vpop.permute.xlu1 %2558  ;;  %v2541_v27 = vpop.permute.xlu0 %2540 }
 0x457   :  { %v2670_v61 = vcombine.low %v2614_v51, %v2630_v45  ;;  %v2671_v28 = vcombine.high %v2614_v51, %v2630_v45  ;;  %v3313_v45 = vld [vmem:[%s29946_s1 + $0x10] sm:$0xff] }
 0x459   :  { %v2678_v18 = vrot.slane %v2670_v61, %v22756_v2  ;;  %v2685_v51 = vrot.slane %v2671_v28, %v22756_v2  ;;  %v3312_v28 = vld [vmem:[%s29946_s1 + $0x8] sm:$0xff] }
 0x45a   :  { %v23448_v29 = vpop.permute.xlu1 %2570  ;;  %v2553_v30 = vpop.permute.xlu0 %2552 }
 0x45b   :  { %v2654_v50 = vcombine.low %v2541_v27, %v2553_v30  ;;  %v2655_v35 = vcombine.high %v2541_v27, %v2553_v30  ;;  %v2742_v27 = vcombine.low %v23443_v41, %v23448_v29  ;;  %v2607_v30 = vcombine.high %v23149_v0, %v23431_v1 }
 0x45c   :  { %v23490_v0 = vrot.slane %v2639_v63, %v22732_v52  ;;  %v23493_v1 = vrot.slane %v2623_v37, %v22732_v52  ;;  %v3315_v37 = vld [vmem:[%s29946_s1 + $0x20] sm:$0xff] }
 0x45d   :  { %v2662_v36 = vrot.slane %v2654_v50, %v22732_v52 }
 0x45e   :  { %v23453_v24 = vpop.permute.xlu1 %2582  ;;  %v23455_v31 = vpop.permute.xlu0 %2564 }
 0x45f   :  { %v2702_v39 = vcombine.low %v2646_v12, %v2662_v36  ;;  %v2703_v22 = vcombine.high %v2646_v12, %v2662_v36  ;;  %v23477_v12 = vrot.slane %v2655_v35, %v22732_v52  ;;  %v23503_v35 = vrot.slane %v2607_v30, %v22732_v52 }
 0x461   :  { %v2710_v17 = vrot.slane %v2702_v39, %v22756_v2  ;;  %v2717_v58 = vrot.slane %v2703_v22, %v22756_v2  ;;  %v2718_v22 = vcombine.low %v23490_v0, %v23477_v12 }
 0x462   :  { %v23459_v32 = vpop.permute.xlu1 %2594  ;;  %v23461_v23 = vpop.permute.xlu0 %2576 }
 0x463   :  { %v2734_v62 = vcombine.low %v2678_v18, %v2710_v17  ;;  %v2758_v47 = vcombine.low %v23455_v31, %v23461_v23  ;;  %v2735_v59 = vcombine.high %v2678_v18, %v2710_v17  ;;  %v2774_v40 = vcombine.low %v23453_v24, %v23459_v32 }
 0x464   :  { %v23498_v17 = vrot.slane %v2742_v27, %v22732_v52 }
 0x465   :  { %3182 = vrot.lane.b32.xlu0 %v2734_v62, %s22558_s0  ;;  %v23484_v42 = vrot.slane %v2758_v47, %v22732_v52  ;;  %v2736_v62 = vcombine.low %v2685_v51, %v2717_v58  ;;  %v2782_v47 = vrot.slane %v2774_v40, %v22732_v52 }
 0x466   :  { %v1955_v50 = vpop.permute.xlu1 %1954  ;;  %v23469_v61 = vpop.permute.xlu0 %2588 }
 0x467   :  { %2051 = vst.msk [vmem:[#allocation2 + $0x19] sm:$0xff] %vm2050_vm4, %v1955_v50  ;;  %v2686_v50 = vcombine.low %v23503_v35, %v23493_v1 }
 0x468   :  { %3375 = vst.msk [vmem:[#allocation2 + $0x19] sm:$0xff] %vm116_vm2, %v3311_v49  ;;  %v2806_v49 = vcombine.low %v23498_v17, %v23484_v42 }
 0x469   :  { %3186 = vrot.lane.b32.xlu0 %v2735_v59, %s22558_s0 }
 0x46a   :  { %v1959_v36 = vpop.permute.xlu1 %1958  ;;  %v2601_v39 = vpop.permute.xlu0 %2600 }
 0x46b   :  { %2053 = vst.msk [vmem:[#allocation2 + $0x31] sm:$0xff] %vm2050_vm4, %v1959_v36  ;;  %v2790_v18 = vcombine.low %v23469_v61, %v2601_v39  ;;  %v2737_v36 = vcombine.high %v2685_v51, %v2717_v58  ;;  %v2791_v51 = vcombine.high %v23469_v61, %v2601_v39  ;;  %v2759_v61 = vcombine.high %v23455_v31, %v23461_v23 }
 0x46c   :  { %3377 = vst.msk [vmem:[#allocation2 + $0x31] sm:$0xff] %vm116_vm2, %v3313_v45  ;;  %v2726_v45 = vrot.slane %v2718_v22, %v22756_v2  ;;  %v2694_v22 = vrot.slane %v2686_v50, %v22756_v2  ;;  %v2807_v39 = vcombine.high %v23498_v17, %v23484_v42  ;;  %v2743_v23 = vcombine.high %v23443_v41, %v23448_v29 }
 0x46d   :  { %v2798_v63 = vrot.slane %v2790_v18, %v22732_v52  ;;  %3190 = vrot.lane.b32.xlu0 %v2736_v62, %s22558_s0  ;;  %v2814_v18 = vrot.slane %v2806_v49, %v22756_v2  ;;  %v23563_v42 = vrot.slane %v2791_v51, %v22732_v52  ;;  %v23576_v29 = vrot.slane %v2759_v61, %v22732_v52  ;;  %v3320_v61 = vld [vmem:[%s29946_s1 + $0x48] sm:$0xff] }
 0x46e   :  { %v1963_v27 = vpop.permute.xlu1 %1962  ;;  %v1957_v30 = vpop.permute.xlu0 %1956  ;;  %v2738_v50 = vcombine.low %v2694_v22, %v2726_v45 }
 0x46f   :  { %v2838_v59 = vcombine.low %v2782_v47, %v2798_v63  ;;  %2055 = vst.msk [vmem:[#allocation2 + $0x49] sm:$0xff] %vm2050_vm4, %v1963_v27  ;;  %2052 = vst.msk [vmem:[#allocation2 + $0x21] sm:$0xff] %vm2050_vm4, %v1957_v30  ;;  %v3507_v40 = vld [vmem:[#allocation2 + $0x19] sm:$0xff]  ;;  %v3317_v27 = vld [vmem:[%s29946_s1 + $0x30] sm:$0xff] }
 0x470   :  { %3379 = vst.msk [vmem:[#allocation2 + $0x49] sm:$0xff] %vm116_vm2, %v3315_v37  ;;  %3376 = vst.msk [vmem:[#allocation2 + $0x21] sm:$0xff] %vm116_vm2, %v3312_v28  ;;  %19696 = vmatprep.mubr.msk.f32.mxu1 %vm35_vm3, %v3507_v40  ;;  %v3314_v30 = vld [vmem:[%s29946_s1 + $0x18] sm:$0xff]  ;;  %v2839_v28 = vcombine.high %v2782_v47, %v2798_v63  ;;  %v2775_v40 = vcombine.high %v23453_v24, %v23459_v32  ;;  %v2687_v47 = vcombine.high %v23503_v35, %v23493_v1 }
 0x471   :  { %v2846_v62 = vrot.slane %v2838_v59, %v22756_v2  ;;  %3194 = vrot.lane.b32.xlu0 %v2737_v36, %s22558_s0  ;;  %v2719_v59 = vcombine.high %v23490_v0, %v23477_v12  ;;  %v3319_v12 = vld [vmem:[%s29946_s1 + $0x40] sm:$0xff]  ;;  %v3316_v0 = vld [vmem:[%s29946_s1 + $0x28] sm:$0xff]  ;;  %v2739_v35 = vcombine.high %v2694_v22, %v2726_v45  ;;  %v3318_v45 = vld [vmem:[%s29946_s1 + $0x38] sm:$0xff] }
 0x472   :  { %v1967_v37 = vpop.permute.xlu1 %1966  ;;  %v1961_v58 = vpop.permute.xlu0 %1960  ;;  %v2853_v17 = vrot.slane %v2839_v28, %v22756_v2  ;;  %v23573_v41 = vrot.slane %v2775_v40, %v22732_v52  ;;  %v3323_v40 = vld [vmem:[%s29946_s1 + $0x60] sm:$0xff] }
 0x473   :  { %2057 = vst.msk [vmem:[#allocation2 + $0x61] sm:$0xff] %vm2050_vm4, %v1967_v37  ;;  %2054 = vst.msk [vmem:[#allocation2 + $0x39] sm:$0xff] %vm2050_vm4, %v1961_v58  ;;  %v2870_v49 = vcombine.low %v2814_v18, %v2846_v62  ;;  %v3509_v32 = vld [vmem:[#allocation2 + $0x31] sm:$0xff]  ;;  %v2871_v63 = vcombine.high %v2814_v18, %v2846_v62  ;;  %v2733_v1 = vrot.slane %v2719_v59, %v22756_v2 }
 0x474   :  { %3381 = vst.msk [vmem:[#allocation2 + $0x61] sm:$0xff] %vm116_vm2, %v3317_v27  ;;  %3378 = vst.msk [vmem:[#allocation2 + $0x39] sm:$0xff] %vm116_vm2, %v3314_v30  ;;  %v2821_v27 = vrot.slane %v2807_v39, %v22756_v2  ;;  %v3321_v18 = vld [vmem:[%s29946_s1 + $0x50] sm:$0xff]  ;;  %v2701_v62 = vrot.slane %v2687_v47, %v22756_v2  ;;  %v2757_v58 = vrot.slane %v2743_v23, %v22732_v52 }
 0x475   :  { %3184 = vrot.lane.b32.xlu1 %v2870_v49, %s22558_s0  ;;  %3198 = vrot.lane.b32.xlu0 %v2738_v50, %s22558_s0  ;;  %v2854_v51 = vcombine.low %v23573_v41, %v23563_v42 }
 0x476   :  { %v1971_v24 = vpop.permute.xlu1 %1970  ;;  %v1965_v31 = vpop.permute.xlu0 %1964  ;;  %v2872_v28 = vcombine.low %v2821_v27, %v2853_v17  ;;  %v2740_v59 = vcombine.low %v2701_v62, %v2733_v1  ;;  %v2822_v50 = vcombine.low %v2757_v58, %v23576_v29 }
 0x477   :  { %2059 = vst.msk [vmem:[#allocation2 + $0x79] sm:$0xff] %vm2050_vm4, %v1971_v24  ;;  %2056 = vst.msk [vmem:[#allocation2 + $0x51] sm:$0xff] %vm2050_vm4, %v1965_v31  ;;  %v3508_v36 = vld [vmem:[#allocation2 + $0x21] sm:$0xff]  ;;  %v3511_v37 = vld [vmem:[#allocation2 + $0x49] sm:$0xff]  ;;  %v2862_v47 = vrot.slane %v2854_v51, %v22756_v2  ;;  %v2873_v24 = vcombine.high %v2821_v27, %v2853_v17 }
 0x478   :  { %3383 = vst.msk [vmem:[#allocation2 + $0x79] sm:$0xff] %vm116_vm2, %v3319_v12  ;;  %3380 = vst.msk [vmem:[#allocation2 + $0x51] sm:$0xff] %vm116_vm2, %v3316_v0  ;;  %19697 = vmatmul.mubr.msk.f32.gmra.mrb[10].mxu1 %vm35_vm3, %v3508_v36  ;;  %v2830_v23 = vrot.slane %v2822_v50, %v22756_v2  ;;  %v24442_v33 = vld [vmem:[#allocation2 + $0x1a] sm:$0xff] }
 0x479   :  { %3188 = vrot.lane.b32.xlu1 %v2871_v63, %s22558_s0  ;;  %19699 = vmatprep.mubr.msk.f32.mxu1 %vm35_vm3, %v3509_v32  ;;  %v2741_v32 = vcombine.high %v2701_v62, %v2733_v1  ;;  %v3322_v63 = vld [vmem:[%s29946_s1 + $0x58] sm:$0xff]  ;;  %v2855_v1 = vcombine.high %v23573_v41, %v23563_v42  ;;  %v3325_v62 = vld [vmem:[%s29946_s1 + $0x70] sm:$0xff]  ;;  %v3324_v42 = vld [vmem:[%s29946_s1 + $0x68] sm:$0xff] }
 0x47a   :  { %3202 = vrot.lane.b32.xlu0 %v2739_v35, %s22558_s0  ;;  %v1975_v30 = vpop.permute.xlu1 %1974  ;;  %v1969_v22 = vpop.permute.xlu0 %1968  ;;  %v2874_v27 = vcombine.low %v2830_v23, %v2862_v47 }
 0x47b   :  { %2061 = vst.msk [vmem:[#allocation2 + $0x91] sm:$0xff] %vm2050_vm4, %v1975_v30  ;;  %2058 = vst.msk [vmem:[#allocation2 + $0x69] sm:$0xff] %vm2050_vm4, %v1969_v22  ;;  %v3510_v49 = vld [vmem:[#allocation2 + $0x39] sm:$0xff]  ;;  %v3513_v0 = vld [vmem:[#allocation2 + $0x61] sm:$0xff]  ;;  %v2869_v22 = vrot.slane %v2855_v1, %v22756_v2  ;;  %v3086_v1 = vrot.slane %v3078_v57, %v22756_v2 }
 0x47c   :  { %3385 = vst.msk [vmem:[#allocation2 + $0x91] sm:$0xff] %vm116_vm2, %v3321_v18  ;;  %3382 = vst.msk [vmem:[#allocation2 + $0x69] sm:$0xff] %vm116_vm2, %v3318_v45  ;;  %19700 = vmatmul.mubr.msk.f32.gmra.mrb[12].mxu1 %vm35_vm3, %v3510_v49  ;;  %v2823_v45 = vcombine.high %v2757_v58, %v23576_v29  ;;  %v3326_v49 = vld [vmem:[%s29946_s1 + $0x78] sm:$0xff] }
 0x47d   :  { %3192 = vrot.lane.b32.xlu1 %v2872_v28, %s22558_s0  ;;  %19702 = vmatprep.mubr.msk.f32.mxu1 %vm35_vm3, %v3511_v37  ;;  %v2875_v37 = vcombine.high %v2830_v23, %v2862_v47  ;;  %v3327_v47 = vld [vmem:[%s29946_s1 + $0x80] sm:$0xff] }
 0x47e   :  { %3206 = vrot.lane.b32.xlu0 %v2740_v59, %s22558_s0  ;;  %v1979_v39 = vpop.permute.xlu1 %1978  ;;  %v1973_v12 = vpop.permute.xlu0 %1972 }
 0x47f   :  { %2063 = vst.msk [vmem:[#allocation2 + $0xa9] sm:$0xff] %vm2050_vm4, %v1979_v39  ;;  %2060 = vst.msk [vmem:[#allocation2 + $0x81] sm:$0xff] %vm2050_vm4, %v1973_v12  ;;  %v3512_v31 = vld [vmem:[#allocation2 + $0x51] sm:$0xff]  ;;  %v3515_v35 = vld [vmem:[#allocation2 + $0x79] sm:$0xff] }
 0x480   :  { %3387 = vst.msk [vmem:[#allocation2 + $0xa9] sm:$0xff] %vm116_vm2, %v3323_v40  ;;  %3384 = vst.msk [vmem:[#allocation2 + $0x81] sm:$0xff] %vm116_vm2, %v3320_v61  ;;  %19703 = vmatmul.mubr.msk.f32.gmra.mrb[14].mxu1 %vm35_vm3, %v3512_v31 }
 0x481   :  { %3196 = vrot.lane.b32.xlu1 %v2873_v24, %s22558_s0  ;;  %19705 = vmatprep.mubr.msk.f32.mxu1 %vm35_vm3, %v3513_v0 }
 0x482   :  { %3210 = vrot.lane.b32.xlu0 %v2741_v32, %s22558_s0  ;;  %v2603_v17 = vpop.permute.xlu1 %2602  ;;  %v1977_v36 = vpop.permute.xlu0 %1976 }
 0x483   :  { %2062 = vst.msk [vmem:[#allocation2 + $0x99] sm:$0xff] %vm2050_vm4, %v1977_v36  ;;  %v3514_v18 = vld [vmem:[#allocation2 + $0x69] sm:$0xff]  ;;  %v3517_v29 = vld [vmem:[#allocation2 + $0x91] sm:$0xff]  ;;  %v3062_v51 = vcombine.low %v23407_v46, %v2603_v17  ;;  %v3063_v28 = vcombine.high %v23407_v46, %v2603_v17 }
 0x484   :  { %3386 = vst.msk [vmem:[#allocation2 + $0x99] sm:$0xff] %vm116_vm2, %v3322_v63  ;;  %19706 = vmatmul.mubr.msk.f32.gmra.mrb[16].mxu1 %vm35_vm3, %v3514_v18 }
 0x485   :  { %3200 = vrot.lane.b32.xlu1 %v2874_v27, %s22558_s0  ;;  %19708 = vmatprep.mubr.msk.f32.mxu1 %vm35_vm3, %v3515_v35  ;;  %v3070_v0 = vrot.slane %v3062_v51, %v22732_v52  ;;  %v3077_v25 = vrot.slane %v3063_v28, %v22732_v52  ;;  %v3333_v28 = vld [vmem:[%s29946_s1 + $0xb0] sm:$0xff] }
 0x486   :  { %3214 = vrot.lane.b32.xlu0 %v3006_v4, %s22558_s0  ;;  %v1983_v41 = vpop.permute.xlu1 %1982  ;;  %v1981_v30 = vpop.permute.xlu0 %1980  ;;  %v2837_v4 = vrot.slane %v2823_v45, %v22756_v2 }
 0x487   :  { %2065 = vst.msk [vmem:[#allocation2 + $0xc1] sm:$0xff] %vm2050_vm4, %v1983_v41  ;;  %2064 = vst.msk [vmem:[#allocation2 + $0xb1] sm:$0xff] %vm2050_vm4, %v1981_v30  ;;  %v3516_v58 = vld [vmem:[#allocation2 + $0x81] sm:$0xff]  ;;  %v3519_v40 = vld [vmem:[#allocation2 + $0xa9] sm:$0xff] }
 0x488   :  { %3389 = vst.msk [vmem:[#allocation2 + $0xc1] sm:$0xff] %vm116_vm2, %v3325_v62  ;;  %3388 = vst.msk [vmem:[#allocation2 + $0xb1] sm:$0xff] %vm116_vm2, %v3324_v42  ;;  %19709 = vmatmul.mubr.msk.f32.gmra.mrb[18].mxu1 %vm35_vm3, %v3516_v58  ;;  %v2876_v39 = vcombine.low %v2837_v4, %v2869_v22  ;;  %v23719_v62 = vrot.slane %v3095_v7, %v22756_v2 }
 0x489   :  { %3204 = vrot.lane.b32.xlu1 %v2875_v37, %s22558_s0  ;;  %19711 = vmatprep.mubr.msk.f32.mxu1 %vm35_vm3, %v3517_v29  ;;  %v3332_v29 = vld [vmem:[%s29946_s1 + $0xa8] sm:$0xff] }
 0x48a   :  { %3218 = vrot.lane.b32.xlu0 %v3007_v5, %s22558_s0  ;;  %v1985_v59 = vpop.permute.xlu1 %1984  ;;  %v2597_v50 = vpop.permute.xlu0 %2596 }
 0x48b   :  { %2066 = vst.msk [vmem:[#allocation2 + $0xc9] sm:$0xff] %vm2050_vm4, %v1985_v59  ;;  %v3046_v46 = vcombine.low %v23433_v54, %v2597_v50  ;;  %v3047_v61 = vcombine.high %v23433_v54, %v2597_v50  ;;  %v3518_v12 = vld [vmem:[#allocation2 + $0x99] sm:$0xff]  ;;  %v3328_v54 = vld [vmem:[%s29946_s1 + $0x88] sm:$0xff] }
 0x48c   :  { %3390 = vst.msk [vmem:[#allocation2 + $0xc9] sm:$0xff] %vm116_vm2, %v3326_v49  ;;  %19712 = vmatmul.mubr.msk.f32.gmra.mrb[20].mxu1 %vm35_vm3, %v3518_v12  ;;  %v3337_v12 = vld [vmem:[%s29946_s1 + $0xd0] sm:$0xff] }
 0x48d   :  { %v3054_v11 = vrot.slane %v3046_v46, %v22732_v52  ;;  %v3061_v5 = vrot.slane %v3047_v61, %v22732_v52  ;;  %3208 = vrot.lane.b32.xlu1 %v2876_v39, %s22558_s0  ;;  %19714 = vmatprep.mubr.msk.f32.mxu1 %vm35_vm3, %v3519_v40  ;;  %v2877_v52 = vcombine.high %v2837_v4, %v2869_v22  ;;  %v3331_v22 = vld [vmem:[%s29946_s1 + $0xa0] sm:$0xff] }
 0x48e   :  { %3222 = vrot.lane.b32.xlu0 %v3008_v55, %s22558_s0  ;;  %v1989_v24 = vpop.permute.xlu1 %1988  ;;  %v1987_v31 = vpop.permute.xlu0 %1986  ;;  %v23687_v55 = vrot.slane %v3079_v48, %v22756_v2  ;;  %v23713_v48 = vrot.slane %v3094_v6, %v22756_v2 }
 0x48f   :  { %v3110_v32 = vcombine.low %v3054_v11, %v3070_v0  ;;  %v3111_v23 = vcombine.high %v3054_v11, %v3070_v0  ;;  %v3126_v63 = vcombine.low %v3061_v5, %v3077_v25  ;;  %v3127_v17 = vcombine.high %v3061_v5, %v3077_v25  ;;  %2068 = vst.msk [vmem:[#allocation2 + $0xe1] sm:$0xff] %vm2050_vm4, %v1989_v24  ;;  %v3520_v36 = vld [vmem:[#allocation2 + $0xb1] sm:$0xff]  ;;  %v3521_v35 = vld [vmem:[#allocation2 + $0xc1] sm:$0xff] }
 0x490   :  { %2067 = vst.msk [vmem:[#allocation2 + $0xd9] sm:$0xff] %vm2050_vm4, %v1987_v31  ;;  %19715 = vmatmul.mubr.msk.f32.gmra.mrb[22].mxu1 %vm35_vm3, %v3520_v36  ;;  %v30197_v0 = vcombine.high %v30194_v16, %v23064_v38  ;;  %v3340_v38 = vld [vmem:[%s29946_s1 + $0xe8] sm:$0xff]  ;;  %v3339_v16 = vld [vmem:[%s29946_s1 + $0xe0] sm:$0xff]  ;;  %v3537_v36 = vld [vmem:[#allocation2 + $0x1b1] sm:$0xff] }
 0x491   :  { %3392 = vst.msk [vmem:[#allocation2 + $0xe1] sm:$0xff] %vm116_vm2, %v3328_v54  ;;  %3391 = vst.msk [vmem:[#allocation2 + $0xd9] sm:$0xff] %vm116_vm2, %v3327_v47  ;;  %v3118_v27 = vrot.slane %v3110_v32, %v22756_v2  ;;  %v23694_v18 = vrot.slane %v3111_v23, %v22756_v2  ;;  %v23697_v45 = vrot.slane %v3126_v63, %v22756_v2  ;;  %3212 = vrot.lane.b32.xlu1 %v2877_v52, %s22558_s0  ;;  %v17409_v32 = vld [vmem:[%s29945_s4 + $0x28] sm:$0xff] }
 0x492   :  { %v23700_v57 = vrot.slane %v3127_v17, %v22756_v2  ;;  %3226 = vrot.lane.b32.xlu0 %v3009_v8, %s22558_s0  ;;  %v1993_v42 = vpop.permute.xlu1 %1992  ;;  %v1991_v41 = vpop.permute.xlu0 %1990  ;;  %19717 = vmatprep.mubr.msk.f32.mxu1 %vm35_vm3, %v3521_v35  ;;  %v30198_v35 = vcombine.high %v30196_v21, %v30195_v20  ;;  %v3345_v20 = vld [vmem:[%s29946_s1 + $0x110] sm:$0xff] }
 0x493   :  { %2070 = vst.msk [vmem:[#allocation2 + $0xf9] sm:$0xff] %vm2050_vm4, %v1993_v42  ;;  %2069 = vst.msk [vmem:[#allocation2 + $0xf1] sm:$0xff] %vm2050_vm4, %v1991_v41  ;;  %v3142_v6 = vcombine.low %v3086_v1, %v3118_v27  ;;  %v3143_v30 = vcombine.high %v3086_v1, %v3118_v27  ;;  %v3144_v60 = vcombine.low %v23687_v55, %v23694_v18  ;;  %v3522_v43 = vld [vmem:[#allocation2 + $0xc9] sm:$0xff]  ;;  %v3538_v1 = vld [vmem:[#allocation2 + $0x1b9] sm:$0xff] }
 0x494   :  { %v3145_v2 = vcombine.high %v23687_v55, %v23694_v18  ;;  %3394 = vst.msk [vmem:[#allocation2 + $0xf9] sm:$0xff] %vm116_vm2, %v3330_v44  ;;  %3393 = vst.msk [vmem:[#allocation2 + $0xf1] sm:$0xff] %vm116_vm2, %v3329_v19  ;;  %v3146_v34 = vcombine.low %v23713_v48, %v23697_v45  ;;  %v3147_v14 = vcombine.high %v23713_v48, %v23697_v45  ;;  %19718 = vmatmul.mubr.msk.f32.gmra.mrb[24].mxu1 %vm35_vm3, %v3522_v43  ;;  %v3343_v55 = vld [vmem:[%s29946_s1 + $0x100] sm:$0xff]  ;;  %v3349_v44 = vld [vmem:[%s29946_s1 + $0x130] sm:$0xff] }
 0x495   :  { %v3148_v8 = vcombine.low %v23719_v62, %v23700_v57  ;;  %v3149_v7 = vcombine.high %v23719_v62, %v23700_v57  ;;  %3216 = vrot.lane.b32.xlu1 %v3142_v6, %s22558_s0  ;;  %v3347_v18 = vld [vmem:[%s29946_s1 + $0x120] sm:$0xff]  ;;  %v3344_v48 = vld [vmem:[%s29946_s1 + $0x108] sm:$0xff]  ;;  %v3346_v6 = vld [vmem:[%s29946_s1 + $0x118] sm:$0xff] }
 0x496   :  { %3230 = vrot.lane.b32.xlu0 %v3010_v9, %s22558_s0  ;;  %v1997_v37 = vpop.permute.xlu1 %1996  ;;  %v1995_v58 = vpop.permute.xlu0 %1994  ;;  %v3334_v9 = vld [vmem:[%s29946_s1 + $0xb8] sm:$0xff]  ;;  %v3351_v42 = vld [vmem:[%s29946_s1 + $0x140] sm:$0xff]  ;;  %v3348_v43 = vld [vmem:[%s29946_s1 + $0x128] sm:$0xff] }
 0x497   :  { %2072 = vst.msk [vmem:[#allocation2 + $0x111] sm:$0xff] %vm2050_vm4, %v1997_v37  ;;  %2071 = vst.msk [vmem:[#allocation2 + $0x109] sm:$0xff] %vm2050_vm4, %v1995_v58  ;;  %v3357_v58 = vld [vmem:[%s29946_s1 + $0x170] sm:$0xff] }
 0x498   :  { %v3523_v51 = vld [vmem:[#allocation2 + $0xd9] sm:$0xff]  ;;  %v3524_v4 = vld [vmem:[#allocation2 + $0xe1] sm:$0xff]  ;;  %3396 = vst.msk [vmem:[#allocation2 + $0x111] sm:$0xff] %vm116_vm2, %v3332_v29  ;;  %3395 = vst.msk [vmem:[#allocation2 + $0x109] sm:$0xff] %vm116_vm2, %v3331_v22 }
 0x499   :  { %19720 = vmatprep.mubr.msk.f32.mxu1 %vm35_vm3, %v3523_v51  ;;  %3220 = vrot.lane.b32.xlu1 %v3143_v30, %s22558_s0  ;;  %v3350_v22 = vld [vmem:[%s29946_s1 + $0x138] sm:$0xff] }
 0x49a   :  { %19721 = vmatmul.mubr.msk.f32.gmra.mrb[26].mxu1 %vm35_vm3, %v3524_v4  ;;  %3234 = vrot.lane.b32.xlu0 %v3011_v15, %s22558_s0  ;;  %v2001_v49 = vpop.permute.xlu1 %2000  ;;  %v1999_v59 = vpop.permute.xlu0 %1998 }
 0x49b   :  { %2074 = vst.msk [vmem:[#allocation2 + $0x129] sm:$0xff] %vm2050_vm4, %v2001_v49  ;;  %2073 = vst.msk [vmem:[#allocation2 + $0x121] sm:$0xff] %vm2050_vm4, %v1999_v59  ;;  %v3525_v50 = vld [vmem:[#allocation2 + $0xf1] sm:$0xff]  ;;  %v3526_v40 = vld [vmem:[#allocation2 + $0xf9] sm:$0xff] }
 0x49c   :  { %3398 = vst.msk [vmem:[#allocation2 + $0x129] sm:$0xff] %vm116_vm2, %v3334_v9  ;;  %3397 = vst.msk [vmem:[#allocation2 + $0x121] sm:$0xff] %vm116_vm2, %v3333_v28  ;;  %19723 = vmatprep.mubr.msk.f32.mxu1 %vm35_vm3, %v3525_v50  ;;  %v3352_v28 = vld [vmem:[%s29946_s1 + $0x148] sm:$0xff]  ;;  %v3359_v59 = vld [vmem:[%s29946_s1 + $0x180] sm:$0xff] }
 0x49d   :  { %3224 = vrot.lane.b32.xlu1 %v3144_v60, %s22558_s0  ;;  %v3353_v60 = vld [vmem:[%s29946_s1 + $0x150] sm:$0xff] }
 0x49e   :  { %19724 = vmatmul.mubr.msk.f32.gmra.mrb[28].mxu1 %vm35_vm3, %v3526_v40  ;;  %3238 = vrot.lane.b32.xlu0 %v3012_v3, %s22558_s0  ;;  %v2005_v15 = vpop.permute.xlu1 %2004  ;;  %v2003_v46 = vpop.permute.xlu0 %2002  ;;  %v3338_v3 = vld [vmem:[%s29946_s1 + $0xd8] sm:$0xff] }
 0x49f   :  { %2076 = vst.msk [vmem:[#allocation2 + $0x141] sm:$0xff] %vm2050_vm4, %v2005_v15  ;;  %2075 = vst.msk [vmem:[#allocation2 + $0x139] sm:$0xff] %vm2050_vm4, %v2003_v46  ;;  %v3527_v61 = vld [vmem:[#allocation2 + $0x109] sm:$0xff]  ;;  %v3528_v39 = vld [vmem:[#allocation2 + $0x111] sm:$0xff] }
 0x4a0   :  { %3400 = vst.msk [vmem:[#allocation2 + $0x141] sm:$0xff] %vm116_vm2, %v3336_v53  ;;  %3399 = vst.msk [vmem:[#allocation2 + $0x139] sm:$0xff] %vm116_vm2, %v3335_v10  ;;  %19726 = vmatprep.mubr.msk.f32.mxu1 %vm35_vm3, %v3527_v61  ;;  %v3354_v10 = vld [vmem:[%s29946_s1 + $0x158] sm:$0xff]  ;;  %v3361_v46 = vld [vmem:[%s29946_s1 + $0x190] sm:$0xff] }
 0x4a1   :  { %3228 = vrot.lane.b32.xlu1 %v3145_v2, %s22558_s0 }
 0x4a2   :  { %19727 = vmatmul.mubr.msk.f32.gmra.mrb[30].mxu1 %vm35_vm3, %v3528_v39  ;;  %2014 = vrot.lane.b32.xlu0 %v30197_v0, %s22558_s0  ;;  %v2009_v25 = vpop.permute.xlu1 %2008  ;;  %v2007_v11 = vpop.permute.xlu0 %2006 }
 0x4a3   :  { %2078 = vst.msk [vmem:[#allocation2 + $0x159] sm:$0xff] %vm2050_vm4, %v2009_v25  ;;  %2077 = vst.msk [vmem:[#allocation2 + $0x151] sm:$0xff] %vm2050_vm4, %v2007_v11  ;;  %v3529_v5 = vld [vmem:[#allocation2 + $0x121] sm:$0xff]  ;;  %v3530_v54 = vld [vmem:[#allocation2 + $0x129] sm:$0xff] }
 0x4a4   :  { %3402 = vst.msk [vmem:[#allocation2 + $0x159] sm:$0xff] %vm116_vm2, %v3338_v3  ;;  %3401 = vst.msk [vmem:[#allocation2 + $0x151] sm:$0xff] %vm116_vm2, %v3337_v12  ;;  %19729 = vmatprep.mubr.msk.f32.mxu1 %vm35_vm3, %v3529_v5  ;;  %v3356_v12 = vld [vmem:[%s29946_s1 + $0x168] sm:$0xff]  ;;  %v3363_v25 = vld [vmem:[%s29946_s1 + $0x1a0] sm:$0xff] }
 0x4a5   :  { %3232 = vrot.lane.b32.xlu1 %v3146_v34, %s22558_s0 }
 0x4a6   :  { %19730 = vmatmul.mubr.msk.f32.gmra.mrb[32].mxu1 %vm35_vm3, %v3530_v54  ;;  %3242 = vrot.lane.b32.xlu0 %v3013_v26, %s22558_s0  ;;  %v2013_v47 = vpop.permute.xlu1 %2012  ;;  %v2011_v24 = vpop.permute.xlu0 %2010  ;;  %v17408_v26 = vld [vmem:[%s29945_s4 + $0x20] sm:$0xff] }
 0x4a7   :  { %2080 = vst.msk [vmem:[#allocation2 + $0x171] sm:$0xff] %vm2050_vm4, %v2013_v47  ;;  %2079 = vst.msk [vmem:[#allocation2 + $0x169] sm:$0xff] %vm2050_vm4, %v2011_v24  ;;  %v3531_v31 = vld [vmem:[#allocation2 + $0x139] sm:$0xff]  ;;  %v3532_v52 = vld [vmem:[#allocation2 + $0x141] sm:$0xff]  ;;  %v23844_v23 = vpack.c.bf16 %v17409_v32, %v17408_v26 }
 0x4a8   :  { %3404 = vst.msk [vmem:[#allocation2 + $0x171] sm:$0xff] %vm116_vm2, %v3340_v38  ;;  %3403 = vst.msk [vmem:[#allocation2 + $0x169] sm:$0xff] %vm116_vm2, %v3339_v16  ;;  %19732 = vmatprep.mubr.msk.f32.mxu1 %vm35_vm3, %v3531_v31  ;;  %v3358_v38 = vld [vmem:[%s29946_s1 + $0x178] sm:$0xff]  ;;  %v3365_v47 = vld [vmem:[%s29946_s1 + $0x1b0] sm:$0xff] }
 0x4a9   :  { %3236 = vrot.lane.b32.xlu1 %v3147_v14, %s22558_s0  ;;  %21480 = vmatprep.subr.bf16.mxu1 %v23844_v23  ;;  %v3355_v14 = vld [vmem:[%s29946_s1 + $0x160] sm:$0xff] }
 0x4aa   :  { %19733 = vmatmul.mubr.msk.f32.gmra.mrb[34].mxu1 %vm35_vm3, %v3532_v52  ;;  %v3367_v26 = vld [vmem:[%s29946_s1 + $0x1c0] sm:$0xff] }
 0x4ab   :  { %v3533_v56 = vld [vmem:[#allocation2 + $0x151] sm:$0xff]  ;;  %v3534_v13 = vld [vmem:[#allocation2 + $0x159] sm:$0xff] }
 0x4ac   :  { %19735 = vmatprep.mubr.msk.f32.mxu1 %vm35_vm3, %v3533_v56  ;;  %v3360_v56 = vld [vmem:[%s29946_s1 + $0x188] sm:$0xff] }
 0x4ad   :  { %3240 = vrot.lane.b32.xlu1 %v3148_v8, %s22558_s0 }
 0x4ae   :  { %19736 = vmatmul.mubr.msk.f32.gmra.mrb[36].mxu1 %vm35_vm3, %v3534_v13 }
 0x4af   :  { %v3535_v63 = vld [vmem:[#allocation2 + $0x169] sm:$0xff]  ;;  %v3536_v17 = vld [vmem:[#allocation2 + $0x171] sm:$0xff] }
 0x4b0   :  { %19738 = vmatprep.mubr.msk.f32.mxu1 %vm35_vm3, %v3535_v63 }
 0x4b1   :  { %2016 = vrot.lane.b32.xlu1 %v30198_v35, %s22558_s0 }
 0x4b2   :  { %19739 = vmatmul.mubr.msk.f32.gmra.mrb[38].mxu1 %vm35_vm3, %v3536_v17 }
 0x4b3   :  { %19741 = vmatprep.mubr.msk.f32.mxu1 %vm35_vm3, %v3537_v36  ;;  %v3362_v36 = vld [vmem:[%s29946_s1 + $0x198] sm:$0xff] }
 0x4b5   :  { %3244 = vrot.lane.b32.xlu1 %v3149_v7, %s22558_s0 }
 0x4b6   :  { %19742 = vmatmul.mubr.msk.f32.gmra.mrb[40].mxu1 %vm35_vm3, %v3538_v1  ;;  %v3369_v1 = vld [vmem:[%s29946_s1 + $0x1d0] sm:$0xff] }
 0x4d7   :  { %v3183_v27 = vpop.permute.xlu0 %3182 }
 0x4d8   :  { %3279 = vst.msk [vmem:[#allocation2 + $0x1c9] sm:$0xff] %vm2050_vm4, %v3183_v27 }
 0x4d9   :  { %3407 = vst.msk [vmem:[#allocation2 + $0x1c9] sm:$0xff] %vm116_vm2, %v3343_v55 }
 0x4db   :  { %v3187_v21 = vpop.permute.xlu0 %3186 }
 0x4dc   :  { %3281 = vst.msk [vmem:[#allocation2 + $0x1e1] sm:$0xff] %vm2050_vm4, %v3187_v21  ;;  %v3364_v21 = vld [vmem:[%s29946_s1 + $0x1a8] sm:$0xff] }
 0x4dd   :  { %3409 = vst.msk [vmem:[#allocation2 + $0x1e1] sm:$0xff] %vm116_vm2, %v3345_v20 }
 0x4df   :  { %v3191_v45 = vpop.permute.xlu0 %3190 }
 0x4e0   :  { %3283 = vst.msk [vmem:[#allocation2 + $0x1f9] sm:$0xff] %vm2050_vm4, %v3191_v45  ;;  %v3539_v57 = vld [vmem:[#allocation2 + $0x1c9] sm:$0xff]  ;;  %v3371_v45 = vld [vmem:[%s29946_s1 + $0x1e0] sm:$0xff] }
 0x4e1   :  { %3411 = vst.msk [vmem:[#allocation2 + $0x1f9] sm:$0xff] %vm116_vm2, %v3347_v18  ;;  %19744 = vmatprep.mubr.msk.f32.mxu1 %vm35_vm3, %v3539_v57 }
 0x4e3   :  { %v3195_v19 = vpop.permute.xlu0 %3194 }
 0x4e4   :  { %3285 = vst.msk [vmem:[#allocation2 + $0x211] sm:$0xff] %vm2050_vm4, %v3195_v19  ;;  %v3541_v8 = vld [vmem:[#allocation2 + $0x1e1] sm:$0xff] }
 0x4e5   :  { %3413 = vst.msk [vmem:[#allocation2 + $0x211] sm:$0xff] %vm116_vm2, %v3349_v44 }
 0x4e7   :  { %v3185_v62 = vpop.permute.xlu1 %3184  ;;  %v3199_v41 = vpop.permute.xlu0 %3198 }
 0x4e8   :  { %3280 = vst.msk [vmem:[#allocation2 + $0x1d1] sm:$0xff] %vm2050_vm4, %v3185_v62  ;;  %3287 = vst.msk [vmem:[#allocation2 + $0x229] sm:$0xff] %vm2050_vm4, %v3199_v41  ;;  %v3543_v51 = vld [vmem:[#allocation2 + $0x1f9] sm:$0xff] }
 0x4e9   :  { %3408 = vst.msk [vmem:[#allocation2 + $0x1d1] sm:$0xff] %vm116_vm2, %v3344_v48  ;;  %3415 = vst.msk [vmem:[#allocation2 + $0x229] sm:$0xff] %vm116_vm2, %v3351_v42  ;;  %v3366_v48 = vld [vmem:[%s29946_s1 + $0x1b8] sm:$0xff]  ;;  %v3341_v42 = vld [vmem:[%s29946_s1 + $0xf0] sm:$0xff] }
 0x4eb   :  { %v3189_v30 = vpop.permute.xlu1 %3188 }
 0x4ec   :  { %3282 = vst.msk [vmem:[#allocation2 + $0x1e9] sm:$0xff] %vm2050_vm4, %v3189_v30  ;;  %v3203_v2 = vpop.permute.xlu0 %3202  ;;  %v3545_v50 = vld [vmem:[#allocation2 + $0x211] sm:$0xff] }
 0x4ed   :  { %3410 = vst.msk [vmem:[#allocation2 + $0x1e9] sm:$0xff] %vm116_vm2, %v3346_v6 }
 0x4ee   :  { %3289 = vst.msk [vmem:[#allocation2 + $0x241] sm:$0xff] %vm2050_vm4, %v3203_v2 }
 0x4ef   :  { %3417 = vst.msk [vmem:[#allocation2 + $0x241] sm:$0xff] %vm116_vm2, %v3353_v60  ;;  %v3193_v34 = vpop.permute.xlu1 %3192  ;;  %v3368_v60 = vld [vmem:[%s29946_s1 + $0x1c8] sm:$0xff] }
 0x4f0   :  { %3284 = vst.msk [vmem:[#allocation2 + $0x201] sm:$0xff] %vm2050_vm4, %v3193_v34  ;;  %v3207_v7 = vpop.permute.xlu0 %3206  ;;  %v3540_v29 = vld [vmem:[#allocation2 + $0x1d1] sm:$0xff]  ;;  %v3547_v61 = vld [vmem:[#allocation2 + $0x229] sm:$0xff] }
 0x4f1   :  { %3412 = vst.msk [vmem:[#allocation2 + $0x201] sm:$0xff] %vm116_vm2, %v3348_v43  ;;  %19745 = vmatmul.mubr.msk.f32.gmra.mrb[42].mxu1 %vm35_vm3, %v3540_v29  ;;  %v3373_v43 = vld [vmem:[%s29946_s1 + $0x1f0] sm:$0xff] }
 0x4f2   :  { %3291 = vst.msk [vmem:[#allocation2 + $0x259] sm:$0xff] %vm2050_vm4, %v3207_v7  ;;  %19747 = vmatprep.mubr.msk.f32.mxu1 %vm35_vm3, %v3541_v8  ;;  %v3370_v7 = vld [vmem:[%s29946_s1 + $0x1d8] sm:$0xff] }
 0x4f3   :  { %3419 = vst.msk [vmem:[#allocation2 + $0x259] sm:$0xff] %vm116_vm2, %v3355_v14  ;;  %v3197_v37 = vpop.permute.xlu1 %3196 }
 0x4f4   :  { %3286 = vst.msk [vmem:[#allocation2 + $0x219] sm:$0xff] %vm2050_vm4, %v3197_v37  ;;  %v3211_v4 = vpop.permute.xlu0 %3210  ;;  %v3542_v9 = vld [vmem:[#allocation2 + $0x1e9] sm:$0xff] }
 0x4f5   :  { %3414 = vst.msk [vmem:[#allocation2 + $0x219] sm:$0xff] %vm116_vm2, %v3350_v22  ;;  %19748 = vmatmul.mubr.msk.f32.gmra.mrb[44].mxu1 %vm35_vm3, %v3542_v9 }
 0x4f6   :  { %3293 = vst.msk [vmem:[#allocation2 + $0x271] sm:$0xff] %vm2050_vm4, %v3211_v4  ;;  %19750 = vmatprep.mubr.msk.f32.mxu1 %vm35_vm3, %v3543_v51  ;;  %v3549_v11 = vld [vmem:[#allocation2 + $0x241] sm:$0xff] }
 0x4f7   :  { %3421 = vst.msk [vmem:[#allocation2 + $0x271] sm:$0xff] %vm116_vm2, %v3357_v58  ;;  %v3201_v49 = vpop.permute.xlu1 %3200  ;;  %v3372_v58 = vld [vmem:[%s29946_s1 + $0x1e8] sm:$0xff] }
 0x4f8   :  { %3288 = vst.msk [vmem:[#allocation2 + $0x231] sm:$0xff] %vm2050_vm4, %v3201_v49  ;;  %v3215_v40 = vpop.permute.xlu0 %3214  ;;  %v3544_v53 = vld [vmem:[#allocation2 + $0x201] sm:$0xff] }
 0x4f9   :  { %3416 = vst.msk [vmem:[#allocation2 + $0x231] sm:$0xff] %vm116_vm2, %v3352_v28  ;;  %19751 = vmatmul.mubr.msk.f32.gmra.mrb[46].mxu1 %vm35_vm3, %v3544_v53  ;;  %v3342_v28 = vld [vmem:[%s29946_s1 + $0xf8] sm:$0xff] }
 0x4fa   :  { %3295 = vst.msk [vmem:[#allocation2 + $0x289] sm:$0xff] %vm2050_vm4, %v3215_v40  ;;  %19753 = vmatprep.mubr.msk.f32.mxu1 %vm35_vm3, %v3545_v50  ;;  %v3551_v24 = vld [vmem:[#allocation2 + $0x259] sm:$0xff] }
 0x4fb   :  { %3423 = vst.msk [vmem:[#allocation2 + $0x289] sm:$0xff] %vm116_vm2, %v3359_v59  ;;  %v3205_v15 = vpop.permute.xlu1 %3204  ;;  %v3374_v40 = vld [vmem:[%s29946_s1 + $0x1f8] sm:$0xff] }
 0x4fc   :  { %3290 = vst.msk [vmem:[#allocation2 + $0x249] sm:$0xff] %vm2050_vm4, %v3205_v15  ;;  %v3219_v39 = vpop.permute.xlu0 %3218  ;;  %v3546_v3 = vld [vmem:[#allocation2 + $0x219] sm:$0xff] }
 0x4fd   :  { %3418 = vst.msk [vmem:[#allocation2 + $0x249] sm:$0xff] %vm116_vm2, %v3354_v10  ;;  %19754 = vmatmul.mubr.msk.f32.gmra.mrb[48].mxu1 %vm35_vm3, %v3546_v3  ;;  %v3439_v10 = vld [vmem:[#allocation2] sm:$0xff]  ;;  %v17475_v3 = vld [vmem:[%s29945_s4 + $0x38] sm:$0xff] }
 0x4fe   :  { %3297 = vst.msk [vmem:[#allocation2 + $0x2a1] sm:$0xff] %vm2050_vm4, %v3219_v39  ;;  %19756 = vmatprep.mubr.msk.f32.mxu1 %vm35_vm3, %v3547_v61  ;;  %v3553_v32 = vld [vmem:[#allocation2 + $0x271] sm:$0xff] }
 0x4ff   :  { %3425 = vst.msk [vmem:[#allocation2 + $0x2a1] sm:$0xff] %vm116_vm2, %v3361_v46  ;;  %v3209_v0 = vpop.permute.xlu1 %3208  ;;  %v3440_v46 = vld [vmem:[#allocation2 + $0x8] sm:$0xff]  ;;  %v24188_v61 = vld [vmem:[#allocation2 + $0x18] sm:$0xff]  ;;  %v17474_v39 = vld [vmem:[%s29945_s4 + $0x30] sm:$0xff] }
 0x500   :  { %3292 = vst.msk [vmem:[#allocation2 + $0x261] sm:$0xff] %vm2050_vm4, %v3209_v0  ;;  %v3223_v5 = vpop.permute.xlu0 %3222  ;;  %v3548_v54 = vld [vmem:[#allocation2 + $0x231] sm:$0xff]  ;;  %v24202_v0 = vpack.c.bf16 %v17475_v3, %v17474_v39 }
 0x501   :  { %3420 = vst.msk [vmem:[#allocation2 + $0x261] sm:$0xff] %vm116_vm2, %v3356_v12  ;;  %19757 = vmatmul.mubr.msk.f32.gmra.mrb[50].mxu1 %vm35_vm3, %v3548_v54  ;;  %v24200_v12 = vld [vmem:[#allocation2 + $0x20] sm:$0xff] }
 0x502   :  { %3299 = vst.msk [vmem:[#allocation2 + $0x2b9] sm:$0xff] %vm2050_vm4, %v3223_v5  ;;  %19759 = vmatprep.mubr.msk.f32.mxu1 %vm35_vm3, %v3549_v11  ;;  %v3555_v55 = vld [vmem:[#allocation2 + $0x289] sm:$0xff]  ;;  %v24211_v11 = vld [vmem:[#allocation2 + $0x38] sm:$0xff]  ;;  %v24221_v54 = vld [vmem:[#allocation2 + $0x60] sm:$0xff] }
 0x503   :  { %3427 = vst.msk [vmem:[#allocation2 + $0x2b9] sm:$0xff] %vm116_vm2, %v3363_v25  ;;  %v3213_v16 = vpop.permute.xlu1 %3212  ;;  %v24204_v25 = vld [vmem:[#allocation2 + $0x30] sm:$0xff]  ;;  %v24213_v5 = vld [vmem:[#allocation2 + $0x48] sm:$0xff] }
 0x504   :  { %3294 = vst.msk [vmem:[#allocation2 + $0x279] sm:$0xff] %vm2050_vm4, %v3213_v16  ;;  %v3227_v31 = vpop.permute.xlu0 %3226  ;;  %v3550_v52 = vld [vmem:[#allocation2 + $0x249] sm:$0xff]  ;;  %v24229_v16 = vld [vmem:[#allocation2 + $0x78] sm:$0xff] }
 0x505   :  { %3422 = vst.msk [vmem:[#allocation2 + $0x279] sm:$0xff] %vm116_vm2, %v3358_v38  ;;  %19760 = vmatmul.mubr.msk.f32.gmra.mrb[52].mxu1 %vm35_vm3, %v3550_v52  ;;  %v24227_v38 = vld [vmem:[#allocation2 + $0x68] sm:$0xff] }
 0x506   :  { %3301 = vst.msk [vmem:[#allocation2 + $0x2d1] sm:$0xff] %vm2050_vm4, %v3227_v31  ;;  %19762 = vmatprep.mubr.msk.f32.mxu1 %vm35_vm3, %v3551_v24  ;;  %v3557_v57 = vld [vmem:[#allocation2 + $0x2a1] sm:$0xff]  ;;  %v24237_v24 = vld [vmem:[#allocation2 + $0x90] sm:$0xff]  ;;  %v24243_v31 = vld [vmem:[#allocation2 + $0x98] sm:$0xff] }
 0x507   :  { %3429 = vst.msk [vmem:[#allocation2 + $0x2d1] sm:$0xff] %vm116_vm2, %v3365_v47  ;;  %v3217_v13 = vpop.permute.xlu1 %3216  ;;  %v24235_v47 = vld [vmem:[#allocation2 + $0x80] sm:$0xff]  ;;  %v24245_v52 = vld [vmem:[#allocation2 + $0xa8] sm:$0xff] }
 0x508   :  { %3296 = vst.msk [vmem:[#allocation2 + $0x291] sm:$0xff] %vm2050_vm4, %v3217_v13  ;;  %v3231_v63 = vpop.permute.xlu0 %3230  ;;  %v3552_v17 = vld [vmem:[#allocation2 + $0x261] sm:$0xff] }
 0x509   :  { %3424 = vst.msk [vmem:[#allocation2 + $0x291] sm:$0xff] %vm116_vm2, %v3360_v56  ;;  %19763 = vmatmul.mubr.msk.f32.gmra.mrb[54].mxu1 %vm35_vm3, %v3552_v17  ;;  %v24251_v56 = vld [vmem:[#allocation2 + $0xb0] sm:$0xff]  ;;  %v24253_v13 = vld [vmem:[#allocation2 + $0xc0] sm:$0xff] }
 0x50a   :  { %3303 = vst.msk [vmem:[#allocation2 + $0x2e9] sm:$0xff] %vm2050_vm4, %v3231_v63  ;;  %19765 = vmatprep.mubr.msk.f32.mxu1 %vm35_vm3, %v3553_v32  ;;  %v3559_v41 = vld [vmem:[#allocation2 + $0x2b9] sm:$0xff]  ;;  %v24269_v17 = vld [vmem:[#allocation2 + $0xf0] sm:$0xff] }
 0x50b   :  { %3431 = vst.msk [vmem:[#allocation2 + $0x2e9] sm:$0xff] %vm116_vm2, %v3367_v26  ;;  %v3221_v35 = vpop.permute.xlu1 %3220  ;;  %v24259_v26 = vld [vmem:[#allocation2 + $0xc8] sm:$0xff]  ;;  %v24261_v32 = vld [vmem:[#allocation2 + $0xd8] sm:$0xff]  ;;  %v24267_v63 = vld [vmem:[#allocation2 + $0xe0] sm:$0xff] }
 0x50c   :  { %3298 = vst.msk [vmem:[#allocation2 + $0x2a9] sm:$0xff] %vm2050_vm4, %v3221_v35  ;;  %v3235_v27 = vpop.permute.xlu0 %3234  ;;  %v3554_v20 = vld [vmem:[#allocation2 + $0x279] sm:$0xff]  ;;  %v24277_v35 = vld [vmem:[#allocation2 + $0x108] sm:$0xff] }
 0x50d   :  { %3426 = vst.msk [vmem:[#allocation2 + $0x2a9] sm:$0xff] %vm116_vm2, %v3362_v36  ;;  %19766 = vmatmul.mubr.msk.f32.gmra.mrb[56].mxu1 %vm35_vm3, %v3554_v20  ;;  %v24275_v36 = vld [vmem:[#allocation2 + $0xf8] sm:$0xff] }
 0x50e   :  { %3305 = vst.msk [vmem:[#allocation2 + $0x301] sm:$0xff] %vm2050_vm4, %v3235_v27  ;;  %19768 = vmatprep.mubr.msk.f32.mxu1 %vm35_vm3, %v3555_v55  ;;  %v3561_v34 = vld [vmem:[#allocation2 + $0x2d1] sm:$0xff]  ;;  %v24285_v55 = vld [vmem:[#allocation2 + $0x120] sm:$0xff]  ;;  %v24291_v27 = vld [vmem:[#allocation2 + $0x128] sm:$0xff] }
 0x50f   :  { %3433 = vst.msk [vmem:[#allocation2 + $0x301] sm:$0xff] %vm116_vm2, %v3369_v1  ;;  %v3225_v18 = vpop.permute.xlu1 %3224  ;;  %v24283_v1 = vld [vmem:[#allocation2 + $0x110] sm:$0xff]  ;;  %v24293_v20 = vld [vmem:[#allocation2 + $0x138] sm:$0xff] }
 0x510   :  { %3300 = vst.msk [vmem:[#allocation2 + $0x2c1] sm:$0xff] %vm2050_vm4, %v3225_v18  ;;  %v3239_v44 = vpop.permute.xlu0 %3238  ;;  %v3556_v19 = vld [vmem:[#allocation2 + $0x291] sm:$0xff] }
 0x511   :  { %3428 = vst.msk [vmem:[#allocation2 + $0x2c1] sm:$0xff] %vm116_vm2, %v3364_v21  ;;  %19769 = vmatmul.mubr.msk.f32.gmra.mrb[58].mxu1 %vm35_vm3, %v3556_v19  ;;  %v24299_v21 = vld [vmem:[#allocation2 + $0x140] sm:$0xff]  ;;  %v24301_v18 = vld [vmem:[#allocation2 + $0x150] sm:$0xff] }
 0x512   :  { %3307 = vst.msk [vmem:[#allocation2 + $0x319] sm:$0xff] %vm2050_vm4, %v3239_v44  ;;  %19771 = vmatprep.mubr.msk.f32.mxu1 %vm35_vm3, %v3557_v57  ;;  %v3563_v22 = vld [vmem:[#allocation2 + $0x2e9] sm:$0xff] }
 0x513   :  { %3435 = vst.msk [vmem:[#allocation2 + $0x319] sm:$0xff] %vm116_vm2, %v3371_v45  ;;  %v3229_v62 = vpop.permute.xlu1 %3228  ;;  %v24307_v45 = vld [vmem:[#allocation2 + $0x158] sm:$0xff]  ;;  %v24309_v57 = vld [vmem:[#allocation2 + $0x168] sm:$0xff]  ;;  %v24315_v44 = vld [vmem:[#allocation2 + $0x170] sm:$0xff] }
 0x514   :  { %3302 = vst.msk [vmem:[#allocation2 + $0x2d9] sm:$0xff] %vm2050_vm4, %v3229_v62  ;;  %v2015_v6 = vpop.permute.xlu0 %2014  ;;  %v3558_v30 = vld [vmem:[#allocation2 + $0x2a9] sm:$0xff] }
 0x515   :  { %3430 = vst.msk [vmem:[#allocation2 + $0x2d9] sm:$0xff] %vm116_vm2, %v3366_v48  ;;  %19772 = vmatmul.mubr.msk.f32.gmra.mrb[60].mxu1 %vm35_vm3, %v3558_v30  ;;  %v3471_v19 = vld [vmem:[#allocation2 + $0x1b0] sm:$0xff]  ;;  %v3472_v48 = vld [vmem:[#allocation2 + $0x1b8] sm:$0xff]  ;;  %v24320_v62 = vld [vmem:[#allocation2 + $0x1c8] sm:$0xff] }
 0x516   :  { %2081 = vst.msk [vmem:[#allocation2 + $0x181] sm:$0xff] %vm2050_vm4, %v2015_v6  ;;  %19774 = vmatprep.mubr.msk.f32.mxu1 %vm35_vm3, %v3559_v41  ;;  %v3565_v4 = vld [vmem:[#allocation2 + $0x301] sm:$0xff]  ;;  %v24335_v30 = vld [vmem:[#allocation2 + $0x1f8] sm:$0xff] }
 0x517   :  { %3405 = vst.msk [vmem:[#allocation2 + $0x181] sm:$0xff] %vm116_vm2, %v3341_v42  ;;  %v3233_v2 = vpop.permute.xlu1 %3232  ;;  %v24325_v42 = vld [vmem:[#allocation2 + $0x1d0] sm:$0xff]  ;;  %v24327_v41 = vld [vmem:[#allocation2 + $0x1e0] sm:$0xff]  ;;  %v24333_v6 = vld [vmem:[#allocation2 + $0x1e8] sm:$0xff] }
 0x518   :  { %3304 = vst.msk [vmem:[#allocation2 + $0x2f1] sm:$0xff] %vm2050_vm4, %v3233_v2  ;;  %v3243_v14 = vpop.permute.xlu0 %3242  ;;  %v3560_v8 = vld [vmem:[#allocation2 + $0x2c1] sm:$0xff]  ;;  %v24343_v2 = vld [vmem:[#allocation2 + $0x210] sm:$0xff] }
 0x519   :  { %3432 = vst.msk [vmem:[#allocation2 + $0x2f1] sm:$0xff] %vm116_vm2, %v3368_v60  ;;  %19775 = vmatmul.mubr.msk.f32.gmra.mrb[62].mxu1 %vm35_vm3, %v3560_v8  ;;  %v24341_v60 = vld [vmem:[#allocation2 + $0x200] sm:$0xff] }
 0x51a   :  { %3309 = vst.msk [vmem:[#allocation2 + $0x331] sm:$0xff] %vm2050_vm4, %v3243_v14  ;;  %19777 = vmatprep.mubr.msk.f32.mxu1 %vm35_vm3, %v3561_v34  ;;  %v3567_v59 = vld [vmem:[#allocation2 + $0x319] sm:$0xff]  ;;  %v24351_v34 = vld [vmem:[#allocation2 + $0x228] sm:$0xff]  ;;  %v24357_v14 = vld [vmem:[#allocation2 + $0x230] sm:$0xff] }
 0x51b   :  { %3437 = vst.msk [vmem:[#allocation2 + $0x331] sm:$0xff] %vm116_vm2, %v3373_v43  ;;  %v3237_v29 = vpop.permute.xlu1 %3236  ;;  %v24349_v43 = vld [vmem:[#allocation2 + $0x218] sm:$0xff]  ;;  %v24359_v8 = vld [vmem:[#allocation2 + $0x240] sm:$0xff] }
 0x51c   :  { %3306 = vst.msk [vmem:[#allocation2 + $0x309] sm:$0xff] %vm2050_vm4, %v3237_v29  ;;  %v3562_v37 = vld [vmem:[#allocation2 + $0x2d9] sm:$0xff] }
 0x51d   :  { %3434 = vst.msk [vmem:[#allocation2 + $0x309] sm:$0xff] %vm116_vm2, %v3370_v7  ;;  %19778 = vmatmul.mubr.msk.f32.gmra.mrb[64].mxu1 %vm35_vm3, %v3562_v37  ;;  %v24365_v7 = vld [vmem:[#allocation2 + $0x248] sm:$0xff]  ;;  %v24367_v29 = vld [vmem:[#allocation2 + $0x258] sm:$0xff]  ;;  %v24375_v37 = vld [vmem:[#allocation2 + $0x270] sm:$0xff] }
 0x51e   :  { %19780 = vmatprep.mubr.msk.f32.mxu1 %vm35_vm3, %v3563_v22  ;;  %v24373_v22 = vld [vmem:[#allocation2 + $0x260] sm:$0xff]  ;;  %v24431_v39 = vld [vmem:[#allocation2 + $0x318] sm:$0xff] }
 0x51f   :  { %v3241_v51 = vpop.permute.xlu1 %3240  ;;  %30202 = vst [vmem:[#allocation8_spill] sm:$0xff] %v24431_v39 }
 0x520   :  { %3308 = vst.msk [vmem:[#allocation2 + $0x321] sm:$0xff] %vm2050_vm4, %v3241_v51  ;;  %v3564_v9 = vld [vmem:[#allocation2 + $0x2f1] sm:$0xff]  ;;  %v24383_v51 = vld [vmem:[#allocation2 + $0x288] sm:$0xff] }
 0x521   :  { %3436 = vst.msk [vmem:[#allocation2 + $0x321] sm:$0xff] %vm116_vm2, %v3372_v58  ;;  %19781 = vmatmul.mubr.msk.f32.gmra.mrb[66].mxu1 %vm35_vm3, %v3564_v9  ;;  %v24381_v58 = vld [vmem:[#allocation2 + $0x278] sm:$0xff]  ;;  %v24391_v9 = vld [vmem:[#allocation2 + $0x2a0] sm:$0xff] }
 0x522   :  { %19783 = vmatprep.mubr.msk.f32.mxu1 %vm35_vm3, %v3565_v4  ;;  %v24389_v4 = vld [vmem:[#allocation2 + $0x290] sm:$0xff] }
 0x523   :  { %v2017_v49 = vpop.permute.xlu1 %2016 }
 0x524   :  { %2082 = vst.msk [vmem:[#allocation2 + $0x189] sm:$0xff] %vm2050_vm4, %v2017_v49  ;;  %v3566_v50 = vld [vmem:[#allocation2 + $0x309] sm:$0xff]  ;;  %v24399_v49 = vld [vmem:[#allocation2 + $0x2b8] sm:$0xff] }
 0x525   :  { %3406 = vst.msk [vmem:[#allocation2 + $0x189] sm:$0xff] %vm116_vm2, %v3342_v28  ;;  %19784 = vmatmul.mubr.msk.f32.gmra.mrb[68].mxu1 %vm35_vm3, %v3566_v50  ;;  %v24397_v28 = vld [vmem:[#allocation2 + $0x2a8] sm:$0xff]  ;;  %v24407_v50 = vld [vmem:[#allocation2 + $0x2d0] sm:$0xff] }
 0x526   :  { %19786 = vmatprep.mubr.msk.f32.mxu1 %vm35_vm3, %v3567_v59  ;;  %v24405_v59 = vld [vmem:[#allocation2 + $0x2c0] sm:$0xff] }
 0x527   :  { %v3245_v53 = vpop.permute.xlu1 %3244 }
 0x528   :  { %3310 = vst.msk [vmem:[#allocation2 + $0x339] sm:$0xff] %vm2050_vm4, %v3245_v53  ;;  %v3568_v15 = vld [vmem:[#allocation2 + $0x321] sm:$0xff] }
 0x529   :  { %3438 = vst.msk [vmem:[#allocation2 + $0x339] sm:$0xff] %vm116_vm2, %v3374_v40  ;;  %19787 = vmatmul.mubr.msk.f32.gmra.mrb[70].mxu1 %vm35_vm3, %v3568_v15  ;;  %v24413_v40 = vld [vmem:[#allocation2 + $0x2d8] sm:$0xff]  ;;  %v24415_v53 = vld [vmem:[#allocation2 + $0x2e8] sm:$0xff]  ;;  %v24423_v15 = vld [vmem:[#allocation2 + $0x300] sm:$0xff] }
 0x52a   :  { %19793 = vmatprep.mubr.msk.f32.mxu1 %vm35_vm3, %v3439_v10  ;;  %v24421_v10 = vld [vmem:[#allocation2 + $0x2f0] sm:$0xff]  ;;  %30200 = vst [vmem:[#allocation7_spill] sm:$0xff] %v24423_v15  ;;  %v24437_v3 = vld [vmem:[#allocation2 + $0x320] sm:$0xff] }
 0x52b   :  { %30199 = vst [vmem:[#allocation5_spill] sm:$0xff] %v24421_v10  ;;  %30203 = vst [vmem:[#allocation9_spill] sm:$0xff] %v24437_v3 }
 0x52d   :  { %19794 = vmatmul.mubr.msk.f32.vlgmr.msra.gmra.mrb[8].mxu1 %vm35_vm3, %v3440_v46  ;;  %v24429_v46 = vld [vmem:[#allocation2 + $0x308] sm:$0xff] }
 0x52e   :  { %19796 = vmatprep.mubr.msk.f32.mxu1 %vm35_vm3, %v24188_v61  ;;  %21482 = vmatpush3.bf16.msra.mxu1 %v23844_v23  ;;  %v24219_v23 = vld [vmem:[#allocation2 + $0x50] sm:$0xff]  ;;  %30201 = vst [vmem:[#allocation6_spill] sm:$0xff] %v24429_v46 }
 0x52f   :  { %21484 = vmatprep.subr.bf16.mxu1 %v24202_v0 }
 0x531   :  { %19797 = vmatmul.mubr.msk.f32.gmra.mrb[10].mxu1 %vm35_vm3, %v24200_v12 }
 0x532   :  { %19799 = vmatprep.mubr.msk.f32.mxu1 %vm35_vm3, %v24204_v25 }
 0x535   :  { %19800 = vmatmul.mubr.msk.f32.gmra.mrb[12].mxu1 %vm35_vm3, %v24211_v11 }
 0x536   :  { %19802 = vmatprep.mubr.msk.f32.mxu1 %vm35_vm3, %v24213_v5 }
 0x539   :  { %19803 = vmatmul.mubr.msk.f32.gmra.mrb[14].mxu1 %vm35_vm3, %v24219_v23 }
 0x53a   :  { %19805 = vmatprep.mubr.msk.f32.mxu1 %vm35_vm3, %v24221_v54 }
 0x53d   :  { %19806 = vmatmul.mubr.msk.f32.gmra.mrb[16].mxu1 %vm35_vm3, %v24227_v38 }
 0x53e   :  { %19808 = vmatprep.mubr.msk.f32.mxu1 %vm35_vm3, %v24229_v16 }
 0x541   :  { %19809 = vmatmul.mubr.msk.f32.gmra.mrb[18].mxu1 %vm35_vm3, %v24235_v47 }
 0x542   :  { %19811 = vmatprep.mubr.msk.f32.mxu1 %vm35_vm3, %v24237_v24 }
 0x545   :  { %19812 = vmatmul.mubr.msk.f32.gmra.mrb[20].mxu1 %vm35_vm3, %v24243_v31 }
 0x546   :  { %19814 = vmatprep.mubr.msk.f32.mxu1 %vm35_vm3, %v24245_v52 }
 0x549   :  { %19815 = vmatmul.mubr.msk.f32.gmra.mrb[22].mxu1 %vm35_vm3, %v24251_v56 }
 0x54a   :  { %19817 = vmatprep.mubr.msk.f32.mxu1 %vm35_vm3, %v24253_v13 }
 0x54d   :  { %19818 = vmatmul.mubr.msk.f32.gmra.mrb[24].mxu1 %vm35_vm3, %v24259_v26 }
 0x54e   :  { %19820 = vmatprep.mubr.msk.f32.mxu1 %vm35_vm3, %v24261_v32 }
 0x551   :  { %19821 = vmatmul.mubr.msk.f32.gmra.mrb[26].mxu1 %vm35_vm3, %v24267_v63 }
 0x552   :  { %19823 = vmatprep.mubr.msk.f32.mxu1 %vm35_vm3, %v24269_v17 }
 0x555   :  { %19824 = vmatmul.mubr.msk.f32.gmra.mrb[28].mxu1 %vm35_vm3, %v24275_v36 }
 0x556   :  { %19826 = vmatprep.mubr.msk.f32.mxu1 %vm35_vm3, %v24277_v35 }
 0x559   :  { %19827 = vmatmul.mubr.msk.f32.gmra.mrb[30].mxu1 %vm35_vm3, %v24283_v1 }
 0x55a   :  { %19829 = vmatprep.mubr.msk.f32.mxu1 %vm35_vm3, %v24285_v55 }
 0x55d   :  { %19830 = vmatmul.mubr.msk.f32.gmra.mrb[32].mxu1 %vm35_vm3, %v24291_v27 }
 0x55e   :  { %19832 = vmatprep.mubr.msk.f32.mxu1 %vm35_vm3, %v24293_v20 }
 0x561   :  { %19833 = vmatmul.mubr.msk.f32.gmra.mrb[34].mxu1 %vm35_vm3, %v24299_v21 }
 0x562   :  { %19835 = vmatprep.mubr.msk.f32.mxu1 %vm35_vm3, %v24301_v18 }
 0x565   :  { %19836 = vmatmul.mubr.msk.f32.gmra.mrb[36].mxu1 %vm35_vm3, %v24307_v45 }
 0x566   :  { %19838 = vmatprep.mubr.msk.f32.mxu1 %vm35_vm3, %v24309_v57 }
 0x569   :  { %19839 = vmatmul.mubr.msk.f32.gmra.mrb[38].mxu1 %vm35_vm3, %v24315_v44 }
 0x56a   :  { %19841 = vmatprep.mubr.msk.f32.mxu1 %vm35_vm3, %v3471_v19  ;;  %v4726_v19 = vld [vmem:[#allocation2 + $0x2] sm:$0xff] }
 0x56d   :  { %19842 = vmatmul.mubr.msk.f32.gmra.mrb[40].mxu1 %vm35_vm3, %v3472_v48  ;;  %v4727_v48 = vld [vmem:[#allocation2 + $0xa] sm:$0xff] }
 0x56e   :  { %19844 = vmatprep.mubr.msk.f32.mxu1 %vm35_vm3, %v24320_v62 }
 0x571   :  { %19845 = vmatmul.mubr.msk.f32.gmra.mrb[42].mxu1 %vm35_vm3, %v24325_v42 }
 0x572   :  { %19847 = vmatprep.mubr.msk.f32.mxu1 %vm35_vm3, %v24327_v41 }
 0x575   :  { %19848 = vmatmul.mubr.msk.f32.gmra.mrb[44].mxu1 %vm35_vm3, %v24333_v6 }
 0x576   :  { %19850 = vmatprep.mubr.msk.f32.mxu1 %vm35_vm3, %v24335_v30 }
 0x579   :  { %19851 = vmatmul.mubr.msk.f32.gmra.mrb[46].mxu1 %vm35_vm3, %v24341_v60 }
 0x57a   :  { %19853 = vmatprep.mubr.msk.f32.mxu1 %vm35_vm3, %v24343_v2 }
 0x57d   :  { %19854 = vmatmul.mubr.msk.f32.gmra.mrb[48].mxu1 %vm35_vm3, %v24349_v43 }
 0x57e   :  { %19856 = vmatprep.mubr.msk.f32.mxu1 %vm35_vm3, %v24351_v34 }
 0x581   :  { %19857 = vmatmul.mubr.msk.f32.gmra.mrb[50].mxu1 %vm35_vm3, %v24357_v14 }
 0x582   :  { %19859 = vmatprep.mubr.msk.f32.mxu1 %vm35_vm3, %v24359_v8 }
 0x585   :  { %19860 = vmatmul.mubr.msk.f32.gmra.mrb[52].mxu1 %vm35_vm3, %v24365_v7 }
 0x586   :  { %19862 = vmatprep.mubr.msk.f32.mxu1 %vm35_vm3, %v24367_v29 }
 0x589   :  { %19863 = vmatmul.mubr.msk.f32.gmra.mrb[54].mxu1 %vm35_vm3, %v24373_v22 }
 0x58a   :  { %19865 = vmatprep.mubr.msk.f32.mxu1 %vm35_vm3, %v24375_v37 }
 0x58d   :  { %19866 = vmatmul.mubr.msk.f32.gmra.mrb[56].mxu1 %vm35_vm3, %v24381_v58 }
 0x58e   :  { %19868 = vmatprep.mubr.msk.f32.mxu1 %vm35_vm3, %v24383_v51 }
 0x591   :  { %19869 = vmatmul.mubr.msk.f32.gmra.mrb[58].mxu1 %vm35_vm3, %v24389_v4 }
 0x592   :  { %19871 = vmatprep.mubr.msk.f32.mxu1 %vm35_vm3, %v24391_v9 }
 0x595   :  { %19872 = vmatmul.mubr.msk.f32.gmra.mrb[60].mxu1 %vm35_vm3, %v24397_v28 }
 0x596   :  { %19874 = vmatprep.mubr.msk.f32.mxu1 %vm35_vm3, %v24399_v49 }
 0x599   :  { %19875 = vmatmul.mubr.msk.f32.gmra.mrb[62].mxu1 %vm35_vm3, %v24405_v59 }
 0x59a   :  { %19877 = vmatprep.mubr.msk.f32.mxu1 %vm35_vm3, %v24407_v50 }
 0x59d   :  { %19878 = vmatmul.mubr.msk.f32.gmra.mrb[64].mxu1 %vm35_vm3, %v24413_v40 }
 0x59e   :  { %19880 = vmatprep.mubr.msk.f32.mxu1 %vm35_vm3, %v24415_v53 }
 0x5a1   :  { %19881 = vmatmul.mubr.msk.f32.gmra.mrb[66].mxu1 %vm35_vm3, %v24421_v10  ;;  %v24467_v10 = vld [vmem:[#allocation2 + $0x4a] sm:$0xff] }
 0x5a2   :  { %19883 = vmatprep.mubr.msk.f32.mxu1 %vm35_vm3, %v24423_v15  ;;  %v24458_v15 = vld [vmem:[#allocation2 + $0x32] sm:$0xff]  ;;  %30207 = vst [vmem:[#allocation13_spill] sm:$0xff] %v24467_v10 }
 0x5a3   :  { %30205 = vst [vmem:[#allocation11_spill] sm:$0xff] %v24458_v15 }
 0x5a5   :  { %19884 = vmatmul.mubr.msk.f32.gmra.mrb[68].mxu1 %vm35_vm3, %v24429_v46  ;;  %v17540_v46 = vld [vmem:[%s29945_s4 + $0x40] sm:$0xff] }
 0x5a6   :  { %19886 = vmatprep.mubr.msk.f32.mxu1 %vm35_vm3, %v24431_v39  ;;  %v17541_v39 = vld [vmem:[%s29945_s4 + $0x48] sm:$0xff] }
 0x5a9   :  { %19887 = vmatmul.mubr.msk.f32.gmra.mrb[70].mxu1 %vm35_vm3, %v24437_v3  ;;  %v24454_v3 = vld [vmem:[#allocation2 + $0x22] sm:$0xff] }
 0x5aa   :  { %19893 = vmatprep.mubr.msk.f32.mxu1 %vm35_vm3, %v4726_v19  ;;  %30204 = vst [vmem:[#allocation10_spill] sm:$0xff] %v24454_v3  ;;  %v24456_v19 = vpack.c.bf16 %v17541_v39, %v17540_v46  ;;  %v24475_v46 = vld [vmem:[#allocation2 + $0x62] sm:$0xff]  ;;  %v24481_v39 = vld [vmem:[#allocation2 + $0x6a] sm:$0xff] }
 0x5ab   :  { %30209 = vst [vmem:[#allocation15_spill] sm:$0xff] %v24475_v46  ;;  %30210 = vst [vmem:[#allocation16_spill] sm:$0xff] %v24481_v39 }
 0x5ad   :  { %19894 = vmatmul.mubr.msk.f32.vlgmr.msra.gmra.mrb[8].mxu1 %vm35_vm3, %v4727_v48  ;;  %v24465_v48 = vld [vmem:[#allocation2 + $0x3a] sm:$0xff] }
 0x5ae   :  { %19896 = vmatprep.mubr.msk.f32.mxu1 %vm35_vm3, %v24442_v33  ;;  %21486 = vmatpush3.bf16.msra.mxu1 %v24202_v0  ;;  %30206 = vst [vmem:[#allocation12_spill] sm:$0xff] %v24465_v48  ;;  %v24473_v0 = vld [vmem:[#allocation2 + $0x52] sm:$0xff] }
 0x5af   :  { %21488 = vmatprep.subr.bf16.mxu1 %v24456_v19  ;;  %30208 = vst [vmem:[#allocation14_spill] sm:$0xff] %v24473_v0 }
 0x5b1   :  { %19897 = vmatmul.mubr.msk.f32.gmra.mrb[10].mxu1 %vm35_vm3, %v24454_v3  ;;  %v24581_v3 = vld [vmem:[#allocation2 + $0x1e2] sm:$0xff] }
 0x5b2   :  { %19899 = vmatprep.mubr.msk.f32.mxu1 %vm35_vm3, %v24458_v15  ;;  %v24483_v15 = vld [vmem:[#allocation2 + $0x7a] sm:$0xff]  ;;  %30234 = vst [vmem:[#allocation40_spill] sm:$0xff] %v24581_v3 }
 0x5b3   :  { %30211 = vst [vmem:[#allocation17_spill] sm:$0xff] %v24483_v15 }
 0x5b5   :  { %19900 = vmatmul.mubr.msk.f32.gmra.mrb[12].mxu1 %vm35_vm3, %v24465_v48  ;;  %v24491_v48 = vld [vmem:[#allocation2 + $0x92] sm:$0xff] }
 0x5b6   :  { %19902 = vmatprep.mubr.msk.f32.mxu1 %vm35_vm3, %v24467_v10  ;;  %v24489_v10 = vld [vmem:[#allocation2 + $0x82] sm:$0xff]  ;;  %30213 = vst [vmem:[#allocation19_spill] sm:$0xff] %v24491_v48 }
 0x5b7   :  { %30212 = vst [vmem:[#allocation18_spill] sm:$0xff] %v24489_v10 }
 0x5b9   :  { %19903 = vmatmul.mubr.msk.f32.gmra.mrb[14].mxu1 %vm35_vm3, %v24473_v0  ;;  %v24499_v0 = vld [vmem:[#allocation2 + $0xaa] sm:$0xff] }
 0x5ba   :  { %19905 = vmatprep.mubr.msk.f32.mxu1 %vm35_vm3, %v24475_v46  ;;  %v24497_v46 = vld [vmem:[#allocation2 + $0x9a] sm:$0xff]  ;;  %30215 = vst [vmem:[#allocation21_spill] sm:$0xff] %v24499_v0 }
 0x5bb   :  { %30214 = vst [vmem:[#allocation20_spill] sm:$0xff] %v24497_v46 }
 0x5bd   :  { %19906 = vmatmul.mubr.msk.f32.gmra.mrb[16].mxu1 %vm35_vm3, %v24481_v39  ;;  %v24507_v39 = vld [vmem:[#allocation2 + $0xc2] sm:$0xff] }
 0x5be   :  { %19908 = vmatprep.mubr.msk.f32.mxu1 %vm35_vm3, %v24483_v15  ;;  %v24505_v15 = vld [vmem:[#allocation2 + $0xb2] sm:$0xff]  ;;  %30217 = vst [vmem:[#allocation23_spill] sm:$0xff] %v24507_v39 }
 0x5bf   :  { %30216 = vst [vmem:[#allocation22_spill] sm:$0xff] %v24505_v15 }
 0x5c1   :  { %19909 = vmatmul.mubr.msk.f32.gmra.mrb[18].mxu1 %vm35_vm3, %v24489_v10  ;;  %v24515_v10 = vld [vmem:[#allocation2 + $0xda] sm:$0xff] }
 0x5c2   :  { %19911 = vmatprep.mubr.msk.f32.mxu1 %vm35_vm3, %v24491_v48  ;;  %v24513_v48 = vld [vmem:[#allocation2 + $0xca] sm:$0xff]  ;;  %30219 = vst [vmem:[#allocation25_spill] sm:$0xff] %v24515_v10 }
 0x5c3   :  { %30218 = vst [vmem:[#allocation24_spill] sm:$0xff] %v24513_v48 }
 0x5c5   :  { %19912 = vmatmul.mubr.msk.f32.gmra.mrb[20].mxu1 %vm35_vm3, %v24497_v46  ;;  %v24523_v46 = vld [vmem:[#allocation2 + $0xf2] sm:$0xff] }
 0x5c6   :  { %19914 = vmatprep.mubr.msk.f32.mxu1 %vm35_vm3, %v24499_v0  ;;  %v24521_v0 = vld [vmem:[#allocation2 + $0xe2] sm:$0xff]  ;;  %30221 = vst [vmem:[#allocation27_spill] sm:$0xff] %v24523_v46 }
 0x5c7   :  { %30220 = vst [vmem:[#allocation26_spill] sm:$0xff] %v24521_v0 }
 0x5c9   :  { %19915 = vmatmul.mubr.msk.f32.gmra.mrb[22].mxu1 %vm35_vm3, %v24505_v15  ;;  %v24531_v15 = vld [vmem:[#allocation2 + $0x10a] sm:$0xff] }
 0x5ca   :  { %19917 = vmatprep.mubr.msk.f32.mxu1 %vm35_vm3, %v24507_v39  ;;  %v24529_v39 = vld [vmem:[#allocation2 + $0xfa] sm:$0xff]  ;;  %30223 = vst [vmem:[#allocation29_spill] sm:$0xff] %v24531_v15 }
 0x5cb   :  { %30222 = vst [vmem:[#allocation28_spill] sm:$0xff] %v24529_v39 }
 0x5cd   :  { %19918 = vmatmul.mubr.msk.f32.gmra.mrb[24].mxu1 %vm35_vm3, %v24513_v48  ;;  %v24539_v48 = vld [vmem:[#allocation2 + $0x122] sm:$0xff] }
 0x5ce   :  { %19920 = vmatprep.mubr.msk.f32.mxu1 %vm35_vm3, %v24515_v10  ;;  %v24537_v10 = vld [vmem:[#allocation2 + $0x112] sm:$0xff]  ;;  %30225 = vst [vmem:[#allocation31_spill] sm:$0xff] %v24539_v48 }
 0x5cf   :  { %30224 = vst [vmem:[#allocation30_spill] sm:$0xff] %v24537_v10 }
 0x5d1   :  { %19921 = vmatmul.mubr.msk.f32.gmra.mrb[26].mxu1 %vm35_vm3, %v24521_v0  ;;  %v24547_v0 = vld [vmem:[#allocation2 + $0x13a] sm:$0xff] }
 0x5d2   :  { %19923 = vmatprep.mubr.msk.f32.mxu1 %vm35_vm3, %v24523_v46  ;;  %v24545_v46 = vld [vmem:[#allocation2 + $0x12a] sm:$0xff]  ;;  %30227 = vst [vmem:[#allocation33_spill] sm:$0xff] %v24547_v0 }
 0x5d3   :  { %30226 = vst [vmem:[#allocation32_spill] sm:$0xff] %v24545_v46 }
 0x5d5   :  { %19924 = vmatmul.mubr.msk.f32.gmra.mrb[28].mxu1 %vm35_vm3, %v24529_v39  ;;  %v24555_v39 = vld [vmem:[#allocation2 + $0x152] sm:$0xff] }
 0x5d6   :  { %19926 = vmatprep.mubr.msk.f32.mxu1 %vm35_vm3, %v24531_v15  ;;  %v24553_v15 = vld [vmem:[#allocation2 + $0x142] sm:$0xff]  ;;  %30229 = vst [vmem:[#allocation35_spill] sm:$0xff] %v24555_v39 }
 0x5d7   :  { %30228 = vst [vmem:[#allocation34_spill] sm:$0xff] %v24553_v15 }
 0x5d9   :  { %19927 = vmatmul.mubr.msk.f32.gmra.mrb[30].mxu1 %vm35_vm3, %v24537_v10  ;;  %v24563_v10 = vld [vmem:[#allocation2 + $0x16a] sm:$0xff] }
 0x5da   :  { %19929 = vmatprep.mubr.msk.f32.mxu1 %vm35_vm3, %v24539_v48  ;;  %v24561_v48 = vld [vmem:[#allocation2 + $0x15a] sm:$0xff] }
 0x5db   :  { %30230 = vst [vmem:[#allocation36_spill] sm:$0xff] %v24561_v48 }
 0x5dd   :  { %19930 = vmatmul.mubr.msk.f32.gmra.mrb[32].mxu1 %vm35_vm3, %v24545_v46  ;;  %v4758_v46 = vld [vmem:[#allocation2 + $0x1b2] sm:$0xff] }
 0x5de   :  { %19932 = vmatprep.mubr.msk.f32.mxu1 %vm35_vm3, %v24547_v0  ;;  %v24569_v0 = vld [vmem:[#allocation2 + $0x172] sm:$0xff] }
 0x5df   :  { %30231 = vst [vmem:[#allocation37_spill] sm:$0xff] %v24569_v0 }
 0x5e1   :  { %19933 = vmatmul.mubr.msk.f32.gmra.mrb[34].mxu1 %vm35_vm3, %v24553_v15  ;;  %v4759_v15 = vld [vmem:[#allocation2 + $0x1ba] sm:$0xff] }
 0x5e2   :  { %19935 = vmatprep.mubr.msk.f32.mxu1 %vm35_vm3, %v24555_v39  ;;  %v24574_v39 = vld [vmem:[#allocation2 + $0x1ca] sm:$0xff] }
 0x5e3   :  { %30232 = vst [vmem:[#allocation38_spill] sm:$0xff] %v24574_v39 }
 0x5e5   :  { %19936 = vmatmul.mubr.msk.f32.gmra.mrb[36].mxu1 %vm35_vm3, %v24561_v48  ;;  %v24579_v48 = vld [vmem:[#allocation2 + $0x1d2] sm:$0xff] }
 0x5e6   :  { %19938 = vmatprep.mubr.msk.f32.mxu1 %vm35_vm3, %v24563_v10  ;;  %30233 = vst [vmem:[#allocation39_spill] sm:$0xff] %v24579_v48 }
 0x5e9   :  { %19939 = vmatmul.mubr.msk.f32.gmra.mrb[38].mxu1 %vm35_vm3, %v24569_v0  ;;  %v24587_v0 = vld [vmem:[#allocation2 + $0x1ea] sm:$0xff] }
 0x5ea   :  { %19941 = vmatprep.mubr.msk.f32.mxu1 %vm35_vm3, %v4758_v46  ;;  %30235 = vst [vmem:[#allocation41_spill] sm:$0xff] %v24587_v0  ;;  %v24589_v46 = vld [vmem:[#allocation2 + $0x1fa] sm:$0xff] }
 0x5eb   :  { %30236 = vst [vmem:[#allocation42_spill] sm:$0xff] %v24589_v46 }
 0x5ed   :  { %19942 = vmatmul.mubr.msk.f32.gmra.mrb[40].mxu1 %vm35_vm3, %v4759_v15  ;;  %v24595_v15 = vld [vmem:[#allocation2 + $0x202] sm:$0xff] }
 0x5ee   :  { %19944 = vmatprep.mubr.msk.f32.mxu1 %vm35_vm3, %v24574_v39  ;;  %30237 = vst [vmem:[#allocation43_spill] sm:$0xff] %v24595_v15  ;;  %v24597_v39 = vld [vmem:[#allocation2 + $0x212] sm:$0xff] }
 0x5ef   :  { %30238 = vst [vmem:[#allocation44_spill] sm:$0xff] %v24597_v39 }
 0x5f1   :  { %19945 = vmatmul.mubr.msk.f32.gmra.mrb[42].mxu1 %vm35_vm3, %v24579_v48  ;;  %v24605_v48 = vld [vmem:[#allocation2 + $0x22a] sm:$0xff] }
 0x5f2   :  { %19947 = vmatprep.mubr.msk.f32.mxu1 %vm35_vm3, %v24581_v3  ;;  %v24603_v3 = vld [vmem:[#allocation2 + $0x21a] sm:$0xff]  ;;  %30240 = vst [vmem:[#allocation46_spill] sm:$0xff] %v24605_v48 }
 0x5f3   :  { %30239 = vst [vmem:[#allocation45_spill] sm:$0xff] %v24603_v3 }
 0x5f5   :  { %19948 = vmatmul.mubr.msk.f32.gmra.mrb[44].mxu1 %vm35_vm3, %v24587_v0  ;;  %v24613_v0 = vld [vmem:[#allocation2 + $0x242] sm:$0xff] }
 0x5f6   :  { %19950 = vmatprep.mubr.msk.f32.mxu1 %vm35_vm3, %v24589_v46  ;;  %v24611_v46 = vld [vmem:[#allocation2 + $0x232] sm:$0xff]  ;;  %30242 = vst [vmem:[#allocation48_spill] sm:$0xff] %v24613_v0 }
 0x5f7   :  { %30241 = vst [vmem:[#allocation47_spill] sm:$0xff] %v24611_v46 }
 0x5f9   :  { %19951 = vmatmul.mubr.msk.f32.gmra.mrb[46].mxu1 %vm35_vm3, %v24595_v15  ;;  %v24621_v15 = vld [vmem:[#allocation2 + $0x25a] sm:$0xff] }
 0x5fa   :  { %19953 = vmatprep.mubr.msk.f32.mxu1 %vm35_vm3, %v24597_v39  ;;  %v24619_v39 = vld [vmem:[#allocation2 + $0x24a] sm:$0xff]  ;;  %30244 = vst [vmem:[#allocation50_spill] sm:$0xff] %v24621_v15 }
 0x5fb   :  { %30243 = vst [vmem:[#allocation49_spill] sm:$0xff] %v24619_v39 }
 0x5fd   :  { %19954 = vmatmul.mubr.msk.f32.gmra.mrb[48].mxu1 %vm35_vm3, %v24603_v3  ;;  %v24629_v3 = vld [vmem:[#allocation2 + $0x272] sm:$0xff] }
 0x5fe   :  { %19956 = vmatprep.mubr.msk.f32.mxu1 %vm35_vm3, %v24605_v48  ;;  %v24627_v48 = vld [vmem:[#allocation2 + $0x262] sm:$0xff]  ;;  %30246 = vst [vmem:[#allocation52_spill] sm:$0xff] %v24629_v3 }
 0x5ff   :  { %30245 = vst [vmem:[#allocation51_spill] sm:$0xff] %v24627_v48 }
 0x601   :  { %19957 = vmatmul.mubr.msk.f32.gmra.mrb[50].mxu1 %vm35_vm3, %v24611_v46  ;;  %v24637_v46 = vld [vmem:[#allocation2 + $0x28a] sm:$0xff] }
 0x602   :  { %19959 = vmatprep.mubr.msk.f32.mxu1 %vm35_vm3, %v24613_v0  ;;  %v24635_v0 = vld [vmem:[#allocation2 + $0x27a] sm:$0xff]  ;;  %30248 = vst [vmem:[#allocation54_spill] sm:$0xff] %v24637_v46 }
 0x603   :  { %30247 = vst [vmem:[#allocation53_spill] sm:$0xff] %v24635_v0 }
 0x605   :  { %19960 = vmatmul.mubr.msk.f32.gmra.mrb[52].mxu1 %vm35_vm3, %v24619_v39  ;;  %v24645_v39 = vld [vmem:[#allocation2 + $0x2a2] sm:$0xff] }
 0x606   :  { %19962 = vmatprep.mubr.msk.f32.mxu1 %vm35_vm3, %v24621_v15  ;;  %v24643_v15 = vld [vmem:[#allocation2 + $0x292] sm:$0xff]  ;;  %30250 = vst [vmem:[#allocation56_spill] sm:$0xff] %v24645_v39 }
 0x607   :  { %30249 = vst [vmem:[#allocation55_spill] sm:$0xff] %v24643_v15 }
 0x609   :  { %19963 = vmatmul.mubr.msk.f32.gmra.mrb[54].mxu1 %vm35_vm3, %v24627_v48  ;;  %v24653_v48 = vld [vmem:[#allocation2 + $0x2ba] sm:$0xff] }
 0x60a   :  { %19965 = vmatprep.mubr.msk.f32.mxu1 %vm35_vm3, %v24629_v3  ;;  %v24651_v3 = vld [vmem:[#allocation2 + $0x2aa] sm:$0xff]  ;;  %30252 = vst [vmem:[#allocation58_spill] sm:$0xff] %v24653_v48 }
 0x60b   :  { %30251 = vst [vmem:[#allocation57_spill] sm:$0xff] %v24651_v3 }
 0x60d   :  { %19966 = vmatmul.mubr.msk.f32.gmra.mrb[56].mxu1 %vm35_vm3, %v24635_v0  ;;  %v24661_v0 = vld [vmem:[#allocation2 + $0x2d2] sm:$0xff] }
 0x60e   :  { %19968 = vmatprep.mubr.msk.f32.mxu1 %vm35_vm3, %v24637_v46  ;;  %v24659_v46 = vld [vmem:[#allocation2 + $0x2c2] sm:$0xff]  ;;  %30254 = vst [vmem:[#allocation60_spill] sm:$0xff] %v24661_v0 }
 0x60f   :  { %30253 = vst [vmem:[#allocation59_spill] sm:$0xff] %v24659_v46 }
 0x611   :  { %19969 = vmatmul.mubr.msk.f32.gmra.mrb[58].mxu1 %vm35_vm3, %v24643_v15  ;;  %v24669_v15 = vld [vmem:[#allocation2 + $0x2ea] sm:$0xff] }
 0x612   :  { %19971 = vmatprep.mubr.msk.f32.mxu1 %vm35_vm3, %v24645_v39  ;;  %v24667_v39 = vld [vmem:[#allocation2 + $0x2da] sm:$0xff]  ;;  %30255 = vst [vmem:[#allocation61_spill] sm:$0xff] %v24669_v15 }
 0x615   :  { %19972 = vmatmul.mubr.msk.f32.gmra.mrb[60].mxu1 %vm35_vm3, %v24651_v3  ;;  %v24677_v3 = vld [vmem:[#allocation2 + $0x302] sm:$0xff] }
 0x616   :  { %19974 = vmatprep.mubr.msk.f32.mxu1 %vm35_vm3, %v24653_v48  ;;  %v24675_v48 = vld [vmem:[#allocation2 + $0x2f2] sm:$0xff]  ;;  %30256 = vst [vmem:[#allocation62_spill] sm:$0xff] %v24677_v3 }
 0x619   :  { %19975 = vmatmul.mubr.msk.f32.gmra.mrb[62].mxu1 %vm35_vm3, %v24659_v46  ;;  %v24685_v46 = vld [vmem:[#allocation2 + $0x31a] sm:$0xff] }
 0x61a   :  { %19977 = vmatprep.mubr.msk.f32.mxu1 %vm35_vm3, %v24661_v0  ;;  %v24683_v0 = vld [vmem:[#allocation2 + $0x30a] sm:$0xff] }
 0x61b   :  { %30257 = vst [vmem:[#allocation63_spill] sm:$0xff] %v24683_v0 }
 0x61d   :  { %19978 = vmatmul.mubr.msk.f32.gmra.mrb[64].mxu1 %vm35_vm3, %v24667_v39 }
 0x61e   :  { %19980 = vmatprep.mubr.msk.f32.mxu1 %vm35_vm3, %v24669_v15  ;;  %v24691_v15 = vld [vmem:[#allocation2 + $0x322] sm:$0xff] }
 0x61f   :  { %30258 = vst [vmem:[#allocation64_spill] sm:$0xff] %v24691_v15 }
 0x621   :  { %19981 = vmatmul.mubr.msk.f32.gmra.mrb[66].mxu1 %vm35_vm3, %v24675_v48 }
 0x622   :  { %19983 = vmatprep.mubr.msk.f32.mxu1 %vm35_vm3, %v24677_v3  ;;  %v17606_v3 = vld [vmem:[%s29945_s4 + $0x50] sm:$0xff] }
 0x625   :  { %19984 = vmatmul.mubr.msk.f32.gmra.mrb[68].mxu1 %vm35_vm3, %v24683_v0  ;;  %v17607_v0 = vld [vmem:[%s29945_s4 + $0x58] sm:$0xff] }
 0x626   :  { %19986 = vmatprep.mubr.msk.f32.mxu1 %vm35_vm3, %v24685_v46 }
 0x629   :  { %19987 = vmatmul.mubr.msk.f32.gmra.mrb[70].mxu1 %vm35_vm3, %v24691_v15  ;;  %v24708_v15 = vpack.c.bf16 %v17607_v0, %v17606_v3  ;;  %v25011_v3 = vld [vmem:[#allocation2 + $0x249] sm:$0xff]  ;;  %v25019_v0 = vld [vmem:[#allocation2 + $0x261] sm:$0xff] }
 0x62a   :  { %19993 = vmatprep.mubr.msk.f32.mxu1 %vm35_vm3, %v24188_v61  ;;  %v24763_v61 = vld [vmem:[#allocation2 + $0x180] sm:$0xff] }
 0x62d   :  { %19994 = vmatmul.mubr.msk.f32.vlgmr.msra.gmra.mrb[8].mxu1 %vm35_vm3, %v24200_v12  ;;  %v24769_v12 = vld [vmem:[#allocation2 + $0x188] sm:$0xff] }
 0x62e   :  { %19996 = vmatprep.mubr.msk.f32.mxu1 %vm35_vm3, %v24204_v25  ;;  %21490 = vmatpush3.bf16.msra.mxu1 %v24456_v19  ;;  %v30259_v25 = vld [vmem:[#allocation5_spill] sm:$0xff]  ;;  %v25013_v19 = vld [vmem:[#allocation2 + $0x259] sm:$0xff] }
 0x62f   :  { %21492 = vmatprep.subr.bf16.mxu1 %v24708_v15 }
 0x631   :  { %19997 = vmatmul.mubr.msk.f32.gmra.mrb[10].mxu1 %vm35_vm3, %v24211_v11  ;;  %v30260_v11 = vld [vmem:[#allocation7_spill] sm:$0xff] }
 0x632   :  { %19999 = vmatprep.mubr.msk.f32.mxu1 %vm35_vm3, %v24213_v5  ;;  %v30261_v5 = vld [vmem:[#allocation6_spill] sm:$0xff] }
 0x635   :  { %20000 = vmatmul.mubr.msk.f32.gmra.mrb[12].mxu1 %vm35_vm3, %v24219_v23  ;;  %v30262_v23 = vld [vmem:[#allocation8_spill] sm:$0xff] }
 0x636   :  { %20002 = vmatprep.mubr.msk.f32.mxu1 %vm35_vm3, %v24221_v54  ;;  %v24831_v54 = vld [vmem:[#allocation2 + $0x330] sm:$0xff] }
 0x639   :  { %20003 = vmatmul.mubr.msk.f32.gmra.mrb[14].mxu1 %vm35_vm3, %v24227_v38  ;;  %v30263_v38 = vld [vmem:[#allocation9_spill] sm:$0xff] }
 0x63a   :  { %20005 = vmatprep.mubr.msk.f32.mxu1 %vm35_vm3, %v24229_v16  ;;  %v24837_v16 = vld [vmem:[#allocation2 + $0x338] sm:$0xff] }
 0x63d   :  { %20006 = vmatmul.mubr.msk.f32.gmra.mrb[16].mxu1 %vm35_vm3, %v24235_v47  ;;  %v6142_v47 = vld [vmem:[#allocation2 + $0x19] sm:$0xff] }
 0x63e   :  { %20008 = vmatprep.mubr.msk.f32.mxu1 %vm35_vm3, %v24237_v24  ;;  %v6143_v24 = vld [vmem:[#allocation2 + $0x21] sm:$0xff] }
 0x641   :  { %20009 = vmatmul.mubr.msk.f32.gmra.mrb[18].mxu1 %vm35_vm3, %v24243_v31  ;;  %v24842_v31 = vld [vmem:[#allocation2 + $0x31] sm:$0xff] }
 0x642   :  { %20011 = vmatprep.mubr.msk.f32.mxu1 %vm35_vm3, %v24245_v52  ;;  %v17672_v52 = vld [vmem:[%s29945_s4 + $0x60] sm:$0xff] }
 0x645   :  { %20012 = vmatmul.mubr.msk.f32.gmra.mrb[20].mxu1 %vm35_vm3, %v24251_v56  ;;  %v17673_v56 = vld [vmem:[%s29945_s4 + $0x68] sm:$0xff] }
 0x646   :  { %20014 = vmatprep.mubr.msk.f32.mxu1 %vm35_vm3, %v24253_v13  ;;  %v24854_v13 = vld [vmem:[#allocation2 + $0x39] sm:$0xff] }
 0x649   :  { %20015 = vmatmul.mubr.msk.f32.gmra.mrb[22].mxu1 %vm35_vm3, %v24259_v26  ;;  %v24856_v26 = vpack.c.bf16 %v17673_v56, %v17672_v52  ;;  %v25053_v52 = vld [vmem:[#allocation2 + $0x2d1] sm:$0xff]  ;;  %v25059_v56 = vld [vmem:[#allocation2 + $0x2d9] sm:$0xff] }
 0x64a   :  { %20017 = vmatprep.mubr.msk.f32.mxu1 %vm35_vm3, %v24261_v32  ;;  %v24858_v32 = vld [vmem:[#allocation2 + $0x49] sm:$0xff]  ;;  %30268 = vst [vmem:[#allocation9_spill] sm:$0xff] %v25053_v52  ;;  %30269 = vst [vmem:[#allocation65_spill] sm:$0xff] %v25059_v56 }
 0x64d   :  { %20018 = vmatmul.mubr.msk.f32.gmra.mrb[24].mxu1 %vm35_vm3, %v24267_v63  ;;  %v24865_v63 = vld [vmem:[#allocation2 + $0x51] sm:$0xff] }
 0x64e   :  { %20020 = vmatprep.mubr.msk.f32.mxu1 %vm35_vm3, %v24269_v17  ;;  %v24867_v17 = vld [vmem:[#allocation2 + $0x61] sm:$0xff] }
 0x651   :  { %20021 = vmatmul.mubr.msk.f32.gmra.mrb[26].mxu1 %vm35_vm3, %v24275_v36  ;;  %v24873_v36 = vld [vmem:[#allocation2 + $0x69] sm:$0xff] }
 0x652   :  { %20023 = vmatprep.mubr.msk.f32.mxu1 %vm35_vm3, %v24277_v35  ;;  %v24875_v35 = vld [vmem:[#allocation2 + $0x79] sm:$0xff] }
 0x655   :  { %20024 = vmatmul.mubr.msk.f32.gmra.mrb[28].mxu1 %vm35_vm3, %v24283_v1  ;;  %v24881_v1 = vld [vmem:[#allocation2 + $0x81] sm:$0xff] }
 0x656   :  { %20026 = vmatprep.mubr.msk.f32.mxu1 %vm35_vm3, %v24285_v55  ;;  %v24883_v55 = vld [vmem:[#allocation2 + $0x91] sm:$0xff] }
 0x659   :  { %20027 = vmatmul.mubr.msk.f32.gmra.mrb[30].mxu1 %vm35_vm3, %v24291_v27  ;;  %v24889_v27 = vld [vmem:[#allocation2 + $0x99] sm:$0xff] }
 0x65a   :  { %20029 = vmatprep.mubr.msk.f32.mxu1 %vm35_vm3, %v24293_v20  ;;  %v24891_v20 = vld [vmem:[#allocation2 + $0xa9] sm:$0xff] }
 0x65d   :  { %20030 = vmatmul.mubr.msk.f32.gmra.mrb[32].mxu1 %vm35_vm3, %v24299_v21  ;;  %v24897_v21 = vld [vmem:[#allocation2 + $0xb1] sm:$0xff] }
 0x65e   :  { %20032 = vmatprep.mubr.msk.f32.mxu1 %vm35_vm3, %v24301_v18  ;;  %v24899_v18 = vld [vmem:[#allocation2 + $0xc1] sm:$0xff] }
 0x661   :  { %20033 = vmatmul.mubr.msk.f32.gmra.mrb[34].mxu1 %vm35_vm3, %v24307_v45  ;;  %v24905_v45 = vld [vmem:[#allocation2 + $0xc9] sm:$0xff] }
 0x662   :  { %20035 = vmatprep.mubr.msk.f32.mxu1 %vm35_vm3, %v24309_v57  ;;  %v24907_v57 = vld [vmem:[#allocation2 + $0xd9] sm:$0xff] }
 0x665   :  { %20036 = vmatmul.mubr.msk.f32.gmra.mrb[36].mxu1 %vm35_vm3, %v24315_v44  ;;  %v24913_v44 = vld [vmem:[#allocation2 + $0xe1] sm:$0xff] }
 0x666   :  { %20038 = vmatprep.mubr.msk.f32.mxu1 %vm35_vm3, %v24763_v61 }
 0x669   :  { %20039 = vmatmul.mubr.msk.f32.gmra.mrb[38].mxu1 %vm35_vm3, %v24769_v12 }
 0x66a   :  { %20041 = vmatprep.mubr.msk.f32.mxu1 %vm35_vm3, %v24320_v62  ;;  %v24915_v62 = vld [vmem:[#allocation2 + $0xf1] sm:$0xff] }
 0x66d   :  { %20042 = vmatmul.mubr.msk.f32.gmra.mrb[40].mxu1 %vm35_vm3, %v24325_v42  ;;  %v24921_v42 = vld [vmem:[#allocation2 + $0xf9] sm:$0xff] }
 0x66e   :  { %20044 = vmatprep.mubr.msk.f32.mxu1 %vm35_vm3, %v24327_v41  ;;  %v24923_v41 = vld [vmem:[#allocation2 + $0x109] sm:$0xff] }
 0x671   :  { %20045 = vmatmul.mubr.msk.f32.gmra.mrb[42].mxu1 %vm35_vm3, %v24333_v6  ;;  %v24929_v6 = vld [vmem:[#allocation2 + $0x111] sm:$0xff] }
 0x672   :  { %20047 = vmatprep.mubr.msk.f32.mxu1 %vm35_vm3, %v24335_v30  ;;  %v24931_v30 = vld [vmem:[#allocation2 + $0x121] sm:$0xff] }
 0x675   :  { %20048 = vmatmul.mubr.msk.f32.gmra.mrb[44].mxu1 %vm35_vm3, %v24341_v60  ;;  %v24937_v60 = vld [vmem:[#allocation2 + $0x129] sm:$0xff] }
 0x676   :  { %20050 = vmatprep.mubr.msk.f32.mxu1 %vm35_vm3, %v24343_v2  ;;  %v24939_v2 = vld [vmem:[#allocation2 + $0x139] sm:$0xff] }
 0x679   :  { %20051 = vmatmul.mubr.msk.f32.gmra.mrb[46].mxu1 %vm35_vm3, %v24349_v43  ;;  %v24945_v43 = vld [vmem:[#allocation2 + $0x141] sm:$0xff] }
 0x67a   :  { %20053 = vmatprep.mubr.msk.f32.mxu1 %vm35_vm3, %v24351_v34  ;;  %v24947_v34 = vld [vmem:[#allocation2 + $0x151] sm:$0xff] }
 0x67d   :  { %20054 = vmatmul.mubr.msk.f32.gmra.mrb[48].mxu1 %vm35_vm3, %v24357_v14  ;;  %v24953_v14 = vld [vmem:[#allocation2 + $0x159] sm:$0xff] }
 0x67e   :  { %20056 = vmatprep.mubr.msk.f32.mxu1 %vm35_vm3, %v24359_v8  ;;  %v24955_v8 = vld [vmem:[#allocation2 + $0x169] sm:$0xff] }
 0x681   :  { %20057 = vmatmul.mubr.msk.f32.gmra.mrb[50].mxu1 %vm35_vm3, %v24365_v7  ;;  %v24961_v7 = vld [vmem:[#allocation2 + $0x171] sm:$0xff] }
 0x682   :  { %20059 = vmatprep.mubr.msk.f32.mxu1 %vm35_vm3, %v24367_v29  ;;  %v24963_v29 = vld [vmem:[#allocation2 + $0x181] sm:$0xff] }
 0x685   :  { %20060 = vmatmul.mubr.msk.f32.gmra.mrb[52].mxu1 %vm35_vm3, %v24373_v22  ;;  %v24969_v22 = vld [vmem:[#allocation2 + $0x189] sm:$0xff] }
 0x686   :  { %20062 = vmatprep.mubr.msk.f32.mxu1 %vm35_vm3, %v24375_v37  ;;  %v6174_v37 = vld [vmem:[#allocation2 + $0x1c9] sm:$0xff] }
 0x689   :  { %20063 = vmatmul.mubr.msk.f32.gmra.mrb[54].mxu1 %vm35_vm3, %v24381_v58  ;;  %v6175_v58 = vld [vmem:[#allocation2 + $0x1d1] sm:$0xff] }
 0x68a   :  { %20065 = vmatprep.mubr.msk.f32.mxu1 %vm35_vm3, %v24383_v51  ;;  %v24974_v51 = vld [vmem:[#allocation2 + $0x1e1] sm:$0xff] }
 0x68d   :  { %20066 = vmatmul.mubr.msk.f32.gmra.mrb[56].mxu1 %vm35_vm3, %v24389_v4  ;;  %v24979_v4 = vld [vmem:[#allocation2 + $0x1e9] sm:$0xff] }
 0x68e   :  { %20068 = vmatprep.mubr.msk.f32.mxu1 %vm35_vm3, %v24391_v9  ;;  %v24981_v9 = vld [vmem:[#allocation2 + $0x1f9] sm:$0xff] }
 0x691   :  { %20069 = vmatmul.mubr.msk.f32.gmra.mrb[58].mxu1 %vm35_vm3, %v24397_v28  ;;  %v24987_v28 = vld [vmem:[#allocation2 + $0x201] sm:$0xff] }
 0x692   :  { %20071 = vmatprep.mubr.msk.f32.mxu1 %vm35_vm3, %v24399_v49  ;;  %v24989_v49 = vld [vmem:[#allocation2 + $0x211] sm:$0xff] }
 0x695   :  { %20072 = vmatmul.mubr.msk.f32.gmra.mrb[60].mxu1 %vm35_vm3, %v24405_v59  ;;  %v24995_v59 = vld [vmem:[#allocation2 + $0x219] sm:$0xff] }
 0x696   :  { %20074 = vmatprep.mubr.msk.f32.mxu1 %vm35_vm3, %v24407_v50  ;;  %v24997_v50 = vld [vmem:[#allocation2 + $0x229] sm:$0xff] }
 0x699   :  { %20075 = vmatmul.mubr.msk.f32.gmra.mrb[62].mxu1 %vm35_vm3, %v24413_v40  ;;  %v25003_v40 = vld [vmem:[#allocation2 + $0x231] sm:$0xff] }
 0x69a   :  { %20077 = vmatprep.mubr.msk.f32.mxu1 %vm35_vm3, %v24415_v53  ;;  %v25005_v53 = vld [vmem:[#allocation2 + $0x241] sm:$0xff] }
 0x69d   :  { %20078 = vmatmul.mubr.msk.f32.gmra.mrb[64].mxu1 %vm35_vm3, %v30259_v25  ;;  %v25027_v25 = vld [vmem:[#allocation2 + $0x279] sm:$0xff] }
 0x69e   :  { %20080 = vmatprep.mubr.msk.f32.mxu1 %vm35_vm3, %v30260_v11  ;;  %v25029_v11 = vld [vmem:[#allocation2 + $0x289] sm:$0xff] }
 0x6a1   :  { %20081 = vmatmul.mubr.msk.f32.gmra.mrb[66].mxu1 %vm35_vm3, %v30261_v5  ;;  %v25035_v5 = vld [vmem:[#allocation2 + $0x291] sm:$0xff] }
 0x6a2   :  { %20083 = vmatprep.mubr.msk.f32.mxu1 %vm35_vm3, %v30262_v23  ;;  %v25037_v23 = vld [vmem:[#allocation2 + $0x2a1] sm:$0xff] }
 0x6a3   :  { %30264 = vst [vmem:[#allocation5_spill] sm:$0xff] %v25037_v23 }
 0x6a5   :  { %20084 = vmatmul.mubr.msk.f32.gmra.mrb[68].mxu1 %vm35_vm3, %v30263_v38  ;;  %v25043_v38 = vld [vmem:[#allocation2 + $0x2a9] sm:$0xff] }
 0x6a6   :  { %20086 = vmatprep.mubr.msk.f32.mxu1 %vm35_vm3, %v24831_v54  ;;  %30265 = vst [vmem:[#allocation7_spill] sm:$0xff] %v25043_v38 }
 0x6a9   :  { %20087 = vmatmul.mubr.msk.f32.gmra.mrb[70].mxu1 %vm35_vm3, %v24837_v16 }
 0x6aa   :  { %20093 = vmatprep.mubr.msk.f32.mxu1 %vm35_vm3, %v6142_v47  ;;  %v25045_v47 = vld [vmem:[#allocation2 + $0x2b9] sm:$0xff] }
 0x6ab   :  { %30266 = vst [vmem:[#allocation6_spill] sm:$0xff] %v25045_v47 }
 0x6ad   :  { %20094 = vmatmul.mubr.msk.f32.vlgmr.msra.gmra.mrb[8].mxu1 %vm35_vm3, %v6143_v24  ;;  %v25051_v24 = vld [vmem:[#allocation2 + $0x2c1] sm:$0xff] }
 0x6ae   :  { %20096 = vmatprep.mubr.msk.f32.mxu1 %vm35_vm3, %v24842_v31  ;;  %21494 = vmatpush3.bf16.msra.mxu1 %v24708_v15  ;;  %v25021_v15 = vld [vmem:[#allocation2 + $0x271] sm:$0xff]  ;;  %30267 = vst [vmem:[#allocation8_spill] sm:$0xff] %v25051_v24 }
 0x6af   :  { %21496 = vmatprep.subr.bf16.mxu1 %v24856_v26 }
 0x6b1   :  { %20097 = vmatmul.mubr.msk.f32.gmra.mrb[10].mxu1 %vm35_vm3, %v24854_v13 }
 0x6b2   :  { %20099 = vmatprep.mubr.msk.f32.mxu1 %vm35_vm3, %v24858_v32 }
 0x6b5   :  { %20100 = vmatmul.mubr.msk.f32.gmra.mrb[12].mxu1 %vm35_vm3, %v24865_v63 }
 0x6b6   :  { %20102 = vmatprep.mubr.msk.f32.mxu1 %vm35_vm3, %v24867_v17 }
 0x6b9   :  { %20103 = vmatmul.mubr.msk.f32.gmra.mrb[14].mxu1 %vm35_vm3, %v24873_v36 }
 0x6ba   :  { %20105 = vmatprep.mubr.msk.f32.mxu1 %vm35_vm3, %v24875_v35 }
 0x6bd   :  { %20106 = vmatmul.mubr.msk.f32.gmra.mrb[16].mxu1 %vm35_vm3, %v24881_v1 }
 0x6be   :  { %20108 = vmatprep.mubr.msk.f32.mxu1 %vm35_vm3, %v24883_v55 }
 0x6c1   :  { %20109 = vmatmul.mubr.msk.f32.gmra.mrb[18].mxu1 %vm35_vm3, %v24889_v27 }
 0x6c2   :  { %20111 = vmatprep.mubr.msk.f32.mxu1 %vm35_vm3, %v24891_v20 }
 0x6c5   :  { %20112 = vmatmul.mubr.msk.f32.gmra.mrb[20].mxu1 %vm35_vm3, %v24897_v21 }
 0x6c6   :  { %20114 = vmatprep.mubr.msk.f32.mxu1 %vm35_vm3, %v24899_v18 }
 0x6c9   :  { %20115 = vmatmul.mubr.msk.f32.gmra.mrb[22].mxu1 %vm35_vm3, %v24905_v45 }
 0x6ca   :  { %20117 = vmatprep.mubr.msk.f32.mxu1 %vm35_vm3, %v24907_v57 }
 0x6cd   :  { %20118 = vmatmul.mubr.msk.f32.gmra.mrb[24].mxu1 %vm35_vm3, %v24913_v44 }
 0x6ce   :  { %20120 = vmatprep.mubr.msk.f32.mxu1 %vm35_vm3, %v24915_v62 }
 0x6d1   :  { %20121 = vmatmul.mubr.msk.f32.gmra.mrb[26].mxu1 %vm35_vm3, %v24921_v42 }
 0x6d2   :  { %20123 = vmatprep.mubr.msk.f32.mxu1 %vm35_vm3, %v24923_v41 }
 0x6d5   :  { %20124 = vmatmul.mubr.msk.f32.gmra.mrb[28].mxu1 %vm35_vm3, %v24929_v6 }
 0x6d6   :  { %20126 = vmatprep.mubr.msk.f32.mxu1 %vm35_vm3, %v24931_v30 }
 0x6d9   :  { %20127 = vmatmul.mubr.msk.f32.gmra.mrb[30].mxu1 %vm35_vm3, %v24937_v60 }
 0x6da   :  { %20129 = vmatprep.mubr.msk.f32.mxu1 %vm35_vm3, %v24939_v2 }
 0x6dd   :  { %20130 = vmatmul.mubr.msk.f32.gmra.mrb[32].mxu1 %vm35_vm3, %v24945_v43 }
 0x6de   :  { %20132 = vmatprep.mubr.msk.f32.mxu1 %vm35_vm3, %v24947_v34 }
 0x6e1   :  { %20133 = vmatmul.mubr.msk.f32.gmra.mrb[34].mxu1 %vm35_vm3, %v24953_v14 }
 0x6e2   :  { %20135 = vmatprep.mubr.msk.f32.mxu1 %vm35_vm3, %v24955_v8 }
 0x6e5   :  { %20136 = vmatmul.mubr.msk.f32.gmra.mrb[36].mxu1 %vm35_vm3, %v24961_v7 }
 0x6e6   :  { %20138 = vmatprep.mubr.msk.f32.mxu1 %vm35_vm3, %v24963_v29 }
 0x6e9   :  { %20139 = vmatmul.mubr.msk.f32.gmra.mrb[38].mxu1 %vm35_vm3, %v24969_v22 }
 0x6ea   :  { %20141 = vmatprep.mubr.msk.f32.mxu1 %vm35_vm3, %v6174_v37  ;;  %v25061_v37 = vld [vmem:[#allocation2 + $0x2e9] sm:$0xff] }
 0x6eb   :  { %30270 = vst [vmem:[#allocation66_spill] sm:$0xff] %v25061_v37 }
 0x6ed   :  { %20142 = vmatmul.mubr.msk.f32.gmra.mrb[40].mxu1 %vm35_vm3, %v6175_v58  ;;  %v25067_v58 = vld [vmem:[#allocation2 + $0x2f1] sm:$0xff] }
 0x6ee   :  { %20144 = vmatprep.mubr.msk.f32.mxu1 %vm35_vm3, %v24974_v51  ;;  %30271 = vst [vmem:[#allocation67_spill] sm:$0xff] %v25067_v58 }
 0x6f1   :  { %20145 = vmatmul.mubr.msk.f32.gmra.mrb[42].mxu1 %vm35_vm3, %v24979_v4 }
 0x6f2   :  { %20147 = vmatprep.mubr.msk.f32.mxu1 %vm35_vm3, %v24981_v9 }
 0x6f5   :  { %20148 = vmatmul.mubr.msk.f32.gmra.mrb[44].mxu1 %vm35_vm3, %v24987_v28 }
 0x6f6   :  { %20150 = vmatprep.mubr.msk.f32.mxu1 %vm35_vm3, %v24989_v49 }
 0x6f9   :  { %20151 = vmatmul.mubr.msk.f32.gmra.mrb[46].mxu1 %vm35_vm3, %v24995_v59 }
 0x6fa   :  { %20153 = vmatprep.mubr.msk.f32.mxu1 %vm35_vm3, %v24997_v50 }
 0x6fd   :  { %20154 = vmatmul.mubr.msk.f32.gmra.mrb[48].mxu1 %vm35_vm3, %v25003_v40 }
 0x6fe   :  { %20156 = vmatprep.mubr.msk.f32.mxu1 %vm35_vm3, %v25005_v53 }
 0x701   :  { %20157 = vmatmul.mubr.msk.f32.gmra.mrb[50].mxu1 %vm35_vm3, %v25011_v3 }
 0x702   :  { %20159 = vmatprep.mubr.msk.f32.mxu1 %vm35_vm3, %v25013_v19 }
 0x705   :  { %20160 = vmatmul.mubr.msk.f32.gmra.mrb[52].mxu1 %vm35_vm3, %v25019_v0 }
 0x706   :  { %20162 = vmatprep.mubr.msk.f32.mxu1 %vm35_vm3, %v25021_v15 }
 0x709   :  { %20163 = vmatmul.mubr.msk.f32.gmra.mrb[54].mxu1 %vm35_vm3, %v25027_v25 }
 0x70a   :  { %20165 = vmatprep.mubr.msk.f32.mxu1 %vm35_vm3, %v25029_v11 }
 0x70d   :  { %20166 = vmatmul.mubr.msk.f32.gmra.mrb[56].mxu1 %vm35_vm3, %v25035_v5 }
 0x70e   :  { %20168 = vmatprep.mubr.msk.f32.mxu1 %vm35_vm3, %v25037_v23  ;;  %v30284_v23 = vld [vmem:[#allocation16_spill] sm:$0xff] }
 0x711   :  { %20169 = vmatmul.mubr.msk.f32.gmra.mrb[58].mxu1 %vm35_vm3, %v25043_v38  ;;  %v30283_v38 = vld [vmem:[#allocation15_spill] sm:$0xff] }
 0x712   :  { %20171 = vmatprep.mubr.msk.f32.mxu1 %vm35_vm3, %v25045_v47  ;;  %v25069_v47 = vld [vmem:[#allocation2 + $0x301] sm:$0xff] }
 0x713   :  { %30272 = vst [vmem:[#allocation68_spill] sm:$0xff] %v25069_v47 }
 0x715   :  { %20172 = vmatmul.mubr.msk.f32.gmra.mrb[60].mxu1 %vm35_vm3, %v25051_v24  ;;  %v25077_v24 = vld [vmem:[#allocation2 + $0x319] sm:$0xff] }
 0x716   :  { %20174 = vmatprep.mubr.msk.f32.mxu1 %vm35_vm3, %v25053_v52  ;;  %v25075_v52 = vld [vmem:[#allocation2 + $0x309] sm:$0xff]  ;;  %30274 = vst [vmem:[#allocation70_spill] sm:$0xff] %v25077_v24 }
 0x717   :  { %30273 = vst [vmem:[#allocation69_spill] sm:$0xff] %v25075_v52 }
 0x719   :  { %20175 = vmatmul.mubr.msk.f32.gmra.mrb[62].mxu1 %vm35_vm3, %v25059_v56  ;;  %v25085_v56 = vld [vmem:[#allocation2 + $0x331] sm:$0xff] }
 0x71a   :  { %20177 = vmatprep.mubr.msk.f32.mxu1 %vm35_vm3, %v25061_v37  ;;  %v25083_v37 = vld [vmem:[#allocation2 + $0x321] sm:$0xff]  ;;  %30276 = vst [vmem:[#allocation72_spill] sm:$0xff] %v25085_v56 }
 0x71b   :  { %30275 = vst [vmem:[#allocation71_spill] sm:$0xff] %v25083_v37 }
 0x71d   :  { %20178 = vmatmul.mubr.msk.f32.gmra.mrb[64].mxu1 %vm35_vm3, %v25067_v58  ;;  %v30282_v58 = vld [vmem:[#allocation14_spill] sm:$0xff] }
 0x71e   :  { %20180 = vmatprep.mubr.msk.f32.mxu1 %vm35_vm3, %v25069_v47  ;;  %v25091_v47 = vld [vmem:[#allocation2 + $0x339] sm:$0xff] }
 0x71f   :  { %30277 = vst [vmem:[#allocation73_spill] sm:$0xff] %v25091_v47 }
 0x721   :  { %20181 = vmatmul.mubr.msk.f32.gmra.mrb[66].mxu1 %vm35_vm3, %v25075_v52  ;;  %v30278_v52 = vld [vmem:[#allocation10_spill] sm:$0xff] }
 0x722   :  { %20183 = vmatprep.mubr.msk.f32.mxu1 %vm35_vm3, %v25077_v24  ;;  %v17738_v24 = vld [vmem:[%s29945_s4 + $0x70] sm:$0xff] }
 0x725   :  { %20184 = vmatmul.mubr.msk.f32.gmra.mrb[68].mxu1 %vm35_vm3, %v25083_v37  ;;  %v17739_v37 = vld [vmem:[%s29945_s4 + $0x78] sm:$0xff] }
 0x726   :  { %20186 = vmatprep.mubr.msk.f32.mxu1 %vm35_vm3, %v25085_v56  ;;  %v30279_v56 = vld [vmem:[#allocation11_spill] sm:$0xff] }
 0x729   :  { %20187 = vmatmul.mubr.msk.f32.gmra.mrb[70].mxu1 %vm35_vm3, %v25091_v47  ;;  %v25108_v47 = vpack.c.bf16 %v17739_v37, %v17738_v24  ;;  %v30286_v24 = vld [vmem:[#allocation18_spill] sm:$0xff]  ;;  %v30288_v37 = vld [vmem:[#allocation20_spill] sm:$0xff] }
 0x72a   :  { %20193 = vmatprep.mubr.msk.f32.mxu1 %vm35_vm3, %v24442_v33  ;;  %v30280_v33 = vld [vmem:[#allocation12_spill] sm:$0xff] }
 0x72d   :  { %20194 = vmatmul.mubr.msk.f32.vlgmr.msra.gmra.mrb[8].mxu1 %vm35_vm3, %v30278_v52  ;;  %v30281_v52 = vld [vmem:[#allocation13_spill] sm:$0xff] }
 0x72e   :  { %20196 = vmatprep.mubr.msk.f32.mxu1 %vm35_vm3, %v30279_v56  ;;  %21498 = vmatpush3.bf16.msra.mxu1 %v24856_v26  ;;  %v30285_v26 = vld [vmem:[#allocation17_spill] sm:$0xff]  ;;  %v30287_v56 = vld [vmem:[#allocation19_spill] sm:$0xff] }
 0x72f   :  { %21500 = vmatprep.subr.bf16.mxu1 %v25108_v47 }
 0x731   :  { %20197 = vmatmul.mubr.msk.f32.gmra.mrb[10].mxu1 %vm35_vm3, %v30280_v33  ;;  %v30289_v33 = vld [vmem:[#allocation21_spill] sm:$0xff] }
 0x732   :  { %20199 = vmatprep.mubr.msk.f32.mxu1 %vm35_vm3, %v30281_v52  ;;  %v30293_v52 = vld [vmem:[#allocation25_spill] sm:$0xff] }
 0x735   :  { %20200 = vmatmul.mubr.msk.f32.gmra.mrb[12].mxu1 %vm35_vm3, %v30282_v58  ;;  %v30290_v58 = vld [vmem:[#allocation22_spill] sm:$0xff] }
 0x736   :  { %20202 = vmatprep.mubr.msk.f32.mxu1 %vm35_vm3, %v30283_v38  ;;  %v30291_v38 = vld [vmem:[#allocation23_spill] sm:$0xff] }
 0x739   :  { %20203 = vmatmul.mubr.msk.f32.gmra.mrb[14].mxu1 %vm35_vm3, %v30284_v23  ;;  %v30292_v23 = vld [vmem:[#allocation24_spill] sm:$0xff] }
 0x73a   :  { %20205 = vmatprep.mubr.msk.f32.mxu1 %vm35_vm3, %v30285_v26  ;;  %v30294_v26 = vld [vmem:[#allocation26_spill] sm:$0xff] }
 0x73d   :  { %20206 = vmatmul.mubr.msk.f32.gmra.mrb[16].mxu1 %vm35_vm3, %v30286_v24  ;;  %v30295_v24 = vld [vmem:[#allocation27_spill] sm:$0xff] }
 0x73e   :  { %20208 = vmatprep.mubr.msk.f32.mxu1 %vm35_vm3, %v30287_v56  ;;  %v30296_v56 = vld [vmem:[#allocation28_spill] sm:$0xff] }
 0x741   :  { %20209 = vmatmul.mubr.msk.f32.gmra.mrb[18].mxu1 %vm35_vm3, %v30288_v37  ;;  %v30297_v37 = vld [vmem:[#allocation29_spill] sm:$0xff] }
 0x742   :  { %20211 = vmatprep.mubr.msk.f32.mxu1 %vm35_vm3, %v30289_v33  ;;  %v30298_v33 = vld [vmem:[#allocation30_spill] sm:$0xff] }
 0x745   :  { %20212 = vmatmul.mubr.msk.f32.gmra.mrb[20].mxu1 %vm35_vm3, %v30290_v58  ;;  %v30299_v58 = vld [vmem:[#allocation31_spill] sm:$0xff] }
 0x746   :  { %20214 = vmatprep.mubr.msk.f32.mxu1 %vm35_vm3, %v30291_v38  ;;  %v30300_v38 = vld [vmem:[#allocation32_spill] sm:$0xff] }
 0x749   :  { %20215 = vmatmul.mubr.msk.f32.gmra.mrb[22].mxu1 %vm35_vm3, %v30292_v23  ;;  %v30301_v23 = vld [vmem:[#allocation33_spill] sm:$0xff] }
 0x74a   :  { %20217 = vmatprep.mubr.msk.f32.mxu1 %vm35_vm3, %v30293_v52  ;;  %v30302_v52 = vld [vmem:[#allocation34_spill] sm:$0xff] }
 0x74d   :  { %20218 = vmatmul.mubr.msk.f32.gmra.mrb[24].mxu1 %vm35_vm3, %v30294_v26  ;;  %v30303_v26 = vld [vmem:[#allocation35_spill] sm:$0xff] }
 0x74e   :  { %20220 = vmatprep.mubr.msk.f32.mxu1 %vm35_vm3, %v30295_v24  ;;  %v30304_v24 = vld [vmem:[#allocation36_spill] sm:$0xff] }
 0x751   :  { %20221 = vmatmul.mubr.msk.f32.gmra.mrb[26].mxu1 %vm35_vm3, %v30296_v56  ;;  %v25163_v56 = vld [vmem:[#allocation2 + $0x182] sm:$0xff] }
 0x752   :  { %20223 = vmatprep.mubr.msk.f32.mxu1 %vm35_vm3, %v30297_v37  ;;  %v30305_v37 = vld [vmem:[#allocation37_spill] sm:$0xff] }
 0x755   :  { %20224 = vmatmul.mubr.msk.f32.gmra.mrb[28].mxu1 %vm35_vm3, %v30298_v33  ;;  %v25169_v33 = vld [vmem:[#allocation2 + $0x18a] sm:$0xff] }
 0x756   :  { %20226 = vmatprep.mubr.msk.f32.mxu1 %vm35_vm3, %v30299_v58  ;;  %v30306_v58 = vld [vmem:[#allocation38_spill] sm:$0xff] }
 0x759   :  { %20227 = vmatmul.mubr.msk.f32.gmra.mrb[30].mxu1 %vm35_vm3, %v30300_v38  ;;  %v30307_v38 = vld [vmem:[#allocation39_spill] sm:$0xff] }
 0x75a   :  { %20229 = vmatprep.mubr.msk.f32.mxu1 %vm35_vm3, %v30301_v23  ;;  %v30309_v23 = vld [vmem:[#allocation41_spill] sm:$0xff] }
 0x75d   :  { %20230 = vmatmul.mubr.msk.f32.gmra.mrb[32].mxu1 %vm35_vm3, %v30302_v52  ;;  %v30310_v52 = vld [vmem:[#allocation42_spill] sm:$0xff] }
 0x75e   :  { %20232 = vmatprep.mubr.msk.f32.mxu1 %vm35_vm3, %v30303_v26  ;;  %v30311_v26 = vld [vmem:[#allocation43_spill] sm:$0xff] }
 0x761   :  { %20233 = vmatmul.mubr.msk.f32.gmra.mrb[34].mxu1 %vm35_vm3, %v30304_v24  ;;  %v30312_v24 = vld [vmem:[#allocation44_spill] sm:$0xff] }
 0x762   :  { %20235 = vmatprep.mubr.msk.f32.mxu1 %vm35_vm3, %v24563_v10  ;;  %v30308_v10 = vld [vmem:[#allocation40_spill] sm:$0xff] }
 0x765   :  { %20236 = vmatmul.mubr.msk.f32.gmra.mrb[36].mxu1 %vm35_vm3, %v30305_v37  ;;  %v30313_v37 = vld [vmem:[#allocation45_spill] sm:$0xff] }
 0x766   :  { %20238 = vmatprep.mubr.msk.f32.mxu1 %vm35_vm3, %v25163_v56 }
 0x769   :  { %20239 = vmatmul.mubr.msk.f32.gmra.mrb[38].mxu1 %vm35_vm3, %v25169_v33 }
 0x76a   :  { %20241 = vmatprep.mubr.msk.f32.mxu1 %vm35_vm3, %v30306_v58  ;;  %v30314_v58 = vld [vmem:[#allocation46_spill] sm:$0xff] }
 0x76d   :  { %20242 = vmatmul.mubr.msk.f32.gmra.mrb[40].mxu1 %vm35_vm3, %v30307_v38  ;;  %v30315_v38 = vld [vmem:[#allocation47_spill] sm:$0xff] }
 0x76e   :  { %20244 = vmatprep.mubr.msk.f32.mxu1 %vm35_vm3, %v30308_v10  ;;  %v30316_v10 = vld [vmem:[#allocation48_spill] sm:$0xff] }
 0x771   :  { %20245 = vmatmul.mubr.msk.f32.gmra.mrb[42].mxu1 %vm35_vm3, %v30309_v23  ;;  %v30317_v23 = vld [vmem:[#allocation49_spill] sm:$0xff] }
 0x772   :  { %20247 = vmatprep.mubr.msk.f32.mxu1 %vm35_vm3, %v30310_v52  ;;  %v30318_v52 = vld [vmem:[#allocation50_spill] sm:$0xff] }
 0x775   :  { %20248 = vmatmul.mubr.msk.f32.gmra.mrb[44].mxu1 %vm35_vm3, %v30311_v26  ;;  %v30319_v26 = vld [vmem:[#allocation51_spill] sm:$0xff] }
 0x776   :  { %20250 = vmatprep.mubr.msk.f32.mxu1 %vm35_vm3, %v30312_v24  ;;  %v30320_v24 = vld [vmem:[#allocation52_spill] sm:$0xff] }
 0x779   :  { %20251 = vmatmul.mubr.msk.f32.gmra.mrb[46].mxu1 %vm35_vm3, %v30313_v37  ;;  %v30321_v37 = vld [vmem:[#allocation53_spill] sm:$0xff] }
 0x77a   :  { %20253 = vmatprep.mubr.msk.f32.mxu1 %vm35_vm3, %v30314_v58  ;;  %v30322_v58 = vld [vmem:[#allocation54_spill] sm:$0xff] }
 0x77d   :  { %20254 = vmatmul.mubr.msk.f32.gmra.mrb[48].mxu1 %vm35_vm3, %v30315_v38  ;;  %v30323_v38 = vld [vmem:[#allocation55_spill] sm:$0xff] }
 0x77e   :  { %20256 = vmatprep.mubr.msk.f32.mxu1 %vm35_vm3, %v30316_v10  ;;  %v30324_v10 = vld [vmem:[#allocation56_spill] sm:$0xff] }
 0x781   :  { %20257 = vmatmul.mubr.msk.f32.gmra.mrb[50].mxu1 %vm35_vm3, %v30317_v23  ;;  %v30325_v23 = vld [vmem:[#allocation57_spill] sm:$0xff] }
 0x782   :  { %20259 = vmatprep.mubr.msk.f32.mxu1 %vm35_vm3, %v30318_v52  ;;  %v30326_v52 = vld [vmem:[#allocation58_spill] sm:$0xff] }
 0x785   :  { %20260 = vmatmul.mubr.msk.f32.gmra.mrb[52].mxu1 %vm35_vm3, %v30319_v26  ;;  %v30327_v26 = vld [vmem:[#allocation59_spill] sm:$0xff] }
 0x786   :  { %20262 = vmatprep.mubr.msk.f32.mxu1 %vm35_vm3, %v30320_v24  ;;  %v30328_v24 = vld [vmem:[#allocation60_spill] sm:$0xff] }
 0x789   :  { %20263 = vmatmul.mubr.msk.f32.gmra.mrb[54].mxu1 %vm35_vm3, %v30321_v37  ;;  %v30329_v37 = vld [vmem:[#allocation61_spill] sm:$0xff] }
 0x78a   :  { %20265 = vmatprep.mubr.msk.f32.mxu1 %vm35_vm3, %v30322_v58  ;;  %v30330_v58 = vld [vmem:[#allocation62_spill] sm:$0xff] }
 0x78d   :  { %20266 = vmatmul.mubr.msk.f32.gmra.mrb[56].mxu1 %vm35_vm3, %v30323_v38  ;;  %v30331_v38 = vld [vmem:[#allocation63_spill] sm:$0xff] }
 0x78e   :  { %20268 = vmatprep.mubr.msk.f32.mxu1 %vm35_vm3, %v30324_v10  ;;  %v25231_v10 = vld [vmem:[#allocation2 + $0x332] sm:$0xff] }
 0x791   :  { %20269 = vmatmul.mubr.msk.f32.gmra.mrb[58].mxu1 %vm35_vm3, %v30325_v23  ;;  %v30332_v23 = vld [vmem:[#allocation64_spill] sm:$0xff] }
 0x792   :  { %20271 = vmatprep.mubr.msk.f32.mxu1 %vm35_vm3, %v30326_v52  ;;  %v7560_v52 = vld [vmem:[#allocation2 + $0x38] sm:$0xff] }
 0x795   :  { %20272 = vmatmul.mubr.msk.f32.gmra.mrb[60].mxu1 %vm35_vm3, %v30327_v26  ;;  %v7561_v26 = vld [vmem:[#allocation2 + $0x48] sm:$0xff] }
 0x796   :  { %20274 = vmatprep.mubr.msk.f32.mxu1 %vm35_vm3, %v30328_v24  ;;  %v17805_v24 = vld [vmem:[%s29945_s4 + $0x88] sm:$0xff] }
 0x799   :  { %20275 = vmatmul.mubr.msk.f32.gmra.mrb[62].mxu1 %vm35_vm3, %v24667_v39  ;;  %v25237_v39 = vld [vmem:[#allocation2 + $0x33a] sm:$0xff] }
 0x79a   :  { %20277 = vmatprep.mubr.msk.f32.mxu1 %vm35_vm3, %v30329_v37  ;;  %v7562_v37 = vld [vmem:[#allocation2 + $0x50] sm:$0xff] }
 0x79d   :  { %20278 = vmatmul.mubr.msk.f32.gmra.mrb[64].mxu1 %vm35_vm3, %v24675_v48  ;;  %v7559_v48 = vld [vmem:[#allocation2 + $0x30] sm:$0xff] }
 0x79e   :  { %20280 = vmatprep.mubr.msk.f32.mxu1 %vm35_vm3, %v30330_v58 }
 0x7a1   :  { %20281 = vmatmul.mubr.msk.f32.gmra.mrb[66].mxu1 %vm35_vm3, %v30331_v38  ;;  %v7563_v38 = vld [vmem:[#allocation2 + $0x60] sm:$0xff] }
 0x7a2   :  { %20283 = vmatprep.mubr.msk.f32.mxu1 %vm35_vm3, %v24685_v46  ;;  %v17804_v46 = vld [vmem:[%s29945_s4 + $0x80] sm:$0xff] }
 0x7a3   :  { %v25251_v58 = vpack.c.bf16 %v17805_v24, %v17804_v46  ;;  %v7569_v46 = vld [vmem:[#allocation2 + $0xa8] sm:$0xff]  ;;  %v7570_v24 = vld [vmem:[#allocation2 + $0xb0] sm:$0xff] }
 0x7a5   :  { %20284 = vmatmul.mubr.msk.f32.gmra.mrb[68].mxu1 %vm35_vm3, %v30332_v23  ;;  %v7564_v23 = vld [vmem:[#allocation2 + $0x68] sm:$0xff] }
 0x7a6   :  { %20286 = vmatprep.mubr.msk.f32.mxu1 %vm35_vm3, %v25231_v10 }
 0x7a9   :  { %20287 = vmatmul.mubr.msk.f32.gmra.mrb[70].mxu1 %vm35_vm3, %v25237_v39 }
 0x7aa   :  { %20293 = vmatprep.mubr.msk.f32.mxu1 %vm35_vm3, %v7559_v48  ;;  %v7565_v48 = vld [vmem:[#allocation2 + $0x78] sm:$0xff] }
 0x7ad   :  { %20294 = vmatmul.mubr.msk.f32.vlgmr.msra.gmra.mrb[8].mxu1 %vm35_vm3, %v7560_v52  ;;  %v7566_v52 = vld [vmem:[#allocation2 + $0x80] sm:$0xff] }
 0x7ae   :  { %20296 = vmatprep.mubr.msk.f32.mxu1 %vm35_vm3, %v7561_v26  ;;  %21502 = vmatpush3.bf16.msra.mxu1 %v25108_v47  ;;  %v7567_v26 = vld [vmem:[#allocation2 + $0x90] sm:$0xff]  ;;  %v7568_v47 = vld [vmem:[#allocation2 + $0x98] sm:$0xff] }
 0x7af   :  { %21504 = vmatprep.subr.bf16.mxu1 %v25251_v58 }
 0x7b1   :  { %20297 = vmatmul.mubr.msk.f32.gmra.mrb[10].mxu1 %vm35_vm3, %v7562_v37  ;;  %v7571_v37 = vld [vmem:[#allocation2 + $0xc0] sm:$0xff] }
 0x7b2   :  { %20299 = vmatprep.mubr.msk.f32.mxu1 %vm35_vm3, %v7563_v38  ;;  %v7572_v38 = vld [vmem:[#allocation2 + $0xc8] sm:$0xff] }
 0x7b5   :  { %20300 = vmatmul.mubr.msk.f32.gmra.mrb[12].mxu1 %vm35_vm3, %v7564_v23  ;;  %v7573_v23 = vld [vmem:[#allocation2 + $0xd8] sm:$0xff] }
 0x7b6   :  { %20302 = vmatprep.mubr.msk.f32.mxu1 %vm35_vm3, %v7565_v48  ;;  %v7574_v48 = vld [vmem:[#allocation2 + $0xe0] sm:$0xff] }
 0x7b9   :  { %20303 = vmatmul.mubr.msk.f32.gmra.mrb[14].mxu1 %vm35_vm3, %v7566_v52  ;;  %v7575_v52 = vld [vmem:[#allocation2 + $0xf0] sm:$0xff] }
 0x7ba   :  { %20305 = vmatprep.mubr.msk.f32.mxu1 %vm35_vm3, %v7567_v26  ;;  %v7576_v26 = vld [vmem:[#allocation2 + $0xf8] sm:$0xff] }
 0x7bd   :  { %20306 = vmatmul.mubr.msk.f32.gmra.mrb[16].mxu1 %vm35_vm3, %v7568_v47  ;;  %v7577_v47 = vld [vmem:[#allocation2 + $0x108] sm:$0xff] }
 0x7be   :  { %20308 = vmatprep.mubr.msk.f32.mxu1 %vm35_vm3, %v7569_v46  ;;  %v7578_v46 = vld [vmem:[#allocation2 + $0x110] sm:$0xff] }
 0x7c1   :  { %20309 = vmatmul.mubr.msk.f32.gmra.mrb[18].mxu1 %vm35_vm3, %v7570_v24  ;;  %v7579_v24 = vld [vmem:[#allocation2 + $0x120] sm:$0xff] }
 0x7c2   :  { %20311 = vmatprep.mubr.msk.f32.mxu1 %vm35_vm3, %v7571_v37  ;;  %v7580_v37 = vld [vmem:[#allocation2 + $0x128] sm:$0xff] }
 0x7c5   :  { %20312 = vmatmul.mubr.msk.f32.gmra.mrb[20].mxu1 %vm35_vm3, %v7572_v38  ;;  %v7581_v38 = vld [vmem:[#allocation2 + $0x138] sm:$0xff] }
 0x7c6   :  { %20314 = vmatprep.mubr.msk.f32.mxu1 %vm35_vm3, %v7573_v23  ;;  %v7582_v23 = vld [vmem:[#allocation2 + $0x140] sm:$0xff] }
 0x7c9   :  { %20315 = vmatmul.mubr.msk.f32.gmra.mrb[22].mxu1 %vm35_vm3, %v7574_v48  ;;  %v7583_v48 = vld [vmem:[#allocation2 + $0x150] sm:$0xff] }
 0x7ca   :  { %20317 = vmatprep.mubr.msk.f32.mxu1 %vm35_vm3, %v7575_v52  ;;  %v7584_v52 = vld [vmem:[#allocation2 + $0x158] sm:$0xff] }
 0x7cd   :  { %20318 = vmatmul.mubr.msk.f32.gmra.mrb[24].mxu1 %vm35_vm3, %v7576_v26  ;;  %v7585_v26 = vld [vmem:[#allocation2 + $0x168] sm:$0xff] }
 0x7ce   :  { %20320 = vmatprep.mubr.msk.f32.mxu1 %vm35_vm3, %v7577_v47  ;;  %v7586_v47 = vld [vmem:[#allocation2 + $0x170] sm:$0xff] }
 0x7d1   :  { %20321 = vmatmul.mubr.msk.f32.gmra.mrb[26].mxu1 %vm35_vm3, %v7578_v46  ;;  %v7589_v46 = vld [vmem:[#allocation2 + $0x198] sm:$0xff] }
 0x7d2   :  { %20323 = vmatprep.mubr.msk.f32.mxu1 %vm35_vm3, %v7579_v24  ;;  %v7590_v24 = vld [vmem:[#allocation2 + $0x1a0] sm:$0xff] }
 0x7d5   :  { %20324 = vmatmul.mubr.msk.f32.gmra.mrb[28].mxu1 %vm35_vm3, %v7580_v37  ;;  %v7591_v37 = vld [vmem:[#allocation2 + $0x1e0] sm:$0xff] }
 0x7d6   :  { %20326 = vmatprep.mubr.msk.f32.mxu1 %vm35_vm3, %v7581_v38  ;;  %v7592_v38 = vld [vmem:[#allocation2 + $0x1e8] sm:$0xff] }
 0x7d9   :  { %20327 = vmatmul.mubr.msk.f32.gmra.mrb[30].mxu1 %vm35_vm3, %v7582_v23  ;;  %v7593_v23 = vld [vmem:[#allocation2 + $0x1f8] sm:$0xff] }
 0x7da   :  { %20329 = vmatprep.mubr.msk.f32.mxu1 %vm35_vm3, %v7583_v48  ;;  %v7594_v48 = vld [vmem:[#allocation2 + $0x200] sm:$0xff] }
 0x7dd   :  { %20330 = vmatmul.mubr.msk.f32.gmra.mrb[32].mxu1 %vm35_vm3, %v7584_v52  ;;  %v7597_v52 = vld [vmem:[#allocation2 + $0x228] sm:$0xff] }
 0x7de   :  { %20332 = vmatprep.mubr.msk.f32.mxu1 %vm35_vm3, %v7585_v26  ;;  %v7598_v26 = vld [vmem:[#allocation2 + $0x230] sm:$0xff] }
 0x7e1   :  { %20333 = vmatmul.mubr.msk.f32.gmra.mrb[34].mxu1 %vm35_vm3, %v7586_v47  ;;  %v7599_v47 = vld [vmem:[#allocation2 + $0x240] sm:$0xff] }
 0x7e2   :  { %20335 = vmatprep.mubr.msk.f32.mxu1 %vm35_vm3, %v24763_v61  ;;  %v7595_v61 = vld [vmem:[#allocation2 + $0x210] sm:$0xff] }
 0x7e5   :  { %20336 = vmatmul.mubr.msk.f32.gmra.mrb[36].mxu1 %vm35_vm3, %v24769_v12  ;;  %v7596_v12 = vld [vmem:[#allocation2 + $0x218] sm:$0xff] }
 0x7e6   :  { %20338 = vmatprep.mubr.msk.f32.mxu1 %vm35_vm3, %v7589_v46  ;;  %v7600_v46 = vld [vmem:[#allocation2 + $0x248] sm:$0xff] }
 0x7e9   :  { %20339 = vmatmul.mubr.msk.f32.gmra.mrb[38].mxu1 %vm35_vm3, %v7590_v24  ;;  %v7601_v24 = vld [vmem:[#allocation2 + $0x258] sm:$0xff] }
 0x7ea   :  { %20341 = vmatprep.mubr.msk.f32.mxu1 %vm35_vm3, %v7591_v37  ;;  %v7602_v37 = vld [vmem:[#allocation2 + $0x260] sm:$0xff] }
 0x7ed   :  { %20342 = vmatmul.mubr.msk.f32.gmra.mrb[40].mxu1 %vm35_vm3, %v7592_v38  ;;  %v7603_v38 = vld [vmem:[#allocation2 + $0x270] sm:$0xff] }
 0x7ee   :  { %20344 = vmatprep.mubr.msk.f32.mxu1 %vm35_vm3, %v7593_v23  ;;  %v7604_v23 = vld [vmem:[#allocation2 + $0x278] sm:$0xff] }
 0x7f1   :  { %20345 = vmatmul.mubr.msk.f32.gmra.mrb[42].mxu1 %vm35_vm3, %v7594_v48  ;;  %v7605_v48 = vld [vmem:[#allocation2 + $0x288] sm:$0xff] }
 0x7f2   :  { %20347 = vmatprep.mubr.msk.f32.mxu1 %vm35_vm3, %v7595_v61  ;;  %v7606_v61 = vld [vmem:[#allocation2 + $0x290] sm:$0xff] }
 0x7f5   :  { %20348 = vmatmul.mubr.msk.f32.gmra.mrb[44].mxu1 %vm35_vm3, %v7596_v12  ;;  %v7607_v12 = vld [vmem:[#allocation2 + $0x2a0] sm:$0xff] }
 0x7f6   :  { %20350 = vmatprep.mubr.msk.f32.mxu1 %vm35_vm3, %v7597_v52  ;;  %v7608_v52 = vld [vmem:[#allocation2 + $0x2a8] sm:$0xff] }
 0x7f9   :  { %20351 = vmatmul.mubr.msk.f32.gmra.mrb[46].mxu1 %vm35_vm3, %v7598_v26  ;;  %v7609_v26 = vld [vmem:[#allocation2 + $0x2b8] sm:$0xff] }
 0x7fa   :  { %20353 = vmatprep.mubr.msk.f32.mxu1 %vm35_vm3, %v7599_v47  ;;  %v7610_v47 = vld [vmem:[#allocation2 + $0x2c0] sm:$0xff] }
 0x7fd   :  { %20354 = vmatmul.mubr.msk.f32.gmra.mrb[48].mxu1 %vm35_vm3, %v7600_v46  ;;  %v7611_v46 = vld [vmem:[#allocation2 + $0x2d0] sm:$0xff] }
 0x7fe   :  { %20356 = vmatprep.mubr.msk.f32.mxu1 %vm35_vm3, %v7601_v24  ;;  %v7612_v24 = vld [vmem:[#allocation2 + $0x2d8] sm:$0xff] }
 0x801   :  { %20357 = vmatmul.mubr.msk.f32.gmra.mrb[50].mxu1 %vm35_vm3, %v7602_v37  ;;  %v7613_v37 = vld [vmem:[#allocation2 + $0x2e8] sm:$0xff] }
 0x802   :  { %20359 = vmatprep.mubr.msk.f32.mxu1 %vm35_vm3, %v7603_v38  ;;  %v7614_v38 = vld [vmem:[#allocation2 + $0x2f0] sm:$0xff] }
 0x805   :  { %20360 = vmatmul.mubr.msk.f32.gmra.mrb[52].mxu1 %vm35_vm3, %v7604_v23  ;;  %v7615_v23 = vld [vmem:[#allocation2 + $0x300] sm:$0xff] }
 0x806   :  { %20362 = vmatprep.mubr.msk.f32.mxu1 %vm35_vm3, %v7605_v48  ;;  %v7616_v48 = vld [vmem:[#allocation2 + $0x308] sm:$0xff] }
 0x809   :  { %20363 = vmatmul.mubr.msk.f32.gmra.mrb[54].mxu1 %vm35_vm3, %v7606_v61  ;;  %v7617_v61 = vld [vmem:[#allocation2 + $0x318] sm:$0xff] }
 0x80a   :  { %20365 = vmatprep.mubr.msk.f32.mxu1 %vm35_vm3, %v7607_v12  ;;  %v7618_v12 = vld [vmem:[#allocation2 + $0x320] sm:$0xff] }
 0x80d   :  { %20366 = vmatmul.mubr.msk.f32.gmra.mrb[56].mxu1 %vm35_vm3, %v7608_v52  ;;  %v7621_v52 = vld [vmem:[#allocation2 + $0x348] sm:$0xff] }
 0x80e   :  { %20368 = vmatprep.mubr.msk.f32.mxu1 %vm35_vm3, %v7609_v26  ;;  %v7622_v26 = vld [vmem:[#allocation2 + $0x350] sm:$0xff] }
 0x811   :  { %20369 = vmatmul.mubr.msk.f32.gmra.mrb[58].mxu1 %vm35_vm3, %v7610_v47  ;;  %v9008_v47 = vld [vmem:[#allocation2 + $0x1ea] sm:$0xff] }
 0x812   :  { %20371 = vmatprep.mubr.msk.f32.mxu1 %vm35_vm3, %v7611_v46  ;;  %v9009_v46 = vld [vmem:[#allocation2 + $0x1fa] sm:$0xff] }
 0x815   :  { %20372 = vmatmul.mubr.msk.f32.gmra.mrb[60].mxu1 %vm35_vm3, %v7612_v24  ;;  %v9010_v24 = vld [vmem:[#allocation2 + $0x202] sm:$0xff] }
 0x816   :  { %20374 = vmatprep.mubr.msk.f32.mxu1 %vm35_vm3, %v7613_v37  ;;  %v9013_v37 = vld [vmem:[#allocation2 + $0x22a] sm:$0xff] }
 0x819   :  { %20375 = vmatmul.mubr.msk.f32.gmra.mrb[62].mxu1 %vm35_vm3, %v7614_v38  ;;  %v9014_v38 = vld [vmem:[#allocation2 + $0x232] sm:$0xff] }
 0x81a   :  { %20377 = vmatprep.mubr.msk.f32.mxu1 %vm35_vm3, %v7615_v23  ;;  %v9015_v23 = vld [vmem:[#allocation2 + $0x242] sm:$0xff] }
 0x81d   :  { %20378 = vmatmul.mubr.msk.f32.gmra.mrb[64].mxu1 %vm35_vm3, %v7616_v48  ;;  %v9016_v48 = vld [vmem:[#allocation2 + $0x24a] sm:$0xff] }
 0x81e   :  { %20380 = vmatprep.mubr.msk.f32.mxu1 %vm35_vm3, %v7617_v61  ;;  %v9017_v61 = vld [vmem:[#allocation2 + $0x25a] sm:$0xff] }
 0x821   :  { %20381 = vmatmul.mubr.msk.f32.gmra.mrb[66].mxu1 %vm35_vm3, %v7618_v12  ;;  %v9018_v12 = vld [vmem:[#allocation2 + $0x262] sm:$0xff] }
 0x822   :  { %20383 = vmatprep.mubr.msk.f32.mxu1 %vm35_vm3, %v24831_v54  ;;  %v8297_v54 = vld [vmem:[#allocation2 + $0x199] sm:$0xff] }
 0x825   :  { %20384 = vmatmul.mubr.msk.f32.gmra.mrb[68].mxu1 %vm35_vm3, %v24837_v16  ;;  %v8298_v16 = vld [vmem:[#allocation2 + $0x1a1] sm:$0xff] }
 0x826   :  { %20386 = vmatprep.mubr.msk.f32.mxu1 %vm35_vm3, %v7621_v52  ;;  %v9019_v52 = vld [vmem:[#allocation2 + $0x272] sm:$0xff] }
 0x829   :  { %20387 = vmatmul.mubr.msk.f32.gmra.mrb[70].mxu1 %vm35_vm3, %v7622_v26  ;;  %v9020_v26 = vld [vmem:[#allocation2 + $0x27a] sm:$0xff] }
 0x82a   :  { %20393 = vmatprep.mubr.msk.f32.mxu1 %vm35_vm3, %v24842_v31  ;;  %v30333_v31 = vld [vmem:[#allocation5_spill] sm:$0xff] }
 0x82d   :  { %20394 = vmatmul.mubr.msk.f32.vlgmr.msra.gmra.mrb[8].mxu1 %vm35_vm3, %v24854_v13  ;;  %v30334_v13 = vld [vmem:[#allocation7_spill] sm:$0xff] }
 0x82e   :  { %20396 = vmatprep.mubr.msk.f32.mxu1 %vm35_vm3, %v24858_v32  ;;  %21506 = vmatpush3.bf16.msra.mxu1 %v25251_v58  ;;  %v30335_v32 = vld [vmem:[#allocation6_spill] sm:$0xff]  ;;  %v9007_v58 = vld [vmem:[#allocation2 + $0x1e2] sm:$0xff] }
 0x831   :  { %20397 = vmatmul.mubr.msk.f32.gmra.mrb[10].mxu1 %vm35_vm3, %v24865_v63  ;;  %v30336_v63 = vld [vmem:[#allocation8_spill] sm:$0xff] }
 0x832   :  { %20399 = vmatprep.mubr.msk.f32.mxu1 %vm35_vm3, %v24867_v17  ;;  %v30337_v17 = vld [vmem:[#allocation9_spill] sm:$0xff] }
 0x835   :  { %20400 = vmatmul.mubr.msk.f32.gmra.mrb[12].mxu1 %vm35_vm3, %v24873_v36  ;;  %v30338_v36 = vld [vmem:[#allocation65_spill] sm:$0xff] }
 0x836   :  { %20402 = vmatprep.mubr.msk.f32.mxu1 %vm35_vm3, %v24875_v35  ;;  %v30339_v35 = vld [vmem:[#allocation66_spill] sm:$0xff] }
 0x839   :  { %20403 = vmatmul.mubr.msk.f32.gmra.mrb[14].mxu1 %vm35_vm3, %v24881_v1  ;;  %v30340_v1 = vld [vmem:[#allocation67_spill] sm:$0xff] }
 0x83a   :  { %20405 = vmatprep.mubr.msk.f32.mxu1 %vm35_vm3, %v24883_v55  ;;  %v30341_v55 = vld [vmem:[#allocation68_spill] sm:$0xff] }
 0x83d   :  { %20406 = vmatmul.mubr.msk.f32.gmra.mrb[16].mxu1 %vm35_vm3, %v24889_v27  ;;  %v30342_v27 = vld [vmem:[#allocation69_spill] sm:$0xff] }
 0x83e   :  { %20408 = vmatprep.mubr.msk.f32.mxu1 %vm35_vm3, %v24891_v20  ;;  %v30343_v20 = vld [vmem:[#allocation70_spill] sm:$0xff] }
 0x841   :  { %20409 = vmatmul.mubr.msk.f32.gmra.mrb[18].mxu1 %vm35_vm3, %v24897_v21  ;;  %v30344_v21 = vld [vmem:[#allocation71_spill] sm:$0xff] }
 0x842   :  { %20411 = vmatprep.mubr.msk.f32.mxu1 %vm35_vm3, %v24899_v18  ;;  %v30345_v18 = vld [vmem:[#allocation72_spill] sm:$0xff] }
 0x845   :  { %20412 = vmatmul.mubr.msk.f32.gmra.mrb[20].mxu1 %vm35_vm3, %v24905_v45  ;;  %v8329_v45 = vld [vmem:[#allocation2 + $0x349] sm:$0xff] }
 0x846   :  { %20414 = vmatprep.mubr.msk.f32.mxu1 %vm35_vm3, %v24907_v57  ;;  %v30346_v57 = vld [vmem:[#allocation73_spill] sm:$0xff] }
 0x849   :  { %20415 = vmatmul.mubr.msk.f32.gmra.mrb[22].mxu1 %vm35_vm3, %v24913_v44  ;;  %v8330_v44 = vld [vmem:[#allocation2 + $0x351] sm:$0xff] }
 0x84a   :  { %20417 = vmatprep.mubr.msk.f32.mxu1 %vm35_vm3, %v24915_v62  ;;  %v8975_v62 = vld [vmem:[#allocation2 + $0x32] sm:$0xff] }
 0x84d   :  { %20418 = vmatmul.mubr.msk.f32.gmra.mrb[24].mxu1 %vm35_vm3, %v24921_v42  ;;  %v8976_v42 = vld [vmem:[#allocation2 + $0x3a] sm:$0xff] }
 0x84e   :  { %20420 = vmatprep.mubr.msk.f32.mxu1 %vm35_vm3, %v24923_v41  ;;  %v8977_v41 = vld [vmem:[#allocation2 + $0x4a] sm:$0xff] }
 0x851   :  { %20421 = vmatmul.mubr.msk.f32.gmra.mrb[26].mxu1 %vm35_vm3, %v24929_v6  ;;  %v8978_v6 = vld [vmem:[#allocation2 + $0x52] sm:$0xff] }
 0x852   :  { %20423 = vmatprep.mubr.msk.f32.mxu1 %vm35_vm3, %v24931_v30  ;;  %v8979_v30 = vld [vmem:[#allocation2 + $0x62] sm:$0xff] }
 0x855   :  { %20424 = vmatmul.mubr.msk.f32.gmra.mrb[28].mxu1 %vm35_vm3, %v24937_v60  ;;  %v8980_v60 = vld [vmem:[#allocation2 + $0x6a] sm:$0xff] }
 0x856   :  { %20426 = vmatprep.mubr.msk.f32.mxu1 %vm35_vm3, %v24939_v2  ;;  %v8981_v2 = vld [vmem:[#allocation2 + $0x7a] sm:$0xff] }
 0x859   :  { %20427 = vmatmul.mubr.msk.f32.gmra.mrb[30].mxu1 %vm35_vm3, %v24945_v43  ;;  %v8982_v43 = vld [vmem:[#allocation2 + $0x82] sm:$0xff] }
 0x85a   :  { %20429 = vmatprep.mubr.msk.f32.mxu1 %vm35_vm3, %v24947_v34  ;;  %v8983_v34 = vld [vmem:[#allocation2 + $0x92] sm:$0xff] }
 0x85d   :  { %20430 = vmatmul.mubr.msk.f32.gmra.mrb[32].mxu1 %vm35_vm3, %v24953_v14  ;;  %v8984_v14 = vld [vmem:[#allocation2 + $0x9a] sm:$0xff] }
 0x85e   :  { %20432 = vmatprep.mubr.msk.f32.mxu1 %vm35_vm3, %v24955_v8  ;;  %v8985_v8 = vld [vmem:[#allocation2 + $0xaa] sm:$0xff] }
 0x861   :  { %20433 = vmatmul.mubr.msk.f32.gmra.mrb[34].mxu1 %vm35_vm3, %v24961_v7  ;;  %v8986_v7 = vld [vmem:[#allocation2 + $0xb2] sm:$0xff] }
 0x862   :  { %20435 = vmatprep.mubr.msk.f32.mxu1 %vm35_vm3, %v24963_v29  ;;  %v8987_v29 = vld [vmem:[#allocation2 + $0xc2] sm:$0xff] }
 0x865   :  { %20436 = vmatmul.mubr.msk.f32.gmra.mrb[36].mxu1 %vm35_vm3, %v24969_v22  ;;  %v8988_v22 = vld [vmem:[#allocation2 + $0xca] sm:$0xff] }
 0x866   :  { %20438 = vmatprep.mubr.msk.f32.mxu1 %vm35_vm3, %v8297_v54  ;;  %v9021_v54 = vld [vmem:[#allocation2 + $0x28a] sm:$0xff] }
 0x869   :  { %20439 = vmatmul.mubr.msk.f32.gmra.mrb[38].mxu1 %vm35_vm3, %v8298_v16  ;;  %v9022_v16 = vld [vmem:[#allocation2 + $0x292] sm:$0xff] }
 0x86a   :  { %20441 = vmatprep.mubr.msk.f32.mxu1 %vm35_vm3, %v24974_v51  ;;  %v8989_v51 = vld [vmem:[#allocation2 + $0xda] sm:$0xff] }
 0x86d   :  { %20442 = vmatmul.mubr.msk.f32.gmra.mrb[40].mxu1 %vm35_vm3, %v24979_v4  ;;  %v8990_v4 = vld [vmem:[#allocation2 + $0xe2] sm:$0xff] }
 0x86e   :  { %20444 = vmatprep.mubr.msk.f32.mxu1 %vm35_vm3, %v24981_v9  ;;  %v8991_v9 = vld [vmem:[#allocation2 + $0xf2] sm:$0xff] }
 0x871   :  { %20445 = vmatmul.mubr.msk.f32.gmra.mrb[42].mxu1 %vm35_vm3, %v24987_v28  ;;  %v8992_v28 = vld [vmem:[#allocation2 + $0xfa] sm:$0xff] }
 0x872   :  { %20447 = vmatprep.mubr.msk.f32.mxu1 %vm35_vm3, %v24989_v49  ;;  %v8993_v49 = vld [vmem:[#allocation2 + $0x10a] sm:$0xff] }
 0x875   :  { %20448 = vmatmul.mubr.msk.f32.gmra.mrb[44].mxu1 %vm35_vm3, %v24995_v59  ;;  %v8994_v59 = vld [vmem:[#allocation2 + $0x112] sm:$0xff] }
 0x876   :  { %20450 = vmatprep.mubr.msk.f32.mxu1 %vm35_vm3, %v24997_v50  ;;  %v8995_v50 = vld [vmem:[#allocation2 + $0x122] sm:$0xff] }
 0x879   :  { %20451 = vmatmul.mubr.msk.f32.gmra.mrb[46].mxu1 %vm35_vm3, %v25003_v40  ;;  %v8996_v40 = vld [vmem:[#allocation2 + $0x12a] sm:$0xff] }
 0x87a   :  { %20453 = vmatprep.mubr.msk.f32.mxu1 %vm35_vm3, %v25005_v53  ;;  %v8997_v53 = vld [vmem:[#allocation2 + $0x13a] sm:$0xff] }
 0x87d   :  { %20454 = vmatmul.mubr.msk.f32.gmra.mrb[48].mxu1 %vm35_vm3, %v25011_v3  ;;  %v8998_v3 = vld [vmem:[#allocation2 + $0x142] sm:$0xff] }
 0x87e   :  { %20456 = vmatprep.mubr.msk.f32.mxu1 %vm35_vm3, %v25013_v19  ;;  %v8999_v19 = vld [vmem:[#allocation2 + $0x152] sm:$0xff] }
 0x881   :  { %20457 = vmatmul.mubr.msk.f32.gmra.mrb[50].mxu1 %vm35_vm3, %v25019_v0  ;;  %v9000_v0 = vld [vmem:[#allocation2 + $0x15a] sm:$0xff] }
 0x882   :  { %20459 = vmatprep.mubr.msk.f32.mxu1 %vm35_vm3, %v25021_v15  ;;  %v9001_v15 = vld [vmem:[#allocation2 + $0x16a] sm:$0xff] }
 0x885   :  { %20460 = vmatmul.mubr.msk.f32.gmra.mrb[52].mxu1 %vm35_vm3, %v25027_v25  ;;  %v9002_v25 = vld [vmem:[#allocation2 + $0x172] sm:$0xff] }
 0x886   :  { %20462 = vmatprep.mubr.msk.f32.mxu1 %vm35_vm3, %v25029_v11  ;;  %v9005_v11 = vld [vmem:[#allocation2 + $0x19a] sm:$0xff] }
 0x889   :  { %20463 = vmatmul.mubr.msk.f32.gmra.mrb[54].mxu1 %vm35_vm3, %v25035_v5  ;;  %v9006_v5 = vld [vmem:[#allocation2 + $0x1a2] sm:$0xff] }
 0x88a   :  { %20465 = vmatprep.mubr.msk.f32.mxu1 %vm35_vm3, %v30333_v31  ;;  %v9023_v31 = vld [vmem:[#allocation2 + $0x2a2] sm:$0xff] }
 0x88d   :  { %20466 = vmatmul.mubr.msk.f32.gmra.mrb[56].mxu1 %vm35_vm3, %v30334_v13  ;;  %v9024_v13 = vld [vmem:[#allocation2 + $0x2aa] sm:$0xff] }
 0x88e   :  { %20468 = vmatprep.mubr.msk.f32.mxu1 %vm35_vm3, %v30335_v32  ;;  %v9025_v32 = vld [vmem:[#allocation2 + $0x2ba] sm:$0xff] }
 0x891   :  { %20469 = vmatmul.mubr.msk.f32.gmra.mrb[58].mxu1 %vm35_vm3, %v30336_v63  ;;  %v9026_v63 = vld [vmem:[#allocation2 + $0x2c2] sm:$0xff] }
 0x892   :  { %20471 = vmatprep.mubr.msk.f32.mxu1 %vm35_vm3, %v30337_v17  ;;  %v9027_v17 = vld [vmem:[#allocation2 + $0x2d2] sm:$0xff] }
 0x895   :  { %20472 = vmatmul.mubr.msk.f32.gmra.mrb[60].mxu1 %vm35_vm3, %v30338_v36  ;;  %v9028_v36 = vld [vmem:[#allocation2 + $0x2da] sm:$0xff] }
 0x896   :  { %20474 = vmatprep.mubr.msk.f32.mxu1 %vm35_vm3, %v30339_v35  ;;  %v9029_v35 = vld [vmem:[#allocation2 + $0x2ea] sm:$0xff] }
 0x899   :  { %20475 = vmatmul.mubr.msk.f32.gmra.mrb[62].mxu1 %vm35_vm3, %v30340_v1  ;;  %v9030_v1 = vld [vmem:[#allocation2 + $0x2f2] sm:$0xff] }
 0x89a   :  { %20477 = vmatprep.mubr.msk.f32.mxu1 %vm35_vm3, %v30341_v55  ;;  %v9031_v55 = vld [vmem:[#allocation2 + $0x302] sm:$0xff] }
 0x89d   :  { %20478 = vmatmul.mubr.msk.f32.gmra.mrb[64].mxu1 %vm35_vm3, %v30342_v27  ;;  %v9032_v27 = vld [vmem:[#allocation2 + $0x30a] sm:$0xff] }
 0x89e   :  { %20480 = vmatprep.mubr.msk.f32.mxu1 %vm35_vm3, %v30343_v20  ;;  %v9033_v20 = vld [vmem:[#allocation2 + $0x31a] sm:$0xff] }
 0x8a1   :  { %20481 = vmatmul.mubr.msk.f32.gmra.mrb[66].mxu1 %vm35_vm3, %v30344_v21  ;;  %v9034_v21 = vld [vmem:[#allocation2 + $0x322] sm:$0xff] }
 0x8a2   :  { %20483 = vmatprep.mubr.msk.f32.mxu1 %vm35_vm3, %v30345_v18  ;;  %v9037_v18 = vld [vmem:[#allocation2 + $0x34a] sm:$0xff] }
 0x8a5   :  { %20484 = vmatmul.mubr.msk.f32.gmra.mrb[68].mxu1 %vm35_vm3, %v30346_v57 }
 0x8a6   :  { %20486 = vmatprep.mubr.msk.f32.mxu1 %vm35_vm3, %v8329_v45  ;;  %v9038_v45 = vld [vmem:[#allocation2 + $0x352] sm:$0xff] }
 0x8a9   :  { %20487 = vmatmul.mubr.msk.f32.gmra.mrb[70].mxu1 %vm35_vm3, %v8330_v44 }
 0x8aa   :  { %20493 = vmatprep.mubr.msk.f32.mxu1 %vm35_vm3, %v8975_v62 }
 0x8ad   :  { %20494 = vmatmul.mubr.msk.f32.vlgmr.msra.gmra.mrb[8].mxu1 %vm35_vm3, %v8976_v42 }
 0x8ae   :  { %20496 = vmatprep.mubr.msk.f32.mxu1 %vm35_vm3, %v8977_v41 }
 0x8b1   :  { %20497 = vmatmul.mubr.msk.f32.gmra.mrb[10].mxu1 %vm35_vm3, %v8978_v6 }
 0x8b2   :  { %20499 = vmatprep.mubr.msk.f32.mxu1 %vm35_vm3, %v8979_v30 }
 0x8b5   :  { %20500 = vmatmul.mubr.msk.f32.gmra.mrb[12].mxu1 %vm35_vm3, %v8980_v60 }
 0x8b6   :  { %20502 = vmatprep.mubr.msk.f32.mxu1 %vm35_vm3, %v8981_v2 }
 0x8b9   :  { %20503 = vmatmul.mubr.msk.f32.gmra.mrb[14].mxu1 %vm35_vm3, %v8982_v43 }
 0x8ba   :  { %20505 = vmatprep.mubr.msk.f32.mxu1 %vm35_vm3, %v8983_v34 }
 0x8bd   :  { %20506 = vmatmul.mubr.msk.f32.gmra.mrb[16].mxu1 %vm35_vm3, %v8984_v14 }
 0x8be   :  { %20508 = vmatprep.mubr.msk.f32.mxu1 %vm35_vm3, %v8985_v8 }
 0x8c1   :  { %20509 = vmatmul.mubr.msk.f32.gmra.mrb[18].mxu1 %vm35_vm3, %v8986_v7 }
 0x8c2   :  { %20511 = vmatprep.mubr.msk.f32.mxu1 %vm35_vm3, %v8987_v29 }
 0x8c5   :  { %20512 = vmatmul.mubr.msk.f32.gmra.mrb[20].mxu1 %vm35_vm3, %v8988_v22 }
 0x8c6   :  { %20514 = vmatprep.mubr.msk.f32.mxu1 %vm35_vm3, %v8989_v51 }
 0x8c9   :  { %20515 = vmatmul.mubr.msk.f32.gmra.mrb[22].mxu1 %vm35_vm3, %v8990_v4 }
 0x8ca   :  { %20517 = vmatprep.mubr.msk.f32.mxu1 %vm35_vm3, %v8991_v9 }
 0x8cd   :  { %20518 = vmatmul.mubr.msk.f32.gmra.mrb[24].mxu1 %vm35_vm3, %v8992_v28 }
 0x8ce   :  { %20520 = vmatprep.mubr.msk.f32.mxu1 %vm35_vm3, %v8993_v49 }
 0x8d1   :  { %20521 = vmatmul.mubr.msk.f32.gmra.mrb[26].mxu1 %vm35_vm3, %v8994_v59 }
 0x8d2   :  { %20523 = vmatprep.mubr.msk.f32.mxu1 %vm35_vm3, %v8995_v50 }
 0x8d5   :  { %20524 = vmatmul.mubr.msk.f32.gmra.mrb[28].mxu1 %vm35_vm3, %v8996_v40 }
 0x8d6   :  { %20526 = vmatprep.mubr.msk.f32.mxu1 %vm35_vm3, %v8997_v53 }
 0x8d9   :  { %20527 = vmatmul.mubr.msk.f32.gmra.mrb[30].mxu1 %vm35_vm3, %v8998_v3 }
 0x8da   :  { %20529 = vmatprep.mubr.msk.f32.mxu1 %vm35_vm3, %v8999_v19 }
 0x8dd   :  { %20530 = vmatmul.mubr.msk.f32.gmra.mrb[32].mxu1 %vm35_vm3, %v9000_v0 }
 0x8de   :  { %20532 = vmatprep.mubr.msk.f32.mxu1 %vm35_vm3, %v9001_v15 }
 0x8e1   :  { %20533 = vmatmul.mubr.msk.f32.gmra.mrb[34].mxu1 %vm35_vm3, %v9002_v25 }
 0x8e2   :  { %20535 = vmatprep.mubr.msk.f32.mxu1 %vm35_vm3, %v25163_v56  ;;  %v9011_v56 = vld [vmem:[#allocation2 + $0x212] sm:$0xff] }
 0x8e5   :  { %20536 = vmatmul.mubr.msk.f32.gmra.mrb[36].mxu1 %vm35_vm3, %v25169_v33  ;;  %v9012_v33 = vld [vmem:[#allocation2 + $0x21a] sm:$0xff] }
 0x8e6   :  { %20538 = vmatprep.mubr.msk.f32.mxu1 %vm35_vm3, %v9005_v11 }
 0x8e9   :  { %20539 = vmatmul.mubr.msk.f32.gmra.mrb[38].mxu1 %vm35_vm3, %v9006_v5 }
 0x8ea   :  { %20541 = vmatprep.mubr.msk.f32.mxu1 %vm35_vm3, %v9007_v58 }
 0x8ed   :  { %20542 = vmatmul.mubr.msk.f32.gmra.mrb[40].mxu1 %vm35_vm3, %v9008_v47 }
 0x8ee   :  { %20544 = vmatprep.mubr.msk.f32.mxu1 %vm35_vm3, %v9009_v46 }
 0x8f1   :  { %20545 = vmatmul.mubr.msk.f32.gmra.mrb[42].mxu1 %vm35_vm3, %v9010_v24 }
 0x8f2   :  { %20547 = vmatprep.mubr.msk.f32.mxu1 %vm35_vm3, %v9011_v56 }
 0x8f5   :  { %20548 = vmatmul.mubr.msk.f32.gmra.mrb[44].mxu1 %vm35_vm3, %v9012_v33 }
 0x8f6   :  { %20550 = vmatprep.mubr.msk.f32.mxu1 %vm35_vm3, %v9013_v37 }
 0x8f9   :  { %20551 = vmatmul.mubr.msk.f32.gmra.mrb[46].mxu1 %vm35_vm3, %v9014_v38 }
 0x8fa   :  { %20553 = vmatprep.mubr.msk.f32.mxu1 %vm35_vm3, %v9015_v23 }
 0x8fd   :  { %20554 = vmatmul.mubr.msk.f32.gmra.mrb[48].mxu1 %vm35_vm3, %v9016_v48 }
 0x8fe   :  { %20556 = vmatprep.mubr.msk.f32.mxu1 %vm35_vm3, %v9017_v61 }
 0x901   :  { %20557 = vmatmul.mubr.msk.f32.gmra.mrb[50].mxu1 %vm35_vm3, %v9018_v12 }
 0x902   :  { %20559 = vmatprep.mubr.msk.f32.mxu1 %vm35_vm3, %v9019_v52 }
 0x905   :  { %20560 = vmatmul.mubr.msk.f32.gmra.mrb[52].mxu1 %vm35_vm3, %v9020_v26 }
 0x906   :  { %20562 = vmatprep.mubr.msk.f32.mxu1 %vm35_vm3, %v9021_v54 }
 0x909   :  { %20563 = vmatmul.mubr.msk.f32.gmra.mrb[54].mxu1 %vm35_vm3, %v9022_v16 }
 0x90a   :  { %20565 = vmatprep.mubr.msk.f32.mxu1 %vm35_vm3, %v9023_v31 }
 0x90d   :  { %20566 = vmatmul.mubr.msk.f32.gmra.mrb[56].mxu1 %vm35_vm3, %v9024_v13 }
 0x90e   :  { %20568 = vmatprep.mubr.msk.f32.mxu1 %vm35_vm3, %v9025_v32 }
 0x911   :  { %20569 = vmatmul.mubr.msk.f32.gmra.mrb[58].mxu1 %vm35_vm3, %v9026_v63 }
 0x912   :  { %20571 = vmatprep.mubr.msk.f32.mxu1 %vm35_vm3, %v9027_v17 }
 0x915   :  { %20572 = vmatmul.mubr.msk.f32.gmra.mrb[60].mxu1 %vm35_vm3, %v9028_v36 }
 0x916   :  { %20574 = vmatprep.mubr.msk.f32.mxu1 %vm35_vm3, %v9029_v35 }
 0x919   :  { %20575 = vmatmul.mubr.msk.f32.gmra.mrb[62].mxu1 %vm35_vm3, %v9030_v1 }
 0x91a   :  { %20577 = vmatprep.mubr.msk.f32.mxu1 %vm35_vm3, %v9031_v55 }
 0x91d   :  { %20578 = vmatmul.mubr.msk.f32.gmra.mrb[64].mxu1 %vm35_vm3, %v9032_v27 }
 0x91e   :  { %20580 = vmatprep.mubr.msk.f32.mxu1 %vm35_vm3, %v9033_v20 }
 0x921   :  { %20581 = vmatmul.mubr.msk.f32.gmra.mrb[66].mxu1 %vm35_vm3, %v9034_v21 }
 0x922   :  { %20583 = vmatprep.mubr.msk.f32.mxu1 %vm35_vm3, %v25231_v10 }
 0x925   :  { %20584 = vmatmul.mubr.msk.f32.gmra.mrb[68].mxu1 %vm35_vm3, %v25237_v39 }
 0x926   :  { %20586 = vmatprep.mubr.msk.f32.mxu1 %vm35_vm3, %v9037_v18 }
 0x929   :  { %20587 = vmatmul.mubr.msk.f32.gmra.mrb[70].mxu1 %vm35_vm3, %v9038_v45  ;;  %vm119_vm3 = vcmask 58368  }
 0x980   :  { %v25512_v57 = vpop.f32.mrb[8].mxu1 }
 0x981   :  { %v9684_v44 = vsel %vm116_vm2, %v25512_v57, 0.0  ;;  %v25516_v62 = vpop.f32.mrb[9].mxu1 }
 0x982   :  { %v9683_v42 = vsel %vm116_vm2, %v25516_v62, 0.0 }
 0x983   :  { %v9685_v10 = vadd.f32 %v9684_v44, %v9683_v42 }
 0x984   :  { %v25520_v41 = vpop.f32.mrb[10].mxu1 }
 0x985   :  { %v25522_v6 = vpop.f32.mrb[11].mxu1  ;;  %v9688_v60 = vsel %vm116_vm2, %v25520_v41, 0.0 }
 0x986   :  { %v9686_v39 = vsel %vm116_vm2, %v25522_v6, 0.0 }
 0x987   :  { %v9687_v30 = vadd.f32 %v9686_v39, %v9685_v10 }
 0x988   :  { %v25528_v2 = vpop.f32.mrb[12].mxu1 }
 0x989   :  { %v9689_v43 = vadd.f32 %v9688_v60, %v9687_v30  ;;  %v25530_v34 = vpop.f32.mrb[13].mxu1  ;;  %v9692_v7 = vsel %vm116_vm2, %v25528_v2, 0.0 }
 0x98a   :  { %v9690_v14 = vsel %vm116_vm2, %v25530_v34, 0.0 }
 0x98b   :  { %v9691_v8 = vadd.f32 %v9690_v14, %v9689_v43 }
 0x98c   :  { %v25536_v29 = vpop.f32.mrb[14].mxu1 }
 0x98d   :  { %v25538_v22 = vpop.f32.mrb[15].mxu1  ;;  %v9693_v51 = vadd.f32 %v9692_v7, %v9691_v8  ;;  %v9696_v28 = vsel %vm116_vm2, %v25536_v29, 0.0 }
 0x98e   :  { %v9694_v4 = vsel %vm116_vm2, %v25538_v22, 0.0 }
 0x98f   :  { %v9695_v9 = vadd.f32 %v9694_v4, %v9693_v51 }
 0x990   :  { %v25544_v49 = vpop.f32.mrb[16].mxu1 }
 0x991   :  { %v25546_v59 = vpop.f32.mrb[17].mxu1  ;;  %v9697_v50 = vadd.f32 %v9696_v28, %v9695_v9  ;;  %v9700_v3 = vsel %vm116_vm2, %v25544_v49, 0.0 }
 0x992   :  { %v9698_v40 = vsel %vm116_vm2, %v25546_v59, 0.0 }
 0x993   :  { %v9699_v53 = vadd.f32 %v9698_v40, %v9697_v50 }
 0x994   :  { %v25552_v19 = vpop.f32.mrb[18].mxu1 }
 0x995   :  { %v25554_v0 = vpop.f32.mrb[19].mxu1  ;;  %v9701_v15 = vadd.f32 %v9700_v3, %v9699_v53  ;;  %v9704_v5 = vsel %vm116_vm2, %v25552_v19, 0.0 }
 0x996   :  { %v9702_v25 = vsel %vm116_vm2, %v25554_v0, 0.0 }
 0x997   :  { %v9703_v11 = vadd.f32 %v9702_v25, %v9701_v15 }
 0x998   :  { %v25560_v58 = vpop.f32.mrb[20].mxu1 }
 0x999   :  { %v25562_v47 = vpop.f32.mrb[21].mxu1  ;;  %v9705_v46 = vadd.f32 %v9704_v5, %v9703_v11  ;;  %v9708_v33 = vsel %vm116_vm2, %v25560_v58, 0.0 }
 0x99a   :  { %v9706_v24 = vsel %vm116_vm2, %v25562_v47, 0.0 }
 0x99b   :  { %v9707_v56 = vadd.f32 %v9706_v24, %v9705_v46 }
 0x99c   :  { %v25568_v37 = vpop.f32.mrb[22].mxu1 }
 0x99d   :  { %v25570_v38 = vpop.f32.mrb[23].mxu1  ;;  %v9709_v23 = vadd.f32 %v9708_v33, %v9707_v56  ;;  %v9712_v12 = vsel %vm116_vm2, %v25568_v37, 0.0 }
 0x99e   :  { %v9710_v48 = vsel %vm116_vm2, %v25570_v38, 0.0 }
 0x99f   :  { %v9711_v61 = vadd.f32 %v9710_v48, %v9709_v23 }
 0x9a0   :  { %v25576_v52 = vpop.f32.mrb[24].mxu1 }
 0x9a1   :  { %v25578_v26 = vpop.f32.mrb[25].mxu1  ;;  %v9713_v54 = vadd.f32 %v9712_v12, %v9711_v61  ;;  %v9716_v13 = vsel %vm116_vm2, %v25576_v52, 0.0 }
 0x9a2   :  { %v9714_v16 = vsel %vm116_vm2, %v25578_v26, 0.0 }
 0x9a3   :  { %v9715_v31 = vadd.f32 %v9714_v16, %v9713_v54 }
 0x9a4   :  { %v25584_v32 = vpop.f32.mrb[26].mxu1 }
 0x9a5   :  { %v25586_v63 = vpop.f32.mrb[27].mxu1  ;;  %v9717_v17 = vadd.f32 %v9716_v13, %v9715_v31  ;;  %v9720_v1 = vsel %vm116_vm2, %v25584_v32, 0.0 }
 0x9a6   :  { %v9718_v36 = vsel %vm116_vm2, %v25586_v63, 0.0 }
 0x9a7   :  { %v9719_v35 = vadd.f32 %v9718_v36, %v9717_v17 }
 0x9a8   :  { %v25592_v55 = vpop.f32.mrb[28].mxu1 }
 0x9a9   :  { %v25594_v27 = vpop.f32.mrb[29].mxu1  ;;  %v9721_v20 = vadd.f32 %v9720_v1, %v9719_v35  ;;  %v9724_v45 = vsel %vm116_vm2, %v25592_v55, 0.0 }
 0x9aa   :  { %v9722_v21 = vsel %vm116_vm2, %v25594_v27, 0.0 }
 0x9ab   :  { %v9723_v18 = vadd.f32 %v9722_v21, %v9721_v20 }
 0x9ac   :  { %v25600_v44 = vpop.f32.mrb[30].mxu1 }
 0x9ad   :  { %v25602_v42 = vpop.f32.mrb[31].mxu1  ;;  %v9725_v10 = vadd.f32 %v9724_v45, %v9723_v18  ;;  %v9728_v60 = vsel %vm116_vm2, %v25600_v44, 0.0 }
 0x9ae   :  { %v9726_v39 = vsel %vm116_vm2, %v25602_v42, 0.0 }
 0x9af   :  { %v9727_v30 = vadd.f32 %v9726_v39, %v9725_v10 }
 0x9b0   :  { %v25608_v43 = vpop.f32.mrb[32].mxu1 }
 0x9b1   :  { %v25610_v14 = vpop.f32.mrb[33].mxu1  ;;  %v9729_v8 = vadd.f32 %v9728_v60, %v9727_v30  ;;  %v9732_v4 = vsel %vm116_vm2, %v25608_v43, 0.0 }
 0x9b2   :  { %v9730_v7 = vsel %vm116_vm2, %v25610_v14, 0.0 }
 0x9b3   :  { %v9731_v51 = vadd.f32 %v9730_v7, %v9729_v8 }
 0x9b4   :  { %v25616_v9 = vpop.f32.mrb[34].mxu1 }
 0x9b5   :  { %v25618_v28 = vpop.f32.mrb[35].mxu1  ;;  %v9733_v50 = vadd.f32 %v9732_v4, %v9731_v51  ;;  %v9736_v3 = vsel %vm116_vm2, %v25616_v9, 0.0 }
 0x9b6   :  { %v9734_v40 = vsel %vm116_vm2, %v25618_v28, 0.0 }
 0x9b7   :  { %v9735_v53 = vadd.f32 %v9734_v40, %v9733_v50 }
 0x9b8   :  { %v25624_v15 = vpop.f32.mrb[36].mxu1 }
 0x9b9   :  { %v25626_v25 = vpop.f32.mrb[37].mxu1  ;;  %v9737_v11 = vadd.f32 %v9736_v3, %v9735_v53  ;;  %v9740_v24 = vsel %vm116_vm2, %v25624_v15, 0.0 }
 0x9ba   :  { %v9738_v5 = vsel %vm116_vm2, %v25626_v25, 0.0 }
 0x9bb   :  { %v9739_v46 = vadd.f32 %v9738_v5, %v9737_v11 }
 0x9bc   :  { %v25632_v56 = vpop.f32.mrb[38].mxu1 }
 0x9bd   :  { %v25634_v33 = vpop.f32.mrb[39].mxu1  ;;  %v9741_v23 = vadd.f32 %v9740_v24, %v9739_v46  ;;  %v9744_v12 = vsel %vm116_vm2, %v25632_v56, 0.0 }
 0x9be   :  { %v9742_v48 = vsel %vm116_vm2, %v25634_v33, 0.0 }
 0x9bf   :  { %v9743_v61 = vadd.f32 %v9742_v48, %v9741_v23 }
 0x9c0   :  { %v25640_v54 = vpop.f32.mrb[40].mxu1 }
 0x9c1   :  { %v25642_v16 = vpop.f32.mrb[41].mxu1  ;;  %v9745_v31 = vadd.f32 %v9744_v12, %v9743_v61  ;;  %v9748_v36 = vsel %vm116_vm2, %v25640_v54, 0.0 }
 0x9c2   :  { %v9746_v13 = vsel %vm116_vm2, %v25642_v16, 0.0 }
 0x9c3   :  { %v9747_v17 = vadd.f32 %v9746_v13, %v9745_v31 }
 0x9c4   :  { %v25648_v35 = vpop.f32.mrb[42].mxu1 }
 0x9c5   :  { %v25650_v1 = vpop.f32.mrb[43].mxu1  ;;  %v9749_v20 = vadd.f32 %v9748_v36, %v9747_v17  ;;  %v9752_v45 = vsel %vm116_vm2, %v25648_v35, 0.0 }
 0x9c6   :  { %v9750_v21 = vsel %vm116_vm2, %v25650_v1, 0.0 }
 0x9c7   :  { %v9751_v18 = vadd.f32 %v9750_v21, %v9749_v20 }
 0x9c8   :  { %v25656_v10 = vpop.f32.mrb[44].mxu1 }
 0x9c9   :  { %v25658_v39 = vpop.f32.mrb[45].mxu1  ;;  %v9753_v30 = vadd.f32 %v9752_v45, %v9751_v18  ;;  %v9756_v7 = vsel %vm116_vm2, %v25656_v10, 0.0 }
 0x9ca   :  { %v9754_v60 = vsel %vm116_vm2, %v25658_v39, 0.0 }
 0x9cb   :  { %v9755_v8 = vadd.f32 %v9754_v60, %v9753_v30 }
 0x9cc   :  { %v25664_v51 = vpop.f32.mrb[46].mxu1 }
 0x9cd   :  { %v25666_v4 = vpop.f32.mrb[47].mxu1  ;;  %v9757_v50 = vadd.f32 %v9756_v7, %v9755_v8  ;;  %v9760_v3 = vsel %vm116_vm2, %v25664_v51, 0.0 }
 0x9ce   :  { %v9758_v40 = vsel %vm116_vm2, %v25666_v4, 0.0 }
 0x9cf   :  { %v9759_v53 = vadd.f32 %v9758_v40, %v9757_v50 }
 0x9d0   :  { %v25672_v11 = vpop.f32.mrb[48].mxu1 }
 0x9d1   :  { %v25674_v5 = vpop.f32.mrb[49].mxu1  ;;  %v9761_v46 = vadd.f32 %v9760_v3, %v9759_v53  ;;  %v9764_v48 = vsel %vm116_vm2, %v25672_v11, 0.0 }
 0x9d2   :  { %v9762_v24 = vsel %vm116_vm2, %v25674_v5, 0.0 }
 0x9d3   :  { %v9763_v23 = vadd.f32 %v9762_v24, %v9761_v46 }
 0x9d4   :  { %v25680_v61 = vpop.f32.mrb[50].mxu1 }
 0x9d5   :  { %v25682_v12 = vpop.f32.mrb[51].mxu1  ;;  %v9765_v31 = vadd.f32 %v9764_v48, %v9763_v23  ;;  %v9768_v36 = vsel %vm116_vm2, %v25680_v61, 0.0 }
 0x9d6   :  { %v9766_v13 = vsel %vm116_vm2, %v25682_v12, 0.0 }
 0x9d7   :  { %v9767_v17 = vadd.f32 %v9766_v13, %v9765_v31 }
 0x9d8   :  { %v25688_v20 = vpop.f32.mrb[52].mxu1 }
 0x9d9   :  { %v25690_v21 = vpop.f32.mrb[53].mxu1  ;;  %v9769_v18 = vadd.f32 %v9768_v36, %v9767_v17  ;;  %v9772_v60 = vsel %vm116_vm2, %v25688_v20, 0.0 }
 0x9da   :  { %v9770_v45 = vsel %vm116_vm2, %v25690_v21, 0.0 }
 0x9db   :  { %v9771_v30 = vadd.f32 %v9770_v45, %v9769_v18 }
 0x9dc   :  { %v25696_v8 = vpop.f32.mrb[54].mxu1 }
 0x9dd   :  { %30347 = vst [vmem:[#allocation10_spill] sm:$0xff] %v25696_v8  ;;  %v25698_v7 = vpop.f32.mrb[55].mxu1  ;;  %v9773_v50 = vadd.f32 %v9772_v60, %v9771_v30  ;;  %v9776_v3 = vsel %vm116_vm2, %v25696_v8, 0.0 }
 0x9de   :  { %v9774_v40 = vsel %vm116_vm2, %v25698_v7, 0.0 }
 0x9df   :  { %v9775_v53 = vadd.f32 %v9774_v40, %v9773_v50 }
 0x9e0   :  { %v25704_v46 = vpop.f32.mrb[56].mxu1 }
 0x9e1   :  { %30348 = vst [vmem:[#allocation11_spill] sm:$0xff] %v25704_v46  ;;  %v25706_v24 = vpop.f32.mrb[57].mxu1  ;;  %v9777_v23 = vadd.f32 %v9776_v3, %v9775_v53  ;;  %v9780_v13 = vsel %vm116_vm2, %v25704_v46, 0.0 }
 0x9e2   :  { %30349 = vst [vmem:[#allocation12_spill] sm:$0xff] %v25706_v24  ;;  %v9778_v48 = vsel %vm116_vm2, %v25706_v24, 0.0 }
 0x9e3   :  { %v9779_v31 = vadd.f32 %v9778_v48, %v9777_v23 }
 0x9e4   :  { %v25712_v17 = vpop.f32.mrb[58].mxu1 }
 0x9e5   :  { %30350 = vst [vmem:[#allocation13_spill] sm:$0xff] %v25712_v17  ;;  %v25714_v36 = vpop.f32.mrb[59].mxu1  ;;  %v9781_v18 = vadd.f32 %v9780_v13, %v9779_v31  ;;  %v9784_v60 = vsel %vm116_vm2, %v25712_v17, 0.0 }
 0x9e6   :  { %30351 = vst [vmem:[#allocation14_spill] sm:$0xff] %v25714_v36  ;;  %v9782_v45 = vsel %vm116_vm2, %v25714_v36, 0.0 }
 0x9e7   :  { %v9783_v30 = vadd.f32 %v9782_v45, %v9781_v18 }
 0x9e8   :  { %v25720_v50 = vpop.f32.mrb[60].mxu1 }
 0x9e9   :  { %30352 = vst [vmem:[#allocation15_spill] sm:$0xff] %v25720_v50  ;;  %v25722_v40 = vpop.f32.mrb[61].mxu1  ;;  %v9785_v53 = vadd.f32 %v9784_v60, %v9783_v30  ;;  %v9788_v48 = vsel %vm116_vm2, %v25720_v50, 0.0 }
 0x9ea   :  { %30353 = vst [vmem:[#allocation16_spill] sm:$0xff] %v25722_v40  ;;  %v9786_v3 = vsel %vm116_vm2, %v25722_v40, 0.0 }
 0x9eb   :  { %v9787_v23 = vadd.f32 %v9786_v3, %v9785_v53 }
 0x9ec   :  { %v25728_v31 = vpop.f32.mrb[62].mxu1 }
 0x9ed   :  { %30354 = vst [vmem:[#allocation17_spill] sm:$0xff] %v25728_v31  ;;  %v25730_v13 = vpop.f32.mrb[63].mxu1  ;;  %v9789_v18 = vadd.f32 %v9788_v48, %v9787_v23  ;;  %v9792_v36 = vsel %vm116_vm2, %v25728_v31, 0.0 }
 0x9ee   :  { %30355 = vst [vmem:[#allocation18_spill] sm:$0xff] %v25730_v13  ;;  %v9790_v45 = vsel %vm116_vm2, %v25730_v13, 0.0 }
 0x9ef   :  { %v9791_v17 = vadd.f32 %v9790_v45, %v9789_v18 }
 0x9f0   :  { %v25736_v30 = vpop.f32.mrb[64].mxu1 }
 0x9f1   :  { %30356 = vst [vmem:[#allocation19_spill] sm:$0xff] %v25736_v30  ;;  %v25738_v60 = vpop.f32.mrb[65].mxu1  ;;  %v9793_v53 = vadd.f32 %v9792_v36, %v9791_v17  ;;  %v9796_v40 = vsel %vm116_vm2, %v25736_v30, 0.0 }
 0x9f2   :  { %30357 = vst [vmem:[#allocation20_spill] sm:$0xff] %v25738_v60  ;;  %v9794_v3 = vsel %vm116_vm2, %v25738_v60, 0.0 }
 0x9f3   :  { %v9795_v50 = vadd.f32 %v9794_v3, %v9793_v53 }
 0x9f4   :  { %v25744_v23 = vpop.f32.mrb[66].mxu1 }
 0x9f5   :  { %30358 = vst [vmem:[#allocation21_spill] sm:$0xff] %v25744_v23  ;;  %v25746_v48 = vpop.f32.mrb[67].mxu1  ;;  %v9797_v18 = vadd.f32 %v9796_v40, %v9795_v50  ;;  %v9800_v13 = vsel %vm116_vm2, %v25744_v23, 0.0 }
 0x9f6   :  { %30359 = vst [vmem:[#allocation22_spill] sm:$0xff] %v25746_v48  ;;  %v9798_v45 = vsel %vm116_vm2, %v25746_v48, 0.0 }
 0x9f7   :  { %v9799_v31 = vadd.f32 %v9798_v45, %v9797_v18 }
 0x9f8   :  { %v25752_v17 = vpop.f32.mrb[68].mxu1 }
 0x9f9   :  { %30360 = vst [vmem:[#allocation23_spill] sm:$0xff] %v25752_v17  ;;  %v25754_v36 = vpop.f32.mrb[69].mxu1  ;;  %v9801_v53 = vadd.f32 %v9800_v13, %v9799_v31  ;;  %v9804_v60 = vsel %vm116_vm2, %v25752_v17, 0.0 }
 0x9fa   :  { %30361 = vst [vmem:[#allocation24_spill] sm:$0xff] %v25754_v36  ;;  %v9802_v3 = vsel %vm116_vm2, %v25754_v36, 0.0 }
 0x9fb   :  { %v9803_v30 = vadd.f32 %v9802_v3, %v9801_v53 }
 0x9fc   :  { %v25760_v50 = vpop.f32.mrb[70].mxu1 }
 0x9fd   :  { %v25762_v40 = vpop.f32.mrb[71].mxu1  ;;  %v9805_v18 = vadd.f32 %v9804_v60, %v9803_v30  ;;  %v9808_v48 = vsel %vm116_vm2, %v25760_v50, 0.0 }
 0x9fe   :  { %v9806_v45 = vsel %vm116_vm2, %v25762_v40, 0.0 }
 0x9ff   :  { %v9807_v23 = vadd.f32 %v9806_v45, %v9805_v18  ;;  %v30372_v18 = vld [vmem:[#allocation14_spill] sm:$0xff]  ;;  %v30374_v45 = vld [vmem:[#allocation13_spill] sm:$0xff] }
 0xa01   :  { %v9809_v31 = vadd.f32 %v9808_v48, %v9807_v23  ;;  %v30368_v48 = vld [vmem:[#allocation12_spill] sm:$0xff] }
 0xa03   :  { %v9810_v13 = vrot.slane %v9809_v31, 4 }
 0xa05   :  { %v9811_v46 = vadd.f32 %v9810_v13, %v9809_v31  ;;  %v30376_v31 = vld [vmem:[#allocation16_spill] sm:$0xff] }
 0xa07   :  { %v9812_v36 = vrot.slane %v9811_v46, 2 }
 0xa09   :  { %v9813_v53 = vadd.f32 %v9812_v36, %v9811_v46  ;;  %v30370_v36 = vld [vmem:[#allocation11_spill] sm:$0xff] }
 0xa0b   :  { %v9814_v3 = vrot.slane %v9813_v53, 1 }
 0xa0d   :  { %v9815_v24 = vadd.f32 %v9814_v3, %v9813_v53  ;;  %v30378_v53 = vld [vmem:[#allocation15_spill] sm:$0xff] }
 0xa0f   :  { %v25768_v17 = vmul.f32 0.001953125, %v9815_v24  ;;  %v30367_v24 = vld [vmem:[#allocation10_spill] sm:$0xff] }
 0xa11   :  { %v25772_v8 = vsub.f32 %v25516_v62, %v25768_v17  ;;  %v25776_v30 = vsub.f32 %v25512_v57, %v25768_v17  ;;  %v25780_v60 = vsub.f32 %v25522_v6, %v25768_v17  ;;  %v25784_v23 = vsub.f32 %v25520_v41, %v25768_v17 }
 0xa12   :  { %v25788_v46 = vsub.f32 %v25530_v34, %v25768_v17  ;;  %v25792_v62 = vsub.f32 %v25528_v2, %v25768_v17  ;;  %v25796_v57 = vsub.f32 %v25538_v22, %v25768_v17  ;;  %v25800_v6 = vsub.f32 %v25536_v29, %v25768_v17 }
 0xa13   :  { %30362 = vst [vmem:[#allocation25_spill] sm:$0xff] %v25772_v8  ;;  %30363 = vst [vmem:[#allocation26_spill] sm:$0xff] %v25776_v30  ;;  %v25804_v41 = vsub.f32 %v25546_v59, %v25768_v17  ;;  %v25808_v34 = vsub.f32 %v25544_v49, %v25768_v17  ;;  %v25812_v2 = vsub.f32 %v25554_v0, %v25768_v17 }
 0xa14   :  { %30364 = vst [vmem:[#allocation27_spill] sm:$0xff] %v25780_v60  ;;  %30365 = vst [vmem:[#allocation28_spill] sm:$0xff] %v25784_v23  ;;  %v25816_v22 = vsub.f32 %v25552_v19, %v25768_v17  ;;  %v25820_v29 = vsub.f32 %v25562_v47, %v25768_v17  ;;  %v25824_v59 = vsub.f32 %v25560_v58, %v25768_v17 }
 0xa15   :  { %v25828_v49 = vsub.f32 %v25570_v38, %v25768_v17  ;;  %v25832_v0 = vsub.f32 %v25568_v37, %v25768_v17  ;;  %v25836_v19 = vsub.f32 %v25578_v26, %v25768_v17  ;;  %v25840_v47 = vsub.f32 %v25576_v52, %v25768_v17 }
 0xa16   :  { %v25844_v58 = vsub.f32 %v25586_v63, %v25768_v17  ;;  %v25848_v38 = vsub.f32 %v25584_v32, %v25768_v17  ;;  %v25852_v37 = vsub.f32 %v25594_v27, %v25768_v17  ;;  %v25856_v26 = vsub.f32 %v25592_v55, %v25768_v17 }
 0xa17   :  { %v25860_v52 = vsub.f32 %v25602_v42, %v25768_v17  ;;  %v25864_v63 = vsub.f32 %v25600_v44, %v25768_v17  ;;  %v25868_v32 = vsub.f32 %v25610_v14, %v25768_v17  ;;  %v25872_v27 = vsub.f32 %v25608_v43, %v25768_v17 }
 0xa18   :  { %v25876_v55 = vsub.f32 %v25618_v28, %v25768_v17  ;;  %v25880_v42 = vsub.f32 %v25616_v9, %v25768_v17  ;;  %v25884_v44 = vsub.f32 %v25626_v25, %v25768_v17  ;;  %v25888_v14 = vsub.f32 %v25624_v15, %v25768_v17 }
 0xa19   :  { %v25892_v43 = vsub.f32 %v25634_v33, %v25768_v17  ;;  %v25896_v28 = vsub.f32 %v25632_v56, %v25768_v17  ;;  %v25900_v9 = vsub.f32 %v25642_v16, %v25768_v17  ;;  %v25904_v25 = vsub.f32 %v25640_v54, %v25768_v17 }
 0xa1a   :  { %v25908_v15 = vsub.f32 %v25650_v1, %v25768_v17  ;;  %v25912_v33 = vsub.f32 %v25648_v35, %v25768_v17  ;;  %v25916_v56 = vsub.f32 %v25658_v39, %v25768_v17  ;;  %v25920_v16 = vsub.f32 %v25656_v10, %v25768_v17 }
 0xa1b   :  { %v25924_v54 = vsub.f32 %v25666_v4, %v25768_v17  ;;  %v25928_v1 = vsub.f32 %v25664_v51, %v25768_v17  ;;  %v25932_v35 = vsub.f32 %v25674_v5, %v25768_v17  ;;  %v25936_v39 = vsub.f32 %v25672_v11, %v25768_v17 }
 0xa1c   :  { %v25940_v10 = vsub.f32 %v25682_v12, %v25768_v17  ;;  %v25944_v4 = vsub.f32 %v25680_v61, %v25768_v17  ;;  %v25948_v51 = vsub.f32 %v25690_v21, %v25768_v17  ;;  %v25952_v5 = vsub.f32 %v25688_v20, %v25768_v17 }
 0xa1d   :  { %v25956_v11 = vsub.f32 %v25698_v7, %v25768_v17  ;;  %v25960_v12 = vsub.f32 %v30367_v24, %v25768_v17  ;;  %v25964_v61 = vsub.f32 %v30368_v48, %v25768_v17  ;;  %v25968_v21 = vsub.f32 %v30370_v36, %v25768_v17  ;;  %v30380_v24 = vld [vmem:[#allocation18_spill] sm:$0xff]  ;;  %v30382_v36 = vld [vmem:[#allocation17_spill] sm:$0xff] }
 0xa1e   :  { %30366 = vst [vmem:[#allocation29_spill] sm:$0xff] %v25944_v4  ;;  %v25972_v20 = vsub.f32 %v30372_v18, %v25768_v17  ;;  %v25976_v7 = vsub.f32 %v30374_v45, %v25768_v17  ;;  %v25980_v13 = vsub.f32 %v30376_v31, %v25768_v17  ;;  %v25984_v3 = vsub.f32 %v30378_v53, %v25768_v17 }
 0xa1f   :  { %30369 = vst [vmem:[#allocation30_spill] sm:$0xff] %v25964_v61  ;;  %30371 = vst [vmem:[#allocation31_spill] sm:$0xff] %v25968_v21  ;;  %v25988_v48 = vsub.f32 %v30380_v24, %v25768_v17  ;;  %v25992_v18 = vsub.f32 %v30382_v36, %v25768_v17 }
 0xa20   :  { %30373 = vst [vmem:[#allocation32_spill] sm:$0xff] %v25972_v20  ;;  %30375 = vst [vmem:[#allocation33_spill] sm:$0xff] %v25976_v7  ;;  %v30384_v20 = vld [vmem:[#allocation20_spill] sm:$0xff]  ;;  %v30386_v7 = vld [vmem:[#allocation19_spill] sm:$0xff] }
 0xa21   :  { %30377 = vst [vmem:[#allocation34_spill] sm:$0xff] %v25980_v13  ;;  %30379 = vst [vmem:[#allocation35_spill] sm:$0xff] %v25984_v3  ;;  %v25996_v45 = vsub.f32 %v30384_v20, %v25768_v17  ;;  %v26000_v31 = vsub.f32 %v30386_v7, %v25768_v17  ;;  %v30388_v13 = vld [vmem:[#allocation22_spill] sm:$0xff]  ;;  %v30390_v3 = vld [vmem:[#allocation21_spill] sm:$0xff]  ;;  %v26020_v7 = vsub.f32 %v25762_v40, %v25768_v17 }
 0xa22   :  { %30381 = vst [vmem:[#allocation36_spill] sm:$0xff] %v25988_v48  ;;  %30383 = vst [vmem:[#allocation37_spill] sm:$0xff] %v25992_v18  ;;  %v26004_v53 = vsub.f32 %v30388_v13, %v25768_v17  ;;  %v26008_v24 = vsub.f32 %v30390_v3, %v25768_v17  ;;  %v30392_v48 = vld [vmem:[#allocation24_spill] sm:$0xff]  ;;  %v30394_v18 = vld [vmem:[#allocation23_spill] sm:$0xff]  ;;  %v26024_v13 = vsub.f32 %v25760_v50, %v25768_v17 }
 0xa23   :  { %30385 = vst [vmem:[#allocation38_spill] sm:$0xff] %v25996_v45  ;;  %30387 = vst [vmem:[#allocation39_spill] sm:$0xff] %v26000_v31  ;;  %v26012_v36 = vsub.f32 %v30392_v48, %v25768_v17  ;;  %v26016_v20 = vsub.f32 %v30394_v18, %v25768_v17  ;;  %v9882_v3 = vmul.f32 %v25772_v8, %v25772_v8 }
 0xa24   :  { %30389 = vst [vmem:[#allocation40_spill] sm:$0xff] %v26004_v53  ;;  %30391 = vst [vmem:[#allocation41_spill] sm:$0xff] %v26008_v24  ;;  %v9883_v24 = vmul.f32 %v25776_v30, %v25776_v30  ;;  %v9884_v48 = vmul.f32 %v25780_v60, %v25780_v60  ;;  %v9885_v18 = vmul.f32 %v25784_v23, %v25784_v23 }
 0xa25   :  { %30393 = vst [vmem:[#allocation42_spill] sm:$0xff] %v26012_v36  ;;  %30395 = vst [vmem:[#allocation43_spill] sm:$0xff] %v26016_v20  ;;  %v9946_v20 = vsel %vm116_vm2, %v9882_v3, 0.0  ;;  %v9886_v17 = vmul.f32 %v25788_v46, %v25788_v46  ;;  %v9887_v30 = vmul.f32 %v25792_v62, %v25792_v62  ;;  %v9888_v23 = vmul.f32 %v25796_v57, %v25796_v57 }
 0xa26   :  { %30396 = vst [vmem:[#allocation44_spill] sm:$0xff] %v26020_v7  ;;  %30397 = vst [vmem:[#allocation45_spill] sm:$0xff] %v26024_v13  ;;  %v9947_v40 = vsel %vm116_vm2, %v9883_v24, 0.0  ;;  %v9949_v50 = vsel %vm116_vm2, %v9884_v48, 0.0  ;;  %v9951_v13 = vsel %vm116_vm2, %v9885_v18, 0.0  ;;  %v9889_v24 = vmul.f32 %v25800_v6, %v25800_v6 }
 0xa27   :  { %v9948_v7 = vadd.f32 %v9947_v40, %v9946_v20  ;;  %v9953_v3 = vsel %vm116_vm2, %v9886_v17, 0.0  ;;  %v9955_v20 = vsel %vm116_vm2, %v9887_v30, 0.0  ;;  %v9957_v48 = vsel %vm116_vm2, %v9888_v23, 0.0 }
 0xa28   :  { %v9893_v30 = vmul.f32 %v25816_v22, %v25816_v22  ;;  %v9894_v23 = vmul.f32 %v25820_v29, %v25820_v29 }
 0xa29   :  { %v9950_v8 = vadd.f32 %v9949_v50, %v9948_v7  ;;  %v9890_v7 = vmul.f32 %v25804_v41, %v25804_v41 }
 0xa2b   :  { %v9952_v60 = vadd.f32 %v9951_v13, %v9950_v8  ;;  %v9891_v8 = vmul.f32 %v25808_v34, %v25808_v34  ;;  %v9959_v13 = vsel %vm116_vm2, %v9889_v24, 0.0  ;;  %v9961_v17 = vsel %vm116_vm2, %v9890_v7, 0.0 }
 0xa2c   :  { %v9895_v24 = vmul.f32 %v25824_v59, %v25824_v59  ;;  %v9896_v7 = vmul.f32 %v25828_v49, %v25828_v49 }
 0xa2d   :  { %v9954_v36 = vadd.f32 %v9953_v3, %v9952_v60  ;;  %v9892_v60 = vmul.f32 %v25812_v2, %v25812_v2 }
 0xa2f   :  { %v9956_v40 = vadd.f32 %v9955_v20, %v9954_v36  ;;  %v9963_v36 = vsel %vm116_vm2, %v9891_v8, 0.0  ;;  %v9897_v8 = vmul.f32 %v25832_v0, %v25832_v0 }
 0xa31   :  { %v9958_v50 = vadd.f32 %v9957_v48, %v9956_v40  ;;  %v9965_v40 = vsel %vm116_vm2, %v9892_v60, 0.0  ;;  %v9898_v60 = vmul.f32 %v25836_v19, %v25836_v19 }
 0xa33   :  { %v9960_v18 = vadd.f32 %v9959_v13, %v9958_v50  ;;  %v9967_v50 = vsel %vm116_vm2, %v9893_v30, 0.0  ;;  %v9899_v30 = vmul.f32 %v25840_v47, %v25840_v47 }
 0xa35   :  { %v9962_v3 = vadd.f32 %v9961_v17, %v9960_v18  ;;  %v9969_v18 = vsel %vm116_vm2, %v9894_v23, 0.0  ;;  %v9900_v23 = vmul.f32 %v25844_v58, %v25844_v58 }
 0xa37   :  { %v9964_v20 = vadd.f32 %v9963_v36, %v9962_v3  ;;  %v9971_v3 = vsel %vm116_vm2, %v9895_v24, 0.0  ;;  %v9901_v24 = vmul.f32 %v25848_v38, %v25848_v38 }
 0xa39   :  { %v9966_v48 = vadd.f32 %v9965_v40, %v9964_v20  ;;  %v9973_v20 = vsel %vm116_vm2, %v9896_v7, 0.0  ;;  %v9902_v7 = vmul.f32 %v25852_v37, %v25852_v37 }
 0xa3b   :  { %v9968_v13 = vadd.f32 %v9967_v50, %v9966_v48  ;;  %v9975_v48 = vsel %vm116_vm2, %v9897_v8, 0.0  ;;  %v9903_v8 = vmul.f32 %v25856_v26, %v25856_v26 }
 0xa3d   :  { %v9970_v17 = vadd.f32 %v9969_v18, %v9968_v13  ;;  %v9977_v13 = vsel %vm116_vm2, %v9898_v60, 0.0  ;;  %v9904_v60 = vmul.f32 %v25860_v52, %v25860_v52 }
 0xa3f   :  { %v9972_v36 = vadd.f32 %v9971_v3, %v9970_v17  ;;  %v9979_v17 = vsel %vm116_vm2, %v9899_v30, 0.0  ;;  %v9905_v30 = vmul.f32 %v25864_v63, %v25864_v63 }
 0xa41   :  { %v9974_v40 = vadd.f32 %v9973_v20, %v9972_v36  ;;  %v9981_v36 = vsel %vm116_vm2, %v9900_v23, 0.0  ;;  %v9906_v23 = vmul.f32 %v25868_v32, %v25868_v32 }
 0xa43   :  { %v9976_v50 = vadd.f32 %v9975_v48, %v9974_v40  ;;  %v9983_v40 = vsel %vm116_vm2, %v9901_v24, 0.0  ;;  %v9907_v24 = vmul.f32 %v25872_v27, %v25872_v27 }
 0xa45   :  { %v9978_v18 = vadd.f32 %v9977_v13, %v9976_v50  ;;  %v9985_v50 = vsel %vm116_vm2, %v9902_v7, 0.0  ;;  %v9908_v7 = vmul.f32 %v25876_v55, %v25876_v55 }
 0xa47   :  { %v9980_v3 = vadd.f32 %v9979_v17, %v9978_v18  ;;  %v9987_v18 = vsel %vm116_vm2, %v9903_v8, 0.0  ;;  %v9909_v8 = vmul.f32 %v25880_v42, %v25880_v42 }
 0xa49   :  { %v9982_v20 = vadd.f32 %v9981_v36, %v9980_v3  ;;  %v9989_v3 = vsel %vm116_vm2, %v9904_v60, 0.0  ;;  %v9910_v60 = vmul.f32 %v25884_v44, %v25884_v44 }
 0xa4b   :  { %v9984_v48 = vadd.f32 %v9983_v40, %v9982_v20  ;;  %v9991_v20 = vsel %vm116_vm2, %v9905_v30, 0.0  ;;  %v9911_v30 = vmul.f32 %v25888_v14, %v25888_v14 }
 0xa4d   :  { %v9986_v13 = vadd.f32 %v9985_v50, %v9984_v48  ;;  %v9993_v48 = vsel %vm116_vm2, %v9906_v23, 0.0  ;;  %v9912_v23 = vmul.f32 %v25892_v43, %v25892_v43 }
 0xa4f   :  { %v9988_v17 = vadd.f32 %v9987_v18, %v9986_v13  ;;  %v9995_v13 = vsel %vm116_vm2, %v9907_v24, 0.0  ;;  %v9913_v24 = vmul.f32 %v25896_v28, %v25896_v28 }
 0xa51   :  { %v9990_v36 = vadd.f32 %v9989_v3, %v9988_v17  ;;  %v9997_v17 = vsel %vm116_vm2, %v9908_v7, 0.0  ;;  %v9914_v7 = vmul.f32 %v25900_v9, %v25900_v9 }
 0xa53   :  { %v9992_v40 = vadd.f32 %v9991_v20, %v9990_v36  ;;  %v9999_v36 = vsel %vm116_vm2, %v9909_v8, 0.0  ;;  %v9915_v8 = vmul.f32 %v25904_v25, %v25904_v25 }
 0xa55   :  { %v9994_v50 = vadd.f32 %v9993_v48, %v9992_v40  ;;  %v10001_v40 = vsel %vm116_vm2, %v9910_v60, 0.0  ;;  %v9916_v60 = vmul.f32 %v25908_v15, %v25908_v15 }
 0xa57   :  { %v9996_v18 = vadd.f32 %v9995_v13, %v9994_v50  ;;  %v10003_v50 = vsel %vm116_vm2, %v9911_v30, 0.0  ;;  %v9917_v30 = vmul.f32 %v25912_v33, %v25912_v33 }
 0xa59   :  { %v9998_v3 = vadd.f32 %v9997_v17, %v9996_v18  ;;  %v10005_v18 = vsel %vm116_vm2, %v9912_v23, 0.0  ;;  %v9918_v23 = vmul.f32 %v25916_v56, %v25916_v56 }
 0xa5b   :  { %v10000_v20 = vadd.f32 %v9999_v36, %v9998_v3  ;;  %v10007_v3 = vsel %vm116_vm2, %v9913_v24, 0.0  ;;  %v9919_v24 = vmul.f32 %v25920_v16, %v25920_v16 }
 0xa5d   :  { %v10002_v48 = vadd.f32 %v10001_v40, %v10000_v20  ;;  %v10009_v20 = vsel %vm116_vm2, %v9914_v7, 0.0  ;;  %v9920_v7 = vmul.f32 %v25924_v54, %v25924_v54 }
 0xa5f   :  { %v10004_v13 = vadd.f32 %v10003_v50, %v10002_v48  ;;  %v10011_v48 = vsel %vm116_vm2, %v9915_v8, 0.0  ;;  %v9921_v8 = vmul.f32 %v25928_v1, %v25928_v1 }
 0xa61   :  { %v10006_v17 = vadd.f32 %v10005_v18, %v10004_v13  ;;  %v10013_v13 = vsel %vm116_vm2, %v9916_v60, 0.0  ;;  %v9922_v60 = vmul.f32 %v25932_v35, %v25932_v35 }
 0xa63   :  { %v10008_v36 = vadd.f32 %v10007_v3, %v10006_v17  ;;  %v10015_v17 = vsel %vm116_vm2, %v9917_v30, 0.0  ;;  %v9923_v30 = vmul.f32 %v25936_v39, %v25936_v39 }
 0xa65   :  { %v10010_v40 = vadd.f32 %v10009_v20, %v10008_v36  ;;  %v10017_v36 = vsel %vm116_vm2, %v9918_v23, 0.0  ;;  %v30398_v23 = vmov 0.0  }
 0xa66   :  { %120 = vst.msk [vmem:[#allocation3 + $0x10] sm:$0x3] %vm119_vm3, %v30398_v23  ;;  %123 = vst.msk [vmem:[#allocation3 + $0x1c0] sm:$0x3] %vm119_vm3, %v30398_v23 }
 0xa67   :  { %v10012_v50 = vadd.f32 %v10011_v48, %v10010_v40  ;;  %v10019_v40 = vsel %vm116_vm2, %v9919_v24, 0.0  ;;  %127 = vst.msk [vmem:[#allocation3 + $0x1a8] sm:$0x3] %vm119_vm3, %v30398_v23  ;;  %130 = vst.msk [vmem:[#allocation3 + $0x358] sm:$0x3] %vm119_vm3, %v30398_v23 }
 0xa68   :  { %133 = vst.msk [vmem:[#allocation3 + $0x18] sm:$0x1] %vm132_vm6, %v30398_v23  ;;  %134 = vst.msk [vmem:[#allocation3 + $0x30] sm:$0x1] %vm132_vm6, %v30398_v23 }
 0xa69   :  { %v10014_v18 = vadd.f32 %v10013_v13, %v10012_v50  ;;  %v10021_v50 = vsel %vm116_vm2, %v9920_v7, 0.0  ;;  %135 = vst.msk [vmem:[#allocation3 + $0x48] sm:$0x1] %vm132_vm6, %v30398_v23  ;;  %136 = vst.msk [vmem:[#allocation3 + $0x60] sm:$0x1] %vm132_vm6, %v30398_v23 }
 0xa6a   :  { %137 = vst.msk [vmem:[#allocation3 + $0x78] sm:$0x1] %vm132_vm6, %v30398_v23  ;;  %138 = vst.msk [vmem:[#allocation3 + $0x90] sm:$0x1] %vm132_vm6, %v30398_v23 }
 0xa6b   :  { %v10016_v3 = vadd.f32 %v10015_v17, %v10014_v18  ;;  %v10023_v18 = vsel %vm116_vm2, %v9921_v8, 0.0  ;;  %v9924_v17 = vmul.f32 %v25940_v10, %v25940_v10  ;;  %v10415_v8 = vld [vmem:[%s29947_s7] sm:$0xff]  ;;  %139 = vst.msk [vmem:[#allocation3 + $0xa8] sm:$0x1] %vm132_vm6, %v30398_v23  ;;  %140 = vst.msk [vmem:[#allocation3 + $0xc0] sm:$0x1] %vm132_vm6, %v30398_v23 }
 0xa6c   :  { %141 = vst.msk [vmem:[#allocation3 + $0xd8] sm:$0x1] %vm132_vm6, %v30398_v23  ;;  %142 = vst.msk [vmem:[#allocation3 + $0xf0] sm:$0x1] %vm132_vm6, %v30398_v23 }
 0xa6d   :  { %v10018_v20 = vadd.f32 %v10017_v36, %v10016_v3  ;;  %v10025_v3 = vsel %vm116_vm2, %v9922_v60, 0.0  ;;  %v17871_v36 = vld [vmem:[%s29947_s7 + $0x8] sm:$0xff]  ;;  %v9926_v60 = vmul.f32 %v25948_v51, %v25948_v51  ;;  %143 = vst.msk [vmem:[#allocation3 + $0x108] sm:$0x1] %vm132_vm6, %v30398_v23  ;;  %144 = vst.msk [vmem:[#allocation3 + $0x120] sm:$0x1] %vm132_vm6, %v30398_v23 }
 0xa6e   :  { %20589 = vmatprep.subr.mxu0 %v17871_v36  ;;  %145 = vst.msk [vmem:[#allocation3 + $0x138] sm:$0x1] %vm132_vm6, %v30398_v23  ;;  %146 = vst.msk [vmem:[#allocation3 + $0x150] sm:$0x1] %vm132_vm6, %v30398_v23 }
 0xa6f   :  { %v10020_v48 = vadd.f32 %v10019_v40, %v10018_v20  ;;  %v10416_v20 = vld [vmem:[#allocation3 + $0x1] sm:$0xff]  ;;  %v9925_v40 = vmul.f32 %v25944_v4, %v25944_v4  ;;  %20590 = vmatpush3.msra.mxu0 %v17871_v36  ;;  %147 = vst.msk [vmem:[#allocation3 + $0x168] sm:$0x1] %vm132_vm6, %v30398_v23  ;;  %148 = vst.msk [vmem:[#allocation3 + $0x180] sm:$0x1] %vm132_vm6, %v30398_v23  ;;  %v9929_v36 = vmul.f32 %v25960_v12, %v25960_v12 }
 0xa70   :  { %20591 = vmatprep.mubr.msk.f32.mxu0 %vm116_vm2, %v10416_v20  ;;  %20687 = vmatprep.subr.mxu0 %v10415_v8  ;;  %149 = vst.msk [vmem:[#allocation3 + $0x1c8] sm:$0x1] %vm132_vm6, %v30398_v23  ;;  %150 = vst.msk [vmem:[#allocation3 + $0x1e0] sm:$0x1] %vm132_vm6, %v30398_v23 }
 0xa71   :  { %v10022_v13 = vadd.f32 %v10021_v50, %v10020_v48  ;;  %v10027_v48 = vsel %vm116_vm2, %v9923_v30, 0.0  ;;  %v10031_v4 = vsel %vm116_vm2, %v9925_v40, 0.0  ;;  %151 = vst.msk [vmem:[#allocation3 + $0x1f8] sm:$0x1] %vm132_vm6, %v30398_v23  ;;  %152 = vst.msk [vmem:[#allocation3 + $0x210] sm:$0x1] %vm132_vm6, %v30398_v23  ;;  %v9930_v40 = vmul.f32 %v25964_v61, %v25964_v61 }
 0xa72   :  { %153 = vst.msk [vmem:[#allocation3 + $0x228] sm:$0x1] %vm132_vm6, %v30398_v23  ;;  %154 = vst.msk [vmem:[#allocation3 + $0x240] sm:$0x1] %vm132_vm6, %v30398_v23 }
 0xa73   :  { %v10024_v24 = vadd.f32 %v10023_v18, %v10022_v13  ;;  %v10029_v13 = vsel %vm116_vm2, %v9924_v17, 0.0  ;;  %v26183_v17 = vsel %vm116_vm2, %v9926_v60, 0.0  ;;  %155 = vst.msk [vmem:[#allocation3 + $0x258] sm:$0x1] %vm132_vm6, %v30398_v23  ;;  %156 = vst.msk [vmem:[#allocation3 + $0x270] sm:$0x1] %vm132_vm6, %v30398_v23 }
 0xa74   :  { %157 = vst.msk [vmem:[#allocation3 + $0x288] sm:$0x1] %vm132_vm6, %v30398_v23  ;;  %158 = vst.msk [vmem:[#allocation3 + $0x2a0] sm:$0x1] %vm132_vm6, %v30398_v23  ;;  %v10039_v60 = vsel %vm116_vm2, %v9929_v36, 0.0  ;;  %v30402_v36 = vld [vmem:[#allocation35_spill] sm:$0xff] }
 0xa75   :  { %v10026_v7 = vadd.f32 %v10025_v3, %v10024_v24  ;;  %v10417_v24 = vld [vmem:[#allocation3 + $0x9] sm:$0xff]  ;;  %v26172_v3 = vmul.f32 %v25952_v5, %v25952_v5  ;;  %159 = vst.msk [vmem:[#allocation3 + $0x2b8] sm:$0x1] %vm132_vm6, %v30398_v23  ;;  %160 = vst.msk [vmem:[#allocation3 + $0x2d0] sm:$0x1] %vm132_vm6, %v30398_v23 }
 0xa76   :  { %20592 = vmatmul.mubr.msk.f32.vlgmr.msra.gmra.mrb[10].mxu0 %vm116_vm2, %v10417_v24  ;;  %161 = vst.msk [vmem:[#allocation3 + $0x2e8] sm:$0x1] %vm132_vm6, %v30398_v23  ;;  %162 = vst.msk [vmem:[#allocation3 + $0x300] sm:$0x1] %vm132_vm6, %v30398_v23 }
 0xa77   :  { %v10028_v50 = vadd.f32 %v10027_v48, %v10026_v7  ;;  %20688 = vmatpush3.msra.mxu0 %v10415_v8  ;;  %v26180_v7 = vmul.f32 %v25956_v11, %v25956_v11  ;;  %163 = vst.msk [vmem:[#allocation3 + $0x318] sm:$0x1] %vm132_vm6, %v30398_v23  ;;  %164 = vst.msk [vmem:[#allocation3 + $0x330] sm:$0x1] %vm132_vm6, %v30398_v23  ;;  %v10035_v20 = vsel %vm116_vm2, %v26172_v3, 0.0 }
 0xa78   :  { %165 = vst.msk [vmem:[#allocation3 + $0x29] sm:$0x1] %vm132_vm6, %v30398_v23  ;;  %166 = vst.msk [vmem:[#allocation3 + $0x41] sm:$0x1] %vm132_vm6, %v30398_v23 }
 0xa79   :  { %v10030_v18 = vadd.f32 %v10029_v13, %v10028_v50  ;;  %167 = vst.msk [vmem:[#allocation3 + $0x59] sm:$0x1] %vm132_vm6, %v30398_v23  ;;  %168 = vst.msk [vmem:[#allocation3 + $0x71] sm:$0x1] %vm132_vm6, %v30398_v23  ;;  %v10037_v48 = vsel %vm116_vm2, %v26180_v7, 0.0  ;;  %v30401_v7 = vld [vmem:[#allocation34_spill] sm:$0xff] }
 0xa7a   :  { %169 = vst.msk [vmem:[#allocation3 + $0x89] sm:$0x1] %vm132_vm6, %v30398_v23  ;;  %170 = vst.msk [vmem:[#allocation3 + $0xa1] sm:$0x1] %vm132_vm6, %v30398_v23 }
 0xa7b   :  { %v26176_v30 = vadd.f32 %v10031_v4, %v10030_v18  ;;  %171 = vst.msk [vmem:[#allocation3 + $0xb9] sm:$0x1] %vm132_vm6, %v30398_v23  ;;  %172 = vst.msk [vmem:[#allocation3 + $0xd1] sm:$0x1] %vm132_vm6, %v30398_v23  ;;  %v30399_v18 = vld [vmem:[#allocation32_spill] sm:$0xff] }
 0xa7c   :  { %173 = vst.msk [vmem:[#allocation3 + $0xe9] sm:$0x1] %vm132_vm6, %v30398_v23  ;;  %174 = vst.msk [vmem:[#allocation3 + $0x101] sm:$0x1] %vm132_vm6, %v30398_v23  ;;  %v9932_v24 = vmul.f32 %v30399_v18, %v30399_v18 }
 0xa7d   :  { %175 = vst.msk [vmem:[#allocation3 + $0x119] sm:$0x1] %vm132_vm6, %v30398_v23  ;;  %176 = vst.msk [vmem:[#allocation3 + $0x131] sm:$0x1] %vm132_vm6, %v30398_v23  ;;  %v10034_v4 = vadd.f32 %v26183_v17, %v26176_v30  ;;  %v10041_v30 = vsel %vm116_vm2, %v9930_v40, 0.0  ;;  %v30400_v17 = vld [vmem:[#allocation33_spill] sm:$0xff] }
 0xa7e   :  { %177 = vst.msk [vmem:[#allocation3 + $0x149] sm:$0x1] %vm132_vm6, %v30398_v23  ;;  %178 = vst.msk [vmem:[#allocation3 + $0x161] sm:$0x1] %vm132_vm6, %v30398_v23  ;;  %v30403_v40 = vld [vmem:[#allocation36_spill] sm:$0xff] }
 0xa7f   :  { %179 = vst.msk [vmem:[#allocation3 + $0x179] sm:$0x1] %vm132_vm6, %v30398_v23  ;;  %180 = vst.msk [vmem:[#allocation3 + $0x191] sm:$0x1] %vm132_vm6, %v30398_v23  ;;  %v10036_v8 = vadd.f32 %v10035_v20, %v10034_v4  ;;  %v9933_v4 = vmul.f32 %v30400_v17, %v30400_v17 }
 0xa80   :  { %181 = vst.msk [vmem:[#allocation3 + $0x1d9] sm:$0x1] %vm132_vm6, %v30398_v23  ;;  %182 = vst.msk [vmem:[#allocation3 + $0x1f1] sm:$0x1] %vm132_vm6, %v30398_v23 }
 0xa81   :  { %183 = vst.msk [vmem:[#allocation3 + $0x209] sm:$0x1] %vm132_vm6, %v30398_v23  ;;  %184 = vst.msk [vmem:[#allocation3 + $0x221] sm:$0x1] %vm132_vm6, %v30398_v23  ;;  %v10038_v50 = vadd.f32 %v10037_v48, %v10036_v8  ;;  %v9934_v8 = vmul.f32 %v30401_v7, %v30401_v7  ;;  %v10045_v48 = vsel %vm116_vm2, %v9932_v24, 0.0 }
 0xa82   :  { %185 = vst.msk [vmem:[#allocation3 + $0x239] sm:$0x1] %vm132_vm6, %v30398_v23  ;;  %186 = vst.msk [vmem:[#allocation3 + $0x251] sm:$0x1] %vm132_vm6, %v30398_v23 }
 0xa83   :  { %187 = vst.msk [vmem:[#allocation3 + $0x269] sm:$0x1] %vm132_vm6, %v30398_v23  ;;  %188 = vst.msk [vmem:[#allocation3 + $0x281] sm:$0x1] %vm132_vm6, %v30398_v23  ;;  %v10040_v13 = vadd.f32 %v10039_v60, %v10038_v50  ;;  %v9935_v50 = vmul.f32 %v30402_v36, %v30402_v36  ;;  %v10047_v60 = vsel %vm116_vm2, %v9933_v4, 0.0 }
 0xa84   :  { %189 = vst.msk [vmem:[#allocation3 + $0x299] sm:$0x1] %vm132_vm6, %v30398_v23  ;;  %190 = vst.msk [vmem:[#allocation3 + $0x2b1] sm:$0x1] %vm132_vm6, %v30398_v23 }
 0xa85   :  { %191 = vst.msk [vmem:[#allocation3 + $0x2c9] sm:$0x1] %vm132_vm6, %v30398_v23  ;;  %192 = vst.msk [vmem:[#allocation3 + $0x2e1] sm:$0x1] %vm132_vm6, %v30398_v23  ;;  %v10042_v3 = vadd.f32 %v10041_v30, %v10040_v13  ;;  %v9936_v13 = vmul.f32 %v30403_v40, %v30403_v40  ;;  %v10049_v30 = vsel %vm116_vm2, %v9934_v8, 0.0 }
 0xa86   :  { %193 = vst.msk [vmem:[#allocation3 + $0x2f9] sm:$0x1] %vm132_vm6, %v30398_v23  ;;  %194 = vst.msk [vmem:[#allocation3 + $0x311] sm:$0x1] %vm132_vm6, %v30398_v23 }
 0xa87   :  { %195 = vst.msk [vmem:[#allocation3 + $0x329] sm:$0x1] %vm132_vm6, %v30398_v23  ;;  %196 = vst.msk [vmem:[#allocation3 + $0x341] sm:$0x1] %vm132_vm6, %v30398_v23  ;;  %v9931_v23 = vmul.f32 %v25968_v21, %v25968_v21  ;;  %v10053_v24 = vsel %vm116_vm2, %v9936_v13, 0.0  ;;  %v30406_v13 = vld [vmem:[#allocation42_spill] sm:$0xff] }
 0xa89   :  { %v10043_v20 = vsel %vm116_vm2, %v9931_v23, 0.0  ;;  %v30404_v23 = vld [vmem:[#allocation37_spill] sm:$0xff] }
 0xa8a   :  { %v10044_v61 = vadd.f32 %v10043_v20, %v10042_v3  ;;  %v9937_v3 = vmul.f32 %v30404_v23, %v30404_v23  ;;  %v10051_v20 = vsel %vm116_vm2, %v9935_v50, 0.0  ;;  %v30405_v50 = vld [vmem:[#allocation41_spill] sm:$0xff] }
 0xa8c   :  { %v10046_v21 = vadd.f32 %v10045_v48, %v10044_v61  ;;  %v9938_v61 = vmul.f32 %v25996_v45, %v25996_v45  ;;  %v10055_v4 = vsel %vm116_vm2, %v9937_v3, 0.0  ;;  %v30407_v3 = vld [vmem:[#allocation43_spill] sm:$0xff] }
 0xa8e   :  { %v10048_v18 = vadd.f32 %v10047_v60, %v10046_v21  ;;  %v9939_v21 = vmul.f32 %v26000_v31, %v26000_v31  ;;  %v10057_v8 = vsel %vm116_vm2, %v9938_v61, 0.0  ;;  %v30408_v61 = vld [vmem:[#allocation44_spill] sm:$0xff] }
 0xa90   :  { %v10050_v17 = vadd.f32 %v10049_v30, %v10048_v18  ;;  %v9940_v18 = vmul.f32 %v26004_v53, %v26004_v53 }
 0xa92   :  { %v10052_v7 = vadd.f32 %v10051_v20, %v10050_v17  ;;  %v9941_v17 = vmul.f32 %v30405_v50, %v30405_v50  ;;  %v10059_v20 = vsel %vm116_vm2, %v9939_v21, 0.0  ;;  %v30409_v21 = vld [vmem:[#allocation45_spill] sm:$0xff] }
 0xa94   :  { %v10054_v48 = vadd.f32 %v10053_v24, %v10052_v7  ;;  %v9942_v7 = vmul.f32 %v30406_v13, %v30406_v13  ;;  %v10061_v24 = vsel %vm116_vm2, %v9940_v18, 0.0 }
 0xa96   :  { %v10056_v60 = vadd.f32 %v10055_v4, %v10054_v48  ;;  %v9943_v48 = vmul.f32 %v30407_v3, %v30407_v3  ;;  %v10063_v4 = vsel %vm116_vm2, %v9941_v17, 0.0 }
 0xa98   :  { %v10058_v30 = vadd.f32 %v10057_v8, %v10056_v60  ;;  %v9944_v60 = vmul.f32 %v30408_v61, %v30408_v61  ;;  %v10065_v8 = vsel %vm116_vm2, %v9942_v7, 0.0 }
 0xa9a   :  { %v10060_v45 = vadd.f32 %v10059_v20, %v10058_v30  ;;  %v9945_v30 = vmul.f32 %v30409_v21, %v30409_v21  ;;  %v10067_v20 = vsel %vm116_vm2, %v9943_v48, 0.0  ;;  %v10082_v48 = vld [vmem:[%s29948_s5] sm:$0x1] }
 0xa9c   :  { %v10062_v31 = vadd.f32 %v10061_v24, %v10060_v45  ;;  %v10069_v45 = vsel %vm116_vm2, %v9944_v60, 0.0  ;;  %v10071_v24 = vsel %vm116_vm2, %v9945_v30, 0.0 }
 0xa9e   :  { %v10064_v53 = vadd.f32 %v10063_v4, %v10062_v31 }
 0xaa0   :  { %v10066_v50 = vadd.f32 %v10065_v8, %v10064_v53 }
 0xaa2   :  { %v10068_v13 = vadd.f32 %v10067_v20, %v10066_v50  ;;  %v30410_v50 = vld [vmem:[#allocation4_spill] sm:$0xff]  ;;  %v30412_v20 = vld [vmem:[#allocation26_spill] sm:$0xff] }
 0xaa3   :  { %v30076_v8 = vsub.s32 0, %v30410_v50  ;;  %v30428_v50 = vld [vmem:[#allocation37_spill] sm:$0xff] }
 0xaa4   :  { %v10070_v18 = vadd.f32 %v10069_v45, %v10068_v13 }
 0xaa6   :  { %v10072_v3 = vadd.f32 %v10071_v24, %v10070_v18  ;;  %v30413_v18 = vld [vmem:[#allocation27_spill] sm:$0xff] }
 0xaa8   :  { %v10073_v17 = vrot.slane %v10072_v3, 4 }
 0xaaa   :  { %v10074_v31 = vadd.f32 %v10073_v17, %v10072_v3  ;;  %v26381_v3 = vld [vmem:[%s29949_s6] ss:$0 sm:$0xff] }
 0xaab   :  { %v30414_v17 = vld [vmem:[#allocation28_spill] sm:$0xff] }
 0xaac   :  { %v10075_v4 = vrot.slane %v10074_v31, 2 }
 0xaae   :  { %v10076_v23 = vadd.f32 %v10075_v4, %v10074_v31 }
 0xab0   :  { %v10077_v40 = vrot.slane %v10076_v23, 1 }
 0xab2   :  { %v10078_v36 = vadd.f32 %v10077_v40, %v10076_v23  ;;  %v30411_v40 = vld [vmem:[#allocation25_spill] sm:$0xff] }
 0xab4   :  { %v10079_v7 = vmul.f32 0.001953125, %v10078_v36 }
 0xab6   :  { %v10080_v53 = vadd.f32 1e-05, %v10079_v7 }
 0xab8   :  { %22551 = vrsqrt.f32 %v10080_v53 }
 0xac2   :  { %v22552_v60 = vpop.eup %22551 }
 0xac3   :  { %v10083_v13 = vmul.f32 %v22552_v60, %v10082_v48 }
 0xac5   :  { %v26376_v30 = vrot.slane %v10083_v13, %v30076_v8  ;;  %v30426_v8 = vld [vmem:[#allocation36_spill] sm:$0xff] }
 0xac7   :  { %v10150_v36 = vmul.f32 %v26376_v30, %v30408_v61  ;;  %v26387_v23 = vmul.f32 %v26376_v30, %v30411_v40  ;;  %v26391_v45 = vmul.f32 %v26376_v30, %v30412_v20  ;;  %v26395_v24 = vmul.f32 %v26376_v30, %v30413_v18  ;;  %v30416_v40 = vld [vmem:[#allocation30_spill] sm:$0xff]  ;;  %v30417_v18 = vld [vmem:[#allocation31_spill] sm:$0xff] }
 0xac8   :  { %v26399_v31 = vmul.f32 %v26376_v30, %v30414_v17  ;;  %v26403_v4 = vmul.f32 %v26376_v30, %v25788_v46  ;;  %v26407_v61 = vmul.f32 %v26376_v30, %v25792_v62  ;;  %v26411_v7 = vmul.f32 %v26376_v30, %v25796_v57  ;;  %v30418_v17 = vld [vmem:[#allocation32_spill] sm:$0xff] }
 0xac9   :  { %v10221_v53 = vadd.f32 %v26381_v3, %v10150_v36  ;;  %v26416_v48 = vmul.f32 %v26376_v30, %v25800_v6  ;;  %v26420_v60 = vmul.f32 %v26376_v30, %v25804_v41  ;;  %v26424_v46 = vmul.f32 %v26376_v30, %v25808_v34  ;;  %v30415_v36 = vld [vmem:[#allocation29_spill] sm:$0xff] }
 0xaca   :  { %v26428_v62 = vmul.f32 %v26376_v30, %v25812_v2  ;;  %v26432_v57 = vmul.f32 %v26376_v30, %v25816_v22  ;;  %v26436_v6 = vmul.f32 %v26376_v30, %v25820_v29  ;;  %v26440_v41 = vmul.f32 %v26376_v30, %v25824_v59 }
 0xacb   :  { %v10285_v13 = vmax.f32 %v10221_v53, 0.0  ;;  %v26444_v34 = vmul.f32 %v26376_v30, %v25828_v49  ;;  %v26448_v2 = vmul.f32 %v26376_v30, %v25832_v0  ;;  %v26452_v22 = vmul.f32 %v26376_v30, %v25836_v19  ;;  %v30420_v53 = vld [vmem:[#allocation33_spill] sm:$0xff] }
 0xacc   :  { %v26456_v29 = vmul.f32 %v26376_v30, %v25840_v47  ;;  %v26460_v59 = vmul.f32 %v26376_v30, %v25844_v58  ;;  %v26464_v49 = vmul.f32 %v26376_v30, %v25848_v38  ;;  %v26468_v0 = vmul.f32 %v26376_v30, %v25852_v37 }
 0xacd   :  { %10349 = vst.msk [vmem:[#allocation3 + $0x331] sm:$0xff] %vm116_vm2, %v10285_v13  ;;  %v26473_v19 = vmul.f32 %v26376_v30, %v25856_v26  ;;  %v26477_v47 = vmul.f32 %v26376_v30, %v25860_v52  ;;  %v26481_v58 = vmul.f32 %v26376_v30, %v25864_v63  ;;  %v26485_v38 = vmul.f32 %v26376_v30, %v25868_v32  ;;  %v30422_v13 = vld [vmem:[#allocation34_spill] sm:$0xff] }
 0xace   :  { %v26489_v37 = vmul.f32 %v26376_v30, %v25872_v27  ;;  %v26493_v26 = vmul.f32 %v26376_v30, %v25876_v55  ;;  %v26497_v52 = vmul.f32 %v26376_v30, %v25880_v42  ;;  %v26501_v63 = vmul.f32 %v26376_v30, %v25884_v44 }
 0xacf   :  { %v26505_v32 = vmul.f32 %v26376_v30, %v25888_v14  ;;  %v26509_v27 = vmul.f32 %v26376_v30, %v25892_v43  ;;  %v26513_v55 = vmul.f32 %v26376_v30, %v25896_v28  ;;  %v26517_v42 = vmul.f32 %v26376_v30, %v25900_v9 }
 0xad0   :  { %v26521_v44 = vmul.f32 %v26376_v30, %v25904_v25  ;;  %v26525_v14 = vmul.f32 %v26376_v30, %v25908_v15  ;;  %v26529_v43 = vmul.f32 %v26376_v30, %v25912_v33  ;;  %v26533_v28 = vmul.f32 %v26376_v30, %v25916_v56 }
 0xad1   :  { %v26537_v9 = vmul.f32 %v26376_v30, %v25920_v16  ;;  %v26541_v25 = vmul.f32 %v26376_v30, %v25924_v54  ;;  %v26545_v15 = vmul.f32 %v26376_v30, %v25928_v1  ;;  %v26549_v33 = vmul.f32 %v26376_v30, %v25932_v35 }
 0xad2   :  { %v26553_v56 = vmul.f32 %v26376_v30, %v25936_v39  ;;  %v26557_v16 = vmul.f32 %v26376_v30, %v25940_v10  ;;  %v26561_v54 = vmul.f32 %v26376_v30, %v30415_v36  ;;  %v26565_v1 = vmul.f32 %v26376_v30, %v25948_v51  ;;  %v30424_v36 = vld [vmem:[#allocation35_spill] sm:$0xff] }
 0xad3   :  { %v26569_v35 = vmul.f32 %v26376_v30, %v25952_v5  ;;  %v26573_v39 = vmul.f32 %v26376_v30, %v25956_v11  ;;  %v26577_v10 = vmul.f32 %v26376_v30, %v25960_v12  ;;  %v26581_v20 = vmul.f32 %v26376_v30, %v30416_v40 }
 0xad4   :  { %v26585_v51 = vmul.f32 %v26376_v30, %v30417_v18  ;;  %v26589_v5 = vmul.f32 %v26376_v30, %v30418_v17  ;;  %v26593_v11 = vmul.f32 %v26376_v30, %v30420_v53  ;;  %v26597_v12 = vmul.f32 %v26376_v30, %v30422_v13 }
 0xad5   :  { %v26601_v40 = vmul.f32 %v26376_v30, %v30424_v36  ;;  %v26605_v18 = vmul.f32 %v26376_v30, %v30426_v8  ;;  %v26609_v17 = vmul.f32 %v26376_v30, %v30428_v50 }
 0xad6   :  { %30419 = vst [vmem:[#allocation46_spill] sm:$0xff] %v26589_v5  ;;  %30421 = vst [vmem:[#allocation47_spill] sm:$0xff] %v26593_v11  ;;  %v30430_v5 = vld [vmem:[#allocation38_spill] sm:$0xff]  ;;  %v30431_v11 = vld [vmem:[#allocation39_spill] sm:$0xff] }
 0xad7   :  { %30423 = vst [vmem:[#allocation48_spill] sm:$0xff] %v26597_v12  ;;  %30425 = vst [vmem:[#allocation49_spill] sm:$0xff] %v26601_v40  ;;  %v26613_v53 = vmul.f32 %v26376_v30, %v30430_v5  ;;  %v26617_v13 = vmul.f32 %v26376_v30, %v30431_v11  ;;  %v30432_v12 = vld [vmem:[#allocation40_spill] sm:$0xff]  ;;  %v30433_v40 = vld [vmem:[#allocation41_spill] sm:$0xff]  ;;  %v26637_v11 = vmul.f32 %v26376_v30, %v30409_v21 }
 0xad8   :  { %30427 = vst [vmem:[#allocation50_spill] sm:$0xff] %v26605_v18  ;;  %30429 = vst [vmem:[#allocation51_spill] sm:$0xff] %v26609_v17  ;;  %v26621_v36 = vmul.f32 %v26376_v30, %v30432_v12  ;;  %v26625_v8 = vmul.f32 %v26376_v30, %v30433_v40  ;;  %v30434_v18 = vld [vmem:[#allocation42_spill] sm:$0xff]  ;;  %v30435_v17 = vld [vmem:[#allocation43_spill] sm:$0xff]  ;;  %v26641_v12 = vadd.f32 %v26381_v3, %v26387_v23 }
 0xad9   :  { %v26629_v50 = vmul.f32 %v26376_v30, %v30434_v18  ;;  %v26633_v5 = vmul.f32 %v26376_v30, %v30435_v17  ;;  %v26645_v40 = vadd.f32 %v26381_v3, %v26391_v45  ;;  %v26649_v18 = vadd.f32 %v26381_v3, %v26395_v24 }
 0xada   :  { %v26653_v17 = vadd.f32 %v26381_v3, %v26399_v31  ;;  %v26657_v21 = vadd.f32 %v26381_v3, %v26403_v4  ;;  %v26661_v30 = vadd.f32 %v26381_v3, %v26407_v61  ;;  %v26665_v23 = vadd.f32 %v26381_v3, %v26411_v7 }
 0xadb   :  { %v26669_v45 = vadd.f32 %v26381_v3, %v26416_v48  ;;  %v26673_v24 = vadd.f32 %v26381_v3, %v26420_v60  ;;  %v26677_v31 = vadd.f32 %v26381_v3, %v26424_v46  ;;  %v26681_v4 = vadd.f32 %v26381_v3, %v26428_v62 }
 0xadc   :  { %v26685_v61 = vadd.f32 %v26381_v3, %v26432_v57  ;;  %v26689_v7 = vadd.f32 %v26381_v3, %v26436_v6  ;;  %v26693_v48 = vadd.f32 %v26381_v3, %v26440_v41  ;;  %v26697_v60 = vadd.f32 %v26381_v3, %v26444_v34 }
 0xadd   :  { %v26701_v46 = vadd.f32 %v26381_v3, %v26448_v2  ;;  %v26705_v62 = vadd.f32 %v26381_v3, %v26452_v22  ;;  %v26709_v57 = vadd.f32 %v26381_v3, %v26456_v29  ;;  %v26713_v6 = vadd.f32 %v26381_v3, %v26460_v59 }
 0xade   :  { %v26717_v41 = vadd.f32 %v26381_v3, %v26464_v49  ;;  %v26721_v34 = vadd.f32 %v26381_v3, %v26468_v0  ;;  %v26725_v2 = vadd.f32 %v26381_v3, %v26473_v19  ;;  %v26729_v22 = vadd.f32 %v26381_v3, %v26477_v47 }
 0xadf   :  { %v26733_v29 = vadd.f32 %v26381_v3, %v26481_v58  ;;  %v26737_v59 = vadd.f32 %v26381_v3, %v26485_v38  ;;  %v26741_v49 = vadd.f32 %v26381_v3, %v26489_v37  ;;  %v26745_v0 = vadd.f32 %v26381_v3, %v26493_v26 }
 0xae0   :  { %v26749_v19 = vadd.f32 %v26381_v3, %v26497_v52  ;;  %v26753_v47 = vadd.f32 %v26381_v3, %v26501_v63  ;;  %v26757_v58 = vadd.f32 %v26381_v3, %v26505_v32  ;;  %v26761_v38 = vadd.f32 %v26381_v3, %v26509_v27 }
 0xae1   :  { %v26765_v37 = vadd.f32 %v26381_v3, %v26513_v55  ;;  %v26769_v26 = vadd.f32 %v26381_v3, %v26517_v42  ;;  %v26773_v52 = vadd.f32 %v26381_v3, %v26521_v44  ;;  %v26777_v63 = vadd.f32 %v26381_v3, %v26525_v14 }
 0xae2   :  { %v26781_v32 = vadd.f32 %v26381_v3, %v26529_v43  ;;  %v26785_v27 = vadd.f32 %v26381_v3, %v26533_v28  ;;  %v26789_v55 = vadd.f32 %v26381_v3, %v26537_v9  ;;  %v26793_v42 = vadd.f32 %v26381_v3, %v26541_v25 }
 0xae3   :  { %v26797_v44 = vadd.f32 %v26381_v3, %v26545_v15  ;;  %v26801_v14 = vadd.f32 %v26381_v3, %v26549_v33  ;;  %v26805_v43 = vadd.f32 %v26381_v3, %v26553_v56  ;;  %v26809_v28 = vadd.f32 %v26381_v3, %v26557_v16 }
 0xae4   :  { %v26813_v9 = vadd.f32 %v26381_v3, %v26561_v54  ;;  %v26817_v25 = vadd.f32 %v26381_v3, %v26565_v1  ;;  %v26821_v15 = vadd.f32 %v26381_v3, %v26569_v35  ;;  %v26825_v33 = vadd.f32 %v26381_v3, %v26573_v39  ;;  %v30441_v1 = vld [vmem:[#allocation46_spill] sm:$0xff] }
 0xae5   :  { %v26829_v56 = vadd.f32 %v26381_v3, %v26577_v10  ;;  %v26833_v16 = vadd.f32 %v26381_v3, %v26581_v20  ;;  %v26837_v54 = vadd.f32 %v26381_v3, %v26585_v51  ;;  %v26841_v35 = vadd.f32 %v26381_v3, %v30441_v1 }
 0xae6   :  { %30436 = vst [vmem:[#allocation52_spill] sm:$0xff] %v26821_v15  ;;  %30437 = vst [vmem:[#allocation53_spill] sm:$0xff] %v26825_v33  ;;  %v30442_v15 = vld [vmem:[#allocation47_spill] sm:$0xff]  ;;  %v30443_v33 = vld [vmem:[#allocation48_spill] sm:$0xff] }
 0xae7   :  { %30438 = vst [vmem:[#allocation54_spill] sm:$0xff] %v26829_v56  ;;  %30439 = vst [vmem:[#allocation55_spill] sm:$0xff] %v26833_v16  ;;  %v26845_v39 = vadd.f32 %v26381_v3, %v30442_v15  ;;  %v26849_v10 = vadd.f32 %v26381_v3, %v30443_v33  ;;  %v30444_v56 = vld [vmem:[#allocation49_spill] sm:$0xff]  ;;  %v30445_v16 = vld [vmem:[#allocation50_spill] sm:$0xff]  ;;  %v26865_v15 = vadd.f32 %v26381_v3, %v26613_v53 }
 0xae8   :  { %30440 = vst [vmem:[#allocation56_spill] sm:$0xff] %v26837_v54  ;;  %v26853_v20 = vadd.f32 %v26381_v3, %v30444_v56  ;;  %v26857_v51 = vadd.f32 %v26381_v3, %v30445_v16  ;;  %v30446_v54 = vld [vmem:[#allocation51_spill] sm:$0xff]  ;;  %v26869_v33 = vadd.f32 %v26381_v3, %v26617_v13  ;;  %v26873_v56 = vadd.f32 %v26381_v3, %v26621_v36 }
 0xae9   :  { %v26861_v1 = vadd.f32 %v26381_v3, %v30446_v54  ;;  %v26877_v16 = vadd.f32 %v26381_v3, %v26625_v8  ;;  %v26881_v54 = vadd.f32 %v26381_v3, %v26629_v50  ;;  %v26885_v53 = vadd.f32 %v26381_v3, %v26633_v5 }
 0xaea   :  { %30447 = vst [vmem:[#allocation57_spill] sm:$0xff] %v26869_v33  ;;  %30448 = vst [vmem:[#allocation58_spill] sm:$0xff] %v26873_v56  ;;  %v26889_v13 = vadd.f32 %v26381_v3, %v26637_v11  ;;  %v10223_v33 = vmax.f32 %v26641_v12, 0.0  ;;  %v10224_v36 = vmax.f32 %v26645_v40, 0.0  ;;  %v10225_v56 = vmax.f32 %v26649_v18, 0.0 }
 0xaeb   :  { %30449 = vst [vmem:[#allocation59_spill] sm:$0xff] %v26877_v16  ;;  %30450 = vst [vmem:[#allocation60_spill] sm:$0xff] %v26881_v54  ;;  %v10226_v8 = vmax.f32 %v26653_v17, 0.0  ;;  %v10227_v16 = vmax.f32 %v26657_v21, 0.0  ;;  %v10228_v50 = vmax.f32 %v26661_v30, 0.0  ;;  %v10229_v54 = vmax.f32 %v26665_v23, 0.0 }
 0xaec   :  { %30451 = vst [vmem:[#allocation61_spill] sm:$0xff] %v26885_v53  ;;  %v10230_v5 = vmax.f32 %v26669_v45, 0.0  ;;  %v10231_v53 = vmax.f32 %v26673_v24, 0.0  ;;  %v10232_v3 = vmax.f32 %v26677_v31, 0.0  ;;  %v10233_v11 = vmax.f32 %v26681_v4, 0.0  ;;  %10287 = vst.msk [vmem:[#allocation3 + $0x19] sm:$0xff] %vm116_vm2, %v10223_v33 }
 0xaed   :  { %10288 = vst.msk [vmem:[#allocation3 + $0x21] sm:$0xff] %vm116_vm2, %v10224_v36  ;;  %10289 = vst.msk [vmem:[#allocation3 + $0x31] sm:$0xff] %vm116_vm2, %v10225_v56  ;;  %v10234_v12 = vmax.f32 %v26685_v61, 0.0  ;;  %v10235_v40 = vmax.f32 %v26689_v7, 0.0  ;;  %v10236_v18 = vmax.f32 %v26693_v48, 0.0  ;;  %v10237_v17 = vmax.f32 %v26697_v60, 0.0 }
 0xaee   :  { %10290 = vst.msk [vmem:[#allocation3 + $0x39] sm:$0xff] %vm116_vm2, %v10226_v8  ;;  %10291 = vst.msk [vmem:[#allocation3 + $0x49] sm:$0xff] %vm116_vm2, %v10227_v16  ;;  %v10238_v21 = vmax.f32 %v26701_v46, 0.0  ;;  %v10239_v30 = vmax.f32 %v26705_v62, 0.0  ;;  %v10240_v23 = vmax.f32 %v26709_v57, 0.0  ;;  %v10241_v45 = vmax.f32 %v26713_v6, 0.0 }
 0xaef   :  { %10292 = vst.msk [vmem:[#allocation3 + $0x51] sm:$0xff] %vm116_vm2, %v10228_v50  ;;  %10293 = vst.msk [vmem:[#allocation3 + $0x61] sm:$0xff] %vm116_vm2, %v10229_v54  ;;  %v10242_v24 = vmax.f32 %v26717_v41, 0.0  ;;  %v10243_v31 = vmax.f32 %v26721_v34, 0.0  ;;  %v10244_v4 = vmax.f32 %v26725_v2, 0.0  ;;  %v10245_v61 = vmax.f32 %v26729_v22, 0.0 }
 0xaf0   :  { %10294 = vst.msk [vmem:[#allocation3 + $0x69] sm:$0xff] %vm116_vm2, %v10230_v5  ;;  %10295 = vst.msk [vmem:[#allocation3 + $0x79] sm:$0xff] %vm116_vm2, %v10231_v53  ;;  %v10246_v7 = vmax.f32 %v26733_v29, 0.0  ;;  %v10247_v48 = vmax.f32 %v26737_v59, 0.0  ;;  %v10248_v60 = vmax.f32 %v26741_v49, 0.0  ;;  %v10249_v46 = vmax.f32 %v26745_v0, 0.0 }
 0xaf1   :  { %10296 = vst.msk [vmem:[#allocation3 + $0x81] sm:$0xff] %vm116_vm2, %v10232_v3  ;;  %10297 = vst.msk [vmem:[#allocation3 + $0x91] sm:$0xff] %vm116_vm2, %v10233_v11  ;;  %v10250_v62 = vmax.f32 %v26749_v19, 0.0  ;;  %v10251_v57 = vmax.f32 %v26753_v47, 0.0  ;;  %v10252_v6 = vmax.f32 %v26757_v58, 0.0  ;;  %v10253_v41 = vmax.f32 %v26761_v38, 0.0 }
 0xaf2   :  { %10298 = vst.msk [vmem:[#allocation3 + $0x99] sm:$0xff] %vm116_vm2, %v10234_v12  ;;  %10299 = vst.msk [vmem:[#allocation3 + $0xa9] sm:$0xff] %vm116_vm2, %v10235_v40  ;;  %v10254_v34 = vmax.f32 %v26765_v37, 0.0  ;;  %v10255_v2 = vmax.f32 %v26769_v26, 0.0  ;;  %v10256_v22 = vmax.f32 %v26773_v52, 0.0  ;;  %v10257_v29 = vmax.f32 %v26777_v63, 0.0 }
 0xaf3   :  { %10300 = vst.msk [vmem:[#allocation3 + $0xb1] sm:$0xff] %vm116_vm2, %v10236_v18  ;;  %10301 = vst.msk [vmem:[#allocation3 + $0xc1] sm:$0xff] %vm116_vm2, %v10237_v17  ;;  %v26956_v59 = vld [vmem:[%s29947_s7 + $0x10] sm:$0xff]  ;;  %v10258_v49 = vmax.f32 %v26781_v32, 0.0  ;;  %v10259_v0 = vmax.f32 %v26785_v27, 0.0  ;;  %v10260_v19 = vmax.f32 %v26789_v55, 0.0 }
 0xaf4   :  { %10302 = vst.msk [vmem:[#allocation3 + $0xc9] sm:$0xff] %vm116_vm2, %v10238_v21  ;;  %10303 = vst.msk [vmem:[#allocation3 + $0xd9] sm:$0xff] %vm116_vm2, %v10239_v30  ;;  %v10261_v47 = vmax.f32 %v26793_v42, 0.0  ;;  %v10418_v58 = vld [vmem:[#allocation3 + $0x19] sm:$0xff]  ;;  %v10419_v38 = vld [vmem:[#allocation3 + $0x21] sm:$0xff]  ;;  %20785 = vmatprep.subr.mxu0 %v26956_v59  ;;  %v10262_v37 = vmax.f32 %v26797_v44, 0.0 }
 0xaf5   :  { %10304 = vst.msk [vmem:[#allocation3 + $0xe1] sm:$0xff] %vm116_vm2, %v10240_v23  ;;  %10305 = vst.msk [vmem:[#allocation3 + $0xf1] sm:$0xff] %vm116_vm2, %v10241_v45  ;;  %v10263_v26 = vmax.f32 %v26801_v14, 0.0  ;;  %v10264_v52 = vmax.f32 %v26805_v43, 0.0  ;;  %v10265_v63 = vmax.f32 %v26809_v28, 0.0  ;;  %20594 = vmatprep.mubr.msk.f32.mxu0 %vm116_vm2, %v10418_v58  ;;  %v10266_v32 = vmax.f32 %v26813_v9, 0.0 }
 0xaf6   :  { %10306 = vst.msk [vmem:[#allocation3 + $0xf9] sm:$0xff] %vm116_vm2, %v10242_v24  ;;  %10307 = vst.msk [vmem:[#allocation3 + $0x109] sm:$0xff] %vm116_vm2, %v10243_v31  ;;  %v10267_v27 = vmax.f32 %v26817_v25, 0.0  ;;  %v30452_v55 = vld [vmem:[#allocation52_spill] sm:$0xff]  ;;  %v30453_v44 = vld [vmem:[#allocation53_spill] sm:$0xff]  ;;  %20595 = vmatmul.mubr.msk.f32.gmra.mrb[12].mxu0 %vm116_vm2, %v10419_v38  ;;  %v10273_v54 = vmax.f32 %v26841_v35, 0.0 }
 0xaf7   :  { %10308 = vst.msk [vmem:[#allocation3 + $0x111] sm:$0xff] %vm116_vm2, %v10244_v4  ;;  %10309 = vst.msk [vmem:[#allocation3 + $0x121] sm:$0xff] %vm116_vm2, %v10245_v61  ;;  %v10268_v42 = vmax.f32 %v30452_v55, 0.0  ;;  %v10269_v14 = vmax.f32 %v30453_v44, 0.0  ;;  %v10420_v43 = vld [vmem:[#allocation3 + $0x31] sm:$0xff]  ;;  %v30456_v25 = vld [vmem:[#allocation56_spill] sm:$0xff] }
 0xaf8   :  { %10310 = vst.msk [vmem:[#allocation3 + $0x129] sm:$0xff] %vm116_vm2, %v10246_v7  ;;  %10311 = vst.msk [vmem:[#allocation3 + $0x139] sm:$0xff] %vm116_vm2, %v10247_v48  ;;  %v30454_v28 = vld [vmem:[#allocation54_spill] sm:$0xff]  ;;  %v30455_v9 = vld [vmem:[#allocation55_spill] sm:$0xff]  ;;  %v10272_v16 = vmax.f32 %v30456_v25, 0.0  ;;  %20597 = vmatprep.mubr.msk.f32.mxu0 %vm116_vm2, %v10420_v43  ;;  %v10274_v53 = vmax.f32 %v26845_v39, 0.0 }
 0xaf9   :  { %10312 = vst.msk [vmem:[#allocation3 + $0x141] sm:$0xff] %vm116_vm2, %v10248_v60  ;;  %10313 = vst.msk [vmem:[#allocation3 + $0x151] sm:$0xff] %vm116_vm2, %v10249_v46  ;;  %v10270_v33 = vmax.f32 %v30454_v28, 0.0  ;;  %v10271_v56 = vmax.f32 %v30455_v9, 0.0  ;;  %v10275_v36 = vmax.f32 %v26849_v10, 0.0  ;;  %v10276_v8 = vmax.f32 %v26853_v20, 0.0 }
 0xafa   :  { %10314 = vst.msk [vmem:[#allocation3 + $0x159] sm:$0xff] %vm116_vm2, %v10250_v62  ;;  %10315 = vst.msk [vmem:[#allocation3 + $0x169] sm:$0xff] %vm116_vm2, %v10251_v57  ;;  %v10277_v50 = vmax.f32 %v26857_v51, 0.0  ;;  %v10278_v35 = vmax.f32 %v26861_v1, 0.0  ;;  %v10279_v5 = vmax.f32 %v26865_v15, 0.0  ;;  %v30457_v3 = vld [vmem:[#allocation57_spill] sm:$0xff] }
 0xafb   :  { %10316 = vst.msk [vmem:[#allocation3 + $0x171] sm:$0xff] %vm116_vm2, %v10252_v6  ;;  %10317 = vst.msk [vmem:[#allocation3 + $0x181] sm:$0xff] %vm116_vm2, %v10253_v41  ;;  %v10280_v39 = vmax.f32 %v30457_v3, 0.0  ;;  %v30458_v11 = vld [vmem:[#allocation58_spill] sm:$0xff]  ;;  %v10421_v20 = vld [vmem:[#allocation3 + $0x39] sm:$0xff]  ;;  %v10286_v15 = vmax.f32 %v26889_v13, 0.0 }
 0xafc   :  { %10318 = vst.msk [vmem:[#allocation3 + $0x189] sm:$0xff] %vm116_vm2, %v10254_v34  ;;  %10319 = vst.msk [vmem:[#allocation3 + $0x1c9] sm:$0xff] %vm116_vm2, %v10255_v2  ;;  %v10281_v10 = vmax.f32 %v30458_v11, 0.0  ;;  %v30459_v51 = vld [vmem:[#allocation59_spill] sm:$0xff]  ;;  %v30460_v40 = vld [vmem:[#allocation60_spill] sm:$0xff]  ;;  %20598 = vmatmul.mubr.msk.f32.gmra.mrb[14].mxu0 %vm116_vm2, %v10421_v20 }
 0xafd   :  { %10320 = vst.msk [vmem:[#allocation3 + $0x1d1] sm:$0xff] %vm116_vm2, %v10256_v22  ;;  %10321 = vst.msk [vmem:[#allocation3 + $0x1e1] sm:$0xff] %vm116_vm2, %v10257_v29  ;;  %v10282_v12 = vmax.f32 %v30459_v51, 0.0  ;;  %v10283_v18 = vmax.f32 %v30460_v40, 0.0  ;;  %v30461_v1 = vld [vmem:[#allocation61_spill] sm:$0xff]  ;;  %v10423_v13 = vld [vmem:[#allocation3 + $0x51] sm:$0xff] }
 0xafe   :  { %10322 = vst.msk [vmem:[#allocation3 + $0x1e9] sm:$0xff] %vm116_vm2, %v10258_v49  ;;  %10323 = vst.msk [vmem:[#allocation3 + $0x1f9] sm:$0xff] %vm116_vm2, %v10259_v0  ;;  %v10284_v17 = vmax.f32 %v30461_v1, 0.0  ;;  %v10422_v21 = vld [vmem:[#allocation3 + $0x49] sm:$0xff]  ;;  %v10424_v30 = vld [vmem:[#allocation3 + $0x61] sm:$0xff] }
 0xaff   :  { %10324 = vst.msk [vmem:[#allocation3 + $0x201] sm:$0xff] %vm116_vm2, %v10260_v19  ;;  %10325 = vst.msk [vmem:[#allocation3 + $0x211] sm:$0xff] %vm116_vm2, %v10261_v47  ;;  %20600 = vmatprep.mubr.msk.f32.mxu0 %vm116_vm2, %v10422_v21  ;;  %v10425_v23 = vld [vmem:[#allocation3 + $0x69] sm:$0xff]  ;;  %v10426_v45 = vld [vmem:[#allocation3 + $0x79] sm:$0xff] }
 0xb00   :  { %10326 = vst.msk [vmem:[#allocation3 + $0x219] sm:$0xff] %vm116_vm2, %v10262_v37  ;;  %10327 = vst.msk [vmem:[#allocation3 + $0x229] sm:$0xff] %vm116_vm2, %v10263_v26  ;;  %20601 = vmatmul.mubr.msk.f32.gmra.mrb[16].mxu0 %vm116_vm2, %v10423_v13  ;;  %v10427_v24 = vld [vmem:[#allocation3 + $0x81] sm:$0xff]  ;;  %v10428_v31 = vld [vmem:[#allocation3 + $0x91] sm:$0xff] }
 0xb01   :  { %10328 = vst.msk [vmem:[#allocation3 + $0x231] sm:$0xff] %vm116_vm2, %v10264_v52  ;;  %10329 = vst.msk [vmem:[#allocation3 + $0x241] sm:$0xff] %vm116_vm2, %v10265_v63  ;;  %20603 = vmatprep.mubr.msk.f32.mxu0 %vm116_vm2, %v10424_v30  ;;  %v10429_v4 = vld [vmem:[#allocation3 + $0x99] sm:$0xff]  ;;  %v10430_v61 = vld [vmem:[#allocation3 + $0xa9] sm:$0xff] }
 0xb02   :  { %10330 = vst.msk [vmem:[#allocation3 + $0x249] sm:$0xff] %vm116_vm2, %v10266_v32  ;;  %10331 = vst.msk [vmem:[#allocation3 + $0x259] sm:$0xff] %vm116_vm2, %v10267_v27  ;;  %v10431_v7 = vld [vmem:[#allocation3 + $0xb1] sm:$0xff]  ;;  %v10432_v48 = vld [vmem:[#allocation3 + $0xc1] sm:$0xff] }
 0xb03   :  { %10332 = vst.msk [vmem:[#allocation3 + $0x261] sm:$0xff] %vm116_vm2, %v10268_v42  ;;  %10333 = vst.msk [vmem:[#allocation3 + $0x271] sm:$0xff] %vm116_vm2, %v10269_v14  ;;  %v10433_v60 = vld [vmem:[#allocation3 + $0xc9] sm:$0xff]  ;;  %v10434_v46 = vld [vmem:[#allocation3 + $0xd9] sm:$0xff] }
 0xb04   :  { %10334 = vst.msk [vmem:[#allocation3 + $0x279] sm:$0xff] %vm116_vm2, %v10270_v33  ;;  %10335 = vst.msk [vmem:[#allocation3 + $0x289] sm:$0xff] %vm116_vm2, %v10271_v56  ;;  %20604 = vmatmul.mubr.msk.f32.gmra.mrb[18].mxu0 %vm116_vm2, %v10425_v23  ;;  %v10435_v62 = vld [vmem:[#allocation3 + $0xe1] sm:$0xff]  ;;  %v10436_v57 = vld [vmem:[#allocation3 + $0xf1] sm:$0xff] }
 0xb05   :  { %10336 = vst.msk [vmem:[#allocation3 + $0x291] sm:$0xff] %vm116_vm2, %v10272_v16  ;;  %10337 = vst.msk [vmem:[#allocation3 + $0x2a1] sm:$0xff] %vm116_vm2, %v10273_v54  ;;  %20606 = vmatprep.mubr.msk.f32.mxu0 %vm116_vm2, %v10426_v45  ;;  %v10437_v6 = vld [vmem:[#allocation3 + $0xf9] sm:$0xff]  ;;  %v10438_v41 = vld [vmem:[#allocation3 + $0x109] sm:$0xff] }
 0xb06   :  { %10338 = vst.msk [vmem:[#allocation3 + $0x2a9] sm:$0xff] %vm116_vm2, %v10274_v53  ;;  %10339 = vst.msk [vmem:[#allocation3 + $0x2b9] sm:$0xff] %vm116_vm2, %v10275_v36  ;;  %v10439_v34 = vld [vmem:[#allocation3 + $0x111] sm:$0xff]  ;;  %v10440_v2 = vld [vmem:[#allocation3 + $0x121] sm:$0xff] }
 0xb07   :  { %10340 = vst.msk [vmem:[#allocation3 + $0x2c1] sm:$0xff] %vm116_vm2, %v10276_v8  ;;  %10341 = vst.msk [vmem:[#allocation3 + $0x2d1] sm:$0xff] %vm116_vm2, %v10277_v50  ;;  %v10441_v22 = vld [vmem:[#allocation3 + $0x129] sm:$0xff]  ;;  %v10442_v29 = vld [vmem:[#allocation3 + $0x139] sm:$0xff] }
 0xb08   :  { %10342 = vst.msk [vmem:[#allocation3 + $0x2d9] sm:$0xff] %vm116_vm2, %v10278_v35  ;;  %10343 = vst.msk [vmem:[#allocation3 + $0x2e9] sm:$0xff] %vm116_vm2, %v10279_v5  ;;  %20607 = vmatmul.mubr.msk.f32.gmra.mrb[20].mxu0 %vm116_vm2, %v10427_v24  ;;  %v10443_v49 = vld [vmem:[#allocation3 + $0x141] sm:$0xff]  ;;  %v10444_v0 = vld [vmem:[#allocation3 + $0x151] sm:$0xff] }
 0xb09   :  { %10344 = vst.msk [vmem:[#allocation3 + $0x2f1] sm:$0xff] %vm116_vm2, %v10280_v39  ;;  %10345 = vst.msk [vmem:[#allocation3 + $0x301] sm:$0xff] %vm116_vm2, %v10281_v10  ;;  %20609 = vmatprep.mubr.msk.f32.mxu0 %vm116_vm2, %v10428_v31  ;;  %v10445_v19 = vld [vmem:[#allocation3 + $0x159] sm:$0xff]  ;;  %v10446_v47 = vld [vmem:[#allocation3 + $0x169] sm:$0xff] }
 0xb0a   :  { %10346 = vst.msk [vmem:[#allocation3 + $0x309] sm:$0xff] %vm116_vm2, %v10282_v12  ;;  %10347 = vst.msk [vmem:[#allocation3 + $0x319] sm:$0xff] %vm116_vm2, %v10283_v18  ;;  %v10448_v58 = vld [vmem:[#allocation3 + $0x1b1] sm:$0xff]  ;;  %v10449_v37 = vld [vmem:[#allocation3 + $0x1b9] sm:$0xff] }
 0xb0b   :  { %10348 = vst.msk [vmem:[#allocation3 + $0x321] sm:$0xff] %vm116_vm2, %v10284_v17  ;;  %10350 = vst.msk [vmem:[#allocation3 + $0x339] sm:$0xff] %vm116_vm2, %v10286_v15  ;;  %v10447_v38 = vld [vmem:[#allocation3 + $0x171] sm:$0xff]  ;;  %v10450_v26 = vld [vmem:[#allocation3 + $0x1c9] sm:$0xff] }
 0xb0c   :  { %20610 = vmatmul.mubr.msk.f32.gmra.mrb[22].mxu0 %vm116_vm2, %v10429_v4  ;;  %v10451_v52 = vld [vmem:[#allocation3 + $0x1d1] sm:$0xff]  ;;  %v10452_v63 = vld [vmem:[#allocation3 + $0x1e1] sm:$0xff]  ;;  %v10453_v32 = vld [vmem:[#allocation3 + $0x1e9] sm:$0xff] }
 0xb0d   :  { %20612 = vmatprep.mubr.msk.f32.mxu0 %vm116_vm2, %v10430_v61  ;;  %v10454_v27 = vld [vmem:[#allocation3 + $0x1f9] sm:$0xff]  ;;  %v10455_v55 = vld [vmem:[#allocation3 + $0x201] sm:$0xff]  ;;  %v10456_v42 = vld [vmem:[#allocation3 + $0x211] sm:$0xff] }
 0xb0e   :  { %v10457_v44 = vld [vmem:[#allocation3 + $0x219] sm:$0xff]  ;;  %v10458_v14 = vld [vmem:[#allocation3 + $0x229] sm:$0xff]  ;;  %v10459_v43 = vld [vmem:[#allocation3 + $0x231] sm:$0xff] }
 0xb0f   :  { %v10460_v28 = vld [vmem:[#allocation3 + $0x241] sm:$0xff]  ;;  %v10461_v33 = vld [vmem:[#allocation3 + $0x249] sm:$0xff]  ;;  %v10462_v9 = vld [vmem:[#allocation3 + $0x259] sm:$0xff] }
 0xb10   :  { %20613 = vmatmul.mubr.msk.f32.gmra.mrb[24].mxu0 %vm116_vm2, %v10431_v7  ;;  %v10463_v56 = vld [vmem:[#allocation3 + $0x261] sm:$0xff]  ;;  %v10464_v25 = vld [vmem:[#allocation3 + $0x271] sm:$0xff]  ;;  %v10465_v16 = vld [vmem:[#allocation3 + $0x279] sm:$0xff] }
 0xb11   :  { %20615 = vmatprep.mubr.msk.f32.mxu0 %vm116_vm2, %v10432_v48  ;;  %v10466_v54 = vld [vmem:[#allocation3 + $0x289] sm:$0xff]  ;;  %v10467_v53 = vld [vmem:[#allocation3 + $0x291] sm:$0xff]  ;;  %v10468_v36 = vld [vmem:[#allocation3 + $0x2a1] sm:$0xff] }
 0xb12   :  { %v10469_v8 = vld [vmem:[#allocation3 + $0x2a9] sm:$0xff]  ;;  %v10470_v50 = vld [vmem:[#allocation3 + $0x2b9] sm:$0xff]  ;;  %v10471_v35 = vld [vmem:[#allocation3 + $0x2c1] sm:$0xff] }
 0xb13   :  { %v10472_v5 = vld [vmem:[#allocation3 + $0x2d1] sm:$0xff]  ;;  %v10473_v3 = vld [vmem:[#allocation3 + $0x2d9] sm:$0xff]  ;;  %v10474_v39 = vld [vmem:[#allocation3 + $0x2e9] sm:$0xff] }
 0xb14   :  { %20616 = vmatmul.mubr.msk.f32.gmra.mrb[26].mxu0 %vm116_vm2, %v10433_v60  ;;  %v10475_v11 = vld [vmem:[#allocation3 + $0x2f1] sm:$0xff]  ;;  %v10476_v10 = vld [vmem:[#allocation3 + $0x301] sm:$0xff]  ;;  %v10477_v20 = vld [vmem:[#allocation3 + $0x309] sm:$0xff] }
 0xb15   :  { %20618 = vmatprep.mubr.msk.f32.mxu0 %vm116_vm2, %v10434_v46  ;;  %v10478_v51 = vld [vmem:[#allocation3 + $0x319] sm:$0xff]  ;;  %v10479_v40 = vld [vmem:[#allocation3 + $0x321] sm:$0xff]  ;;  %v27102_v21 = vld [vmem:[#allocation3 + $0x30] sm:$0xff] }
 0xb16   :  { %v10351_v12 = vld [vmem:[#allocation3] sm:$0xff]  ;;  %v10352_v18 = vld [vmem:[#allocation3 + $0x8] sm:$0xff]  ;;  %v27087_v1 = vld [vmem:[#allocation3 + $0x18] sm:$0xff] }
 0xb17   :  { %v27095_v17 = vld [vmem:[%s29947_s7 + $0x18] sm:$0xff]  ;;  %v27098_v15 = vld [vmem:[#allocation3 + $0x20] sm:$0xff]  ;;  %v27114_v30 = vld [vmem:[#allocation3 + $0x50] sm:$0xff] }
 0xb18   :  { %20619 = vmatmul.mubr.msk.f32.gmra.mrb[28].mxu0 %vm116_vm2, %v10435_v62  ;;  %v27106_v13 = vld [vmem:[#allocation3 + $0x38] sm:$0xff]  ;;  %v27118_v23 = vld [vmem:[#allocation3 + $0x60] sm:$0xff]  ;;  %v27122_v45 = vld [vmem:[#allocation3 + $0x68] sm:$0xff] }
 0xb19   :  { %20621 = vmatprep.mubr.msk.f32.mxu0 %vm116_vm2, %v10436_v57  ;;  %v27126_v24 = vld [vmem:[#allocation3 + $0x78] sm:$0xff]  ;;  %v27130_v31 = vld [vmem:[#allocation3 + $0x80] sm:$0xff]  ;;  %v27134_v4 = vld [vmem:[#allocation3 + $0x90] sm:$0xff] }
 0xb1a   :  { %v27138_v61 = vld [vmem:[#allocation3 + $0x98] sm:$0xff]  ;;  %v27142_v7 = vld [vmem:[#allocation3 + $0xa8] sm:$0xff]  ;;  %v27146_v48 = vld [vmem:[#allocation3 + $0xb0] sm:$0xff] }
 0xb1b   :  { %v27150_v60 = vld [vmem:[#allocation3 + $0xc0] sm:$0xff]  ;;  %v27154_v46 = vld [vmem:[#allocation3 + $0xc8] sm:$0xff]  ;;  %v27158_v62 = vld [vmem:[#allocation3 + $0xd8] sm:$0xff] }
 0xb1c   :  { %20622 = vmatmul.mubr.msk.f32.gmra.mrb[30].mxu0 %vm116_vm2, %v10437_v6  ;;  %v27162_v57 = vld [vmem:[#allocation3 + $0xe0] sm:$0xff]  ;;  %v27166_v6 = vld [vmem:[#allocation3 + $0xf0] sm:$0xff] }
 0xb1d   :  { %20624 = vmatprep.mubr.msk.f32.mxu0 %vm116_vm2, %v10438_v41  ;;  %v27170_v41 = vld [vmem:[#allocation3 + $0xf8] sm:$0xff] }
 0xb20   :  { %20625 = vmatmul.mubr.msk.f32.gmra.mrb[32].mxu0 %vm116_vm2, %v10439_v34  ;;  %v27174_v34 = vld [vmem:[#allocation3 + $0x108] sm:$0xff] }
 0xb21   :  { %20627 = vmatprep.mubr.msk.f32.mxu0 %vm116_vm2, %v10440_v2  ;;  %v27178_v2 = vld [vmem:[#allocation3 + $0x110] sm:$0xff] }
 0xb24   :  { %20628 = vmatmul.mubr.msk.f32.gmra.mrb[34].mxu0 %vm116_vm2, %v10441_v22  ;;  %v27182_v22 = vld [vmem:[#allocation3 + $0x120] sm:$0xff] }
 0xb25   :  { %20630 = vmatprep.mubr.msk.f32.mxu0 %vm116_vm2, %v10442_v29  ;;  %v27186_v29 = vld [vmem:[#allocation3 + $0x128] sm:$0xff] }
 0xb28   :  { %20631 = vmatmul.mubr.msk.f32.gmra.mrb[36].mxu0 %vm116_vm2, %v10443_v49  ;;  %v27190_v49 = vld [vmem:[#allocation3 + $0x138] sm:$0xff] }
 0xb29   :  { %20633 = vmatprep.mubr.msk.f32.mxu0 %vm116_vm2, %v10444_v0  ;;  %v27194_v0 = vld [vmem:[#allocation3 + $0x140] sm:$0xff] }
 0xb2c   :  { %20634 = vmatmul.mubr.msk.f32.gmra.mrb[38].mxu0 %vm116_vm2, %v10445_v19  ;;  %v27198_v19 = vld [vmem:[#allocation3 + $0x150] sm:$0xff] }
 0xb2d   :  { %20636 = vmatprep.mubr.msk.f32.mxu0 %vm116_vm2, %v10446_v47  ;;  %v27202_v47 = vld [vmem:[#allocation3 + $0x158] sm:$0xff] }
 0xb30   :  { %20637 = vmatmul.mubr.msk.f32.gmra.mrb[40].mxu0 %vm116_vm2, %v10447_v38  ;;  %v10383_v38 = vld [vmem:[#allocation3 + $0x1b0] sm:$0xff] }
 0xb31   :  { %20639 = vmatprep.mubr.msk.f32.mxu0 %vm116_vm2, %v10448_v58  ;;  %v27206_v58 = vld [vmem:[#allocation3 + $0x168] sm:$0xff] }
 0xb34   :  { %20640 = vmatmul.mubr.msk.f32.gmra.mrb[42].mxu0 %vm116_vm2, %v10449_v37  ;;  %v27210_v37 = vld [vmem:[#allocation3 + $0x170] sm:$0xff] }
 0xb35   :  { %20642 = vmatprep.mubr.msk.f32.mxu0 %vm116_vm2, %v10450_v26  ;;  %v10384_v26 = vld [vmem:[#allocation3 + $0x1b8] sm:$0xff] }
 0xb38   :  { %20643 = vmatmul.mubr.msk.f32.gmra.mrb[44].mxu0 %vm116_vm2, %v10451_v52  ;;  %v27216_v52 = vld [vmem:[#allocation3 + $0x1c8] sm:$0xff] }
 0xb39   :  { %20645 = vmatprep.mubr.msk.f32.mxu0 %vm116_vm2, %v10452_v63  ;;  %v27220_v63 = vld [vmem:[#allocation3 + $0x1d0] sm:$0xff] }
 0xb3c   :  { %20646 = vmatmul.mubr.msk.f32.gmra.mrb[46].mxu0 %vm116_vm2, %v10453_v32  ;;  %v27224_v32 = vld [vmem:[#allocation3 + $0x1e0] sm:$0xff] }
 0xb3d   :  { %20648 = vmatprep.mubr.msk.f32.mxu0 %vm116_vm2, %v10454_v27  ;;  %v27228_v27 = vld [vmem:[#allocation3 + $0x1e8] sm:$0xff] }
 0xb40   :  { %20649 = vmatmul.mubr.msk.f32.gmra.mrb[48].mxu0 %vm116_vm2, %v10455_v55  ;;  %v27232_v55 = vld [vmem:[#allocation3 + $0x1f8] sm:$0xff] }
 0xb41   :  { %20651 = vmatprep.mubr.msk.f32.mxu0 %vm116_vm2, %v10456_v42  ;;  %v27236_v42 = vld [vmem:[#allocation3 + $0x200] sm:$0xff] }
 0xb44   :  { %20652 = vmatmul.mubr.msk.f32.gmra.mrb[50].mxu0 %vm116_vm2, %v10457_v44  ;;  %v27240_v44 = vld [vmem:[#allocation3 + $0x210] sm:$0xff] }
 0xb45   :  { %20654 = vmatprep.mubr.msk.f32.mxu0 %vm116_vm2, %v10458_v14  ;;  %v27244_v14 = vld [vmem:[#allocation3 + $0x218] sm:$0xff] }
 0xb48   :  { %20655 = vmatmul.mubr.msk.f32.gmra.mrb[52].mxu0 %vm116_vm2, %v10459_v43  ;;  %v27248_v43 = vld [vmem:[#allocation3 + $0x228] sm:$0xff] }
 0xb49   :  { %20657 = vmatprep.mubr.msk.f32.mxu0 %vm116_vm2, %v10460_v28  ;;  %v27252_v28 = vld [vmem:[#allocation3 + $0x230] sm:$0xff] }
 0xb4c   :  { %20658 = vmatmul.mubr.msk.f32.gmra.mrb[54].mxu0 %vm116_vm2, %v10461_v33  ;;  %v27256_v33 = vld [vmem:[#allocation3 + $0x240] sm:$0xff] }
 0xb4d   :  { %20660 = vmatprep.mubr.msk.f32.mxu0 %vm116_vm2, %v10462_v9  ;;  %v27260_v9 = vld [vmem:[#allocation3 + $0x248] sm:$0xff] }
 0xb50   :  { %20661 = vmatmul.mubr.msk.f32.gmra.mrb[56].mxu0 %vm116_vm2, %v10463_v56  ;;  %v27264_v56 = vld [vmem:[#allocation3 + $0x258] sm:$0xff] }
 0xb51   :  { %20663 = vmatprep.mubr.msk.f32.mxu0 %vm116_vm2, %v10464_v25  ;;  %v27268_v25 = vld [vmem:[#allocation3 + $0x260] sm:$0xff] }
 0xb54   :  { %20664 = vmatmul.mubr.msk.f32.gmra.mrb[58].mxu0 %vm116_vm2, %v10465_v16  ;;  %v27272_v16 = vld [vmem:[#allocation3 + $0x270] sm:$0xff] }
 0xb55   :  { %20666 = vmatprep.mubr.msk.f32.mxu0 %vm116_vm2, %v10466_v54  ;;  %v27276_v54 = vld [vmem:[#allocation3 + $0x278] sm:$0xff] }
 0xb58   :  { %20667 = vmatmul.mubr.msk.f32.gmra.mrb[60].mxu0 %vm116_vm2, %v10467_v53  ;;  %v27280_v53 = vld [vmem:[#allocation3 + $0x288] sm:$0xff] }
 0xb59   :  { %20669 = vmatprep.mubr.msk.f32.mxu0 %vm116_vm2, %v10468_v36  ;;  %v27284_v36 = vld [vmem:[#allocation3 + $0x290] sm:$0xff] }
 0xb5c   :  { %20670 = vmatmul.mubr.msk.f32.gmra.mrb[62].mxu0 %vm116_vm2, %v10469_v8  ;;  %v27288_v8 = vld [vmem:[#allocation3 + $0x2a0] sm:$0xff] }
 0xb5d   :  { %20672 = vmatprep.mubr.msk.f32.mxu0 %vm116_vm2, %v10470_v50  ;;  %v27292_v50 = vld [vmem:[#allocation3 + $0x2a8] sm:$0xff] }
 0xb60   :  { %20673 = vmatmul.mubr.msk.f32.gmra.mrb[64].mxu0 %vm116_vm2, %v10471_v35  ;;  %v27296_v35 = vld [vmem:[#allocation3 + $0x2b8] sm:$0xff] }
 0xb61   :  { %20675 = vmatprep.mubr.msk.f32.mxu0 %vm116_vm2, %v10472_v5  ;;  %v27300_v5 = vld [vmem:[#allocation3 + $0x2c0] sm:$0xff] }
 0xb64   :  { %20676 = vmatmul.mubr.msk.f32.gmra.mrb[66].mxu0 %vm116_vm2, %v10473_v3  ;;  %v27304_v3 = vld [vmem:[#allocation3 + $0x2d0] sm:$0xff] }
 0xb65   :  { %20678 = vmatprep.mubr.msk.f32.mxu0 %vm116_vm2, %v10474_v39  ;;  %v27308_v39 = vld [vmem:[#allocation3 + $0x2d8] sm:$0xff] }
 0xb68   :  { %20679 = vmatmul.mubr.msk.f32.gmra.mrb[68].mxu0 %vm116_vm2, %v10475_v11  ;;  %v27312_v11 = vld [vmem:[#allocation3 + $0x2e8] sm:$0xff] }
 0xb69   :  { %20681 = vmatprep.mubr.msk.f32.mxu0 %vm116_vm2, %v10476_v10  ;;  %v27316_v10 = vld [vmem:[#allocation3 + $0x2f0] sm:$0xff] }
 0xb6c   :  { %20682 = vmatmul.mubr.msk.f32.gmra.mrb[70].mxu0 %vm116_vm2, %v10477_v20  ;;  %v27320_v20 = vld [vmem:[#allocation3 + $0x300] sm:$0xff] }
 0xb6d   :  { %20684 = vmatprep.mubr.msk.f32.mxu0 %vm116_vm2, %v10478_v51  ;;  %v27324_v51 = vld [vmem:[#allocation3 + $0x308] sm:$0xff] }
 0xb6e   :  { %30462 = vst [vmem:[#allocation62_spill] sm:$0xff] %v27324_v51 }
 0xb70   :  { %20685 = vmatmul.mubr.msk.f32.gmra.mrb[72].mxu0 %vm116_vm2, %v10479_v40  ;;  %v11636_v40 = vld [vmem:[#allocation3 + $0x2] sm:$0xff] }
 0xb71   :  { %20689 = vmatprep.mubr.msk.f32.mxu0 %vm116_vm2, %v10351_v12  ;;  %v27328_v12 = vld [vmem:[#allocation3 + $0x318] sm:$0xff] }
 0xb72   :  { %30463 = vst [vmem:[#allocation63_spill] sm:$0xff] %v27328_v12 }
 0xb74   :  { %20690 = vmatmul.mubr.msk.f32.vlgmr.msra.gmra.mrb[10].mxu0 %vm116_vm2, %v10352_v18  ;;  %v27332_v18 = vld [vmem:[#allocation3 + $0x320] sm:$0xff] }
 0xb75   :  { %20692 = vmatprep.mubr.msk.f32.mxu0 %vm116_vm2, %v27087_v1  ;;  %20786 = vmatpush3.msra.mxu0 %v26956_v59  ;;  %v27110_v59 = vld [vmem:[#allocation3 + $0x48] sm:$0xff]  ;;  %30464 = vst [vmem:[#allocation64_spill] sm:$0xff] %v27332_v18 }
 0xb76   :  { %20883 = vmatprep.subr.mxu0 %v27095_v17 }
 0xb78   :  { %20693 = vmatmul.mubr.msk.f32.gmra.mrb[12].mxu0 %vm116_vm2, %v27098_v15 }
 0xb79   :  { %20695 = vmatprep.mubr.msk.f32.mxu0 %vm116_vm2, %v27102_v21 }
 0xb7c   :  { %20696 = vmatmul.mubr.msk.f32.gmra.mrb[14].mxu0 %vm116_vm2, %v27106_v13 }
 0xb7d   :  { %20698 = vmatprep.mubr.msk.f32.mxu0 %vm116_vm2, %v27110_v59 }
 0xb80   :  { %20699 = vmatmul.mubr.msk.f32.gmra.mrb[16].mxu0 %vm116_vm2, %v27114_v30 }
 0xb81   :  { %20701 = vmatprep.mubr.msk.f32.mxu0 %vm116_vm2, %v27118_v23 }
 0xb84   :  { %20702 = vmatmul.mubr.msk.f32.gmra.mrb[18].mxu0 %vm116_vm2, %v27122_v45 }
 0xb85   :  { %20704 = vmatprep.mubr.msk.f32.mxu0 %vm116_vm2, %v27126_v24 }
 0xb88   :  { %20705 = vmatmul.mubr.msk.f32.gmra.mrb[20].mxu0 %vm116_vm2, %v27130_v31 }
 0xb89   :  { %20707 = vmatprep.mubr.msk.f32.mxu0 %vm116_vm2, %v27134_v4 }
 0xb8c   :  { %20708 = vmatmul.mubr.msk.f32.gmra.mrb[22].mxu0 %vm116_vm2, %v27138_v61 }
 0xb8d   :  { %20710 = vmatprep.mubr.msk.f32.mxu0 %vm116_vm2, %v27142_v7 }
 0xb90   :  { %20711 = vmatmul.mubr.msk.f32.gmra.mrb[24].mxu0 %vm116_vm2, %v27146_v48 }
 0xb91   :  { %20713 = vmatprep.mubr.msk.f32.mxu0 %vm116_vm2, %v27150_v60 }
 0xb94   :  { %20714 = vmatmul.mubr.msk.f32.gmra.mrb[26].mxu0 %vm116_vm2, %v27154_v46 }
 0xb95   :  { %20716 = vmatprep.mubr.msk.f32.mxu0 %vm116_vm2, %v27158_v62 }
 0xb98   :  { %20717 = vmatmul.mubr.msk.f32.gmra.mrb[28].mxu0 %vm116_vm2, %v27162_v57 }
 0xb99   :  { %20719 = vmatprep.mubr.msk.f32.mxu0 %vm116_vm2, %v27166_v6 }
 0xb9c   :  { %20720 = vmatmul.mubr.msk.f32.gmra.mrb[30].mxu0 %vm116_vm2, %v27170_v41 }
 0xb9d   :  { %20722 = vmatprep.mubr.msk.f32.mxu0 %vm116_vm2, %v27174_v34 }
 0xba0   :  { %20723 = vmatmul.mubr.msk.f32.gmra.mrb[32].mxu0 %vm116_vm2, %v27178_v2 }
 0xba1   :  { %20725 = vmatprep.mubr.msk.f32.mxu0 %vm116_vm2, %v27182_v22 }
 0xba4   :  { %20726 = vmatmul.mubr.msk.f32.gmra.mrb[34].mxu0 %vm116_vm2, %v27186_v29 }
 0xba5   :  { %20728 = vmatprep.mubr.msk.f32.mxu0 %vm116_vm2, %v27190_v49 }
 0xba8   :  { %20729 = vmatmul.mubr.msk.f32.gmra.mrb[36].mxu0 %vm116_vm2, %v27194_v0 }
 0xba9   :  { %20731 = vmatprep.mubr.msk.f32.mxu0 %vm116_vm2, %v27198_v19 }
 0xbac   :  { %20732 = vmatmul.mubr.msk.f32.gmra.mrb[38].mxu0 %vm116_vm2, %v27202_v47 }
 0xbad   :  { %20734 = vmatprep.mubr.msk.f32.mxu0 %vm116_vm2, %v27206_v58 }
 0xbb0   :  { %20735 = vmatmul.mubr.msk.f32.gmra.mrb[40].mxu0 %vm116_vm2, %v27210_v37 }
 0xbb1   :  { %20737 = vmatprep.mubr.msk.f32.mxu0 %vm116_vm2, %v10383_v38  ;;  %v11637_v38 = vld [vmem:[#allocation3 + $0xa] sm:$0xff] }
 0xbb4   :  { %20738 = vmatmul.mubr.msk.f32.gmra.mrb[42].mxu0 %vm116_vm2, %v10384_v26  ;;  %v27338_v26 = vld [vmem:[#allocation3 + $0x1a] sm:$0xff] }
 0xbb5   :  { %20740 = vmatprep.mubr.msk.f32.mxu0 %vm116_vm2, %v27216_v52  ;;  %30465 = vst [vmem:[#allocation5_spill] sm:$0xff] %v27338_v26 }
 0xbb8   :  { %20741 = vmatmul.mubr.msk.f32.gmra.mrb[44].mxu0 %vm116_vm2, %v27220_v63 }
 0xbb9   :  { %20743 = vmatprep.mubr.msk.f32.mxu0 %vm116_vm2, %v27224_v32 }
 0xbbc   :  { %20744 = vmatmul.mubr.msk.f32.gmra.mrb[46].mxu0 %vm116_vm2, %v27228_v27 }
 0xbbd   :  { %20746 = vmatprep.mubr.msk.f32.mxu0 %vm116_vm2, %v27232_v55 }
 0xbc0   :  { %20747 = vmatmul.mubr.msk.f32.gmra.mrb[48].mxu0 %vm116_vm2, %v27236_v42 }
 0xbc1   :  { %20749 = vmatprep.mubr.msk.f32.mxu0 %vm116_vm2, %v27240_v44 }
 0xbc4   :  { %20750 = vmatmul.mubr.msk.f32.gmra.mrb[50].mxu0 %vm116_vm2, %v27244_v14 }
 0xbc5   :  { %20752 = vmatprep.mubr.msk.f32.mxu0 %vm116_vm2, %v27248_v43 }
 0xbc8   :  { %20753 = vmatmul.mubr.msk.f32.gmra.mrb[52].mxu0 %vm116_vm2, %v27252_v28 }
 0xbc9   :  { %20755 = vmatprep.mubr.msk.f32.mxu0 %vm116_vm2, %v27256_v33 }
 0xbcc   :  { %20756 = vmatmul.mubr.msk.f32.gmra.mrb[54].mxu0 %vm116_vm2, %v27260_v9 }
 0xbcd   :  { %20758 = vmatprep.mubr.msk.f32.mxu0 %vm116_vm2, %v27264_v56 }
 0xbd0   :  { %20759 = vmatmul.mubr.msk.f32.gmra.mrb[56].mxu0 %vm116_vm2, %v27268_v25 }
 0xbd1   :  { %20761 = vmatprep.mubr.msk.f32.mxu0 %vm116_vm2, %v27272_v16 }
 0xbd4   :  { %20762 = vmatmul.mubr.msk.f32.gmra.mrb[58].mxu0 %vm116_vm2, %v27276_v54 }
 0xbd5   :  { %20764 = vmatprep.mubr.msk.f32.mxu0 %vm116_vm2, %v27280_v53 }
 0xbd8   :  { %20765 = vmatmul.mubr.msk.f32.gmra.mrb[60].mxu0 %vm116_vm2, %v27284_v36 }
 0xbd9   :  { %20767 = vmatprep.mubr.msk.f32.mxu0 %vm116_vm2, %v27288_v8 }
 0xbdc   :  { %20768 = vmatmul.mubr.msk.f32.gmra.mrb[62].mxu0 %vm116_vm2, %v27292_v50 }
 0xbdd   :  { %20770 = vmatprep.mubr.msk.f32.mxu0 %vm116_vm2, %v27296_v35 }
 0xbe0   :  { %20771 = vmatmul.mubr.msk.f32.gmra.mrb[64].mxu0 %vm116_vm2, %v27300_v5 }
 0xbe1   :  { %20773 = vmatprep.mubr.msk.f32.mxu0 %vm116_vm2, %v27304_v3 }
 0xbe4   :  { %20774 = vmatmul.mubr.msk.f32.gmra.mrb[66].mxu0 %vm116_vm2, %v27308_v39 }
 0xbe5   :  { %20776 = vmatprep.mubr.msk.f32.mxu0 %vm116_vm2, %v27312_v11 }
 0xbe8   :  { %20777 = vmatmul.mubr.msk.f32.gmra.mrb[68].mxu0 %vm116_vm2, %v27316_v10 }
 0xbe9   :  { %20779 = vmatprep.mubr.msk.f32.mxu0 %vm116_vm2, %v27320_v20 }
 0xbec   :  { %20780 = vmatmul.mubr.msk.f32.gmra.mrb[70].mxu0 %vm116_vm2, %v27324_v51  ;;  %v27461_v51 = vld [vmem:[#allocation3 + $0x172] sm:$0xff] }
 0xbed   :  { %20782 = vmatprep.mubr.msk.f32.mxu0 %vm116_vm2, %v27328_v12  ;;  %v27346_v12 = vld [vmem:[%s29947_s7 + $0x20] sm:$0xff]  ;;  %30494 = vst [vmem:[#allocation44_spill] sm:$0xff] %v27461_v51 }
 0xbf0   :  { %20783 = vmatmul.mubr.msk.f32.gmra.mrb[72].mxu0 %vm116_vm2, %v27332_v18  ;;  %v27349_v18 = vld [vmem:[#allocation3 + $0x22] sm:$0xff] }
 0xbf1   :  { %20787 = vmatprep.mubr.msk.f32.mxu0 %vm116_vm2, %v11636_v40  ;;  %30466 = vst [vmem:[#allocation7_spill] sm:$0xff] %v27349_v18  ;;  %v27353_v40 = vld [vmem:[#allocation3 + $0x32] sm:$0xff] }
 0xbf2   :  { %30467 = vst [vmem:[#allocation6_spill] sm:$0xff] %v27353_v40 }
 0xbf4   :  { %20788 = vmatmul.mubr.msk.f32.vlgmr.msra.gmra.mrb[10].mxu0 %vm116_vm2, %v11637_v38  ;;  %v27357_v38 = vld [vmem:[#allocation3 + $0x3a] sm:$0xff] }
 0xbf5   :  { %20790 = vmatprep.mubr.msk.f32.mxu0 %vm116_vm2, %v27338_v26  ;;  %20884 = vmatpush3.msra.mxu0 %v27095_v17  ;;  %30468 = vst [vmem:[#allocation8_spill] sm:$0xff] %v27357_v38  ;;  %v27361_v17 = vld [vmem:[#allocation3 + $0x4a] sm:$0xff]  ;;  %v27365_v26 = vld [vmem:[#allocation3 + $0x52] sm:$0xff] }
 0xbf6   :  { %20981 = vmatprep.subr.mxu0 %v27346_v12  ;;  %30469 = vst [vmem:[#allocation9_spill] sm:$0xff] %v27361_v17  ;;  %30470 = vst [vmem:[#allocation65_spill] sm:$0xff] %v27365_v26 }
 0xbf8   :  { %20791 = vmatmul.mubr.msk.f32.gmra.mrb[12].mxu0 %vm116_vm2, %v27349_v18  ;;  %v27369_v18 = vld [vmem:[#allocation3 + $0x62] sm:$0xff] }
 0xbf9   :  { %20793 = vmatprep.mubr.msk.f32.mxu0 %vm116_vm2, %v27353_v40  ;;  %30471 = vst [vmem:[#allocation66_spill] sm:$0xff] %v27369_v18  ;;  %v27373_v40 = vld [vmem:[#allocation3 + $0x6a] sm:$0xff] }
 0xbfa   :  { %30472 = vst [vmem:[#allocation67_spill] sm:$0xff] %v27373_v40 }
 0xbfc   :  { %20794 = vmatmul.mubr.msk.f32.gmra.mrb[14].mxu0 %vm116_vm2, %v27357_v38  ;;  %v27377_v38 = vld [vmem:[#allocation3 + $0x7a] sm:$0xff] }
 0xbfd   :  { %20796 = vmatprep.mubr.msk.f32.mxu0 %vm116_vm2, %v27361_v17  ;;  %30473 = vst [vmem:[#allocation68_spill] sm:$0xff] %v27377_v38  ;;  %v27381_v17 = vld [vmem:[#allocation3 + $0x82] sm:$0xff] }
 0xbfe   :  { %30474 = vst [vmem:[#allocation69_spill] sm:$0xff] %v27381_v17 }
 0xc00   :  { %20797 = vmatmul.mubr.msk.f32.gmra.mrb[16].mxu0 %vm116_vm2, %v27365_v26  ;;  %v27385_v26 = vld [vmem:[#allocation3 + $0x92] sm:$0xff] }
 0xc01   :  { %20799 = vmatprep.mubr.msk.f32.mxu0 %vm116_vm2, %v27369_v18  ;;  %30475 = vst [vmem:[#allocation70_spill] sm:$0xff] %v27385_v26  ;;  %v27389_v18 = vld [vmem:[#allocation3 + $0x9a] sm:$0xff] }
 0xc02   :  { %30476 = vst [vmem:[#allocation71_spill] sm:$0xff] %v27389_v18 }
 0xc04   :  { %20800 = vmatmul.mubr.msk.f32.gmra.mrb[18].mxu0 %vm116_vm2, %v27373_v40  ;;  %v27393_v40 = vld [vmem:[#allocation3 + $0xaa] sm:$0xff] }
 0xc05   :  { %20802 = vmatprep.mubr.msk.f32.mxu0 %vm116_vm2, %v27377_v38  ;;  %30477 = vst [vmem:[#allocation72_spill] sm:$0xff] %v27393_v40  ;;  %v27397_v38 = vld [vmem:[#allocation3 + $0xb2] sm:$0xff] }
 0xc06   :  { %30478 = vst [vmem:[#allocation73_spill] sm:$0xff] %v27397_v38 }
 0xc08   :  { %20803 = vmatmul.mubr.msk.f32.gmra.mrb[20].mxu0 %vm116_vm2, %v27381_v17  ;;  %v27401_v17 = vld [vmem:[#allocation3 + $0xc2] sm:$0xff] }
 0xc09   :  { %20805 = vmatprep.mubr.msk.f32.mxu0 %vm116_vm2, %v27385_v26  ;;  %30479 = vst [vmem:[#allocation10_spill] sm:$0xff] %v27401_v17  ;;  %v27405_v26 = vld [vmem:[#allocation3 + $0xca] sm:$0xff] }
 0xc0a   :  { %30480 = vst [vmem:[#allocation12_spill] sm:$0xff] %v27405_v26 }
 0xc0c   :  { %20806 = vmatmul.mubr.msk.f32.gmra.mrb[22].mxu0 %vm116_vm2, %v27389_v18  ;;  %v27409_v18 = vld [vmem:[#allocation3 + $0xda] sm:$0xff] }
 0xc0d   :  { %20808 = vmatprep.mubr.msk.f32.mxu0 %vm116_vm2, %v27393_v40  ;;  %30481 = vst [vmem:[#allocation11_spill] sm:$0xff] %v27409_v18  ;;  %v27413_v40 = vld [vmem:[#allocation3 + $0xe2] sm:$0xff] }
 0xc0e   :  { %30482 = vst [vmem:[#allocation14_spill] sm:$0xff] %v27413_v40 }
 0xc10   :  { %20809 = vmatmul.mubr.msk.f32.gmra.mrb[24].mxu0 %vm116_vm2, %v27397_v38  ;;  %v27417_v38 = vld [vmem:[#allocation3 + $0xf2] sm:$0xff] }
 0xc11   :  { %20811 = vmatprep.mubr.msk.f32.mxu0 %vm116_vm2, %v27401_v17  ;;  %30483 = vst [vmem:[#allocation13_spill] sm:$0xff] %v27417_v38  ;;  %v27421_v17 = vld [vmem:[#allocation3 + $0xfa] sm:$0xff] }
 0xc12   :  { %30484 = vst [vmem:[#allocation16_spill] sm:$0xff] %v27421_v17 }
 0xc14   :  { %20812 = vmatmul.mubr.msk.f32.gmra.mrb[26].mxu0 %vm116_vm2, %v27405_v26  ;;  %v27425_v26 = vld [vmem:[#allocation3 + $0x10a] sm:$0xff] }
 0xc15   :  { %20814 = vmatprep.mubr.msk.f32.mxu0 %vm116_vm2, %v27409_v18  ;;  %30485 = vst [vmem:[#allocation15_spill] sm:$0xff] %v27425_v26  ;;  %v27429_v18 = vld [vmem:[#allocation3 + $0x112] sm:$0xff] }
 0xc16   :  { %30486 = vst [vmem:[#allocation18_spill] sm:$0xff] %v27429_v18 }
 0xc18   :  { %20815 = vmatmul.mubr.msk.f32.gmra.mrb[28].mxu0 %vm116_vm2, %v27413_v40  ;;  %v27433_v40 = vld [vmem:[#allocation3 + $0x122] sm:$0xff] }
 0xc19   :  { %20817 = vmatprep.mubr.msk.f32.mxu0 %vm116_vm2, %v27417_v38  ;;  %30487 = vst [vmem:[#allocation17_spill] sm:$0xff] %v27433_v40  ;;  %v27437_v38 = vld [vmem:[#allocation3 + $0x12a] sm:$0xff] }
 0xc1a   :  { %30488 = vst [vmem:[#allocation20_spill] sm:$0xff] %v27437_v38 }
 0xc1c   :  { %20818 = vmatmul.mubr.msk.f32.gmra.mrb[30].mxu0 %vm116_vm2, %v27421_v17  ;;  %v27441_v17 = vld [vmem:[#allocation3 + $0x13a] sm:$0xff] }
 0xc1d   :  { %20820 = vmatprep.mubr.msk.f32.mxu0 %vm116_vm2, %v27425_v26  ;;  %30489 = vst [vmem:[#allocation19_spill] sm:$0xff] %v27441_v17  ;;  %v27445_v26 = vld [vmem:[#allocation3 + $0x142] sm:$0xff] }
 0xc1e   :  { %30490 = vst [vmem:[#allocation22_spill] sm:$0xff] %v27445_v26 }
 0xc20   :  { %20821 = vmatmul.mubr.msk.f32.gmra.mrb[32].mxu0 %vm116_vm2, %v27429_v18  ;;  %v27449_v18 = vld [vmem:[#allocation3 + $0x152] sm:$0xff] }
 0xc21   :  { %20823 = vmatprep.mubr.msk.f32.mxu0 %vm116_vm2, %v27433_v40  ;;  %30491 = vst [vmem:[#allocation21_spill] sm:$0xff] %v27449_v18  ;;  %v27453_v40 = vld [vmem:[#allocation3 + $0x15a] sm:$0xff] }
 0xc22   :  { %30492 = vst [vmem:[#allocation24_spill] sm:$0xff] %v27453_v40 }
 0xc24   :  { %20824 = vmatmul.mubr.msk.f32.gmra.mrb[34].mxu0 %vm116_vm2, %v27437_v38  ;;  %v27457_v38 = vld [vmem:[#allocation3 + $0x16a] sm:$0xff] }
 0xc25   :  { %20826 = vmatprep.mubr.msk.f32.mxu0 %vm116_vm2, %v27441_v17  ;;  %30493 = vst [vmem:[#allocation23_spill] sm:$0xff] %v27457_v38  ;;  %v11668_v17 = vld [vmem:[#allocation3 + $0x1b2] sm:$0xff] }
 0xc28   :  { %20827 = vmatmul.mubr.msk.f32.gmra.mrb[36].mxu0 %vm116_vm2, %v27445_v26  ;;  %v11669_v26 = vld [vmem:[#allocation3 + $0x1ba] sm:$0xff] }
 0xc29   :  { %20829 = vmatprep.mubr.msk.f32.mxu0 %vm116_vm2, %v27449_v18  ;;  %v27467_v18 = vld [vmem:[#allocation3 + $0x1ca] sm:$0xff] }
 0xc2c   :  { %20830 = vmatmul.mubr.msk.f32.gmra.mrb[38].mxu0 %vm116_vm2, %v27453_v40  ;;  %v27471_v40 = vld [vmem:[#allocation3 + $0x1d2] sm:$0xff] }
 0xc2d   :  { %20832 = vmatprep.mubr.msk.f32.mxu0 %vm116_vm2, %v27457_v38  ;;  %30495 = vst [vmem:[#allocation45_spill] sm:$0xff] %v27471_v40  ;;  %v27475_v38 = vld [vmem:[#allocation3 + $0x1e2] sm:$0xff] }
 0xc2e   :  { %30496 = vst [vmem:[#allocation25_spill] sm:$0xff] %v27475_v38 }
 0xc30   :  { %20833 = vmatmul.mubr.msk.f32.gmra.mrb[40].mxu0 %vm116_vm2, %v27461_v51  ;;  %v27479_v51 = vld [vmem:[#allocation3 + $0x1ea] sm:$0xff] }
 0xc31   :  { %20835 = vmatprep.mubr.msk.f32.mxu0 %vm116_vm2, %v11668_v17  ;;  %30497 = vst [vmem:[#allocation26_spill] sm:$0xff] %v27479_v51  ;;  %v27487_v17 = vld [vmem:[#allocation3 + $0x202] sm:$0xff] }
 0xc32   :  { %30499 = vst [vmem:[#allocation28_spill] sm:$0xff] %v27487_v17 }
 0xc34   :  { %20836 = vmatmul.mubr.msk.f32.gmra.mrb[42].mxu0 %vm116_vm2, %v11669_v26  ;;  %v27483_v26 = vld [vmem:[#allocation3 + $0x1fa] sm:$0xff] }
 0xc35   :  { %20838 = vmatprep.mubr.msk.f32.mxu0 %vm116_vm2, %v27467_v18  ;;  %30498 = vst [vmem:[#allocation27_spill] sm:$0xff] %v27483_v26 }
 0xc38   :  { %20839 = vmatmul.mubr.msk.f32.gmra.mrb[44].mxu0 %vm116_vm2, %v27471_v40  ;;  %v27491_v40 = vld [vmem:[#allocation3 + $0x212] sm:$0xff] }
 0xc39   :  { %20841 = vmatprep.mubr.msk.f32.mxu0 %vm116_vm2, %v27475_v38  ;;  %30500 = vst [vmem:[#allocation29_spill] sm:$0xff] %v27491_v40  ;;  %v27495_v38 = vld [vmem:[#allocation3 + $0x21a] sm:$0xff] }
 0xc3a   :  { %30501 = vst [vmem:[#allocation30_spill] sm:$0xff] %v27495_v38 }
 0xc3c   :  { %20842 = vmatmul.mubr.msk.f32.gmra.mrb[46].mxu0 %vm116_vm2, %v27479_v51  ;;  %v27499_v51 = vld [vmem:[#allocation3 + $0x22a] sm:$0xff] }
 0xc3d   :  { %20844 = vmatprep.mubr.msk.f32.mxu0 %vm116_vm2, %v27483_v26  ;;  %30502 = vst [vmem:[#allocation31_spill] sm:$0xff] %v27499_v51  ;;  %v27503_v26 = vld [vmem:[#allocation3 + $0x232] sm:$0xff] }
 0xc3e   :  { %30503 = vst [vmem:[#allocation32_spill] sm:$0xff] %v27503_v26 }
 0xc40   :  { %20845 = vmatmul.mubr.msk.f32.gmra.mrb[48].mxu0 %vm116_vm2, %v27487_v17  ;;  %v27507_v17 = vld [vmem:[#allocation3 + $0x242] sm:$0xff] }
 0xc41   :  { %20847 = vmatprep.mubr.msk.f32.mxu0 %vm116_vm2, %v27491_v40  ;;  %30504 = vst [vmem:[#allocation33_spill] sm:$0xff] %v27507_v17  ;;  %v27511_v40 = vld [vmem:[#allocation3 + $0x24a] sm:$0xff] }
 0xc42   :  { %30505 = vst [vmem:[#allocation34_spill] sm:$0xff] %v27511_v40 }
 0xc44   :  { %20848 = vmatmul.mubr.msk.f32.gmra.mrb[50].mxu0 %vm116_vm2, %v27495_v38  ;;  %v27515_v38 = vld [vmem:[#allocation3 + $0x25a] sm:$0xff] }
 0xc45   :  { %20850 = vmatprep.mubr.msk.f32.mxu0 %vm116_vm2, %v27499_v51  ;;  %30506 = vst [vmem:[#allocation35_spill] sm:$0xff] %v27515_v38  ;;  %v27519_v51 = vld [vmem:[#allocation3 + $0x262] sm:$0xff] }
 0xc46   :  { %30507 = vst [vmem:[#allocation36_spill] sm:$0xff] %v27519_v51 }
 0xc48   :  { %20851 = vmatmul.mubr.msk.f32.gmra.mrb[52].mxu0 %vm116_vm2, %v27503_v26  ;;  %v27523_v26 = vld [vmem:[#allocation3 + $0x272] sm:$0xff] }
 0xc49   :  { %20853 = vmatprep.mubr.msk.f32.mxu0 %vm116_vm2, %v27507_v17  ;;  %30508 = vst [vmem:[#allocation37_spill] sm:$0xff] %v27523_v26  ;;  %v27527_v17 = vld [vmem:[#allocation3 + $0x27a] sm:$0xff] }
 0xc4a   :  { %30509 = vst [vmem:[#allocation38_spill] sm:$0xff] %v27527_v17 }
 0xc4c   :  { %20854 = vmatmul.mubr.msk.f32.gmra.mrb[54].mxu0 %vm116_vm2, %v27511_v40  ;;  %v27531_v40 = vld [vmem:[#allocation3 + $0x28a] sm:$0xff] }
 0xc4d   :  { %20856 = vmatprep.mubr.msk.f32.mxu0 %vm116_vm2, %v27515_v38  ;;  %30510 = vst [vmem:[#allocation39_spill] sm:$0xff] %v27531_v40  ;;  %v27535_v38 = vld [vmem:[#allocation3 + $0x292] sm:$0xff] }
 0xc4e   :  { %30511 = vst [vmem:[#allocation40_spill] sm:$0xff] %v27535_v38 }
 0xc50   :  { %20857 = vmatmul.mubr.msk.f32.gmra.mrb[56].mxu0 %vm116_vm2, %v27519_v51  ;;  %v27539_v51 = vld [vmem:[#allocation3 + $0x2a2] sm:$0xff] }
 0xc51   :  { %20859 = vmatprep.mubr.msk.f32.mxu0 %vm116_vm2, %v27523_v26  ;;  %30512 = vst [vmem:[#allocation41_spill] sm:$0xff] %v27539_v51  ;;  %v27543_v26 = vld [vmem:[#allocation3 + $0x2aa] sm:$0xff] }
 0xc52   :  { %30513 = vst [vmem:[#allocation42_spill] sm:$0xff] %v27543_v26 }
 0xc54   :  { %20860 = vmatmul.mubr.msk.f32.gmra.mrb[58].mxu0 %vm116_vm2, %v27527_v17  ;;  %v27547_v17 = vld [vmem:[#allocation3 + $0x2ba] sm:$0xff] }
 0xc55   :  { %20862 = vmatprep.mubr.msk.f32.mxu0 %vm116_vm2, %v27531_v40  ;;  %30514 = vst [vmem:[#allocation43_spill] sm:$0xff] %v27547_v17  ;;  %v27551_v40 = vld [vmem:[#allocation3 + $0x2c2] sm:$0xff] }
 0xc56   :  { %30515 = vst [vmem:[#allocation46_spill] sm:$0xff] %v27551_v40 }
 0xc58   :  { %20863 = vmatmul.mubr.msk.f32.gmra.mrb[60].mxu0 %vm116_vm2, %v27535_v38  ;;  %v27555_v38 = vld [vmem:[#allocation3 + $0x2d2] sm:$0xff] }
 0xc59   :  { %20865 = vmatprep.mubr.msk.f32.mxu0 %vm116_vm2, %v27539_v51  ;;  %30516 = vst [vmem:[#allocation47_spill] sm:$0xff] %v27555_v38  ;;  %v27559_v51 = vld [vmem:[#allocation3 + $0x2da] sm:$0xff] }
 0xc5a   :  { %30517 = vst [vmem:[#allocation48_spill] sm:$0xff] %v27559_v51 }
 0xc5c   :  { %20866 = vmatmul.mubr.msk.f32.gmra.mrb[62].mxu0 %vm116_vm2, %v27543_v26  ;;  %v27563_v26 = vld [vmem:[#allocation3 + $0x2ea] sm:$0xff] }
 0xc5d   :  { %20868 = vmatprep.mubr.msk.f32.mxu0 %vm116_vm2, %v27547_v17  ;;  %30518 = vst [vmem:[#allocation49_spill] sm:$0xff] %v27563_v26  ;;  %v27567_v17 = vld [vmem:[#allocation3 + $0x2f2] sm:$0xff] }
 0xc60   :  { %20869 = vmatmul.mubr.msk.f32.gmra.mrb[64].mxu0 %vm116_vm2, %v27551_v40  ;;  %v27571_v40 = vld [vmem:[#allocation3 + $0x302] sm:$0xff] }
 0xc61   :  { %20871 = vmatprep.mubr.msk.f32.mxu0 %vm116_vm2, %v27555_v38  ;;  %v27575_v38 = vld [vmem:[#allocation3 + $0x30a] sm:$0xff] }
 0xc64   :  { %20872 = vmatmul.mubr.msk.f32.gmra.mrb[66].mxu0 %vm116_vm2, %v27559_v51  ;;  %v27579_v51 = vld [vmem:[#allocation3 + $0x31a] sm:$0xff] }
 0xc65   :  { %20874 = vmatprep.mubr.msk.f32.mxu0 %vm116_vm2, %v27563_v26  ;;  %30519 = vst [vmem:[#allocation50_spill] sm:$0xff] %v27579_v51  ;;  %v27583_v26 = vld [vmem:[#allocation3 + $0x322] sm:$0xff] }
 0xc68   :  { %20875 = vmatmul.mubr.msk.f32.gmra.mrb[68].mxu0 %vm116_vm2, %v27567_v17 }
 0xc69   :  { %20877 = vmatprep.mubr.msk.f32.mxu0 %vm116_vm2, %v27571_v40 }
 0xc6c   :  { %20878 = vmatmul.mubr.msk.f32.gmra.mrb[70].mxu0 %vm116_vm2, %v27575_v38 }
 0xc6d   :  { %20880 = vmatprep.mubr.msk.f32.mxu0 %vm116_vm2, %v27579_v51  ;;  %v27597_v51 = vld [vmem:[%s29947_s7 + $0x28] sm:$0xff] }
 0xc70   :  { %20881 = vmatmul.mubr.msk.f32.gmra.mrb[72].mxu0 %vm116_vm2, %v27583_v26 }
 0xc71   :  { %20885 = vmatprep.mubr.msk.f32.mxu0 %vm116_vm2, %v27087_v1  ;;  %v27654_v1 = vld [vmem:[#allocation3 + $0x180] sm:$0xff] }
 0xc74   :  { %20886 = vmatmul.mubr.msk.f32.vlgmr.msra.gmra.mrb[10].mxu0 %vm116_vm2, %v27098_v15  ;;  %v27658_v15 = vld [vmem:[#allocation3 + $0x188] sm:$0xff] }
 0xc75   :  { %20888 = vmatprep.mubr.msk.f32.mxu0 %vm116_vm2, %v27102_v21  ;;  %20982 = vmatpush3.msra.mxu0 %v27346_v12  ;;  %v30520_v21 = vld [vmem:[#allocation62_spill] sm:$0xff]  ;;  %v27925_v12 = vld [vmem:[#allocation3 + $0x2a1] sm:$0xff] }
 0xc76   :  { %21079 = vmatprep.subr.mxu0 %v27597_v51  ;;  %30523 = vst [vmem:[#allocation51_spill] sm:$0xff] %v27925_v12 }
 0xc78   :  { %20889 = vmatmul.mubr.msk.f32.gmra.mrb[12].mxu0 %vm116_vm2, %v27106_v13  ;;  %v30521_v13 = vld [vmem:[#allocation63_spill] sm:$0xff] }
 0xc79   :  { %20891 = vmatprep.mubr.msk.f32.mxu0 %vm116_vm2, %v27110_v59  ;;  %v30522_v59 = vld [vmem:[#allocation64_spill] sm:$0xff] }
 0xc7c   :  { %20892 = vmatmul.mubr.msk.f32.gmra.mrb[14].mxu0 %vm116_vm2, %v27114_v30  ;;  %v27722_v30 = vld [vmem:[#allocation3 + $0x330] sm:$0xff] }
 0xc7d   :  { %20894 = vmatprep.mubr.msk.f32.mxu0 %vm116_vm2, %v27118_v23  ;;  %v27726_v23 = vld [vmem:[#allocation3 + $0x338] sm:$0xff] }
 0xc80   :  { %20895 = vmatmul.mubr.msk.f32.gmra.mrb[16].mxu0 %vm116_vm2, %v27122_v45  ;;  %v13050_v45 = vld [vmem:[#allocation3 + $0x19] sm:$0xff] }
 0xc81   :  { %20897 = vmatprep.mubr.msk.f32.mxu0 %vm116_vm2, %v27126_v24  ;;  %v13051_v24 = vld [vmem:[#allocation3 + $0x21] sm:$0xff] }
 0xc84   :  { %20898 = vmatmul.mubr.msk.f32.gmra.mrb[18].mxu0 %vm116_vm2, %v27130_v31  ;;  %v27732_v31 = vld [vmem:[#allocation3 + $0x31] sm:$0xff] }
 0xc85   :  { %20900 = vmatprep.mubr.msk.f32.mxu0 %vm116_vm2, %v27134_v4  ;;  %v27740_v4 = vld [vmem:[%s29947_s7 + $0x30] sm:$0xff] }
 0xc88   :  { %20901 = vmatmul.mubr.msk.f32.gmra.mrb[20].mxu0 %vm116_vm2, %v27138_v61  ;;  %v27743_v61 = vld [vmem:[#allocation3 + $0x39] sm:$0xff] }
 0xc89   :  { %20903 = vmatprep.mubr.msk.f32.mxu0 %vm116_vm2, %v27142_v7  ;;  %v27747_v7 = vld [vmem:[#allocation3 + $0x49] sm:$0xff] }
 0xc8c   :  { %20904 = vmatmul.mubr.msk.f32.gmra.mrb[22].mxu0 %vm116_vm2, %v27146_v48  ;;  %v27751_v48 = vld [vmem:[#allocation3 + $0x51] sm:$0xff] }
 0xc8d   :  { %20906 = vmatprep.mubr.msk.f32.mxu0 %vm116_vm2, %v27150_v60  ;;  %v27755_v60 = vld [vmem:[#allocation3 + $0x61] sm:$0xff] }
 0xc90   :  { %20907 = vmatmul.mubr.msk.f32.gmra.mrb[24].mxu0 %vm116_vm2, %v27154_v46  ;;  %v27759_v46 = vld [vmem:[#allocation3 + $0x69] sm:$0xff] }
 0xc91   :  { %20909 = vmatprep.mubr.msk.f32.mxu0 %vm116_vm2, %v27158_v62  ;;  %v27763_v62 = vld [vmem:[#allocation3 + $0x79] sm:$0xff] }
 0xc94   :  { %20910 = vmatmul.mubr.msk.f32.gmra.mrb[26].mxu0 %vm116_vm2, %v27162_v57  ;;  %v27767_v57 = vld [vmem:[#allocation3 + $0x81] sm:$0xff] }
 0xc95   :  { %20912 = vmatprep.mubr.msk.f32.mxu0 %vm116_vm2, %v27166_v6  ;;  %v27771_v6 = vld [vmem:[#allocation3 + $0x91] sm:$0xff] }
 0xc98   :  { %20913 = vmatmul.mubr.msk.f32.gmra.mrb[28].mxu0 %vm116_vm2, %v27170_v41  ;;  %v27775_v41 = vld [vmem:[#allocation3 + $0x99] sm:$0xff] }
 0xc99   :  { %20915 = vmatprep.mubr.msk.f32.mxu0 %vm116_vm2, %v27174_v34  ;;  %v27779_v34 = vld [vmem:[#allocation3 + $0xa9] sm:$0xff] }
 0xc9c   :  { %20916 = vmatmul.mubr.msk.f32.gmra.mrb[30].mxu0 %vm116_vm2, %v27178_v2  ;;  %v27783_v2 = vld [vmem:[#allocation3 + $0xb1] sm:$0xff] }
 0xc9d   :  { %20918 = vmatprep.mubr.msk.f32.mxu0 %vm116_vm2, %v27182_v22  ;;  %v27787_v22 = vld [vmem:[#allocation3 + $0xc1] sm:$0xff] }
 0xca0   :  { %20919 = vmatmul.mubr.msk.f32.gmra.mrb[32].mxu0 %vm116_vm2, %v27186_v29  ;;  %v27791_v29 = vld [vmem:[#allocation3 + $0xc9] sm:$0xff] }
 0xca1   :  { %20921 = vmatprep.mubr.msk.f32.mxu0 %vm116_vm2, %v27190_v49  ;;  %v27795_v49 = vld [vmem:[#allocation3 + $0xd9] sm:$0xff] }
 0xca4   :  { %20922 = vmatmul.mubr.msk.f32.gmra.mrb[34].mxu0 %vm116_vm2, %v27194_v0  ;;  %v27799_v0 = vld [vmem:[#allocation3 + $0xe1] sm:$0xff] }
 0xca5   :  { %20924 = vmatprep.mubr.msk.f32.mxu0 %vm116_vm2, %v27198_v19  ;;  %v27803_v19 = vld [vmem:[#allocation3 + $0xf1] sm:$0xff] }
 0xca8   :  { %20925 = vmatmul.mubr.msk.f32.gmra.mrb[36].mxu0 %vm116_vm2, %v27202_v47  ;;  %v27807_v47 = vld [vmem:[#allocation3 + $0xf9] sm:$0xff] }
 0xca9   :  { %20927 = vmatprep.mubr.msk.f32.mxu0 %vm116_vm2, %v27206_v58  ;;  %v27811_v58 = vld [vmem:[#allocation3 + $0x109] sm:$0xff] }
 0xcac   :  { %20928 = vmatmul.mubr.msk.f32.gmra.mrb[38].mxu0 %vm116_vm2, %v27210_v37  ;;  %v27815_v37 = vld [vmem:[#allocation3 + $0x111] sm:$0xff] }
 0xcad   :  { %20930 = vmatprep.mubr.msk.f32.mxu0 %vm116_vm2, %v27654_v1 }
 0xcb0   :  { %20931 = vmatmul.mubr.msk.f32.gmra.mrb[40].mxu0 %vm116_vm2, %v27658_v15 }
 0xcb1   :  { %20933 = vmatprep.mubr.msk.f32.mxu0 %vm116_vm2, %v27216_v52  ;;  %v27819_v52 = vld [vmem:[#allocation3 + $0x121] sm:$0xff] }
 0xcb4   :  { %20934 = vmatmul.mubr.msk.f32.gmra.mrb[42].mxu0 %vm116_vm2, %v27220_v63  ;;  %v27823_v63 = vld [vmem:[#allocation3 + $0x129] sm:$0xff] }
 0xcb5   :  { %20936 = vmatprep.mubr.msk.f32.mxu0 %vm116_vm2, %v27224_v32  ;;  %v27827_v32 = vld [vmem:[#allocation3 + $0x139] sm:$0xff] }
 0xcb8   :  { %20937 = vmatmul.mubr.msk.f32.gmra.mrb[44].mxu0 %vm116_vm2, %v27228_v27  ;;  %v27831_v27 = vld [vmem:[#allocation3 + $0x141] sm:$0xff] }
 0xcb9   :  { %20939 = vmatprep.mubr.msk.f32.mxu0 %vm116_vm2, %v27232_v55  ;;  %v27835_v55 = vld [vmem:[#allocation3 + $0x151] sm:$0xff] }
 0xcbc   :  { %20940 = vmatmul.mubr.msk.f32.gmra.mrb[46].mxu0 %vm116_vm2, %v27236_v42  ;;  %v27839_v42 = vld [vmem:[#allocation3 + $0x159] sm:$0xff] }
 0xcbd   :  { %20942 = vmatprep.mubr.msk.f32.mxu0 %vm116_vm2, %v27240_v44  ;;  %v27843_v44 = vld [vmem:[#allocation3 + $0x169] sm:$0xff] }
 0xcc0   :  { %20943 = vmatmul.mubr.msk.f32.gmra.mrb[48].mxu0 %vm116_vm2, %v27244_v14  ;;  %v27847_v14 = vld [vmem:[#allocation3 + $0x171] sm:$0xff] }
 0xcc1   :  { %20945 = vmatprep.mubr.msk.f32.mxu0 %vm116_vm2, %v27248_v43  ;;  %v27851_v43 = vld [vmem:[#allocation3 + $0x181] sm:$0xff] }
 0xcc4   :  { %20946 = vmatmul.mubr.msk.f32.gmra.mrb[50].mxu0 %vm116_vm2, %v27252_v28  ;;  %v27855_v28 = vld [vmem:[#allocation3 + $0x189] sm:$0xff] }
 0xcc5   :  { %20948 = vmatprep.mubr.msk.f32.mxu0 %vm116_vm2, %v27256_v33  ;;  %v13082_v33 = vld [vmem:[#allocation3 + $0x1c9] sm:$0xff] }
 0xcc8   :  { %20949 = vmatmul.mubr.msk.f32.gmra.mrb[52].mxu0 %vm116_vm2, %v27260_v9  ;;  %v13083_v9 = vld [vmem:[#allocation3 + $0x1d1] sm:$0xff] }
 0xcc9   :  { %20951 = vmatprep.mubr.msk.f32.mxu0 %vm116_vm2, %v27264_v56  ;;  %v27861_v56 = vld [vmem:[#allocation3 + $0x1e1] sm:$0xff] }
 0xccc   :  { %20952 = vmatmul.mubr.msk.f32.gmra.mrb[54].mxu0 %vm116_vm2, %v27268_v25  ;;  %v27865_v25 = vld [vmem:[#allocation3 + $0x1e9] sm:$0xff] }
 0xccd   :  { %20954 = vmatprep.mubr.msk.f32.mxu0 %vm116_vm2, %v27272_v16  ;;  %v27869_v16 = vld [vmem:[#allocation3 + $0x1f9] sm:$0xff] }
 0xcd0   :  { %20955 = vmatmul.mubr.msk.f32.gmra.mrb[56].mxu0 %vm116_vm2, %v27276_v54  ;;  %v27873_v54 = vld [vmem:[#allocation3 + $0x201] sm:$0xff] }
 0xcd1   :  { %20957 = vmatprep.mubr.msk.f32.mxu0 %vm116_vm2, %v27280_v53  ;;  %v27877_v53 = vld [vmem:[#allocation3 + $0x211] sm:$0xff] }
 0xcd4   :  { %20958 = vmatmul.mubr.msk.f32.gmra.mrb[58].mxu0 %vm116_vm2, %v27284_v36  ;;  %v27881_v36 = vld [vmem:[#allocation3 + $0x219] sm:$0xff] }
 0xcd5   :  { %20960 = vmatprep.mubr.msk.f32.mxu0 %vm116_vm2, %v27288_v8  ;;  %v27885_v8 = vld [vmem:[#allocation3 + $0x229] sm:$0xff] }
 0xcd8   :  { %20961 = vmatmul.mubr.msk.f32.gmra.mrb[60].mxu0 %vm116_vm2, %v27292_v50  ;;  %v27889_v50 = vld [vmem:[#allocation3 + $0x231] sm:$0xff] }
 0xcd9   :  { %20963 = vmatprep.mubr.msk.f32.mxu0 %vm116_vm2, %v27296_v35  ;;  %v27893_v35 = vld [vmem:[#allocation3 + $0x241] sm:$0xff] }
 0xcdc   :  { %20964 = vmatmul.mubr.msk.f32.gmra.mrb[62].mxu0 %vm116_vm2, %v27300_v5  ;;  %v27897_v5 = vld [vmem:[#allocation3 + $0x249] sm:$0xff] }
 0xcdd   :  { %20966 = vmatprep.mubr.msk.f32.mxu0 %vm116_vm2, %v27304_v3  ;;  %v27901_v3 = vld [vmem:[#allocation3 + $0x259] sm:$0xff] }
 0xce0   :  { %20967 = vmatmul.mubr.msk.f32.gmra.mrb[64].mxu0 %vm116_vm2, %v27308_v39  ;;  %v27905_v39 = vld [vmem:[#allocation3 + $0x261] sm:$0xff] }
 0xce1   :  { %20969 = vmatprep.mubr.msk.f32.mxu0 %vm116_vm2, %v27312_v11  ;;  %v27909_v11 = vld [vmem:[#allocation3 + $0x271] sm:$0xff] }
 0xce4   :  { %20970 = vmatmul.mubr.msk.f32.gmra.mrb[66].mxu0 %vm116_vm2, %v27316_v10  ;;  %v27913_v10 = vld [vmem:[#allocation3 + $0x279] sm:$0xff] }
 0xce5   :  { %20972 = vmatprep.mubr.msk.f32.mxu0 %vm116_vm2, %v27320_v20  ;;  %v27917_v20 = vld [vmem:[#allocation3 + $0x289] sm:$0xff] }
 0xce8   :  { %20973 = vmatmul.mubr.msk.f32.gmra.mrb[68].mxu0 %vm116_vm2, %v30520_v21  ;;  %v27929_v21 = vld [vmem:[#allocation3 + $0x2a9] sm:$0xff] }
 0xce9   :  { %20975 = vmatprep.mubr.msk.f32.mxu0 %vm116_vm2, %v30521_v13  ;;  %30524 = vst [vmem:[#allocation52_spill] sm:$0xff] %v27929_v21  ;;  %v27933_v13 = vld [vmem:[#allocation3 + $0x2b9] sm:$0xff] }
 0xcea   :  { %30525 = vst [vmem:[#allocation53_spill] sm:$0xff] %v27933_v13 }
 0xcec   :  { %20976 = vmatmul.mubr.msk.f32.gmra.mrb[70].mxu0 %vm116_vm2, %v30522_v59  ;;  %v27937_v59 = vld [vmem:[#allocation3 + $0x2c1] sm:$0xff] }
 0xced   :  { %20978 = vmatprep.mubr.msk.f32.mxu0 %vm116_vm2, %v27722_v30  ;;  %30526 = vst [vmem:[#allocation54_spill] sm:$0xff] %v27937_v59 }
 0xcf0   :  { %20979 = vmatmul.mubr.msk.f32.gmra.mrb[72].mxu0 %vm116_vm2, %v27726_v23 }
 0xcf1   :  { %20983 = vmatprep.mubr.msk.f32.mxu0 %vm116_vm2, %v13050_v45  ;;  %v27941_v45 = vld [vmem:[#allocation3 + $0x2d1] sm:$0xff] }
 0xcf2   :  { %30527 = vst [vmem:[#allocation55_spill] sm:$0xff] %v27941_v45 }
 0xcf4   :  { %20984 = vmatmul.mubr.msk.f32.vlgmr.msra.gmra.mrb[10].mxu0 %vm116_vm2, %v13051_v24  ;;  %v27945_v24 = vld [vmem:[#allocation3 + $0x2d9] sm:$0xff] }
 0xcf5   :  { %20986 = vmatprep.mubr.msk.f32.mxu0 %vm116_vm2, %v27732_v31  ;;  %21080 = vmatpush3.msra.mxu0 %v27597_v51  ;;  %v27921_v51 = vld [vmem:[#allocation3 + $0x291] sm:$0xff]  ;;  %30528 = vst [vmem:[#allocation56_spill] sm:$0xff] %v27945_v24 }
 0xcf6   :  { %21177 = vmatprep.subr.mxu0 %v27740_v4 }
 0xcf8   :  { %20987 = vmatmul.mubr.msk.f32.gmra.mrb[12].mxu0 %vm116_vm2, %v27743_v61 }
 0xcf9   :  { %20989 = vmatprep.mubr.msk.f32.mxu0 %vm116_vm2, %v27747_v7 }
 0xcfc   :  { %20990 = vmatmul.mubr.msk.f32.gmra.mrb[14].mxu0 %vm116_vm2, %v27751_v48 }
 0xcfd   :  { %20992 = vmatprep.mubr.msk.f32.mxu0 %vm116_vm2, %v27755_v60 }
 0xd00   :  { %20993 = vmatmul.mubr.msk.f32.gmra.mrb[16].mxu0 %vm116_vm2, %v27759_v46 }
 0xd01   :  { %20995 = vmatprep.mubr.msk.f32.mxu0 %vm116_vm2, %v27763_v62 }
 0xd04   :  { %20996 = vmatmul.mubr.msk.f32.gmra.mrb[18].mxu0 %vm116_vm2, %v27767_v57 }
 0xd05   :  { %20998 = vmatprep.mubr.msk.f32.mxu0 %vm116_vm2, %v27771_v6 }
 0xd08   :  { %20999 = vmatmul.mubr.msk.f32.gmra.mrb[20].mxu0 %vm116_vm2, %v27775_v41 }
 0xd09   :  { %21001 = vmatprep.mubr.msk.f32.mxu0 %vm116_vm2, %v27779_v34 }
 0xd0c   :  { %21002 = vmatmul.mubr.msk.f32.gmra.mrb[22].mxu0 %vm116_vm2, %v27783_v2 }
 0xd0d   :  { %21004 = vmatprep.mubr.msk.f32.mxu0 %vm116_vm2, %v27787_v22 }
 0xd10   :  { %21005 = vmatmul.mubr.msk.f32.gmra.mrb[24].mxu0 %vm116_vm2, %v27791_v29 }
 0xd11   :  { %21007 = vmatprep.mubr.msk.f32.mxu0 %vm116_vm2, %v27795_v49 }
 0xd14   :  { %21008 = vmatmul.mubr.msk.f32.gmra.mrb[26].mxu0 %vm116_vm2, %v27799_v0 }
 0xd15   :  { %21010 = vmatprep.mubr.msk.f32.mxu0 %vm116_vm2, %v27803_v19 }
 0xd18   :  { %21011 = vmatmul.mubr.msk.f32.gmra.mrb[28].mxu0 %vm116_vm2, %v27807_v47 }
 0xd19   :  { %21013 = vmatprep.mubr.msk.f32.mxu0 %vm116_vm2, %v27811_v58 }
 0xd1c   :  { %21014 = vmatmul.mubr.msk.f32.gmra.mrb[30].mxu0 %vm116_vm2, %v27815_v37 }
 0xd1d   :  { %21016 = vmatprep.mubr.msk.f32.mxu0 %vm116_vm2, %v27819_v52 }
 0xd20   :  { %21017 = vmatmul.mubr.msk.f32.gmra.mrb[32].mxu0 %vm116_vm2, %v27823_v63 }
 0xd21   :  { %21019 = vmatprep.mubr.msk.f32.mxu0 %vm116_vm2, %v27827_v32 }
 0xd24   :  { %21020 = vmatmul.mubr.msk.f32.gmra.mrb[34].mxu0 %vm116_vm2, %v27831_v27 }
 0xd25   :  { %21022 = vmatprep.mubr.msk.f32.mxu0 %vm116_vm2, %v27835_v55 }
 0xd28   :  { %21023 = vmatmul.mubr.msk.f32.gmra.mrb[36].mxu0 %vm116_vm2, %v27839_v42 }
 0xd29   :  { %21025 = vmatprep.mubr.msk.f32.mxu0 %vm116_vm2, %v27843_v44 }
 0xd2c   :  { %21026 = vmatmul.mubr.msk.f32.gmra.mrb[38].mxu0 %vm116_vm2, %v27847_v14 }
 0xd2d   :  { %21028 = vmatprep.mubr.msk.f32.mxu0 %vm116_vm2, %v27851_v43 }
 0xd30   :  { %21029 = vmatmul.mubr.msk.f32.gmra.mrb[40].mxu0 %vm116_vm2, %v27855_v28 }
 0xd31   :  { %21031 = vmatprep.mubr.msk.f32.mxu0 %vm116_vm2, %v13082_v33  ;;  %v27949_v33 = vld [vmem:[#allocation3 + $0x2e9] sm:$0xff] }
 0xd32   :  { %30529 = vst [vmem:[#allocation57_spill] sm:$0xff] %v27949_v33 }
 0xd34   :  { %21032 = vmatmul.mubr.msk.f32.gmra.mrb[42].mxu0 %vm116_vm2, %v13083_v9  ;;  %v27953_v9 = vld [vmem:[#allocation3 + $0x2f1] sm:$0xff] }
 0xd35   :  { %21034 = vmatprep.mubr.msk.f32.mxu0 %vm116_vm2, %v27861_v56  ;;  %30530 = vst [vmem:[#allocation58_spill] sm:$0xff] %v27953_v9 }
 0xd38   :  { %21035 = vmatmul.mubr.msk.f32.gmra.mrb[44].mxu0 %vm116_vm2, %v27865_v25 }
 0xd39   :  { %21037 = vmatprep.mubr.msk.f32.mxu0 %vm116_vm2, %v27869_v16 }
 0xd3c   :  { %21038 = vmatmul.mubr.msk.f32.gmra.mrb[46].mxu0 %vm116_vm2, %v27873_v54 }
 0xd3d   :  { %21040 = vmatprep.mubr.msk.f32.mxu0 %vm116_vm2, %v27877_v53 }
 0xd40   :  { %21041 = vmatmul.mubr.msk.f32.gmra.mrb[48].mxu0 %vm116_vm2, %v27881_v36 }
 0xd41   :  { %21043 = vmatprep.mubr.msk.f32.mxu0 %vm116_vm2, %v27885_v8 }
 0xd44   :  { %21044 = vmatmul.mubr.msk.f32.gmra.mrb[50].mxu0 %vm116_vm2, %v27889_v50 }
 0xd45   :  { %21046 = vmatprep.mubr.msk.f32.mxu0 %vm116_vm2, %v27893_v35 }
 0xd48   :  { %21047 = vmatmul.mubr.msk.f32.gmra.mrb[52].mxu0 %vm116_vm2, %v27897_v5 }
 0xd49   :  { %21049 = vmatprep.mubr.msk.f32.mxu0 %vm116_vm2, %v27901_v3 }
 0xd4c   :  { %21050 = vmatmul.mubr.msk.f32.gmra.mrb[54].mxu0 %vm116_vm2, %v27905_v39 }
 0xd4d   :  { %21052 = vmatprep.mubr.msk.f32.mxu0 %vm116_vm2, %v27909_v11 }
 0xd50   :  { %21053 = vmatmul.mubr.msk.f32.gmra.mrb[56].mxu0 %vm116_vm2, %v27913_v10 }
 0xd51   :  { %21055 = vmatprep.mubr.msk.f32.mxu0 %vm116_vm2, %v27917_v20 }
 0xd54   :  { %21056 = vmatmul.mubr.msk.f32.gmra.mrb[58].mxu0 %vm116_vm2, %v27921_v51 }
 0xd55   :  { %21058 = vmatprep.mubr.msk.f32.mxu0 %vm116_vm2, %v27925_v12  ;;  %v30547_v12 = vld [vmem:[#allocation70_spill] sm:$0xff] }
 0xd58   :  { %21059 = vmatmul.mubr.msk.f32.gmra.mrb[60].mxu0 %vm116_vm2, %v27929_v21  ;;  %v30546_v21 = vld [vmem:[#allocation69_spill] sm:$0xff] }
 0xd59   :  { %21061 = vmatprep.mubr.msk.f32.mxu0 %vm116_vm2, %v27933_v13  ;;  %v30538_v13 = vld [vmem:[#allocation7_spill] sm:$0xff] }
 0xd5c   :  { %21062 = vmatmul.mubr.msk.f32.gmra.mrb[62].mxu0 %vm116_vm2, %v27937_v59  ;;  %v27957_v59 = vld [vmem:[#allocation3 + $0x301] sm:$0xff] }
 0xd5d   :  { %21064 = vmatprep.mubr.msk.f32.mxu0 %vm116_vm2, %v27941_v45  ;;  %30531 = vst [vmem:[#allocation59_spill] sm:$0xff] %v27957_v59  ;;  %v27961_v45 = vld [vmem:[#allocation3 + $0x309] sm:$0xff] }
 0xd5e   :  { %30532 = vst [vmem:[#allocation60_spill] sm:$0xff] %v27961_v45 }
 0xd60   :  { %21065 = vmatmul.mubr.msk.f32.gmra.mrb[64].mxu0 %vm116_vm2, %v27945_v24  ;;  %v27965_v24 = vld [vmem:[#allocation3 + $0x319] sm:$0xff] }
 0xd61   :  { %21067 = vmatprep.mubr.msk.f32.mxu0 %vm116_vm2, %v27949_v33  ;;  %30533 = vst [vmem:[#allocation61_spill] sm:$0xff] %v27965_v24  ;;  %v27969_v33 = vld [vmem:[#allocation3 + $0x321] sm:$0xff] }
 0xd62   :  { %30534 = vst [vmem:[#allocation62_spill] sm:$0xff] %v27969_v33 }
 0xd64   :  { %21068 = vmatmul.mubr.msk.f32.gmra.mrb[66].mxu0 %vm116_vm2, %v27953_v9  ;;  %v27973_v9 = vld [vmem:[#allocation3 + $0x331] sm:$0xff] }
 0xd65   :  { %21070 = vmatprep.mubr.msk.f32.mxu0 %vm116_vm2, %v27957_v59  ;;  %30535 = vst [vmem:[#allocation63_spill] sm:$0xff] %v27973_v9  ;;  %v27977_v59 = vld [vmem:[#allocation3 + $0x339] sm:$0xff] }
 0xd66   :  { %30536 = vst [vmem:[#allocation64_spill] sm:$0xff] %v27977_v59 }
 0xd68   :  { %21071 = vmatmul.mubr.msk.f32.gmra.mrb[68].mxu0 %vm116_vm2, %v27961_v45  ;;  %v30537_v45 = vld [vmem:[#allocation5_spill] sm:$0xff] }
 0xd69   :  { %21073 = vmatprep.mubr.msk.f32.mxu0 %vm116_vm2, %v27965_v24  ;;  %v30539_v24 = vld [vmem:[#allocation6_spill] sm:$0xff] }
 0xd6c   :  { %21074 = vmatmul.mubr.msk.f32.gmra.mrb[70].mxu0 %vm116_vm2, %v27969_v33  ;;  %v30540_v33 = vld [vmem:[#allocation8_spill] sm:$0xff] }
 0xd6d   :  { %21076 = vmatprep.mubr.msk.f32.mxu0 %vm116_vm2, %v27973_v9  ;;  %v27991_v9 = vld [vmem:[%s29947_s7 + $0x38] sm:$0xff] }
 0xd70   :  { %21077 = vmatmul.mubr.msk.f32.gmra.mrb[72].mxu0 %vm116_vm2, %v27977_v59  ;;  %v30541_v59 = vld [vmem:[#allocation9_spill] sm:$0xff] }
 0xd71   :  { %21081 = vmatprep.mubr.msk.f32.mxu0 %vm116_vm2, %v30537_v45  ;;  %v30542_v45 = vld [vmem:[#allocation65_spill] sm:$0xff] }
 0xd74   :  { %21082 = vmatmul.mubr.msk.f32.vlgmr.msra.gmra.mrb[10].mxu0 %vm116_vm2, %v30538_v13  ;;  %v30543_v13 = vld [vmem:[#allocation66_spill] sm:$0xff] }
 0xd75   :  { %21084 = vmatprep.mubr.msk.f32.mxu0 %vm116_vm2, %v30539_v24  ;;  %21178 = vmatpush3.msra.mxu0 %v27740_v4  ;;  %v30544_v4 = vld [vmem:[#allocation67_spill] sm:$0xff]  ;;  %v30545_v24 = vld [vmem:[#allocation68_spill] sm:$0xff] }
 0xd76   :  { %21275 = vmatprep.subr.mxu0 %v27991_v9 }
 0xd78   :  { %21085 = vmatmul.mubr.msk.f32.gmra.mrb[12].mxu0 %vm116_vm2, %v30540_v33  ;;  %v30548_v33 = vld [vmem:[#allocation71_spill] sm:$0xff] }
 0xd79   :  { %21087 = vmatprep.mubr.msk.f32.mxu0 %vm116_vm2, %v30541_v59  ;;  %v30549_v59 = vld [vmem:[#allocation72_spill] sm:$0xff] }
 0xd7c   :  { %21088 = vmatmul.mubr.msk.f32.gmra.mrb[14].mxu0 %vm116_vm2, %v30542_v45  ;;  %v30550_v45 = vld [vmem:[#allocation73_spill] sm:$0xff] }
 0xd7d   :  { %21090 = vmatprep.mubr.msk.f32.mxu0 %vm116_vm2, %v30543_v13  ;;  %v30551_v13 = vld [vmem:[#allocation10_spill] sm:$0xff] }
 0xd80   :  { %21091 = vmatmul.mubr.msk.f32.gmra.mrb[16].mxu0 %vm116_vm2, %v30544_v4  ;;  %v30552_v4 = vld [vmem:[#allocation12_spill] sm:$0xff] }
 0xd81   :  { %21093 = vmatprep.mubr.msk.f32.mxu0 %vm116_vm2, %v30545_v24  ;;  %v30553_v24 = vld [vmem:[#allocation11_spill] sm:$0xff] }
 0xd84   :  { %21094 = vmatmul.mubr.msk.f32.gmra.mrb[18].mxu0 %vm116_vm2, %v30546_v21  ;;  %v30554_v21 = vld [vmem:[#allocation14_spill] sm:$0xff] }
 0xd85   :  { %21096 = vmatprep.mubr.msk.f32.mxu0 %vm116_vm2, %v30547_v12  ;;  %v30555_v12 = vld [vmem:[#allocation13_spill] sm:$0xff] }
 0xd88   :  { %21097 = vmatmul.mubr.msk.f32.gmra.mrb[20].mxu0 %vm116_vm2, %v30548_v33  ;;  %v30556_v33 = vld [vmem:[#allocation16_spill] sm:$0xff] }
 0xd89   :  { %21099 = vmatprep.mubr.msk.f32.mxu0 %vm116_vm2, %v30549_v59  ;;  %v30557_v59 = vld [vmem:[#allocation15_spill] sm:$0xff] }
 0xd8c   :  { %21100 = vmatmul.mubr.msk.f32.gmra.mrb[22].mxu0 %vm116_vm2, %v30550_v45  ;;  %v30558_v45 = vld [vmem:[#allocation18_spill] sm:$0xff] }
 0xd8d   :  { %21102 = vmatprep.mubr.msk.f32.mxu0 %vm116_vm2, %v30551_v13  ;;  %v30559_v13 = vld [vmem:[#allocation17_spill] sm:$0xff] }
 0xd90   :  { %21103 = vmatmul.mubr.msk.f32.gmra.mrb[24].mxu0 %vm116_vm2, %v30552_v4  ;;  %v30560_v4 = vld [vmem:[#allocation20_spill] sm:$0xff] }
 0xd91   :  { %21105 = vmatprep.mubr.msk.f32.mxu0 %vm116_vm2, %v30553_v24  ;;  %v30561_v24 = vld [vmem:[#allocation19_spill] sm:$0xff] }
 0xd94   :  { %21106 = vmatmul.mubr.msk.f32.gmra.mrb[26].mxu0 %vm116_vm2, %v30554_v21  ;;  %v30562_v21 = vld [vmem:[#allocation22_spill] sm:$0xff] }
 0xd95   :  { %21108 = vmatprep.mubr.msk.f32.mxu0 %vm116_vm2, %v30555_v12  ;;  %v30563_v12 = vld [vmem:[#allocation21_spill] sm:$0xff] }
 0xd98   :  { %21109 = vmatmul.mubr.msk.f32.gmra.mrb[28].mxu0 %vm116_vm2, %v30556_v33  ;;  %v30564_v33 = vld [vmem:[#allocation24_spill] sm:$0xff] }
 0xd99   :  { %21111 = vmatprep.mubr.msk.f32.mxu0 %vm116_vm2, %v30557_v59  ;;  %v30565_v59 = vld [vmem:[#allocation23_spill] sm:$0xff] }
 0xd9c   :  { %21112 = vmatmul.mubr.msk.f32.gmra.mrb[30].mxu0 %vm116_vm2, %v30558_v45  ;;  %v30566_v45 = vld [vmem:[#allocation44_spill] sm:$0xff] }
 0xd9d   :  { %21114 = vmatprep.mubr.msk.f32.mxu0 %vm116_vm2, %v30559_v13  ;;  %v28048_v13 = vld [vmem:[#allocation3 + $0x182] sm:$0xff] }
 0xda0   :  { %21115 = vmatmul.mubr.msk.f32.gmra.mrb[32].mxu0 %vm116_vm2, %v30560_v4  ;;  %v28052_v4 = vld [vmem:[#allocation3 + $0x18a] sm:$0xff] }
 0xda1   :  { %21117 = vmatprep.mubr.msk.f32.mxu0 %vm116_vm2, %v30561_v24  ;;  %30567 = vst [vmem:[#allocation5_spill] sm:$0xff] %v28052_v4  ;;  %v30568_v24 = vld [vmem:[#allocation45_spill] sm:$0xff] }
 0xda4   :  { %21118 = vmatmul.mubr.msk.f32.gmra.mrb[34].mxu0 %vm116_vm2, %v30562_v21  ;;  %v30569_v21 = vld [vmem:[#allocation25_spill] sm:$0xff] }
 0xda5   :  { %21120 = vmatprep.mubr.msk.f32.mxu0 %vm116_vm2, %v30563_v12  ;;  %v30570_v12 = vld [vmem:[#allocation26_spill] sm:$0xff] }
 0xda8   :  { %21121 = vmatmul.mubr.msk.f32.gmra.mrb[36].mxu0 %vm116_vm2, %v30564_v33  ;;  %v30571_v33 = vld [vmem:[#allocation27_spill] sm:$0xff] }
 0xda9   :  { %21123 = vmatprep.mubr.msk.f32.mxu0 %vm116_vm2, %v30565_v59  ;;  %v30572_v59 = vld [vmem:[#allocation28_spill] sm:$0xff] }
 0xdac   :  { %21124 = vmatmul.mubr.msk.f32.gmra.mrb[38].mxu0 %vm116_vm2, %v30566_v45  ;;  %v30573_v45 = vld [vmem:[#allocation29_spill] sm:$0xff] }
 0xdad   :  { %21126 = vmatprep.mubr.msk.f32.mxu0 %vm116_vm2, %v28048_v13 }
 0xdb0   :  { %21127 = vmatmul.mubr.msk.f32.gmra.mrb[40].mxu0 %vm116_vm2, %v28052_v4  ;;  %v30574_v4 = vld [vmem:[#allocation30_spill] sm:$0xff] }
 0xdb1   :  { %21129 = vmatprep.mubr.msk.f32.mxu0 %vm116_vm2, %v27467_v18  ;;  %v30575_v18 = vld [vmem:[#allocation31_spill] sm:$0xff] }
 0xdb4   :  { %21130 = vmatmul.mubr.msk.f32.gmra.mrb[42].mxu0 %vm116_vm2, %v30568_v24  ;;  %v30576_v24 = vld [vmem:[#allocation32_spill] sm:$0xff] }
 0xdb5   :  { %21132 = vmatprep.mubr.msk.f32.mxu0 %vm116_vm2, %v30569_v21  ;;  %v30577_v21 = vld [vmem:[#allocation33_spill] sm:$0xff] }
 0xdb8   :  { %21133 = vmatmul.mubr.msk.f32.gmra.mrb[44].mxu0 %vm116_vm2, %v30570_v12  ;;  %v30578_v12 = vld [vmem:[#allocation34_spill] sm:$0xff] }
 0xdb9   :  { %21135 = vmatprep.mubr.msk.f32.mxu0 %vm116_vm2, %v30571_v33  ;;  %v30579_v33 = vld [vmem:[#allocation35_spill] sm:$0xff] }
 0xdbc   :  { %21136 = vmatmul.mubr.msk.f32.gmra.mrb[46].mxu0 %vm116_vm2, %v30572_v59  ;;  %v30580_v59 = vld [vmem:[#allocation36_spill] sm:$0xff] }
 0xdbd   :  { %21138 = vmatprep.mubr.msk.f32.mxu0 %vm116_vm2, %v30573_v45  ;;  %v30581_v45 = vld [vmem:[#allocation37_spill] sm:$0xff] }
 0xdc0   :  { %21139 = vmatmul.mubr.msk.f32.gmra.mrb[48].mxu0 %vm116_vm2, %v30574_v4  ;;  %v30582_v4 = vld [vmem:[#allocation38_spill] sm:$0xff] }
 0xdc1   :  { %21141 = vmatprep.mubr.msk.f32.mxu0 %vm116_vm2, %v30575_v18  ;;  %v30583_v18 = vld [vmem:[#allocation39_spill] sm:$0xff] }
 0xdc4   :  { %21142 = vmatmul.mubr.msk.f32.gmra.mrb[50].mxu0 %vm116_vm2, %v30576_v24  ;;  %v30584_v24 = vld [vmem:[#allocation40_spill] sm:$0xff] }
 0xdc5   :  { %21144 = vmatprep.mubr.msk.f32.mxu0 %vm116_vm2, %v30577_v21  ;;  %v30585_v21 = vld [vmem:[#allocation41_spill] sm:$0xff] }
 0xdc8   :  { %21145 = vmatmul.mubr.msk.f32.gmra.mrb[52].mxu0 %vm116_vm2, %v30578_v12  ;;  %v30586_v12 = vld [vmem:[#allocation42_spill] sm:$0xff] }
 0xdc9   :  { %21147 = vmatprep.mubr.msk.f32.mxu0 %vm116_vm2, %v30579_v33  ;;  %v30587_v33 = vld [vmem:[#allocation43_spill] sm:$0xff] }
 0xdcc   :  { %21148 = vmatmul.mubr.msk.f32.gmra.mrb[54].mxu0 %vm116_vm2, %v30580_v59  ;;  %v30588_v59 = vld [vmem:[#allocation46_spill] sm:$0xff] }
 0xdcd   :  { %21150 = vmatprep.mubr.msk.f32.mxu0 %vm116_vm2, %v30581_v45  ;;  %v30589_v45 = vld [vmem:[#allocation47_spill] sm:$0xff] }
 0xdd0   :  { %21151 = vmatmul.mubr.msk.f32.gmra.mrb[56].mxu0 %vm116_vm2, %v30582_v4  ;;  %v30590_v4 = vld [vmem:[#allocation48_spill] sm:$0xff] }
 0xdd1   :  { %21153 = vmatprep.mubr.msk.f32.mxu0 %vm116_vm2, %v30583_v18  ;;  %v30591_v18 = vld [vmem:[#allocation49_spill] sm:$0xff] }
 0xdd4   :  { %21154 = vmatmul.mubr.msk.f32.gmra.mrb[58].mxu0 %vm116_vm2, %v30584_v24  ;;  %v30592_v24 = vld [vmem:[#allocation50_spill] sm:$0xff] }
 0xdd5   :  { %21156 = vmatprep.mubr.msk.f32.mxu0 %vm116_vm2, %v30585_v21  ;;  %v28116_v21 = vld [vmem:[#allocation3 + $0x332] sm:$0xff] }
 0xdd8   :  { %21157 = vmatmul.mubr.msk.f32.gmra.mrb[60].mxu0 %vm116_vm2, %v30586_v12  ;;  %v28120_v12 = vld [vmem:[#allocation3 + $0x33a] sm:$0xff] }
 0xdd9   :  { %21159 = vmatprep.mubr.msk.f32.mxu0 %vm116_vm2, %v30587_v33  ;;  %v14468_v33 = vld [vmem:[#allocation3 + $0x50] sm:$0xff] }
 0xddc   :  { %21160 = vmatmul.mubr.msk.f32.gmra.mrb[62].mxu0 %vm116_vm2, %v30588_v59  ;;  %v14469_v59 = vld [vmem:[#allocation3 + $0x60] sm:$0xff] }
 0xddd   :  { %21162 = vmatprep.mubr.msk.f32.mxu0 %vm116_vm2, %v30589_v45  ;;  %v14470_v45 = vld [vmem:[#allocation3 + $0x68] sm:$0xff] }
 0xde0   :  { %21163 = vmatmul.mubr.msk.f32.gmra.mrb[64].mxu0 %vm116_vm2, %v30590_v4  ;;  %v14471_v4 = vld [vmem:[#allocation3 + $0x78] sm:$0xff] }
 0xde1   :  { %21165 = vmatprep.mubr.msk.f32.mxu0 %vm116_vm2, %v30591_v18  ;;  %v14473_v18 = vld [vmem:[#allocation3 + $0x90] sm:$0xff] }
 0xde4   :  { %21166 = vmatmul.mubr.msk.f32.gmra.mrb[66].mxu0 %vm116_vm2, %v27567_v17  ;;  %v14467_v17 = vld [vmem:[#allocation3 + $0x48] sm:$0xff] }
 0xde5   :  { %21168 = vmatprep.mubr.msk.f32.mxu0 %vm116_vm2, %v27571_v40  ;;  %v14465_v40 = vld [vmem:[#allocation3 + $0x30] sm:$0xff] }
 0xde8   :  { %21169 = vmatmul.mubr.msk.f32.gmra.mrb[68].mxu0 %vm116_vm2, %v27575_v38  ;;  %v14466_v38 = vld [vmem:[#allocation3 + $0x38] sm:$0xff] }
 0xde9   :  { %21171 = vmatprep.mubr.msk.f32.mxu0 %vm116_vm2, %v30592_v24  ;;  %v14474_v24 = vld [vmem:[#allocation3 + $0x98] sm:$0xff] }
 0xdec   :  { %21172 = vmatmul.mubr.msk.f32.gmra.mrb[70].mxu0 %vm116_vm2, %v27583_v26  ;;  %v28131_v26 = vld [vmem:[%s29947_s7 + $0x40] sm:$0xff] }
 0xded   :  { %21174 = vmatprep.mubr.msk.f32.mxu0 %vm116_vm2, %v28116_v21 }
 0xdf0   :  { %21175 = vmatmul.mubr.msk.f32.gmra.mrb[72].mxu0 %vm116_vm2, %v28120_v12 }
 0xdf1   :  { %21179 = vmatprep.mubr.msk.f32.mxu0 %vm116_vm2, %v14465_v40  ;;  %v14475_v40 = vld [vmem:[#allocation3 + $0xa8] sm:$0xff] }
 0xdf4   :  { %21180 = vmatmul.mubr.msk.f32.vlgmr.msra.gmra.mrb[10].mxu0 %vm116_vm2, %v14466_v38  ;;  %v14476_v38 = vld [vmem:[#allocation3 + $0xb0] sm:$0xff] }
 0xdf5   :  { %21182 = vmatprep.mubr.msk.f32.mxu0 %vm116_vm2, %v14467_v17  ;;  %21276 = vmatpush3.msra.mxu0 %v27991_v9  ;;  %v14472_v9 = vld [vmem:[#allocation3 + $0x80] sm:$0xff] }
 0xdf6   :  { %21373 = vmatprep.subr.mxu0 %v28131_v26  ;;  %v14477_v17 = vld [vmem:[#allocation3 + $0xc0] sm:$0xff] }
 0xdf8   :  { %21183 = vmatmul.mubr.msk.f32.gmra.mrb[12].mxu0 %vm116_vm2, %v14468_v33  ;;  %v14478_v33 = vld [vmem:[#allocation3 + $0xc8] sm:$0xff] }
 0xdf9   :  { %21185 = vmatprep.mubr.msk.f32.mxu0 %vm116_vm2, %v14469_v59  ;;  %v14479_v59 = vld [vmem:[#allocation3 + $0xd8] sm:$0xff] }
 0xdfc   :  { %21186 = vmatmul.mubr.msk.f32.gmra.mrb[14].mxu0 %vm116_vm2, %v14470_v45  ;;  %v14480_v45 = vld [vmem:[#allocation3 + $0xe0] sm:$0xff] }
 0xdfd   :  { %21188 = vmatprep.mubr.msk.f32.mxu0 %vm116_vm2, %v14471_v4  ;;  %v14481_v4 = vld [vmem:[#allocation3 + $0xf0] sm:$0xff] }
 0xe00   :  { %21189 = vmatmul.mubr.msk.f32.gmra.mrb[16].mxu0 %vm116_vm2, %v14472_v9  ;;  %v14482_v9 = vld [vmem:[#allocation3 + $0xf8] sm:$0xff] }
 0xe01   :  { %21191 = vmatprep.mubr.msk.f32.mxu0 %vm116_vm2, %v14473_v18  ;;  %v14483_v18 = vld [vmem:[#allocation3 + $0x108] sm:$0xff] }
 0xe04   :  { %21192 = vmatmul.mubr.msk.f32.gmra.mrb[18].mxu0 %vm116_vm2, %v14474_v24  ;;  %v14484_v24 = vld [vmem:[#allocation3 + $0x110] sm:$0xff] }
 0xe05   :  { %21194 = vmatprep.mubr.msk.f32.mxu0 %vm116_vm2, %v14475_v40  ;;  %v14485_v40 = vld [vmem:[#allocation3 + $0x120] sm:$0xff] }
 0xe08   :  { %21195 = vmatmul.mubr.msk.f32.gmra.mrb[20].mxu0 %vm116_vm2, %v14476_v38  ;;  %v14486_v38 = vld [vmem:[#allocation3 + $0x128] sm:$0xff] }
 0xe09   :  { %21197 = vmatprep.mubr.msk.f32.mxu0 %vm116_vm2, %v14477_v17  ;;  %v14487_v17 = vld [vmem:[#allocation3 + $0x138] sm:$0xff] }
 0xe0c   :  { %21198 = vmatmul.mubr.msk.f32.gmra.mrb[22].mxu0 %vm116_vm2, %v14478_v33  ;;  %v14488_v33 = vld [vmem:[#allocation3 + $0x140] sm:$0xff] }
 0xe0d   :  { %21200 = vmatprep.mubr.msk.f32.mxu0 %vm116_vm2, %v14479_v59  ;;  %v14489_v59 = vld [vmem:[#allocation3 + $0x150] sm:$0xff] }
 0xe10   :  { %21201 = vmatmul.mubr.msk.f32.gmra.mrb[24].mxu0 %vm116_vm2, %v14480_v45  ;;  %v14490_v45 = vld [vmem:[#allocation3 + $0x158] sm:$0xff] }
 0xe11   :  { %21203 = vmatprep.mubr.msk.f32.mxu0 %vm116_vm2, %v14481_v4  ;;  %v14491_v4 = vld [vmem:[#allocation3 + $0x168] sm:$0xff] }
 0xe14   :  { %21204 = vmatmul.mubr.msk.f32.gmra.mrb[26].mxu0 %vm116_vm2, %v14482_v9  ;;  %v14492_v9 = vld [vmem:[#allocation3 + $0x170] sm:$0xff] }
 0xe15   :  { %21206 = vmatprep.mubr.msk.f32.mxu0 %vm116_vm2, %v14483_v18  ;;  %v14495_v18 = vld [vmem:[#allocation3 + $0x198] sm:$0xff] }
 0xe18   :  { %21207 = vmatmul.mubr.msk.f32.gmra.mrb[28].mxu0 %vm116_vm2, %v14484_v24  ;;  %v14496_v24 = vld [vmem:[#allocation3 + $0x1a0] sm:$0xff] }
 0xe19   :  { %21209 = vmatprep.mubr.msk.f32.mxu0 %vm116_vm2, %v14485_v40  ;;  %v14497_v40 = vld [vmem:[#allocation3 + $0x1e0] sm:$0xff] }
 0xe1c   :  { %21210 = vmatmul.mubr.msk.f32.gmra.mrb[30].mxu0 %vm116_vm2, %v14486_v38  ;;  %v14498_v38 = vld [vmem:[#allocation3 + $0x1e8] sm:$0xff] }
 0xe1d   :  { %21212 = vmatprep.mubr.msk.f32.mxu0 %vm116_vm2, %v14487_v17  ;;  %v14499_v17 = vld [vmem:[#allocation3 + $0x1f8] sm:$0xff] }
 0xe20   :  { %21213 = vmatmul.mubr.msk.f32.gmra.mrb[32].mxu0 %vm116_vm2, %v14488_v33  ;;  %v14500_v33 = vld [vmem:[#allocation3 + $0x200] sm:$0xff] }
 0xe21   :  { %21215 = vmatprep.mubr.msk.f32.mxu0 %vm116_vm2, %v14489_v59  ;;  %v14503_v59 = vld [vmem:[#allocation3 + $0x228] sm:$0xff] }
 0xe24   :  { %21216 = vmatmul.mubr.msk.f32.gmra.mrb[34].mxu0 %vm116_vm2, %v14490_v45  ;;  %v14504_v45 = vld [vmem:[#allocation3 + $0x230] sm:$0xff] }
 0xe25   :  { %21218 = vmatprep.mubr.msk.f32.mxu0 %vm116_vm2, %v14491_v4  ;;  %v14505_v4 = vld [vmem:[#allocation3 + $0x240] sm:$0xff] }
 0xe28   :  { %21219 = vmatmul.mubr.msk.f32.gmra.mrb[36].mxu0 %vm116_vm2, %v14492_v9  ;;  %v14506_v9 = vld [vmem:[#allocation3 + $0x248] sm:$0xff] }
 0xe29   :  { %21221 = vmatprep.mubr.msk.f32.mxu0 %vm116_vm2, %v27654_v1  ;;  %v14501_v1 = vld [vmem:[#allocation3 + $0x210] sm:$0xff] }
 0xe2c   :  { %21222 = vmatmul.mubr.msk.f32.gmra.mrb[38].mxu0 %vm116_vm2, %v27658_v15  ;;  %v14502_v15 = vld [vmem:[#allocation3 + $0x218] sm:$0xff] }
 0xe2d   :  { %21224 = vmatprep.mubr.msk.f32.mxu0 %vm116_vm2, %v14495_v18  ;;  %v14507_v18 = vld [vmem:[#allocation3 + $0x258] sm:$0xff] }
 0xe30   :  { %21225 = vmatmul.mubr.msk.f32.gmra.mrb[40].mxu0 %vm116_vm2, %v14496_v24  ;;  %v14508_v24 = vld [vmem:[#allocation3 + $0x260] sm:$0xff] }
 0xe31   :  { %21227 = vmatprep.mubr.msk.f32.mxu0 %vm116_vm2, %v14497_v40  ;;  %v14509_v40 = vld [vmem:[#allocation3 + $0x270] sm:$0xff] }
 0xe34   :  { %21228 = vmatmul.mubr.msk.f32.gmra.mrb[42].mxu0 %vm116_vm2, %v14498_v38  ;;  %v14510_v38 = vld [vmem:[#allocation3 + $0x278] sm:$0xff] }
 0xe35   :  { %21230 = vmatprep.mubr.msk.f32.mxu0 %vm116_vm2, %v14499_v17  ;;  %v14511_v17 = vld [vmem:[#allocation3 + $0x288] sm:$0xff] }
 0xe38   :  { %21231 = vmatmul.mubr.msk.f32.gmra.mrb[44].mxu0 %vm116_vm2, %v14500_v33  ;;  %v14512_v33 = vld [vmem:[#allocation3 + $0x290] sm:$0xff] }
 0xe39   :  { %21233 = vmatprep.mubr.msk.f32.mxu0 %vm116_vm2, %v14501_v1  ;;  %v14513_v1 = vld [vmem:[#allocation3 + $0x2a0] sm:$0xff] }
 0xe3c   :  { %21234 = vmatmul.mubr.msk.f32.gmra.mrb[46].mxu0 %vm116_vm2, %v14502_v15  ;;  %v14514_v15 = vld [vmem:[#allocation3 + $0x2a8] sm:$0xff] }
 0xe3d   :  { %21236 = vmatprep.mubr.msk.f32.mxu0 %vm116_vm2, %v14503_v59  ;;  %v14515_v59 = vld [vmem:[#allocation3 + $0x2b8] sm:$0xff] }
 0xe40   :  { %21237 = vmatmul.mubr.msk.f32.gmra.mrb[48].mxu0 %vm116_vm2, %v14504_v45  ;;  %v14516_v45 = vld [vmem:[#allocation3 + $0x2c0] sm:$0xff] }
 0xe41   :  { %21239 = vmatprep.mubr.msk.f32.mxu0 %vm116_vm2, %v14505_v4  ;;  %v14517_v4 = vld [vmem:[#allocation3 + $0x2d0] sm:$0xff] }
 0xe44   :  { %21240 = vmatmul.mubr.msk.f32.gmra.mrb[50].mxu0 %vm116_vm2, %v14506_v9  ;;  %v14518_v9 = vld [vmem:[#allocation3 + $0x2d8] sm:$0xff] }
 0xe45   :  { %21242 = vmatprep.mubr.msk.f32.mxu0 %vm116_vm2, %v14507_v18  ;;  %v14519_v18 = vld [vmem:[#allocation3 + $0x2e8] sm:$0xff] }
 0xe48   :  { %21243 = vmatmul.mubr.msk.f32.gmra.mrb[52].mxu0 %vm116_vm2, %v14508_v24  ;;  %v14520_v24 = vld [vmem:[#allocation3 + $0x2f0] sm:$0xff] }
 0xe49   :  { %21245 = vmatprep.mubr.msk.f32.mxu0 %vm116_vm2, %v14509_v40  ;;  %v14521_v40 = vld [vmem:[#allocation3 + $0x300] sm:$0xff] }
 0xe4c   :  { %21246 = vmatmul.mubr.msk.f32.gmra.mrb[54].mxu0 %vm116_vm2, %v14510_v38  ;;  %v14522_v38 = vld [vmem:[#allocation3 + $0x308] sm:$0xff] }
 0xe4d   :  { %21248 = vmatprep.mubr.msk.f32.mxu0 %vm116_vm2, %v14511_v17  ;;  %v14523_v17 = vld [vmem:[#allocation3 + $0x318] sm:$0xff] }
 0xe50   :  { %21249 = vmatmul.mubr.msk.f32.gmra.mrb[56].mxu0 %vm116_vm2, %v14512_v33  ;;  %v14524_v33 = vld [vmem:[#allocation3 + $0x320] sm:$0xff] }
 0xe51   :  { %21251 = vmatprep.mubr.msk.f32.mxu0 %vm116_vm2, %v14513_v1  ;;  %v14527_v1 = vld [vmem:[#allocation3 + $0x348] sm:$0xff] }
 0xe54   :  { %21252 = vmatmul.mubr.msk.f32.gmra.mrb[58].mxu0 %vm116_vm2, %v14514_v15  ;;  %v14528_v15 = vld [vmem:[#allocation3 + $0x350] sm:$0xff] }
 0xe55   :  { %21254 = vmatprep.mubr.msk.f32.mxu0 %vm116_vm2, %v14515_v59  ;;  %v15911_v59 = vld [vmem:[#allocation3 + $0x1e2] sm:$0xff] }
 0xe58   :  { %21255 = vmatmul.mubr.msk.f32.gmra.mrb[60].mxu0 %vm116_vm2, %v14516_v45  ;;  %v15912_v45 = vld [vmem:[#allocation3 + $0x1ea] sm:$0xff] }
 0xe59   :  { %21257 = vmatprep.mubr.msk.f32.mxu0 %vm116_vm2, %v14517_v4  ;;  %v15913_v4 = vld [vmem:[#allocation3 + $0x1fa] sm:$0xff] }
 0xe5c   :  { %21258 = vmatmul.mubr.msk.f32.gmra.mrb[62].mxu0 %vm116_vm2, %v14518_v9  ;;  %v15914_v9 = vld [vmem:[#allocation3 + $0x202] sm:$0xff] }
 0xe5d   :  { %21260 = vmatprep.mubr.msk.f32.mxu0 %vm116_vm2, %v14519_v18  ;;  %v15916_v18 = vld [vmem:[#allocation3 + $0x21a] sm:$0xff] }
 0xe60   :  { %21261 = vmatmul.mubr.msk.f32.gmra.mrb[64].mxu0 %vm116_vm2, %v14520_v24  ;;  %v15917_v24 = vld [vmem:[#allocation3 + $0x22a] sm:$0xff] }
 0xe61   :  { %21263 = vmatprep.mubr.msk.f32.mxu0 %vm116_vm2, %v14521_v40  ;;  %v15918_v40 = vld [vmem:[#allocation3 + $0x232] sm:$0xff] }
 0xe64   :  { %21264 = vmatmul.mubr.msk.f32.gmra.mrb[66].mxu0 %vm116_vm2, %v14522_v38  ;;  %v15919_v38 = vld [vmem:[#allocation3 + $0x242] sm:$0xff] }
 0xe65   :  { %21266 = vmatprep.mubr.msk.f32.mxu0 %vm116_vm2, %v14523_v17  ;;  %v15920_v17 = vld [vmem:[#allocation3 + $0x24a] sm:$0xff] }
 0xe68   :  { %21267 = vmatmul.mubr.msk.f32.gmra.mrb[68].mxu0 %vm116_vm2, %v14524_v33  ;;  %v15921_v33 = vld [vmem:[#allocation3 + $0x25a] sm:$0xff] }
 0xe69   :  { %21269 = vmatprep.mubr.msk.f32.mxu0 %vm116_vm2, %v27722_v30  ;;  %v15202_v30 = vld [vmem:[#allocation3 + $0x199] sm:$0xff] }
 0xe6c   :  { %21270 = vmatmul.mubr.msk.f32.gmra.mrb[70].mxu0 %vm116_vm2, %v27726_v23  ;;  %v15203_v23 = vld [vmem:[#allocation3 + $0x1a1] sm:$0xff] }
 0xe6d   :  { %21272 = vmatprep.mubr.msk.f32.mxu0 %vm116_vm2, %v14527_v1  ;;  %v15922_v1 = vld [vmem:[#allocation3 + $0x262] sm:$0xff] }
 0xe70   :  { %21273 = vmatmul.mubr.msk.f32.gmra.mrb[72].mxu0 %vm116_vm2, %v14528_v15  ;;  %v15923_v15 = vld [vmem:[#allocation3 + $0x272] sm:$0xff] }
 0xe71   :  { %21277 = vmatprep.mubr.msk.f32.mxu0 %vm116_vm2, %v27732_v31  ;;  %v30593_v31 = vld [vmem:[#allocation51_spill] sm:$0xff] }
 0xe74   :  { %21278 = vmatmul.mubr.msk.f32.vlgmr.msra.gmra.mrb[10].mxu0 %vm116_vm2, %v27743_v61  ;;  %v30594_v61 = vld [vmem:[#allocation52_spill] sm:$0xff] }
 0xe75   :  { %21280 = vmatprep.mubr.msk.f32.mxu0 %vm116_vm2, %v27747_v7  ;;  %21374 = vmatpush3.msra.mxu0 %v28131_v26  ;;  %v30595_v7 = vld [vmem:[#allocation53_spill] sm:$0xff] }
 0xe76   :  { %v15910_v26 = vld [vmem:[#allocation3 + $0x1a2] sm:$0xff] }
 0xe78   :  { %21281 = vmatmul.mubr.msk.f32.gmra.mrb[12].mxu0 %vm116_vm2, %v27751_v48  ;;  %v30596_v48 = vld [vmem:[#allocation54_spill] sm:$0xff] }
 0xe79   :  { %21283 = vmatprep.mubr.msk.f32.mxu0 %vm116_vm2, %v27755_v60  ;;  %v30597_v60 = vld [vmem:[#allocation55_spill] sm:$0xff] }
 0xe7c   :  { %21284 = vmatmul.mubr.msk.f32.gmra.mrb[14].mxu0 %vm116_vm2, %v27759_v46  ;;  %v30598_v46 = vld [vmem:[#allocation56_spill] sm:$0xff] }
 0xe7d   :  { %21286 = vmatprep.mubr.msk.f32.mxu0 %vm116_vm2, %v27763_v62  ;;  %v30599_v62 = vld [vmem:[#allocation57_spill] sm:$0xff] }
 0xe80   :  { %21287 = vmatmul.mubr.msk.f32.gmra.mrb[16].mxu0 %vm116_vm2, %v27767_v57  ;;  %v30600_v57 = vld [vmem:[#allocation58_spill] sm:$0xff] }
 0xe81   :  { %21289 = vmatprep.mubr.msk.f32.mxu0 %vm116_vm2, %v27771_v6  ;;  %v30601_v6 = vld [vmem:[#allocation59_spill] sm:$0xff] }
 0xe84   :  { %21290 = vmatmul.mubr.msk.f32.gmra.mrb[18].mxu0 %vm116_vm2, %v27775_v41  ;;  %v30602_v41 = vld [vmem:[#allocation60_spill] sm:$0xff] }
 0xe85   :  { %21292 = vmatprep.mubr.msk.f32.mxu0 %vm116_vm2, %v27779_v34  ;;  %v30603_v34 = vld [vmem:[#allocation61_spill] sm:$0xff] }
 0xe88   :  { %21293 = vmatmul.mubr.msk.f32.gmra.mrb[20].mxu0 %vm116_vm2, %v27783_v2  ;;  %v30604_v2 = vld [vmem:[#allocation62_spill] sm:$0xff] }
 0xe89   :  { %21295 = vmatprep.mubr.msk.f32.mxu0 %vm116_vm2, %v27787_v22  ;;  %v30605_v22 = vld [vmem:[#allocation63_spill] sm:$0xff] }
 0xe8c   :  { %21296 = vmatmul.mubr.msk.f32.gmra.mrb[22].mxu0 %vm116_vm2, %v27791_v29  ;;  %v15234_v29 = vld [vmem:[#allocation3 + $0x349] sm:$0xff] }
 0xe8d   :  { %21298 = vmatprep.mubr.msk.f32.mxu0 %vm116_vm2, %v27795_v49  ;;  %v30606_v49 = vld [vmem:[#allocation64_spill] sm:$0xff] }
 0xe90   :  { %21299 = vmatmul.mubr.msk.f32.gmra.mrb[24].mxu0 %vm116_vm2, %v27799_v0  ;;  %v15235_v0 = vld [vmem:[#allocation3 + $0x351] sm:$0xff] }
 0xe91   :  { %21301 = vmatprep.mubr.msk.f32.mxu0 %vm116_vm2, %v27803_v19  ;;  %v15879_v19 = vld [vmem:[#allocation3 + $0x32] sm:$0xff] }
 0xe94   :  { %21302 = vmatmul.mubr.msk.f32.gmra.mrb[26].mxu0 %vm116_vm2, %v27807_v47  ;;  %v15880_v47 = vld [vmem:[#allocation3 + $0x3a] sm:$0xff] }
 0xe95   :  { %21304 = vmatprep.mubr.msk.f32.mxu0 %vm116_vm2, %v27811_v58  ;;  %v15881_v58 = vld [vmem:[#allocation3 + $0x4a] sm:$0xff] }
 0xe98   :  { %21305 = vmatmul.mubr.msk.f32.gmra.mrb[28].mxu0 %vm116_vm2, %v27815_v37  ;;  %v15882_v37 = vld [vmem:[#allocation3 + $0x52] sm:$0xff] }
 0xe99   :  { %21307 = vmatprep.mubr.msk.f32.mxu0 %vm116_vm2, %v27819_v52  ;;  %v15883_v52 = vld [vmem:[#allocation3 + $0x62] sm:$0xff] }
 0xe9c   :  { %21308 = vmatmul.mubr.msk.f32.gmra.mrb[30].mxu0 %vm116_vm2, %v27823_v63  ;;  %v15884_v63 = vld [vmem:[#allocation3 + $0x6a] sm:$0xff] }
 0xe9d   :  { %21310 = vmatprep.mubr.msk.f32.mxu0 %vm116_vm2, %v27827_v32  ;;  %v15885_v32 = vld [vmem:[#allocation3 + $0x7a] sm:$0xff] }
 0xea0   :  { %21311 = vmatmul.mubr.msk.f32.gmra.mrb[32].mxu0 %vm116_vm2, %v27831_v27  ;;  %v15886_v27 = vld [vmem:[#allocation3 + $0x82] sm:$0xff] }
 0xea1   :  { %21313 = vmatprep.mubr.msk.f32.mxu0 %vm116_vm2, %v27835_v55  ;;  %v15887_v55 = vld [vmem:[#allocation3 + $0x92] sm:$0xff] }
 0xea4   :  { %21314 = vmatmul.mubr.msk.f32.gmra.mrb[34].mxu0 %vm116_vm2, %v27839_v42  ;;  %v15888_v42 = vld [vmem:[#allocation3 + $0x9a] sm:$0xff] }
 0xea5   :  { %21316 = vmatprep.mubr.msk.f32.mxu0 %vm116_vm2, %v27843_v44  ;;  %v15889_v44 = vld [vmem:[#allocation3 + $0xaa] sm:$0xff] }
 0xea8   :  { %21317 = vmatmul.mubr.msk.f32.gmra.mrb[36].mxu0 %vm116_vm2, %v27847_v14  ;;  %v15890_v14 = vld [vmem:[#allocation3 + $0xb2] sm:$0xff] }
 0xea9   :  { %21319 = vmatprep.mubr.msk.f32.mxu0 %vm116_vm2, %v27851_v43  ;;  %v15891_v43 = vld [vmem:[#allocation3 + $0xc2] sm:$0xff] }
 0xeac   :  { %21320 = vmatmul.mubr.msk.f32.gmra.mrb[38].mxu0 %vm116_vm2, %v27855_v28  ;;  %v15892_v28 = vld [vmem:[#allocation3 + $0xca] sm:$0xff] }
 0xead   :  { %21322 = vmatprep.mubr.msk.f32.mxu0 %vm116_vm2, %v15202_v30  ;;  %v15924_v30 = vld [vmem:[#allocation3 + $0x27a] sm:$0xff] }
 0xeb0   :  { %21323 = vmatmul.mubr.msk.f32.gmra.mrb[40].mxu0 %vm116_vm2, %v15203_v23  ;;  %v15925_v23 = vld [vmem:[#allocation3 + $0x28a] sm:$0xff] }
 0xeb1   :  { %21325 = vmatprep.mubr.msk.f32.mxu0 %vm116_vm2, %v27861_v56  ;;  %v15893_v56 = vld [vmem:[#allocation3 + $0xda] sm:$0xff] }
 0xeb4   :  { %21326 = vmatmul.mubr.msk.f32.gmra.mrb[42].mxu0 %vm116_vm2, %v27865_v25  ;;  %v15894_v25 = vld [vmem:[#allocation3 + $0xe2] sm:$0xff] }
 0xeb5   :  { %21328 = vmatprep.mubr.msk.f32.mxu0 %vm116_vm2, %v27869_v16  ;;  %v15895_v16 = vld [vmem:[#allocation3 + $0xf2] sm:$0xff] }
 0xeb8   :  { %21329 = vmatmul.mubr.msk.f32.gmra.mrb[44].mxu0 %vm116_vm2, %v27873_v54  ;;  %v15896_v54 = vld [vmem:[#allocation3 + $0xfa] sm:$0xff] }
 0xeb9   :  { %21331 = vmatprep.mubr.msk.f32.mxu0 %vm116_vm2, %v27877_v53  ;;  %v15897_v53 = vld [vmem:[#allocation3 + $0x10a] sm:$0xff] }
 0xebc   :  { %21332 = vmatmul.mubr.msk.f32.gmra.mrb[46].mxu0 %vm116_vm2, %v27881_v36  ;;  %v15898_v36 = vld [vmem:[#allocation3 + $0x112] sm:$0xff] }
 0xebd   :  { %21334 = vmatprep.mubr.msk.f32.mxu0 %vm116_vm2, %v27885_v8  ;;  %v15899_v8 = vld [vmem:[#allocation3 + $0x122] sm:$0xff] }
 0xec0   :  { %21335 = vmatmul.mubr.msk.f32.gmra.mrb[48].mxu0 %vm116_vm2, %v27889_v50  ;;  %v15900_v50 = vld [vmem:[#allocation3 + $0x12a] sm:$0xff] }
 0xec1   :  { %21337 = vmatprep.mubr.msk.f32.mxu0 %vm116_vm2, %v27893_v35  ;;  %v15901_v35 = vld [vmem:[#allocation3 + $0x13a] sm:$0xff] }
 0xec4   :  { %21338 = vmatmul.mubr.msk.f32.gmra.mrb[50].mxu0 %vm116_vm2, %v27897_v5  ;;  %v15902_v5 = vld [vmem:[#allocation3 + $0x142] sm:$0xff] }
 0xec5   :  { %21340 = vmatprep.mubr.msk.f32.mxu0 %vm116_vm2, %v27901_v3  ;;  %v15903_v3 = vld [vmem:[#allocation3 + $0x152] sm:$0xff] }
 0xec8   :  { %21341 = vmatmul.mubr.msk.f32.gmra.mrb[52].mxu0 %vm116_vm2, %v27905_v39  ;;  %v15904_v39 = vld [vmem:[#allocation3 + $0x15a] sm:$0xff] }
 0xec9   :  { %21343 = vmatprep.mubr.msk.f32.mxu0 %vm116_vm2, %v27909_v11  ;;  %v15905_v11 = vld [vmem:[#allocation3 + $0x16a] sm:$0xff] }
 0xecc   :  { %21344 = vmatmul.mubr.msk.f32.gmra.mrb[54].mxu0 %vm116_vm2, %v27913_v10  ;;  %v15906_v10 = vld [vmem:[#allocation3 + $0x172] sm:$0xff] }
 0xecd   :  { %21346 = vmatprep.mubr.msk.f32.mxu0 %vm116_vm2, %v27917_v20  ;;  %v15909_v20 = vld [vmem:[#allocation3 + $0x19a] sm:$0xff] }
 0xed0   :  { %21347 = vmatmul.mubr.msk.f32.gmra.mrb[56].mxu0 %vm116_vm2, %v27921_v51  ;;  %v30607_v51 = vld [vmem:[#allocation5_spill] sm:$0xff] }
 0xed1   :  { %21349 = vmatprep.mubr.msk.f32.mxu0 %vm116_vm2, %v30593_v31  ;;  %v15926_v31 = vld [vmem:[#allocation3 + $0x292] sm:$0xff] }
 0xed4   :  { %21350 = vmatmul.mubr.msk.f32.gmra.mrb[58].mxu0 %vm116_vm2, %v30594_v61  ;;  %v15927_v61 = vld [vmem:[#allocation3 + $0x2a2] sm:$0xff] }
 0xed5   :  { %21352 = vmatprep.mubr.msk.f32.mxu0 %vm116_vm2, %v30595_v7  ;;  %v15928_v7 = vld [vmem:[#allocation3 + $0x2aa] sm:$0xff] }
 0xed8   :  { %21353 = vmatmul.mubr.msk.f32.gmra.mrb[60].mxu0 %vm116_vm2, %v30596_v48  ;;  %v15929_v48 = vld [vmem:[#allocation3 + $0x2ba] sm:$0xff] }
 0xed9   :  { %21355 = vmatprep.mubr.msk.f32.mxu0 %vm116_vm2, %v30597_v60  ;;  %v15930_v60 = vld [vmem:[#allocation3 + $0x2c2] sm:$0xff] }
 0xedc   :  { %21356 = vmatmul.mubr.msk.f32.gmra.mrb[62].mxu0 %vm116_vm2, %v30598_v46  ;;  %v15931_v46 = vld [vmem:[#allocation3 + $0x2d2] sm:$0xff] }
 0xedd   :  { %21358 = vmatprep.mubr.msk.f32.mxu0 %vm116_vm2, %v30599_v62  ;;  %v15932_v62 = vld [vmem:[#allocation3 + $0x2da] sm:$0xff] }
 0xee0   :  { %21359 = vmatmul.mubr.msk.f32.gmra.mrb[64].mxu0 %vm116_vm2, %v30600_v57  ;;  %v15933_v57 = vld [vmem:[#allocation3 + $0x2ea] sm:$0xff] }
 0xee1   :  { %21361 = vmatprep.mubr.msk.f32.mxu0 %vm116_vm2, %v30601_v6  ;;  %v15934_v6 = vld [vmem:[#allocation3 + $0x2f2] sm:$0xff] }
 0xee4   :  { %21362 = vmatmul.mubr.msk.f32.gmra.mrb[66].mxu0 %vm116_vm2, %v30602_v41  ;;  %v15935_v41 = vld [vmem:[#allocation3 + $0x302] sm:$0xff] }
 0xee5   :  { %21364 = vmatprep.mubr.msk.f32.mxu0 %vm116_vm2, %v30603_v34  ;;  %v15936_v34 = vld [vmem:[#allocation3 + $0x30a] sm:$0xff] }
 0xee8   :  { %21365 = vmatmul.mubr.msk.f32.gmra.mrb[68].mxu0 %vm116_vm2, %v30604_v2  ;;  %v15937_v2 = vld [vmem:[#allocation3 + $0x31a] sm:$0xff] }
 0xee9   :  { %21367 = vmatprep.mubr.msk.f32.mxu0 %vm116_vm2, %v30605_v22  ;;  %v15938_v22 = vld [vmem:[#allocation3 + $0x322] sm:$0xff] }
 0xeec   :  { %21368 = vmatmul.mubr.msk.f32.gmra.mrb[70].mxu0 %vm116_vm2, %v30606_v49  ;;  %v15942_v49 = vld [vmem:[#allocation3 + $0x352] sm:$0xff] }
 0xeed   :  { %21370 = vmatprep.mubr.msk.f32.mxu0 %vm116_vm2, %v15234_v29  ;;  %v15941_v29 = vld [vmem:[#allocation3 + $0x34a] sm:$0xff] }
 0xef0   :  { %21371 = vmatmul.mubr.msk.f32.gmra.mrb[72].mxu0 %vm116_vm2, %v15235_v0 }
 0xef1   :  { %21375 = vmatprep.mubr.msk.f32.mxu0 %vm116_vm2, %v15879_v19 }
 0xef4   :  { %21376 = vmatmul.mubr.msk.f32.vlgmr.msra.gmra.mrb[10].mxu0 %vm116_vm2, %v15880_v47 }
 0xef5   :  { %21378 = vmatprep.mubr.msk.f32.mxu0 %vm116_vm2, %v15881_v58 }
 0xef8   :  { %21379 = vmatmul.mubr.msk.f32.gmra.mrb[12].mxu0 %vm116_vm2, %v15882_v37 }
 0xef9   :  { %21381 = vmatprep.mubr.msk.f32.mxu0 %vm116_vm2, %v15883_v52 }
 0xefc   :  { %21382 = vmatmul.mubr.msk.f32.gmra.mrb[14].mxu0 %vm116_vm2, %v15884_v63 }
 0xefd   :  { %21384 = vmatprep.mubr.msk.f32.mxu0 %vm116_vm2, %v15885_v32 }
 0xf00   :  { %21385 = vmatmul.mubr.msk.f32.gmra.mrb[16].mxu0 %vm116_vm2, %v15886_v27 }
 0xf01   :  { %21387 = vmatprep.mubr.msk.f32.mxu0 %vm116_vm2, %v15887_v55 }
 0xf04   :  { %21388 = vmatmul.mubr.msk.f32.gmra.mrb[18].mxu0 %vm116_vm2, %v15888_v42 }
 0xf05   :  { %21390 = vmatprep.mubr.msk.f32.mxu0 %vm116_vm2, %v15889_v44 }
 0xf08   :  { %21391 = vmatmul.mubr.msk.f32.gmra.mrb[20].mxu0 %vm116_vm2, %v15890_v14 }
 0xf09   :  { %21393 = vmatprep.mubr.msk.f32.mxu0 %vm116_vm2, %v15891_v43 }
 0xf0c   :  { %21394 = vmatmul.mubr.msk.f32.gmra.mrb[22].mxu0 %vm116_vm2, %v15892_v28 }
 0xf0d   :  { %21396 = vmatprep.mubr.msk.f32.mxu0 %vm116_vm2, %v15893_v56 }
 0xf10   :  { %21397 = vmatmul.mubr.msk.f32.gmra.mrb[24].mxu0 %vm116_vm2, %v15894_v25 }
 0xf11   :  { %21399 = vmatprep.mubr.msk.f32.mxu0 %vm116_vm2, %v15895_v16 }
 0xf14   :  { %21400 = vmatmul.mubr.msk.f32.gmra.mrb[26].mxu0 %vm116_vm2, %v15896_v54 }
 0xf15   :  { %21402 = vmatprep.mubr.msk.f32.mxu0 %vm116_vm2, %v15897_v53 }
 0xf18   :  { %21403 = vmatmul.mubr.msk.f32.gmra.mrb[28].mxu0 %vm116_vm2, %v15898_v36 }
 0xf19   :  { %21405 = vmatprep.mubr.msk.f32.mxu0 %vm116_vm2, %v15899_v8 }
 0xf1c   :  { %21406 = vmatmul.mubr.msk.f32.gmra.mrb[30].mxu0 %vm116_vm2, %v15900_v50 }
 0xf1d   :  { %21408 = vmatprep.mubr.msk.f32.mxu0 %vm116_vm2, %v15901_v35 }
 0xf20   :  { %21409 = vmatmul.mubr.msk.f32.gmra.mrb[32].mxu0 %vm116_vm2, %v15902_v5 }
 0xf21   :  { %21411 = vmatprep.mubr.msk.f32.mxu0 %vm116_vm2, %v15903_v3 }
 0xf24   :  { %21412 = vmatmul.mubr.msk.f32.gmra.mrb[34].mxu0 %vm116_vm2, %v15904_v39 }
 0xf25   :  { %21414 = vmatprep.mubr.msk.f32.mxu0 %vm116_vm2, %v15905_v11 }
 0xf28   :  { %21415 = vmatmul.mubr.msk.f32.gmra.mrb[36].mxu0 %vm116_vm2, %v15906_v10 }
 0xf29   :  { %21417 = vmatprep.mubr.msk.f32.mxu0 %vm116_vm2, %v28048_v13  ;;  %v15915_v13 = vld [vmem:[#allocation3 + $0x212] sm:$0xff] }
 0xf2c   :  { %21418 = vmatmul.mubr.msk.f32.gmra.mrb[38].mxu0 %vm116_vm2, %v30607_v51 }
 0xf2d   :  { %21420 = vmatprep.mubr.msk.f32.mxu0 %vm116_vm2, %v15909_v20 }
 0xf30   :  { %21421 = vmatmul.mubr.msk.f32.gmra.mrb[40].mxu0 %vm116_vm2, %v15910_v26 }
 0xf31   :  { %21423 = vmatprep.mubr.msk.f32.mxu0 %vm116_vm2, %v15911_v59 }
 0xf34   :  { %21424 = vmatmul.mubr.msk.f32.gmra.mrb[42].mxu0 %vm116_vm2, %v15912_v45 }
 0xf35   :  { %21426 = vmatprep.mubr.msk.f32.mxu0 %vm116_vm2, %v15913_v4 }
 0xf38   :  { %21427 = vmatmul.mubr.msk.f32.gmra.mrb[44].mxu0 %vm116_vm2, %v15914_v9 }
 0xf39   :  { %21429 = vmatprep.mubr.msk.f32.mxu0 %vm116_vm2, %v15915_v13 }
 0xf3c   :  { %21430 = vmatmul.mubr.msk.f32.gmra.mrb[46].mxu0 %vm116_vm2, %v15916_v18 }
 0xf3d   :  { %21432 = vmatprep.mubr.msk.f32.mxu0 %vm116_vm2, %v15917_v24 }
 0xf40   :  { %21433 = vmatmul.mubr.msk.f32.gmra.mrb[48].mxu0 %vm116_vm2, %v15918_v40 }
 0xf41   :  { %21435 = vmatprep.mubr.msk.f32.mxu0 %vm116_vm2, %v15919_v38 }
 0xf44   :  { %21436 = vmatmul.mubr.msk.f32.gmra.mrb[50].mxu0 %vm116_vm2, %v15920_v17 }
 0xf45   :  { %21438 = vmatprep.mubr.msk.f32.mxu0 %vm116_vm2, %v15921_v33 }
 0xf48   :  { %21439 = vmatmul.mubr.msk.f32.gmra.mrb[52].mxu0 %vm116_vm2, %v15922_v1 }
 0xf49   :  { %21441 = vmatprep.mubr.msk.f32.mxu0 %vm116_vm2, %v15923_v15 }
 0xf4c   :  { %21442 = vmatmul.mubr.msk.f32.gmra.mrb[54].mxu0 %vm116_vm2, %v15924_v30 }
 0xf4d   :  { %21444 = vmatprep.mubr.msk.f32.mxu0 %vm116_vm2, %v15925_v23 }
 0xf50   :  { %21445 = vmatmul.mubr.msk.f32.gmra.mrb[56].mxu0 %vm116_vm2, %v15926_v31 }
 0xf51   :  { %21447 = vmatprep.mubr.msk.f32.mxu0 %vm116_vm2, %v15927_v61 }
 0xf54   :  { %21448 = vmatmul.mubr.msk.f32.gmra.mrb[58].mxu0 %vm116_vm2, %v15928_v7 }
 0xf55   :  { %21450 = vmatprep.mubr.msk.f32.mxu0 %vm116_vm2, %v15929_v48 }
 0xf58   :  { %21451 = vmatmul.mubr.msk.f32.gmra.mrb[60].mxu0 %vm116_vm2, %v15930_v60 }
 0xf59   :  { %21453 = vmatprep.mubr.msk.f32.mxu0 %vm116_vm2, %v15931_v46 }
 0xf5c   :  { %21454 = vmatmul.mubr.msk.f32.gmra.mrb[62].mxu0 %vm116_vm2, %v15932_v62 }
 0xf5d   :  { %21456 = vmatprep.mubr.msk.f32.mxu0 %vm116_vm2, %v15933_v57 }
 0xf60   :  { %21457 = vmatmul.mubr.msk.f32.gmra.mrb[64].mxu0 %vm116_vm2, %v15934_v6 }
 0xf61   :  { %21459 = vmatprep.mubr.msk.f32.mxu0 %vm116_vm2, %v15935_v41 }
 0xf64   :  { %21460 = vmatmul.mubr.msk.f32.gmra.mrb[66].mxu0 %vm116_vm2, %v15936_v34 }
 0xf65   :  { %21462 = vmatprep.mubr.msk.f32.mxu0 %vm116_vm2, %v15937_v2 }
 0xf68   :  { %21463 = vmatmul.mubr.msk.f32.gmra.mrb[68].mxu0 %vm116_vm2, %v15938_v22 }
 0xf69   :  { %21465 = vmatprep.mubr.msk.f32.mxu0 %vm116_vm2, %v28116_v21 }
 0xf6c   :  { %21466 = vmatmul.mubr.msk.f32.gmra.mrb[70].mxu0 %vm116_vm2, %v28120_v12 }
 0xf6d   :  { %21468 = vmatprep.mubr.msk.f32.mxu0 %vm116_vm2, %v15941_v29 }
 0xf70   :  { %21469 = vmatmul.mubr.msk.f32.gmra.mrb[72].mxu0 %vm116_vm2, %v15942_v49 }
 0xfc7   :  { %v28392_v0 = vpop.f32.mrb[10].mxu0 }
 0xfc8   :  { %v16587_v19 = vsel %vm116_vm2, %v28392_v0, 0.0  ;;  %v28396_v47 = vpop.f32.mrb[11].mxu0 }
 0xfc9   :  { %v16586_v58 = vsel %vm116_vm2, %v28396_v47, 0.0 }
 0xfca   :  { %v16588_v21 = vadd.f32 %v16587_v19, %v16586_v58 }
 0xfcb   :  { %v28400_v37 = vpop.f32.mrb[12].mxu0 }
 0xfcc   :  { %v28402_v52 = vpop.f32.mrb[13].mxu0  ;;  %v16591_v32 = vsel %vm116_vm2, %v28400_v37, 0.0 }
 0xfcd   :  { %v16589_v12 = vsel %vm116_vm2, %v28402_v52, 0.0 }
 0xfce   :  { %v16590_v63 = vadd.f32 %v16589_v12, %v16588_v21 }
 0xfcf   :  { %v28408_v27 = vpop.f32.mrb[14].mxu0 }
 0xfd0   :  { %v16592_v55 = vadd.f32 %v16591_v32, %v16590_v63  ;;  %v28410_v42 = vpop.f32.mrb[15].mxu0  ;;  %v16595_v43 = vsel %vm116_vm2, %v28408_v27, 0.0 }
 0xfd1   :  { %v16593_v44 = vsel %vm116_vm2, %v28410_v42, 0.0 }
 0xfd2   :  { %v16594_v14 = vadd.f32 %v16593_v44, %v16592_v55 }
 0xfd3   :  { %v28416_v28 = vpop.f32.mrb[16].mxu0 }
 0xfd4   :  { %v28418_v56 = vpop.f32.mrb[17].mxu0  ;;  %v16596_v25 = vadd.f32 %v16595_v43, %v16594_v14  ;;  %v16599_v53 = vsel %vm116_vm2, %v28416_v28, 0.0 }
 0xfd5   :  { %v16597_v16 = vsel %vm116_vm2, %v28418_v56, 0.0 }
 0xfd6   :  { %v16598_v54 = vadd.f32 %v16597_v16, %v16596_v25 }
 0xfd7   :  { %v28424_v36 = vpop.f32.mrb[18].mxu0 }
 0xfd8   :  { %v28426_v8 = vpop.f32.mrb[19].mxu0  ;;  %v16600_v50 = vadd.f32 %v16599_v53, %v16598_v54  ;;  %v16603_v3 = vsel %vm116_vm2, %v28424_v36, 0.0 }
 0xfd9   :  { %v16601_v35 = vsel %vm116_vm2, %v28426_v8, 0.0 }
 0xfda   :  { %v16602_v5 = vadd.f32 %v16601_v35, %v16600_v50 }
 0xfdb   :  { %v28432_v39 = vpop.f32.mrb[20].mxu0 }
 0xfdc   :  { %v28434_v11 = vpop.f32.mrb[21].mxu0  ;;  %v16604_v10 = vadd.f32 %v16603_v3, %v16602_v5  ;;  %v16607_v26 = vsel %vm116_vm2, %v28432_v39, 0.0 }
 0xfdd   :  { %v16605_v20 = vsel %vm116_vm2, %v28434_v11, 0.0 }
 0xfde   :  { %v16606_v51 = vadd.f32 %v16605_v20, %v16604_v10 }
 0xfdf   :  { %v28440_v59 = vpop.f32.mrb[22].mxu0 }
 0xfe0   :  { %v28442_v45 = vpop.f32.mrb[23].mxu0  ;;  %v16608_v4 = vadd.f32 %v16607_v26, %v16606_v51  ;;  %v16611_v18 = vsel %vm116_vm2, %v28440_v59, 0.0 }
 0xfe1   :  { %v16609_v9 = vsel %vm116_vm2, %v28442_v45, 0.0 }
 0xfe2   :  { %v16610_v13 = vadd.f32 %v16609_v9, %v16608_v4 }
 0xfe3   :  { %v28448_v24 = vpop.f32.mrb[24].mxu0 }
 0xfe4   :  { %v28450_v40 = vpop.f32.mrb[25].mxu0  ;;  %v16612_v38 = vadd.f32 %v16611_v18, %v16610_v13  ;;  %v16615_v1 = vsel %vm116_vm2, %v28448_v24, 0.0 }
 0xfe5   :  { %v16613_v17 = vsel %vm116_vm2, %v28450_v40, 0.0 }
 0xfe6   :  { %v16614_v33 = vadd.f32 %v16613_v17, %v16612_v38 }
 0xfe7   :  { %v28456_v15 = vpop.f32.mrb[26].mxu0 }
 0xfe8   :  { %v28458_v30 = vpop.f32.mrb[27].mxu0  ;;  %v16616_v23 = vadd.f32 %v16615_v1, %v16614_v33  ;;  %v16619_v7 = vsel %vm116_vm2, %v28456_v15, 0.0 }
 0xfe9   :  { %v16617_v31 = vsel %vm116_vm2, %v28458_v30, 0.0 }
 0xfea   :  { %v16618_v61 = vadd.f32 %v16617_v31, %v16616_v23 }
 0xfeb   :  { %v28464_v48 = vpop.f32.mrb[28].mxu0 }
 0xfec   :  { %v28466_v60 = vpop.f32.mrb[29].mxu0  ;;  %v16620_v46 = vadd.f32 %v16619_v7, %v16618_v61  ;;  %v16623_v6 = vsel %vm116_vm2, %v28464_v48, 0.0 }
 0xfed   :  { %v16621_v62 = vsel %vm116_vm2, %v28466_v60, 0.0 }
 0xfee   :  { %v16622_v57 = vadd.f32 %v16621_v62, %v16620_v46 }
 0xfef   :  { %v28472_v41 = vpop.f32.mrb[30].mxu0 }
 0xff0   :  { %v28474_v34 = vpop.f32.mrb[31].mxu0  ;;  %v16624_v2 = vadd.f32 %v16623_v6, %v16622_v57  ;;  %v16627_v49 = vsel %vm116_vm2, %v28472_v41, 0.0 }
 0xff1   :  { %v16625_v22 = vsel %vm116_vm2, %v28474_v34, 0.0 }
 0xff2   :  { %v16626_v29 = vadd.f32 %v16625_v22, %v16624_v2 }
 0xff3   :  { %v28480_v19 = vpop.f32.mrb[32].mxu0 }
 0xff4   :  { %v28482_v58 = vpop.f32.mrb[33].mxu0  ;;  %v16628_v21 = vadd.f32 %v16627_v49, %v16626_v29  ;;  %v16631_v32 = vsel %vm116_vm2, %v28480_v19, 0.0 }
 0xff5   :  { %v16629_v12 = vsel %vm116_vm2, %v28482_v58, 0.0 }
 0xff6   :  { %v16630_v63 = vadd.f32 %v16629_v12, %v16628_v21 }
 0xff7   :  { %v28488_v55 = vpop.f32.mrb[34].mxu0 }
 0xff8   :  { %v28490_v44 = vpop.f32.mrb[35].mxu0  ;;  %v16632_v14 = vadd.f32 %v16631_v32, %v16630_v63  ;;  %v16635_v16 = vsel %vm116_vm2, %v28488_v55, 0.0 }
 0xff9   :  { %v16633_v43 = vsel %vm116_vm2, %v28490_v44, 0.0 }
 0xffa   :  { %v16634_v25 = vadd.f32 %v16633_v43, %v16632_v14 }
 0xffb   :  { %v28496_v54 = vpop.f32.mrb[36].mxu0 }
 0xffc   :  { %v28498_v53 = vpop.f32.mrb[37].mxu0  ;;  %v16636_v50 = vadd.f32 %v16635_v16, %v16634_v25  ;;  %v16639_v3 = vsel %vm116_vm2, %v28496_v54, 0.0 }
 0xffd   :  { %v16637_v35 = vsel %vm116_vm2, %v28498_v53, 0.0 }
 0xffe   :  { %v16638_v5 = vadd.f32 %v16637_v35, %v16636_v50 }
 0xfff   :  { %v28504_v10 = vpop.f32.mrb[38].mxu0 }
0x1000   :  { %v28506_v20 = vpop.f32.mrb[39].mxu0  ;;  %v16640_v51 = vadd.f32 %v16639_v3, %v16638_v5  ;;  %v16643_v9 = vsel %vm116_vm2, %v28504_v10, 0.0 }
0x1001   :  { %v16641_v26 = vsel %vm116_vm2, %v28506_v20, 0.0 }
0x1002   :  { %v16642_v4 = vadd.f32 %v16641_v26, %v16640_v51 }
0x1003   :  { %v28512_v13 = vpop.f32.mrb[40].mxu0 }
0x1004   :  { %v28514_v18 = vpop.f32.mrb[41].mxu0  ;;  %v16644_v38 = vadd.f32 %v16643_v9, %v16642_v4  ;;  %v16647_v1 = vsel %vm116_vm2, %v28512_v13, 0.0 }
0x1005   :  { %v16645_v17 = vsel %vm116_vm2, %v28514_v18, 0.0 }
0x1006   :  { %v16646_v33 = vadd.f32 %v16645_v17, %v16644_v38 }
0x1007   :  { %v28520_v23 = vpop.f32.mrb[42].mxu0 }
0x1008   :  { %v28522_v31 = vpop.f32.mrb[43].mxu0  ;;  %v16648_v61 = vadd.f32 %v16647_v1, %v16646_v33  ;;  %v16651_v62 = vsel %vm116_vm2, %v28520_v23, 0.0 }
0x1009   :  { %v16649_v7 = vsel %vm116_vm2, %v28522_v31, 0.0 }
0x100a   :  { %v16650_v46 = vadd.f32 %v16649_v7, %v16648_v61 }
0x100b   :  { %v28528_v57 = vpop.f32.mrb[44].mxu0 }
0x100c   :  { %v28530_v6 = vpop.f32.mrb[45].mxu0  ;;  %v16652_v2 = vadd.f32 %v16651_v62, %v16650_v46  ;;  %v16655_v49 = vsel %vm116_vm2, %v28528_v57, 0.0 }
0x100d   :  { %v16653_v22 = vsel %vm116_vm2, %v28530_v6, 0.0 }
0x100e   :  { %v16654_v29 = vadd.f32 %v16653_v22, %v16652_v2 }
0x100f   :  { %v28536_v21 = vpop.f32.mrb[46].mxu0 }
0x1010   :  { %v28538_v12 = vpop.f32.mrb[47].mxu0  ;;  %v16656_v63 = vadd.f32 %v16655_v49, %v16654_v29  ;;  %v16659_v43 = vsel %vm116_vm2, %v28536_v21, 0.0 }
0x1011   :  { %v16657_v32 = vsel %vm116_vm2, %v28538_v12, 0.0 }
0x1012   :  { %v16658_v14 = vadd.f32 %v16657_v32, %v16656_v63 }
0x1013   :  { %v28544_v25 = vpop.f32.mrb[48].mxu0 }
0x1014   :  { %v28546_v16 = vpop.f32.mrb[49].mxu0  ;;  %v16660_v50 = vadd.f32 %v16659_v43, %v16658_v14  ;;  %v16663_v3 = vsel %vm116_vm2, %v28544_v25, 0.0 }
0x1015   :  { %v16661_v35 = vsel %vm116_vm2, %v28546_v16, 0.0 }
0x1016   :  { %v16662_v5 = vadd.f32 %v16661_v35, %v16660_v50 }
0x1017   :  { %v28552_v51 = vpop.f32.mrb[50].mxu0 }
0x1018   :  { %v28554_v26 = vpop.f32.mrb[51].mxu0  ;;  %v16664_v4 = vadd.f32 %v16663_v3, %v16662_v5  ;;  %v16667_v17 = vsel %vm116_vm2, %v28552_v51, 0.0 }
0x1019   :  { %v16665_v9 = vsel %vm116_vm2, %v28554_v26, 0.0 }
0x101a   :  { %v16666_v38 = vadd.f32 %v16665_v9, %v16664_v4 }
0x101b   :  { %v28560_v33 = vpop.f32.mrb[52].mxu0 }
0x101c   :  { %v28562_v1 = vpop.f32.mrb[53].mxu0  ;;  %v16668_v61 = vadd.f32 %v16667_v17, %v16666_v38  ;;  %v16671_v62 = vsel %vm116_vm2, %v28560_v33, 0.0 }
0x101d   :  { %v16669_v7 = vsel %vm116_vm2, %v28562_v1, 0.0 }
0x101e   :  { %v16670_v46 = vadd.f32 %v16669_v7, %v16668_v61 }
0x101f   :  { %v28568_v2 = vpop.f32.mrb[54].mxu0 }
0x1020   :  { %v28570_v22 = vpop.f32.mrb[55].mxu0  ;;  %v16672_v29 = vadd.f32 %v16671_v62, %v16670_v46  ;;  %v16675_v32 = vsel %vm116_vm2, %v28568_v2, 0.0 }
0x1021   :  { %v16673_v49 = vsel %vm116_vm2, %v28570_v22, 0.0 }
0x1022   :  { %v16674_v63 = vadd.f32 %v16673_v49, %v16672_v29 }
0x1023   :  { %v28576_v14 = vpop.f32.mrb[56].mxu0 }
0x1024   :  { %30608 = vst [vmem:[#allocation7_spill] sm:$0xff] %v28576_v14  ;;  %v28578_v43 = vpop.f32.mrb[57].mxu0  ;;  %v16676_v50 = vadd.f32 %v16675_v32, %v16674_v63  ;;  %v16679_v3 = vsel %vm116_vm2, %v28576_v14, 0.0 }
0x1025   :  { %v16677_v35 = vsel %vm116_vm2, %v28578_v43, 0.0 }
0x1026   :  { %v16678_v5 = vadd.f32 %v16677_v35, %v16676_v50 }
0x1027   :  { %v28584_v4 = vpop.f32.mrb[58].mxu0 }
0x1028   :  { %30609 = vst [vmem:[#allocation6_spill] sm:$0xff] %v28584_v4  ;;  %v28586_v9 = vpop.f32.mrb[59].mxu0  ;;  %v16680_v38 = vadd.f32 %v16679_v3, %v16678_v5  ;;  %v16683_v7 = vsel %vm116_vm2, %v28584_v4, 0.0 }
0x1029   :  { %30610 = vst [vmem:[#allocation8_spill] sm:$0xff] %v28586_v9  ;;  %v16681_v17 = vsel %vm116_vm2, %v28586_v9, 0.0 }
0x102a   :  { %v16682_v61 = vadd.f32 %v16681_v17, %v16680_v38 }
0x102b   :  { %v28592_v46 = vpop.f32.mrb[60].mxu0 }
0x102c   :  { %30611 = vst [vmem:[#allocation9_spill] sm:$0xff] %v28592_v46  ;;  %v28594_v62 = vpop.f32.mrb[61].mxu0  ;;  %v16684_v29 = vadd.f32 %v16683_v7, %v16682_v61  ;;  %v16687_v32 = vsel %vm116_vm2, %v28592_v46, 0.0 }
0x102d   :  { %30612 = vst [vmem:[#allocation65_spill] sm:$0xff] %v28594_v62  ;;  %v16685_v49 = vsel %vm116_vm2, %v28594_v62, 0.0 }
0x102e   :  { %v16686_v63 = vadd.f32 %v16685_v49, %v16684_v29 }
0x102f   :  { %v28600_v50 = vpop.f32.mrb[62].mxu0 }
0x1030   :  { %30613 = vst [vmem:[#allocation66_spill] sm:$0xff] %v28600_v50  ;;  %v28602_v35 = vpop.f32.mrb[63].mxu0  ;;  %v16688_v5 = vadd.f32 %v16687_v32, %v16686_v63  ;;  %v16691_v17 = vsel %vm116_vm2, %v28600_v50, 0.0 }
0x1031   :  { %30614 = vst [vmem:[#allocation67_spill] sm:$0xff] %v28602_v35  ;;  %v16689_v3 = vsel %vm116_vm2, %v28602_v35, 0.0 }
0x1032   :  { %v16690_v38 = vadd.f32 %v16689_v3, %v16688_v5 }
0x1033   :  { %v28608_v61 = vpop.f32.mrb[64].mxu0 }
0x1034   :  { %30615 = vst [vmem:[#allocation68_spill] sm:$0xff] %v28608_v61  ;;  %v28610_v7 = vpop.f32.mrb[65].mxu0  ;;  %v16692_v29 = vadd.f32 %v16691_v17, %v16690_v38  ;;  %v16695_v62 = vsel %vm116_vm2, %v28608_v61, 0.0 }
0x1035   :  { %30616 = vst [vmem:[#allocation69_spill] sm:$0xff] %v28610_v7  ;;  %v16693_v49 = vsel %vm116_vm2, %v28610_v7, 0.0 }
0x1036   :  { %v16694_v46 = vadd.f32 %v16693_v49, %v16692_v29 }
0x1037   :  { %v28616_v63 = vpop.f32.mrb[66].mxu0 }
0x1038   :  { %30617 = vst [vmem:[#allocation70_spill] sm:$0xff] %v28616_v63  ;;  %v28618_v32 = vpop.f32.mrb[67].mxu0  ;;  %v16696_v5 = vadd.f32 %v16695_v62, %v16694_v46  ;;  %v16699_v35 = vsel %vm116_vm2, %v28616_v63, 0.0 }
0x1039   :  { %30618 = vst [vmem:[#allocation71_spill] sm:$0xff] %v28618_v32  ;;  %v16697_v3 = vsel %vm116_vm2, %v28618_v32, 0.0 }
0x103a   :  { %v16698_v50 = vadd.f32 %v16697_v3, %v16696_v5 }
0x103b   :  { %v28624_v38 = vpop.f32.mrb[68].mxu0 }
0x103c   :  { %30619 = vst [vmem:[#allocation72_spill] sm:$0xff] %v28624_v38  ;;  %v28626_v17 = vpop.f32.mrb[69].mxu0  ;;  %v16700_v29 = vadd.f32 %v16699_v35, %v16698_v50  ;;  %v16703_v7 = vsel %vm116_vm2, %v28624_v38, 0.0 }
0x103d   :  { %30620 = vst [vmem:[#allocation73_spill] sm:$0xff] %v28626_v17  ;;  %v16701_v49 = vsel %vm116_vm2, %v28626_v17, 0.0 }
0x103e   :  { %v16702_v61 = vadd.f32 %v16701_v49, %v16700_v29 }
0x103f   :  { %v28632_v46 = vpop.f32.mrb[70].mxu0 }
0x1040   :  { %30621 = vst [vmem:[#allocation10_spill] sm:$0xff] %v28632_v46  ;;  %v28634_v62 = vpop.f32.mrb[71].mxu0  ;;  %v16704_v5 = vadd.f32 %v16703_v7, %v16702_v61  ;;  %v16707_v32 = vsel %vm116_vm2, %v28632_v46, 0.0 }
0x1041   :  { %30622 = vst [vmem:[#allocation12_spill] sm:$0xff] %v28634_v62  ;;  %v16705_v3 = vsel %vm116_vm2, %v28634_v62, 0.0 }
0x1042   :  { %v16706_v63 = vadd.f32 %v16705_v3, %v16704_v5 }
0x1043   :  { %v28640_v50 = vpop.f32.mrb[72].mxu0 }
0x1044   :  { %v28642_v35 = vpop.f32.mrb[73].mxu0  ;;  %v16708_v29 = vadd.f32 %v16707_v32, %v16706_v63  ;;  %v16711_v17 = vsel %vm116_vm2, %v28640_v50, 0.0 }
0x1045   :  { %v16709_v49 = vsel %vm116_vm2, %v28642_v35, 0.0 }
0x1046   :  { %v16710_v38 = vadd.f32 %v16709_v49, %v16708_v29  ;;  %v30633_v29 = vld [vmem:[#allocation65_spill] sm:$0xff] }
0x1047   :  { %v30635_v49 = vld [vmem:[#allocation9_spill] sm:$0xff] }
0x1048   :  { %v16712_v61 = vadd.f32 %v16711_v17, %v16710_v38  ;;  %v30629_v17 = vld [vmem:[#allocation8_spill] sm:$0xff] }
0x104a   :  { %v16713_v7 = vrot.slane %v16712_v61, 4 }
0x104c   :  { %v16714_v4 = vadd.f32 %v16713_v7, %v16712_v61  ;;  %v30637_v61 = vld [vmem:[#allocation67_spill] sm:$0xff] }
0x104e   :  { %v16715_v62 = vrot.slane %v16714_v4, 2 }
0x1050   :  { %v16716_v5 = vadd.f32 %v16715_v62, %v16714_v4  ;;  %v30631_v62 = vld [vmem:[#allocation6_spill] sm:$0xff] }
0x1052   :  { %v16717_v3 = vrot.slane %v16716_v5, 1 }
0x1054   :  { %v16718_v9 = vadd.f32 %v16717_v3, %v16716_v5  ;;  %v30639_v5 = vld [vmem:[#allocation66_spill] sm:$0xff] }
0x1056   :  { %v28648_v46 = vmul.f32 0.001953125, %v16718_v9  ;;  %v30627_v9 = vld [vmem:[#allocation7_spill] sm:$0xff] }
0x1058   :  { %v28652_v14 = vsub.f32 %v28396_v47, %v28648_v46  ;;  %v28656_v63 = vsub.f32 %v28392_v0, %v28648_v46  ;;  %v28660_v32 = vsub.f32 %v28402_v52, %v28648_v46  ;;  %v28664_v38 = vsub.f32 %v28400_v37, %v28648_v46 }
0x1059   :  { %v28668_v4 = vsub.f32 %v28410_v42, %v28648_v46  ;;  %v28672_v47 = vsub.f32 %v28408_v27, %v28648_v46  ;;  %v28676_v0 = vsub.f32 %v28418_v56, %v28648_v46  ;;  %v28680_v52 = vsub.f32 %v28416_v28, %v28648_v46 }
0x105a   :  { %30623 = vst [vmem:[#allocation11_spill] sm:$0xff] %v28652_v14  ;;  %30624 = vst [vmem:[#allocation14_spill] sm:$0xff] %v28656_v63  ;;  %v28684_v37 = vsub.f32 %v28426_v8, %v28648_v46  ;;  %v28688_v42 = vsub.f32 %v28424_v36, %v28648_v46  ;;  %v28692_v27 = vsub.f32 %v28434_v11, %v28648_v46 }
0x105b   :  { %30625 = vst [vmem:[#allocation13_spill] sm:$0xff] %v28660_v32  ;;  %30626 = vst [vmem:[#allocation16_spill] sm:$0xff] %v28664_v38  ;;  %v28696_v56 = vsub.f32 %v28432_v39, %v28648_v46  ;;  %v28700_v28 = vsub.f32 %v28442_v45, %v28648_v46  ;;  %v28704_v8 = vsub.f32 %v28440_v59, %v28648_v46 }
0x105c   :  { %v28708_v36 = vsub.f32 %v28450_v40, %v28648_v46  ;;  %v28712_v11 = vsub.f32 %v28448_v24, %v28648_v46  ;;  %v28716_v39 = vsub.f32 %v28458_v30, %v28648_v46  ;;  %v28720_v45 = vsub.f32 %v28456_v15, %v28648_v46 }
0x105d   :  { %v28724_v59 = vsub.f32 %v28466_v60, %v28648_v46  ;;  %v28728_v40 = vsub.f32 %v28464_v48, %v28648_v46  ;;  %v28732_v24 = vsub.f32 %v28474_v34, %v28648_v46  ;;  %v28736_v30 = vsub.f32 %v28472_v41, %v28648_v46 }
0x105e   :  { %v28740_v15 = vsub.f32 %v28482_v58, %v28648_v46  ;;  %v28744_v60 = vsub.f32 %v28480_v19, %v28648_v46  ;;  %v28748_v48 = vsub.f32 %v28490_v44, %v28648_v46  ;;  %v28752_v34 = vsub.f32 %v28488_v55, %v28648_v46 }
0x105f   :  { %v28756_v41 = vsub.f32 %v28498_v53, %v28648_v46  ;;  %v28760_v58 = vsub.f32 %v28496_v54, %v28648_v46  ;;  %v28764_v19 = vsub.f32 %v28506_v20, %v28648_v46  ;;  %v28768_v44 = vsub.f32 %v28504_v10, %v28648_v46 }
0x1060   :  { %v28772_v55 = vsub.f32 %v28514_v18, %v28648_v46  ;;  %v28776_v53 = vsub.f32 %v28512_v13, %v28648_v46  ;;  %v28780_v54 = vsub.f32 %v28522_v31, %v28648_v46  ;;  %v28784_v20 = vsub.f32 %v28520_v23, %v28648_v46 }
0x1061   :  { %v28788_v10 = vsub.f32 %v28530_v6, %v28648_v46  ;;  %v28792_v18 = vsub.f32 %v28528_v57, %v28648_v46  ;;  %v28796_v13 = vsub.f32 %v28538_v12, %v28648_v46  ;;  %v28800_v31 = vsub.f32 %v28536_v21, %v28648_v46 }
0x1062   :  { %v28804_v23 = vsub.f32 %v28546_v16, %v28648_v46  ;;  %v28808_v6 = vsub.f32 %v28544_v25, %v28648_v46  ;;  %v28812_v57 = vsub.f32 %v28554_v26, %v28648_v46  ;;  %v28816_v12 = vsub.f32 %v28552_v51, %v28648_v46 }
0x1063   :  { %v28820_v21 = vsub.f32 %v28562_v1, %v28648_v46  ;;  %v28824_v16 = vsub.f32 %v28560_v33, %v28648_v46  ;;  %v28828_v25 = vsub.f32 %v28570_v22, %v28648_v46  ;;  %v28832_v26 = vsub.f32 %v28568_v2, %v28648_v46 }
0x1064   :  { %v28836_v51 = vsub.f32 %v28578_v43, %v28648_v46  ;;  %v28840_v1 = vsub.f32 %v30627_v9, %v28648_v46  ;;  %v28844_v33 = vsub.f32 %v30629_v17, %v28648_v46  ;;  %v28848_v22 = vsub.f32 %v30631_v62, %v28648_v46  ;;  %v30641_v9 = vld [vmem:[#allocation69_spill] sm:$0xff]  ;;  %v30643_v62 = vld [vmem:[#allocation68_spill] sm:$0xff] }
0x1065   :  { %v28852_v2 = vsub.f32 %v30633_v29, %v28648_v46  ;;  %v28856_v43 = vsub.f32 %v30635_v49, %v28648_v46  ;;  %v28860_v7 = vsub.f32 %v30637_v61, %v28648_v46  ;;  %v28864_v3 = vsub.f32 %v30639_v5, %v28648_v46 }
0x1066   :  { %30628 = vst [vmem:[#allocation15_spill] sm:$0xff] %v28840_v1  ;;  %30630 = vst [vmem:[#allocation18_spill] sm:$0xff] %v28844_v33  ;;  %v28868_v17 = vsub.f32 %v30641_v9, %v28648_v46  ;;  %v28872_v29 = vsub.f32 %v30643_v62, %v28648_v46 }
0x1067   :  { %30632 = vst [vmem:[#allocation17_spill] sm:$0xff] %v28848_v22  ;;  %30634 = vst [vmem:[#allocation20_spill] sm:$0xff] %v28852_v2  ;;  %v30645_v2 = vld [vmem:[#allocation71_spill] sm:$0xff] }
0x1068   :  { %30636 = vst [vmem:[#allocation19_spill] sm:$0xff] %v28856_v43  ;;  %30638 = vst [vmem:[#allocation22_spill] sm:$0xff] %v28860_v7  ;;  %v28876_v49 = vsub.f32 %v30645_v2, %v28648_v46  ;;  %v30647_v43 = vld [vmem:[#allocation70_spill] sm:$0xff]  ;;  %v30649_v7 = vld [vmem:[#allocation73_spill] sm:$0xff] }
0x1069   :  { %30640 = vst [vmem:[#allocation21_spill] sm:$0xff] %v28864_v3  ;;  %30642 = vst [vmem:[#allocation24_spill] sm:$0xff] %v28868_v17  ;;  %v28880_v61 = vsub.f32 %v30647_v43, %v28648_v46  ;;  %v28884_v5 = vsub.f32 %v30649_v7, %v28648_v46  ;;  %v30651_v3 = vld [vmem:[#allocation72_spill] sm:$0xff]  ;;  %v28900_v43 = vsub.f32 %v28642_v35, %v28648_v46 }
0x106a   :  { %30644 = vst [vmem:[#allocation23_spill] sm:$0xff] %v28872_v29  ;;  %30646 = vst [vmem:[#allocation44_spill] sm:$0xff] %v28876_v49  ;;  %v28888_v9 = vsub.f32 %v30651_v3, %v28648_v46  ;;  %v30653_v17 = vld [vmem:[#allocation12_spill] sm:$0xff]  ;;  %v30655_v29 = vld [vmem:[#allocation10_spill] sm:$0xff]  ;;  %v28904_v7 = vsub.f32 %v28640_v50, %v28648_v46  ;;  %v16784_v3 = vmul.f32 %v28652_v14, %v28652_v14 }
0x106b   :  { %30648 = vst [vmem:[#allocation45_spill] sm:$0xff] %v28880_v61  ;;  %30650 = vst [vmem:[#allocation25_spill] sm:$0xff] %v28884_v5  ;;  %v28892_v62 = vsub.f32 %v30653_v17, %v28648_v46  ;;  %v28896_v2 = vsub.f32 %v30655_v29, %v28648_v46  ;;  %v16786_v17 = vmul.f32 %v28660_v32, %v28660_v32 }
0x106c   :  { %30652 = vst [vmem:[#allocation26_spill] sm:$0xff] %v28888_v9  ;;  %30657 = vst [vmem:[#allocation29_spill] sm:$0xff] %v28900_v43  ;;  %v16785_v9 = vmul.f32 %v28656_v63, %v28656_v63  ;;  %v16787_v29 = vmul.f32 %v28664_v38, %v28664_v38  ;;  %v16788_v46 = vmul.f32 %v28668_v4, %v28668_v4 }
0x106d   :  { %30654 = vst [vmem:[#allocation27_spill] sm:$0xff] %v28892_v62  ;;  %30656 = vst [vmem:[#allocation28_spill] sm:$0xff] %v28896_v2  ;;  %v16848_v2 = vsel %vm116_vm2, %v16784_v3, 0.0  ;;  %v16851_v50 = vsel %vm116_vm2, %v16786_v17, 0.0  ;;  %v16789_v63 = vmul.f32 %v28672_v47, %v28672_v47  ;;  %v16790_v38 = vmul.f32 %v28676_v0, %v28676_v0 }
0x106e   :  { %30658 = vst [vmem:[#allocation30_spill] sm:$0xff] %v28904_v7  ;;  %v16849_v35 = vsel %vm116_vm2, %v16785_v9, 0.0  ;;  %v16853_v7 = vsel %vm116_vm2, %v16787_v29, 0.0  ;;  %v16855_v3 = vsel %vm116_vm2, %v16788_v46, 0.0  ;;  %v16791_v9 = vmul.f32 %v28680_v52, %v28680_v52 }
0x106f   :  { %v16850_v43 = vadd.f32 %v16849_v35, %v16848_v2  ;;  %v16857_v2 = vsel %vm116_vm2, %v16789_v63, 0.0  ;;  %v16859_v17 = vsel %vm116_vm2, %v16790_v38, 0.0  ;;  %v16795_v63 = vmul.f32 %v28696_v56, %v28696_v56 }
0x1070   :  { %v16796_v38 = vmul.f32 %v28700_v28, %v28700_v28 }
0x1071   :  { %v16852_v14 = vadd.f32 %v16851_v50, %v16850_v43  ;;  %v16792_v43 = vmul.f32 %v28684_v37, %v28684_v37 }
0x1073   :  { %v16854_v32 = vadd.f32 %v16853_v7, %v16852_v14  ;;  %v16793_v14 = vmul.f32 %v28688_v42, %v28688_v42  ;;  %v16861_v7 = vsel %vm116_vm2, %v16791_v9, 0.0  ;;  %v16863_v46 = vsel %vm116_vm2, %v16792_v43, 0.0 }
0x1074   :  { %v16797_v9 = vmul.f32 %v28704_v8, %v28704_v8  ;;  %v16798_v43 = vmul.f32 %v28708_v36, %v28708_v36 }
0x1075   :  { %v16856_v62 = vadd.f32 %v16855_v3, %v16854_v32  ;;  %v16794_v32 = vmul.f32 %v28692_v27, %v28692_v27 }
0x1077   :  { %v16858_v35 = vadd.f32 %v16857_v2, %v16856_v62  ;;  %v16865_v62 = vsel %vm116_vm2, %v16793_v14, 0.0  ;;  %v16799_v14 = vmul.f32 %v28712_v11, %v28712_v11 }
0x1079   :  { %v16860_v50 = vadd.f32 %v16859_v17, %v16858_v35  ;;  %v16867_v35 = vsel %vm116_vm2, %v16794_v32, 0.0  ;;  %v16800_v32 = vmul.f32 %v28716_v39, %v28716_v39 }
0x107b   :  { %v16862_v29 = vadd.f32 %v16861_v7, %v16860_v50  ;;  %v16869_v50 = vsel %vm116_vm2, %v16795_v63, 0.0  ;;  %v16801_v63 = vmul.f32 %v28720_v45, %v28720_v45 }
0x107d   :  { %v16864_v3 = vadd.f32 %v16863_v46, %v16862_v29  ;;  %v16871_v29 = vsel %vm116_vm2, %v16796_v38, 0.0  ;;  %v16802_v38 = vmul.f32 %v28724_v59, %v28724_v59 }
0x107f   :  { %v16866_v2 = vadd.f32 %v16865_v62, %v16864_v3  ;;  %v16873_v3 = vsel %vm116_vm2, %v16797_v9, 0.0  ;;  %v16803_v9 = vmul.f32 %v28728_v40, %v28728_v40 }
0x1081   :  { %v16868_v17 = vadd.f32 %v16867_v35, %v16866_v2  ;;  %v16875_v2 = vsel %vm116_vm2, %v16798_v43, 0.0  ;;  %v16804_v43 = vmul.f32 %v28732_v24, %v28732_v24 }
0x1083   :  { %v16870_v7 = vadd.f32 %v16869_v50, %v16868_v17  ;;  %v16877_v17 = vsel %vm116_vm2, %v16799_v14, 0.0  ;;  %v16805_v14 = vmul.f32 %v28736_v30, %v28736_v30 }
0x1085   :  { %v16872_v46 = vadd.f32 %v16871_v29, %v16870_v7  ;;  %v16879_v7 = vsel %vm116_vm2, %v16800_v32, 0.0  ;;  %v16806_v32 = vmul.f32 %v28740_v15, %v28740_v15 }
0x1087   :  { %v16874_v62 = vadd.f32 %v16873_v3, %v16872_v46  ;;  %v16881_v46 = vsel %vm116_vm2, %v16801_v63, 0.0  ;;  %v16807_v63 = vmul.f32 %v28744_v60, %v28744_v60 }
0x1089   :  { %v16876_v35 = vadd.f32 %v16875_v2, %v16874_v62  ;;  %v16883_v62 = vsel %vm116_vm2, %v16802_v38, 0.0  ;;  %v16808_v38 = vmul.f32 %v28748_v48, %v28748_v48 }
0x108b   :  { %v16878_v50 = vadd.f32 %v16877_v17, %v16876_v35  ;;  %v16885_v35 = vsel %vm116_vm2, %v16803_v9, 0.0  ;;  %v16809_v9 = vmul.f32 %v28752_v34, %v28752_v34 }
0x108d   :  { %v16880_v29 = vadd.f32 %v16879_v7, %v16878_v50  ;;  %v16887_v50 = vsel %vm116_vm2, %v16804_v43, 0.0  ;;  %v16810_v43 = vmul.f32 %v28756_v41, %v28756_v41 }
0x108f   :  { %v16882_v3 = vadd.f32 %v16881_v46, %v16880_v29  ;;  %v16889_v29 = vsel %vm116_vm2, %v16805_v14, 0.0  ;;  %v16811_v14 = vmul.f32 %v28760_v58, %v28760_v58 }
0x1091   :  { %v16884_v2 = vadd.f32 %v16883_v62, %v16882_v3  ;;  %v16891_v3 = vsel %vm116_vm2, %v16806_v32, 0.0  ;;  %v16812_v32 = vmul.f32 %v28764_v19, %v28764_v19 }
0x1093   :  { %v16886_v17 = vadd.f32 %v16885_v35, %v16884_v2  ;;  %v16893_v2 = vsel %vm116_vm2, %v16807_v63, 0.0  ;;  %v16813_v63 = vmul.f32 %v28768_v44, %v28768_v44 }
0x1095   :  { %v16888_v7 = vadd.f32 %v16887_v50, %v16886_v17  ;;  %v16895_v17 = vsel %vm116_vm2, %v16808_v38, 0.0  ;;  %v16814_v38 = vmul.f32 %v28772_v55, %v28772_v55 }
0x1097   :  { %v16890_v46 = vadd.f32 %v16889_v29, %v16888_v7  ;;  %v16897_v7 = vsel %vm116_vm2, %v16809_v9, 0.0  ;;  %v16815_v9 = vmul.f32 %v28776_v53, %v28776_v53 }
0x1099   :  { %v16892_v62 = vadd.f32 %v16891_v3, %v16890_v46  ;;  %v16899_v46 = vsel %vm116_vm2, %v16810_v43, 0.0  ;;  %v16816_v43 = vmul.f32 %v28780_v54, %v28780_v54 }
0x109b   :  { %v16894_v35 = vadd.f32 %v16893_v2, %v16892_v62  ;;  %v16901_v62 = vsel %vm116_vm2, %v16811_v14, 0.0  ;;  %v16817_v14 = vmul.f32 %v28784_v20, %v28784_v20 }
0x109d   :  { %v16896_v50 = vadd.f32 %v16895_v17, %v16894_v35  ;;  %v16903_v35 = vsel %vm116_vm2, %v16812_v32, 0.0  ;;  %v16818_v32 = vmul.f32 %v28788_v10, %v28788_v10 }
0x109f   :  { %v16898_v29 = vadd.f32 %v16897_v7, %v16896_v50  ;;  %v16905_v50 = vsel %vm116_vm2, %v16813_v63, 0.0  ;;  %v16819_v63 = vmul.f32 %v28792_v18, %v28792_v18 }
0x10a1   :  { %v16900_v3 = vadd.f32 %v16899_v46, %v16898_v29  ;;  %v16907_v29 = vsel %vm116_vm2, %v16814_v38, 0.0  ;;  %v16820_v38 = vmul.f32 %v28796_v13, %v28796_v13 }
0x10a3   :  { %v16902_v2 = vadd.f32 %v16901_v62, %v16900_v3  ;;  %v16909_v3 = vsel %vm116_vm2, %v16815_v9, 0.0  ;;  %v16821_v9 = vmul.f32 %v28800_v31, %v28800_v31 }
0x10a5   :  { %v16904_v17 = vadd.f32 %v16903_v35, %v16902_v2  ;;  %v16911_v2 = vsel %vm116_vm2, %v16816_v43, 0.0  ;;  %v16822_v43 = vmul.f32 %v28804_v23, %v28804_v23 }
0x10a7   :  { %v16906_v7 = vadd.f32 %v16905_v50, %v16904_v17  ;;  %v16913_v17 = vsel %vm116_vm2, %v16817_v14, 0.0  ;;  %v16823_v14 = vmul.f32 %v28808_v6, %v28808_v6 }
0x10a9   :  { %v16908_v46 = vadd.f32 %v16907_v29, %v16906_v7  ;;  %v16915_v7 = vsel %vm116_vm2, %v16818_v32, 0.0  ;;  %v16824_v32 = vmul.f32 %v28812_v57, %v28812_v57 }
0x10ab   :  { %v16910_v62 = vadd.f32 %v16909_v3, %v16908_v46  ;;  %v16917_v46 = vsel %vm116_vm2, %v16819_v63, 0.0  ;;  %v16825_v63 = vmul.f32 %v28816_v12, %v28816_v12 }
0x10ad   :  { %v16912_v35 = vadd.f32 %v16911_v2, %v16910_v62  ;;  %v16919_v62 = vsel %vm116_vm2, %v16820_v38, 0.0  ;;  %v16826_v38 = vmul.f32 %v28820_v21, %v28820_v21 }
0x10af   :  { %v16914_v50 = vadd.f32 %v16913_v17, %v16912_v35  ;;  %v16921_v35 = vsel %vm116_vm2, %v16821_v9, 0.0  ;;  %v16827_v9 = vmul.f32 %v28824_v16, %v28824_v16 }
0x10b1   :  { %v16916_v29 = vadd.f32 %v16915_v7, %v16914_v50  ;;  %v16923_v50 = vsel %vm116_vm2, %v16822_v43, 0.0  ;;  %v16828_v43 = vmul.f32 %v28828_v25, %v28828_v25 }
0x10b3   :  { %v16918_v3 = vadd.f32 %v16917_v46, %v16916_v29  ;;  %v16925_v29 = vsel %vm116_vm2, %v16823_v14, 0.0  ;;  %v16829_v14 = vmul.f32 %v28832_v26, %v28832_v26 }
0x10b5   :  { %v16920_v2 = vadd.f32 %v16919_v62, %v16918_v3  ;;  %v16927_v3 = vsel %vm116_vm2, %v16824_v32, 0.0  ;;  %v16830_v32 = vmul.f32 %v28836_v51, %v28836_v51 }
0x10b7   :  { %v16922_v17 = vadd.f32 %v16921_v35, %v16920_v2  ;;  %v16929_v2 = vsel %vm116_vm2, %v16825_v63, 0.0  ;;  %v16831_v63 = vmul.f32 %v28840_v1, %v28840_v1 }
0x10b9   :  { %v16924_v7 = vadd.f32 %v16923_v50, %v16922_v17  ;;  %v16931_v17 = vsel %vm116_vm2, %v16826_v38, 0.0  ;;  %v16832_v38 = vmul.f32 %v28844_v33, %v28844_v33 }
0x10bb   :  { %v16926_v46 = vadd.f32 %v16925_v29, %v16924_v7  ;;  %v16933_v7 = vsel %vm116_vm2, %v16827_v9, 0.0  ;;  %v16833_v9 = vmul.f32 %v28848_v22, %v28848_v22 }
0x10bd   :  { %v16928_v62 = vadd.f32 %v16927_v3, %v16926_v46  ;;  %v16935_v46 = vsel %vm116_vm2, %v16828_v43, 0.0  ;;  %v30659_v43 = vld [vmem:[#allocation20_spill] sm:$0xff] }
0x10bf   :  { %v16930_v35 = vadd.f32 %v16929_v2, %v16928_v62  ;;  %v16937_v62 = vsel %vm116_vm2, %v16829_v14, 0.0  ;;  %v30660_v14 = vld [vmem:[#allocation19_spill] sm:$0xff] }
0x10c1   :  { %v16932_v50 = vadd.f32 %v16931_v17, %v16930_v35  ;;  %v16939_v35 = vsel %vm116_vm2, %v16830_v32, 0.0  ;;  %v30661_v32 = vld [vmem:[#allocation22_spill] sm:$0xff] }
0x10c3   :  { %v16934_v29 = vadd.f32 %v16933_v7, %v16932_v50  ;;  %v16941_v50 = vsel %vm116_vm2, %v16831_v63, 0.0  ;;  %v30662_v63 = vld [vmem:[#allocation21_spill] sm:$0xff] }
0x10c5   :  { %v16936_v3 = vadd.f32 %v16935_v46, %v16934_v29  ;;  %v16834_v29 = vmul.f32 %v30659_v43, %v30659_v43  ;;  %v16943_v46 = vsel %vm116_vm2, %v16832_v38, 0.0  ;;  %v30663_v38 = vld [vmem:[#allocation24_spill] sm:$0xff] }
0x10c7   :  { %v16938_v2 = vadd.f32 %v16937_v62, %v16936_v3  ;;  %v16835_v3 = vmul.f32 %v30660_v14, %v30660_v14  ;;  %v16945_v62 = vsel %vm116_vm2, %v16833_v9, 0.0  ;;  %v30664_v9 = vld [vmem:[#allocation23_spill] sm:$0xff] }
0x10c9   :  { %v16940_v17 = vadd.f32 %v16939_v35, %v16938_v2  ;;  %v16836_v2 = vmul.f32 %v30661_v32, %v30661_v32  ;;  %v16947_v35 = vsel %vm116_vm2, %v16834_v29, 0.0 }
0x10cb   :  { %v16942_v7 = vadd.f32 %v16941_v50, %v16940_v17  ;;  %v16837_v17 = vmul.f32 %v30662_v63, %v30662_v63  ;;  %v16949_v50 = vsel %vm116_vm2, %v16835_v3, 0.0 }
0x10cd   :  { %v16944_v1 = vadd.f32 %v16943_v46, %v16942_v7  ;;  %v16838_v7 = vmul.f32 %v30663_v38, %v30663_v38  ;;  %v16951_v46 = vsel %vm116_vm2, %v16836_v2, 0.0 }
0x10cf   :  { %v16946_v33 = vadd.f32 %v16945_v62, %v16944_v1  ;;  %v16839_v1 = vmul.f32 %v30664_v9, %v30664_v9  ;;  %v16953_v62 = vsel %vm116_vm2, %v16837_v17, 0.0  ;;  %v16955_v29 = vsel %vm116_vm2, %v16838_v7, 0.0  ;;  %v30665_v17 = vld [vmem:[#allocation26_spill] sm:$0xff]  ;;  %v30666_v7 = vld [vmem:[#allocation27_spill] sm:$0xff] }
0x10d1   :  { %v16948_v22 = vadd.f32 %v16947_v35, %v16946_v33  ;;  %v16840_v33 = vmul.f32 %v28876_v49, %v28876_v49  ;;  %v16957_v3 = vsel %vm116_vm2, %v16839_v1, 0.0  ;;  %v30667_v1 = vld [vmem:[#allocation28_spill] sm:$0xff] }
0x10d3   :  { %v16950_v43 = vadd.f32 %v16949_v50, %v16948_v22  ;;  %v16841_v22 = vmul.f32 %v28880_v61, %v28880_v61  ;;  %v16959_v2 = vsel %vm116_vm2, %v16840_v33, 0.0  ;;  %v30668_v33 = vld [vmem:[#allocation29_spill] sm:$0xff] }
0x10d5   :  { %v16952_v14 = vadd.f32 %v16951_v46, %v16950_v43  ;;  %v16842_v43 = vmul.f32 %v28884_v5, %v28884_v5 }
0x10d7   :  { %v16954_v32 = vadd.f32 %v16953_v62, %v16952_v14  ;;  %v16843_v14 = vmul.f32 %v30665_v17, %v30665_v17  ;;  %v16961_v62 = vsel %vm116_vm2, %v16841_v22, 0.0  ;;  %v30669_v22 = vld [vmem:[#allocation30_spill] sm:$0xff] }
0x10d9   :  { %v16956_v35 = vadd.f32 %v16955_v29, %v16954_v32  ;;  %v16844_v32 = vmul.f32 %v30666_v7, %v30666_v7  ;;  %v16963_v29 = vsel %vm116_vm2, %v16842_v43, 0.0 }
0x10db   :  { %v16958_v50 = vadd.f32 %v16957_v3, %v16956_v35  ;;  %v16845_v35 = vmul.f32 %v30667_v1, %v30667_v1  ;;  %v16965_v3 = vsel %vm116_vm2, %v16843_v14, 0.0 }
0x10dd   :  { %v16960_v46 = vadd.f32 %v16959_v2, %v16958_v50  ;;  %v16846_v50 = vmul.f32 %v30668_v33, %v30668_v33  ;;  %v16967_v2 = vsel %vm116_vm2, %v16844_v32, 0.0 }
0x10df   :  { %v16962_v49 = vadd.f32 %v16961_v62, %v16960_v46  ;;  %v16847_v46 = vmul.f32 %v30669_v22, %v30669_v22  ;;  %v16969_v62 = vsel %vm116_vm2, %v16845_v35, 0.0  ;;  %v16984_v35 = vld [vmem:[%s29950_s8] sm:$0x1] }
0x10e1   :  { %v16964_v61 = vadd.f32 %v16963_v29, %v16962_v49  ;;  %v16971_v49 = vsel %vm116_vm2, %v16846_v50, 0.0  ;;  %v16973_v29 = vsel %vm116_vm2, %v16847_v46, 0.0  ;;  %v30670_v50 = vld [vmem:[#allocation4_spill] sm:$0xff]  ;;  %v30672_v46 = vld [vmem:[#allocation11_spill] sm:$0xff] }
0x10e3   :  { %v16966_v5 = vadd.f32 %v16965_v3, %v16964_v61 }
0x10e5   :  { %v16968_v17 = vadd.f32 %v16967_v2, %v16966_v5 }
0x10e7   :  { %v16970_v7 = vadd.f32 %v16969_v62, %v16968_v17 }
0x10e9   :  { %v16972_v43 = vadd.f32 %v16971_v49, %v16970_v7  ;;  %v30671_v7 = vsub.s32 0, %v30670_v50  ;;  %v30673_v49 = vld [vmem:[#allocation14_spill] sm:$0xff]  ;;  %v30679_v50 = vld [vmem:[#allocation20_spill] sm:$0xff] }
0x10eb   :  { %v16974_v1 = vadd.f32 %v16973_v29, %v16972_v43  ;;  %v30675_v43 = vld [vmem:[#allocation16_spill] sm:$0xff] }
0x10ed   :  { %v16975_v14 = vrot.slane %v16974_v1, 4 }
0x10ef   :  { %v16976_v61 = vadd.f32 %v16975_v14, %v16974_v1 }
0x10f1   :  { %v16977_v3 = vrot.slane %v16976_v61, 2 }
0x10f3   :  { %v16978_v9 = vadd.f32 %v16977_v3, %v16976_v61 }
0x10f5   :  { %v16979_v33 = vrot.slane %v16978_v9, 1 }
0x10f7   :  { %v16980_v38 = vadd.f32 %v16979_v33, %v16978_v9 }
0x10f9   :  { %v16981_v32 = vmul.f32 0.001953125, %v16980_v38  ;;  %v30674_v38 = vld [vmem:[#allocation13_spill] sm:$0xff] }
0x10fb   :  { %v16982_v5 = vadd.f32 1e-05, %v16981_v32 }
0x10fd   :  { %22553 = vrsqrt.f32 %v16982_v5 }
0x1107   :  { %v22554_v17 = vpop.eup %22553 }
0x1108   :  { %v16985_v2 = vmul.f32 %v22554_v17, %v16984_v35  ;;  %v30676_v35 = vld [vmem:[#allocation15_spill] sm:$0xff]  ;;  %v30677_v17 = vld [vmem:[#allocation18_spill] sm:$0xff] }
0x110a   :  { %v29103_v62 = vrot.slane %v16985_v2, %v30671_v7  ;;  %v30678_v2 = vld [vmem:[#allocation17_spill] sm:$0xff]  ;;  %v30681_v7 = vld [vmem:[#allocation19_spill] sm:$0xff] }
0x110c   :  { %v29107_v1 = vmul.f32 %v29103_v62, %v30672_v46  ;;  %v29111_v9 = vmul.f32 %v29103_v62, %v30673_v49  ;;  %v29115_v33 = vmul.f32 %v29103_v62, %v30674_v38  ;;  %v29119_v29 = vmul.f32 %v29103_v62, %v30675_v43  ;;  %v30683_v46 = vld [vmem:[#allocation22_spill] sm:$0xff]  ;;  %v30686_v43 = vld [vmem:[#allocation24_spill] sm:$0xff] }
0x110d   :  { %v29123_v14 = vmul.f32 %v29103_v62, %v28668_v4  ;;  %v29127_v61 = vmul.f32 %v29103_v62, %v28672_v47  ;;  %v29131_v3 = vmul.f32 %v29103_v62, %v28676_v0  ;;  %v29135_v32 = vmul.f32 %v29103_v62, %v28680_v52 }
0x110e   :  { %v29139_v5 = vmul.f32 %v29103_v62, %v28684_v37  ;;  %v29143_v4 = vmul.f32 %v29103_v62, %v28688_v42  ;;  %v29147_v47 = vmul.f32 %v29103_v62, %v28692_v27  ;;  %v29151_v0 = vmul.f32 %v29103_v62, %v28696_v56 }
0x110f   :  { %v29155_v52 = vmul.f32 %v29103_v62, %v28700_v28  ;;  %v29159_v37 = vmul.f32 %v29103_v62, %v28704_v8  ;;  %v29163_v42 = vmul.f32 %v29103_v62, %v28708_v36  ;;  %v29167_v27 = vmul.f32 %v29103_v62, %v28712_v11 }
0x1110   :  { %v29171_v56 = vmul.f32 %v29103_v62, %v28716_v39  ;;  %v29175_v28 = vmul.f32 %v29103_v62, %v28720_v45  ;;  %v29179_v8 = vmul.f32 %v29103_v62, %v28724_v59  ;;  %v29183_v36 = vmul.f32 %v29103_v62, %v28728_v40 }
0x1111   :  { %v29187_v11 = vmul.f32 %v29103_v62, %v28732_v24  ;;  %v29191_v39 = vmul.f32 %v29103_v62, %v28736_v30  ;;  %v29195_v45 = vmul.f32 %v29103_v62, %v28740_v15  ;;  %v29199_v59 = vmul.f32 %v29103_v62, %v28744_v60 }
0x1112   :  { %v29203_v40 = vmul.f32 %v29103_v62, %v28748_v48  ;;  %v29207_v24 = vmul.f32 %v29103_v62, %v28752_v34  ;;  %v29211_v30 = vmul.f32 %v29103_v62, %v28756_v41  ;;  %v29215_v15 = vmul.f32 %v29103_v62, %v28760_v58 }
0x1113   :  { %v29219_v60 = vmul.f32 %v29103_v62, %v28764_v19  ;;  %v29223_v48 = vmul.f32 %v29103_v62, %v28768_v44  ;;  %v29227_v34 = vmul.f32 %v29103_v62, %v28772_v55  ;;  %v29231_v41 = vmul.f32 %v29103_v62, %v28776_v53 }
0x1114   :  { %v29235_v58 = vmul.f32 %v29103_v62, %v28780_v54  ;;  %v29239_v19 = vmul.f32 %v29103_v62, %v28784_v20  ;;  %v29243_v44 = vmul.f32 %v29103_v62, %v28788_v10  ;;  %v29247_v55 = vmul.f32 %v29103_v62, %v28792_v18 }
0x1115   :  { %v29251_v53 = vmul.f32 %v29103_v62, %v28796_v13  ;;  %v29255_v54 = vmul.f32 %v29103_v62, %v28800_v31  ;;  %v29259_v20 = vmul.f32 %v29103_v62, %v28804_v23  ;;  %v29263_v10 = vmul.f32 %v29103_v62, %v28808_v6 }
0x1116   :  { %v29267_v18 = vmul.f32 %v29103_v62, %v28812_v57  ;;  %v29271_v13 = vmul.f32 %v29103_v62, %v28816_v12  ;;  %v29275_v31 = vmul.f32 %v29103_v62, %v28820_v21  ;;  %v29279_v23 = vmul.f32 %v29103_v62, %v28824_v16 }
0x1117   :  { %v29283_v6 = vmul.f32 %v29103_v62, %v28828_v25  ;;  %v29287_v57 = vmul.f32 %v29103_v62, %v28832_v26  ;;  %v29291_v12 = vmul.f32 %v29103_v62, %v28836_v51  ;;  %v29295_v21 = vmul.f32 %v29103_v62, %v30676_v35 }
0x1118   :  { %v29299_v16 = vmul.f32 %v29103_v62, %v30677_v17  ;;  %v29303_v25 = vmul.f32 %v29103_v62, %v30678_v2  ;;  %v29307_v26 = vmul.f32 %v29103_v62, %v30679_v50  ;;  %v29311_v51 = vmul.f32 %v29103_v62, %v30681_v7  ;;  %v30688_v17 = vld [vmem:[#allocation23_spill] sm:$0xff]  ;;  %v29332_v50 = vld [vmem:[%s29951_s9] ss:$0 sm:$0xff] }
0x1119   :  { %v29315_v49 = vmul.f32 %v29103_v62, %v30683_v46  ;;  %v29319_v38 = vmul.f32 %v29103_v62, %v30662_v63  ;;  %v29323_v35 = vmul.f32 %v29103_v62, %v30686_v43  ;;  %v29327_v2 = vmul.f32 %v29103_v62, %v30688_v17  ;;  %v30690_v7 = vld [vmem:[#allocation44_spill] sm:$0xff] }
0x111a   :  { %30680 = vst [vmem:[#allocation31_spill] sm:$0xff] %v29307_v26  ;;  %30682 = vst [vmem:[#allocation32_spill] sm:$0xff] %v29311_v51  ;;  %v29336_v46 = vmul.f32 %v29103_v62, %v30690_v7  ;;  %v30696_v26 = vld [vmem:[#allocation28_spill] sm:$0xff] }
0x111b   :  { %30684 = vst [vmem:[#allocation33_spill] sm:$0xff] %v29315_v49  ;;  %30685 = vst [vmem:[#allocation34_spill] sm:$0xff] %v29319_v38  ;;  %v30692_v49 = vld [vmem:[#allocation45_spill] sm:$0xff]  ;;  %v29356_v7 = vmul.f32 %v29103_v62, %v30696_v26  ;;  %v29376_v26 = vadd.f32 %v29332_v50, %v29115_v33  ;;  %v29400_v33 = vadd.f32 %v29332_v50, %v29139_v5 }
0x111c   :  { %30687 = vst [vmem:[#allocation35_spill] sm:$0xff] %v29323_v35  ;;  %30689 = vst [vmem:[#allocation36_spill] sm:$0xff] %v29327_v2  ;;  %v29340_v63 = vmul.f32 %v29103_v62, %v30692_v49  ;;  %v30693_v38 = vld [vmem:[#allocation25_spill] sm:$0xff]  ;;  %v30694_v35 = vld [vmem:[#allocation26_spill] sm:$0xff]  ;;  %v29424_v5 = vadd.f32 %v29332_v50, %v29163_v42  ;;  %v29448_v42 = vadd.f32 %v29332_v50, %v29187_v11 }
0x111d   :  { %30691 = vst [vmem:[#allocation37_spill] sm:$0xff] %v29336_v46  ;;  %v29344_v43 = vmul.f32 %v29103_v62, %v30693_v38  ;;  %v29348_v17 = vmul.f32 %v29103_v62, %v30694_v35  ;;  %v30695_v2 = vld [vmem:[#allocation27_spill] sm:$0xff]  ;;  %v30697_v46 = vld [vmem:[#allocation29_spill] sm:$0xff]  ;;  %v29364_v38 = vmul.f32 %v29103_v62, %v30669_v22  ;;  %v29368_v35 = vadd.f32 %v29332_v50, %v29107_v1 }
0x111e   :  { %v29352_v51 = vmul.f32 %v29103_v62, %v30695_v2  ;;  %v29360_v49 = vmul.f32 %v29103_v62, %v30697_v46  ;;  %v29372_v2 = vadd.f32 %v29332_v50, %v29111_v9  ;;  %v29380_v46 = vadd.f32 %v29332_v50, %v29119_v29 }
0x111f   :  { %v29384_v22 = vadd.f32 %v29332_v50, %v29123_v14  ;;  %v29388_v62 = vadd.f32 %v29332_v50, %v29127_v61  ;;  %v29392_v1 = vadd.f32 %v29332_v50, %v29131_v3  ;;  %v29396_v9 = vadd.f32 %v29332_v50, %v29135_v32 }
0x1120   :  { %v29404_v29 = vadd.f32 %v29332_v50, %v29143_v4  ;;  %v29408_v14 = vadd.f32 %v29332_v50, %v29147_v47  ;;  %v29412_v61 = vadd.f32 %v29332_v50, %v29151_v0  ;;  %v29416_v3 = vadd.f32 %v29332_v50, %v29155_v52 }
0x1121   :  { %v29420_v32 = vadd.f32 %v29332_v50, %v29159_v37  ;;  %v29428_v4 = vadd.f32 %v29332_v50, %v29167_v27  ;;  %v29432_v47 = vadd.f32 %v29332_v50, %v29171_v56  ;;  %v29436_v0 = vadd.f32 %v29332_v50, %v29175_v28 }
0x1122   :  { %v29440_v52 = vadd.f32 %v29332_v50, %v29179_v8  ;;  %v29444_v37 = vadd.f32 %v29332_v50, %v29183_v36  ;;  %v29452_v27 = vadd.f32 %v29332_v50, %v29191_v39  ;;  %v29456_v56 = vadd.f32 %v29332_v50, %v29195_v45 }
0x1123   :  { %v29460_v28 = vadd.f32 %v29332_v50, %v29199_v59  ;;  %v29464_v8 = vadd.f32 %v29332_v50, %v29203_v40  ;;  %v29468_v36 = vadd.f32 %v29332_v50, %v29207_v24  ;;  %v29472_v11 = vadd.f32 %v29332_v50, %v29211_v30 }
0x1124   :  { %v29476_v39 = vadd.f32 %v29332_v50, %v29215_v15  ;;  %v29480_v45 = vadd.f32 %v29332_v50, %v29219_v60  ;;  %v29484_v59 = vadd.f32 %v29332_v50, %v29223_v48  ;;  %v29488_v40 = vadd.f32 %v29332_v50, %v29227_v34 }
0x1125   :  { %v29492_v24 = vadd.f32 %v29332_v50, %v29231_v41  ;;  %v29496_v30 = vadd.f32 %v29332_v50, %v29235_v58  ;;  %v29500_v15 = vadd.f32 %v29332_v50, %v29239_v19  ;;  %v29504_v60 = vadd.f32 %v29332_v50, %v29243_v44 }
0x1126   :  { %v29508_v48 = vadd.f32 %v29332_v50, %v29247_v55  ;;  %v29512_v34 = vadd.f32 %v29332_v50, %v29251_v53  ;;  %v29516_v41 = vadd.f32 %v29332_v50, %v29255_v54  ;;  %v29520_v58 = vadd.f32 %v29332_v50, %v29259_v20 }
0x1127   :  { %v29524_v19 = vadd.f32 %v29332_v50, %v29263_v10  ;;  %v29528_v44 = vadd.f32 %v29332_v50, %v29267_v18  ;;  %v29532_v55 = vadd.f32 %v29332_v50, %v29271_v13  ;;  %v29536_v53 = vadd.f32 %v29332_v50, %v29275_v31 }
0x1128   :  { %v29540_v54 = vadd.f32 %v29332_v50, %v29279_v23  ;;  %v29544_v20 = vadd.f32 %v29332_v50, %v29283_v6  ;;  %v29548_v10 = vadd.f32 %v29332_v50, %v29287_v57  ;;  %v29552_v18 = vadd.f32 %v29332_v50, %v29291_v12  ;;  %v30703_v6 = vld [vmem:[#allocation31_spill] sm:$0xff] }
0x1129   :  { %v29556_v13 = vadd.f32 %v29332_v50, %v29295_v21  ;;  %v29560_v31 = vadd.f32 %v29332_v50, %v29299_v16  ;;  %v29564_v23 = vadd.f32 %v29332_v50, %v29303_v25  ;;  %v29568_v57 = vadd.f32 %v29332_v50, %v30703_v6 }
0x112a   :  { %30698 = vst [vmem:[#allocation38_spill] sm:$0xff] %v29548_v10  ;;  %30699 = vst [vmem:[#allocation39_spill] sm:$0xff] %v29552_v18  ;;  %v30705_v10 = vld [vmem:[#allocation32_spill] sm:$0xff]  ;;  %v30706_v18 = vld [vmem:[#allocation33_spill] sm:$0xff] }
0x112b   :  { %30700 = vst [vmem:[#allocation40_spill] sm:$0xff] %v29556_v13  ;;  %30701 = vst [vmem:[#allocation41_spill] sm:$0xff] %v29560_v31  ;;  %v29572_v12 = vadd.f32 %v29332_v50, %v30705_v10  ;;  %v29576_v21 = vadd.f32 %v29332_v50, %v30706_v18  ;;  %v30707_v13 = vld [vmem:[#allocation34_spill] sm:$0xff]  ;;  %v30708_v31 = vld [vmem:[#allocation35_spill] sm:$0xff]  ;;  %v29596_v18 = vadd.f32 %v29332_v50, %v29340_v63 }
0x112c   :  { %30702 = vst [vmem:[#allocation42_spill] sm:$0xff] %v29564_v23  ;;  %30704 = vst [vmem:[#allocation43_spill] sm:$0xff] %v29568_v57  ;;  %v29580_v16 = vadd.f32 %v29332_v50, %v30707_v13  ;;  %v29584_v25 = vadd.f32 %v29332_v50, %v30708_v31  ;;  %v30709_v23 = vld [vmem:[#allocation36_spill] sm:$0xff]  ;;  %v30710_v57 = vld [vmem:[#allocation37_spill] sm:$0xff]  ;;  %v29600_v13 = vadd.f32 %v29332_v50, %v29344_v43 }
0x112d   :  { %v29588_v6 = vadd.f32 %v29332_v50, %v30709_v23  ;;  %v29592_v10 = vadd.f32 %v29332_v50, %v30710_v57  ;;  %v29604_v31 = vadd.f32 %v29332_v50, %v29348_v17  ;;  %v29608_v23 = vadd.f32 %v29332_v50, %v29352_v51 }
0x112e   :  { %30711 = vst [vmem:[#allocation46_spill] sm:$0xff] %v29600_v13  ;;  %v29612_v57 = vadd.f32 %v29332_v50, %v29356_v7  ;;  %v29616_v63 = vadd.f32 %v29332_v50, %v29360_v49  ;;  %v29620_v43 = vadd.f32 %v29332_v50, %v29364_v38  ;;  %v17125_v13 = vmax.f32 %v29368_v35, 0.0 }
0x112f   :  { %30712 = vst [vmem:[#allocation47_spill] sm:$0xff] %v29604_v31  ;;  %30713 = vst [vmem:[#allocation48_spill] sm:$0xff] %v29608_v23  ;;  %v17126_v17 = vmax.f32 %v29372_v2, 0.0  ;;  %v17127_v31 = vmax.f32 %v29376_v26, 0.0  ;;  %v17128_v51 = vmax.f32 %v29380_v46, 0.0  ;;  %v17129_v23 = vmax.f32 %v29384_v22, 0.0 }
0x1130   :  { %30714 = vst [vmem:[#allocation49_spill] sm:$0xff] %v29612_v57  ;;  %30715 = vst [vmem:[#allocation50_spill] sm:$0xff] %v29616_v63  ;;  %v17130_v7 = vmax.f32 %v29388_v62, 0.0  ;;  %v17131_v57 = vmax.f32 %v29392_v1, 0.0  ;;  %v17132_v49 = vmax.f32 %v29396_v9, 0.0  ;;  %v17133_v63 = vmax.f32 %v29400_v33, 0.0 }
0x1131   :  { %v17134_v50 = vmax.f32 %v29404_v29, 0.0  ;;  %v17135_v38 = vmax.f32 %v29408_v14, 0.0  ;;  %v17136_v35 = vmax.f32 %v29412_v61, 0.0  ;;  %17189 = vst.msk [vmem:[%s29952_s10] sm:$0xff] %vm116_vm2, %v17125_v13  ;;  %17190 = vst.msk [vmem:[%s29952_s10 + $0x8] sm:$0xff] %vm116_vm2, %v17126_v17  ;;  %v17137_v2 = vmax.f32 %v29416_v3, 0.0 }
0x1132   :  { %17191 = vst.msk [vmem:[%s29952_s10 + $0x10] sm:$0xff] %vm116_vm2, %v17127_v31  ;;  %17192 = vst.msk [vmem:[%s29952_s10 + $0x18] sm:$0xff] %vm116_vm2, %v17128_v51  ;;  %v17138_v26 = vmax.f32 %v29420_v32, 0.0  ;;  %v17139_v46 = vmax.f32 %v29424_v5, 0.0  ;;  %v17140_v22 = vmax.f32 %v29428_v4, 0.0  ;;  %v17141_v62 = vmax.f32 %v29432_v47, 0.0 }
0x1133   :  { %17193 = vst.msk [vmem:[%s29952_s10 + $0x20] sm:$0xff] %vm116_vm2, %v17129_v23  ;;  %17194 = vst.msk [vmem:[%s29952_s10 + $0x28] sm:$0xff] %vm116_vm2, %v17130_v7  ;;  %v17142_v1 = vmax.f32 %v29436_v0, 0.0  ;;  %v17143_v9 = vmax.f32 %v29440_v52, 0.0  ;;  %v17144_v33 = vmax.f32 %v29444_v37, 0.0  ;;  %v17145_v29 = vmax.f32 %v29448_v42, 0.0 }
0x1134   :  { %17195 = vst.msk [vmem:[%s29952_s10 + $0x30] sm:$0xff] %vm116_vm2, %v17131_v57  ;;  %17196 = vst.msk [vmem:[%s29952_s10 + $0x38] sm:$0xff] %vm116_vm2, %v17132_v49  ;;  %v17146_v14 = vmax.f32 %v29452_v27, 0.0  ;;  %v17147_v61 = vmax.f32 %v29456_v56, 0.0  ;;  %v17148_v3 = vmax.f32 %v29460_v28, 0.0  ;;  %v17149_v32 = vmax.f32 %v29464_v8, 0.0 }
0x1135   :  { %17197 = vst.msk [vmem:[%s29952_s10 + $0x40] sm:$0xff] %vm116_vm2, %v17133_v63  ;;  %17198 = vst.msk [vmem:[%s29952_s10 + $0x48] sm:$0xff] %vm116_vm2, %v17134_v50  ;;  %v17150_v5 = vmax.f32 %v29468_v36, 0.0  ;;  %v17151_v4 = vmax.f32 %v29472_v11, 0.0  ;;  %v17152_v47 = vmax.f32 %v29476_v39, 0.0  ;;  %v17153_v0 = vmax.f32 %v29480_v45, 0.0 }
0x1136   :  { %17199 = vst.msk [vmem:[%s29952_s10 + $0x50] sm:$0xff] %vm116_vm2, %v17135_v38  ;;  %17200 = vst.msk [vmem:[%s29952_s10 + $0x58] sm:$0xff] %vm116_vm2, %v17136_v35  ;;  %v17154_v52 = vmax.f32 %v29484_v59, 0.0  ;;  %v17155_v37 = vmax.f32 %v29488_v40, 0.0  ;;  %v17156_v42 = vmax.f32 %v29492_v24, 0.0  ;;  %v17157_v27 = vmax.f32 %v29496_v30, 0.0 }
0x1137   :  { %17201 = vst.msk [vmem:[%s29952_s10 + $0x60] sm:$0xff] %vm116_vm2, %v17137_v2  ;;  %17202 = vst.msk [vmem:[%s29952_s10 + $0x68] sm:$0xff] %vm116_vm2, %v17138_v26  ;;  %v17158_v56 = vmax.f32 %v29500_v15, 0.0  ;;  %v17159_v28 = vmax.f32 %v29504_v60, 0.0  ;;  %v17160_v8 = vmax.f32 %v29508_v48, 0.0  ;;  %v17161_v36 = vmax.f32 %v29512_v34, 0.0 }
0x1138   :  { %17203 = vst.msk [vmem:[%s29952_s10 + $0x70] sm:$0xff] %vm116_vm2, %v17139_v46  ;;  %17204 = vst.msk [vmem:[%s29952_s10 + $0x78] sm:$0xff] %vm116_vm2, %v17140_v22  ;;  %v17162_v11 = vmax.f32 %v29516_v41, 0.0  ;;  %v17163_v39 = vmax.f32 %v29520_v58, 0.0  ;;  %v17164_v45 = vmax.f32 %v29524_v19, 0.0  ;;  %v17165_v59 = vmax.f32 %v29528_v44, 0.0 }
0x1139   :  { %17205 = vst.msk [vmem:[%s29952_s10 + $0x80] sm:$0xff] %vm116_vm2, %v17141_v62  ;;  %17206 = vst.msk [vmem:[%s29952_s10 + $0x88] sm:$0xff] %vm116_vm2, %v17142_v1  ;;  %v17166_v40 = vmax.f32 %v29532_v55, 0.0  ;;  %v17167_v24 = vmax.f32 %v29536_v53, 0.0  ;;  %v17168_v30 = vmax.f32 %v29540_v54, 0.0  ;;  %v17169_v15 = vmax.f32 %v29544_v20, 0.0 }
0x113a   :  { %17207 = vst.msk [vmem:[%s29952_s10 + $0x90] sm:$0xff] %vm116_vm2, %v17143_v9  ;;  %17208 = vst.msk [vmem:[%s29952_s10 + $0x98] sm:$0xff] %vm116_vm2, %v17144_v33  ;;  %v30716_v60 = vld [vmem:[#allocation38_spill] sm:$0xff]  ;;  %v30717_v34 = vld [vmem:[#allocation39_spill] sm:$0xff]  ;;  %v17176_v31 = vmax.f32 %v29572_v12, 0.0  ;;  %v17177_v12 = vmax.f32 %v29576_v21, 0.0 }
0x113b   :  { %17209 = vst.msk [vmem:[%s29952_s10 + $0xa0] sm:$0xff] %vm116_vm2, %v17145_v29  ;;  %17210 = vst.msk [vmem:[%s29952_s10 + $0xa8] sm:$0xff] %vm116_vm2, %v17146_v14  ;;  %v17170_v48 = vmax.f32 %v30716_v60, 0.0  ;;  %v17171_v41 = vmax.f32 %v30717_v34, 0.0  ;;  %v30718_v58 = vld [vmem:[#allocation40_spill] sm:$0xff]  ;;  %v30719_v44 = vld [vmem:[#allocation41_spill] sm:$0xff] }
0x113c   :  { %17211 = vst.msk [vmem:[%s29952_s10 + $0xb0] sm:$0xff] %vm116_vm2, %v17147_v61  ;;  %17212 = vst.msk [vmem:[%s29952_s10 + $0xb8] sm:$0xff] %vm116_vm2, %v17148_v3  ;;  %v17172_v19 = vmax.f32 %v30718_v58, 0.0  ;;  %v17173_v55 = vmax.f32 %v30719_v44, 0.0  ;;  %v30720_v53 = vld [vmem:[#allocation42_spill] sm:$0xff]  ;;  %v30721_v20 = vld [vmem:[#allocation43_spill] sm:$0xff] }
0x113d   :  { %17213 = vst.msk [vmem:[%s29952_s10 + $0xc0] sm:$0xff] %vm116_vm2, %v17149_v32  ;;  %17214 = vst.msk [vmem:[%s29952_s10 + $0xc8] sm:$0xff] %vm116_vm2, %v17150_v5  ;;  %v17174_v54 = vmax.f32 %v30720_v53, 0.0  ;;  %v17175_v13 = vmax.f32 %v30721_v20, 0.0  ;;  %v17178_v23 = vmax.f32 %v29580_v16, 0.0  ;;  %v17179_v57 = vmax.f32 %v29584_v25, 0.0 }
0x113e   :  { %17215 = vst.msk [vmem:[%s29952_s10 + $0xd0] sm:$0xff] %vm116_vm2, %v17151_v4  ;;  %17216 = vst.msk [vmem:[%s29952_s10 + $0xd8] sm:$0xff] %vm116_vm2, %v17152_v47  ;;  %v17180_v63 = vmax.f32 %v29588_v6, 0.0  ;;  %v17181_v21 = vmax.f32 %v29592_v10, 0.0  ;;  %v17182_v16 = vmax.f32 %v29596_v18, 0.0  ;;  %v30722_v25 = vld [vmem:[#allocation46_spill] sm:$0xff] }
0x113f   :  { %17217 = vst.msk [vmem:[%s29952_s10 + $0xe0] sm:$0xff] %vm116_vm2, %v17153_v0  ;;  %17218 = vst.msk [vmem:[%s29952_s10 + $0xe8] sm:$0xff] %vm116_vm2, %v17154_v52  ;;  %v17183_v6 = vmax.f32 %v30722_v25, 0.0  ;;  %v30723_v17 = vld [vmem:[#allocation47_spill] sm:$0xff]  ;;  %v30724_v10 = vld [vmem:[#allocation48_spill] sm:$0xff]  ;;  %v17188_v35 = vmax.f32 %v29620_v43, 0.0 }
0x1140   :  { %17219 = vst.msk [vmem:[%s29952_s10 + $0xf0] sm:$0xff] %vm116_vm2, %v17155_v37  ;;  %17220 = vst.msk [vmem:[%s29952_s10 + $0xf8] sm:$0xff] %vm116_vm2, %v17156_v42  ;;  %v17184_v51 = vmax.f32 %v30723_v17, 0.0  ;;  %v17185_v18 = vmax.f32 %v30724_v10, 0.0  ;;  %v30725_v7 = vld [vmem:[#allocation49_spill] sm:$0xff]  ;;  %v30726_v50 = vld [vmem:[#allocation50_spill] sm:$0xff] }
0x1141   :  { %17221 = vst.msk [vmem:[%s29952_s10 + $0x100] sm:$0xff] %vm116_vm2, %v17157_v27  ;;  %17222 = vst.msk [vmem:[%s29952_s10 + $0x108] sm:$0xff] %vm116_vm2, %v17158_v56  ;;  %v17186_v49 = vmax.f32 %v30725_v7, 0.0  ;;  %v17187_v38 = vmax.f32 %v30726_v50, 0.0 }
0x1142   :  { %17223 = vst.msk [vmem:[%s29952_s10 + $0x110] sm:$0xff] %vm116_vm2, %v17159_v28  ;;  %17224 = vst.msk [vmem:[%s29952_s10 + $0x118] sm:$0xff] %vm116_vm2, %v17160_v8 }
0x1143   :  { %17225 = vst.msk [vmem:[%s29952_s10 + $0x120] sm:$0xff] %vm116_vm2, %v17161_v36  ;;  %17226 = vst.msk [vmem:[%s29952_s10 + $0x128] sm:$0xff] %vm116_vm2, %v17162_v11 }
0x1144   :  { %17227 = vst.msk [vmem:[%s29952_s10 + $0x130] sm:$0xff] %vm116_vm2, %v17163_v39  ;;  %17228 = vst.msk [vmem:[%s29952_s10 + $0x138] sm:$0xff] %vm116_vm2, %v17164_v45 }
0x1145   :  { %17229 = vst.msk [vmem:[%s29952_s10 + $0x140] sm:$0xff] %vm116_vm2, %v17165_v59  ;;  %17230 = vst.msk [vmem:[%s29952_s10 + $0x148] sm:$0xff] %vm116_vm2, %v17166_v40 }
0x1146   :  { %17231 = vst.msk [vmem:[%s29952_s10 + $0x150] sm:$0xff] %vm116_vm2, %v17167_v24  ;;  %17232 = vst.msk [vmem:[%s29952_s10 + $0x158] sm:$0xff] %vm116_vm2, %v17168_v30 }
0x1147   :  { %17233 = vst.msk [vmem:[%s29952_s10 + $0x160] sm:$0xff] %vm116_vm2, %v17169_v15  ;;  %17234 = vst.msk [vmem:[%s29952_s10 + $0x168] sm:$0xff] %vm116_vm2, %v17170_v48 }
0x1148   :  { %17235 = vst.msk [vmem:[%s29952_s10 + $0x170] sm:$0xff] %vm116_vm2, %v17171_v41  ;;  %17236 = vst.msk [vmem:[%s29952_s10 + $0x178] sm:$0xff] %vm116_vm2, %v17172_v19 }
0x1149   :  { %17237 = vst.msk [vmem:[%s29952_s10 + $0x180] sm:$0xff] %vm116_vm2, %v17173_v55  ;;  %17238 = vst.msk [vmem:[%s29952_s10 + $0x188] sm:$0xff] %vm116_vm2, %v17174_v54 }
0x114a   :  { %17239 = vst.msk [vmem:[%s29952_s10 + $0x190] sm:$0xff] %vm116_vm2, %v17175_v13  ;;  %17240 = vst.msk [vmem:[%s29952_s10 + $0x198] sm:$0xff] %vm116_vm2, %v17176_v31 }
0x114b   :  { %17241 = vst.msk [vmem:[%s29952_s10 + $0x1a0] sm:$0xff] %vm116_vm2, %v17177_v12  ;;  %17242 = vst.msk [vmem:[%s29952_s10 + $0x1a8] sm:$0xff] %vm116_vm2, %v17178_v23 }
0x114c   :  { %17243 = vst.msk [vmem:[%s29952_s10 + $0x1b0] sm:$0xff] %vm116_vm2, %v17179_v57  ;;  %17244 = vst.msk [vmem:[%s29952_s10 + $0x1b8] sm:$0xff] %vm116_vm2, %v17180_v63 }
0x114d   :  { %17245 = vst.msk [vmem:[%s29952_s10 + $0x1c0] sm:$0xff] %vm116_vm2, %v17181_v21  ;;  %17246 = vst.msk [vmem:[%s29952_s10 + $0x1c8] sm:$0xff] %vm116_vm2, %v17182_v16 }
0x114e   :  { %17247 = vst.msk [vmem:[%s29952_s10 + $0x1d0] sm:$0xff] %vm116_vm2, %v17183_v6  ;;  %17248 = vst.msk [vmem:[%s29952_s10 + $0x1d8] sm:$0xff] %vm116_vm2, %v17184_v51 }
0x114f   :  { %17249 = vst.msk [vmem:[%s29952_s10 + $0x1e0] sm:$0xff] %vm116_vm2, %v17185_v18  ;;  %17250 = vst.msk [vmem:[%s29952_s10 + $0x1e8] sm:$0xff] %vm116_vm2, %v17186_v49 }
0x1150   :  { %17251 = vst.msk [vmem:[%s29952_s10 + $0x1f0] sm:$0xff] %vm116_vm2, %v17187_v38  ;;  %17252 = vst.msk [vmem:[%s29952_s10 + $0x1f8] sm:$0xff] %vm116_vm2, %v17188_v35 }

</bundles_post_ra>
